<compile_context>
chip_gen: v7x
topology: tpu7x:2x2x1
jax: 0.10.0
libtpu: 0.0.40
codegen_flags: <defaults>
</compile_context>

<pallas_src>
import functools
import math

import jax
import jax.numpy as jnp
from jax.experimental import pallas as pl
from jax.experimental.pallas import tpu as pltpu


# ----------------------------------------------------------------------------
# Kernel.  Grid = (4,): steps 0..2 = q/k/v projections (one fused-weight
# column tile each); attention runs at the tail of step 2 (hidden under the
# wo tile DMA); step 3 = output projection + LayerNorm + mlp_head.
# ----------------------------------------------------------------------------
def seq_atten_kernel(fc_ref, fs_ref, dc_ref, ds_ref,      # activations (whole, VMEM)
                     w_ref,                               # (C, C) tile of [wq|wk|wv|wo] (bf16)
                     bq_ref, bk_ref, bv_ref, bo_ref,      # (1, C) f32 biases
                     g_ref, b_ref,                        # LayerNorm gamma / beta (1, C)
                     wm_ref, bm_ref,                      # mlp_head Linear (C, O) bf16 / (1, O)
                     out_ref,                             # (B, O) f32
                     xin_sc, qkv_sc, oall_sc,             # VMEM scratch
                     *, n_heads):
    j = pl.program_id(0)
    n_proj = pl.num_programs(0) - 1          # 3 projection steps, then the wo step
    B, S, C = fs_ref.shape
    H = n_heads
    d = C // H
    MKV = B * S                              # kv-token rows; q-token rows follow them

    # ---- step 0: build the fused bf16 token slab [kv tokens ; q tokens] once ----
    @pl.when(j == 0)
    def _():
        kv_rows = (fs_ref[...] + ds_ref[...]).reshape(MKV, C)
        q_rows = (fc_ref[...] + dc_ref[...]).reshape(B, C)
        xin_sc[...] = jnp.concatenate([kv_rows, q_rows],
                                      axis=0).astype(xin_sc.dtype)

    # ---- steps 0..2: projection j (w_ref holds the wq / wk / wv column tile) ----
    @pl.when(j < n_proj)
    def _():
        qkv_sc[j] = jnp.dot(xin_sc[...], w_ref[...],
                            preferred_element_type=jnp.float32)   # f32 accumulate

    # ---- step 2: attention (hidden under the wo tile's DMA) -> o_all scratch ----
    @pl.when(j == n_proj - 1)
    def _():
        q = qkv_sc[0, MKV:, :] + bq_ref[...]                      # (B, C)
        k = (qkv_sc[1, :MKV, :] + bk_ref[...]).reshape(B, S, C)   # (B, S, C)
        v = (qkv_sc[2, :MKV, :] + bv_ref[...]).reshape(B, S, C)

        scale = 1.0 / math.sqrt(d)
        o_parts = []
        for h in range(H):                                        # H is small & static
            q_h = q[:, h * d:(h + 1) * d] * scale                 # (B, d)
            k_h = k[:, :, h * d:(h + 1) * d]                      # (B, S, d)
            v_h = v[:, :, h * d:(h + 1) * d]                      # (B, S, d)

            # query length is 1 -> scores via VPU broadcast-mul + lane reduce
            s_h = jnp.sum(q_h[:, None, :] * k_h, axis=-1)         # (B, S)
            s_h = s_h - jnp.max(s_h, axis=-1, keepdims=True)
            p_h = jnp.exp(s_h)
            p_h = p_h / jnp.sum(p_h, axis=-1, keepdims=True)      # exact; S=8
            o_parts.append(jnp.sum(p_h[:, :, None] * v_h, axis=1))  # (B, d)

        # heads are adjacent, lane-aligned (d multiple of 128): one (B, C) slab
        oall_sc[...] = jnp.concatenate(o_parts, axis=-1).astype(oall_sc.dtype)

    # ---- last step: single output projection (w_ref holds wo) + LN + mlp_head ----
    @pl.when(j == n_proj)
    def _():
        f_o = jnp.dot(oall_sc[...], w_ref[...],
                      preferred_element_type=jnp.float32) + bo_ref[...]   # (B, C)

        # mlp_head: LayerNorm(C) then Linear(C, out_channels), all in f32
        mean = jnp.mean(f_o, axis=-1, keepdims=True)
        var = jnp.mean((f_o - mean) ** 2, axis=-1, keepdims=True)
        x_ln = (f_o - mean) * jax.lax.rsqrt(var + 1e-5)
        x_ln = x_ln * g_ref[...] + b_ref[...]
        out_ref[...] = (jnp.dot(x_ln.astype(wm_ref.dtype), wm_ref[...],
                                preferred_element_type=jnp.float32)
                        + bm_ref[...])


# ----------------------------------------------------------------------------
# One-time parameter preparation (hoisted out of the per-call path):
# fuse wq|wk|wv|wo into a single (C, 4C) bf16 weight and cast wm to bf16.
# Call once and reuse the result for every forward call.
# ----------------------------------------------------------------------------
def prepare_seq_atten_params(params):
    w_all = jnp.concatenate(
        [params['wq'], params['wk'], params['wv'], params['wo']],
        axis=1).astype(jnp.bfloat16)                       # (C, 4C)
    prepped = {
        'w_all': w_all,
        'wm': params['wm'].astype(jnp.bfloat16),           # (C, O)
        'bq': params['bq'], 'bk': params['bk'],
        'bv': params['bv'], 'bo': params['bo'],
        'ln_g': params['ln_g'], 'ln_b': params['ln_b'],
        'bm': params['bm'],
    }
    return jax.tree_util.tree_map(jax.block_until_ready, prepped)


# ----------------------------------------------------------------------------
# Wrapper (expects parameters already prepared by prepare_seq_atten_params)
# ----------------------------------------------------------------------------
def seq_atten(fvec_c, fvec_seq, dis_enc_c, dis_enc_seq, prepped, *, n_heads):
    B, S, C = fvec_seq.shape
    O = prepped['wm'].shape[1]
    assert C % n_heads == 0
    assert prepped['w_all'].shape == (C, 4 * C)

    M = B * (S + 1)
    n_steps = 4                                            # wq, wk, wv, then wo step

    def whole(shape):                                      # whole-array resident block
        return pl.BlockSpec(shape, lambda j: (0,) * len(shape))

    in_specs = [
        whole((B, 1, C)),                                  # fvec_c
        whole((B, S, C)),                                  # fvec_seq
        whole((B, 1, C)),                                  # dis_enc_c
        whole((B, S, C)),                                  # dis_enc_seq
        pl.BlockSpec((C, C), lambda j: (0, j)),            # fused weight tile (pipelined)
        whole((1, C)), whole((1, C)), whole((1, C)), whole((1, C)),  # bq bk bv bo
        whole((1, C)), whole((1, C)),                      # LN gamma / beta
        whole((C, O)), whole((1, O)),                      # wm, bm
    ]
    out_specs = pl.BlockSpec((B, O), lambda j: (0, 0))

    cost = pl.CostEstimate(
        flops=2 * M * C * (3 * C) + 2 * B * C * C + 2 * B * C * O + 4 * B * S * C,
        transcendentals=B * S * n_heads,
        bytes_accessed=(prepped['w_all'].size + prepped['wm'].size) * 2
        + (2 * M * C + 10 * C) * 4,
    )

    grid_spec = pltpu.PrefetchScalarGridSpec(
        num_scalar_prefetch=0,
        grid=(n_steps,),
        in_specs=in_specs,
        out_specs=out_specs,
        scratch_shapes=[
            pltpu.VMEM((M, C), jnp.bfloat16),              # fused bf16 input token slab
            pltpu.VMEM((3, M, C), jnp.float32),            # q / k / v projections (f32)
            pltpu.VMEM((B, C), jnp.bfloat16),              # o_all (attention output)
        ],
    )

    return pl.pallas_call(
        functools.partial(seq_atten_kernel, n_heads=n_heads),
        out_shape=jax.ShapeDtypeStruct((B, O), jnp.float32),
        grid_spec=grid_spec,
        compiler_params=pltpu.CompilerParams(
            dimension_semantics=("arbitrary",),            # sequential: scratch carried
            vmem_limit_bytes=16 * 1024 * 1024),            # ~6 MiB actual footprint
        cost_estimate=cost,
    )(fvec_c, fvec_seq, dis_enc_c, dis_enc_seq, prepped['w_all'],
      prepped['bq'], prepped['bk'], prepped['bv'], prepped['bo'],
      prepped['ln_g'], prepped['ln_b'], prepped['wm'], prepped['bm'])


# ----------------------------------------------------------------------------
# Pure-JAX f32 reference (for a sanity check)
# ----------------------------------------------------------------------------
def seq_atten_ref(fvec_c, fvec_seq, dis_enc_c, dis_enc_seq, params, *, n_heads):
    B, S, C = fvec_seq.shape
    d = C // n_heads
    q_in = (fvec_c + dis_enc_c).reshape(B, C)
    kv_in = (fvec_seq + dis_enc_seq).reshape(B * S, C)
    q = q_in @ params['wq'] + params['bq']
    k = (kv_in @ params['wk'] + params['bk']).reshape(B, S, C)
    v = (kv_in @ params['wv'] + params['bv']).reshape(B, S, C)
    qh = q.reshape(B, n_heads, d)
    kh = k.reshape(B, S, n_heads, d).transpose(0, 2, 1, 3)
    vh = v.reshape(B, S, n_heads, d).transpose(0, 2, 1, 3)
    s = jnp.einsum('bhd,bhkd->bhk', qh, kh) / jnp.sqrt(jnp.float32(d))
    p = jax.nn.softmax(s, axis=-1)
    o = jnp.einsum('bhk,bhkd->bhd', p, vh).reshape(B, C)
    f_o = o @ params['wo'] + params['bo']
    mean = jnp.mean(f_o, axis=-1, keepdims=True)
    var = jnp.mean((f_o - mean) ** 2, axis=-1, keepdims=True)
    x = (f_o - mean) * jax.lax.rsqrt(var + 1e-5) * params['ln_g'] + params['ln_b']
    return x @ params['wm'] + params['bm']


def trunc_normal(key, shape, std=0.02):
    return std * jax.random.truncated_normal(key, -2.0, 2.0, shape, jnp.float32)


if __name__ == "__main__":
    # Small shapes consistent with the module: LayerNorm(1024) fixes C=1024.
    B, S, C = 2, 8, 1024
    N_HEADS = 4
    OUT_CHANNELS = 32

    key = jax.random.PRNGKey(0)
    keys = jax.random.split(key, 10)

    fvec_c = jax.random.normal(keys[0], (B, 1, C), jnp.float32)
    fvec_seq = jax.random.normal(keys[1], (B, S, C), jnp.float32)
    dis_enc_c = jax.random.normal(keys[2], (B, 1, C), jnp.float32)
    dis_enc_seq = jax.random.normal(keys[3], (B, S, C), jnp.float32)

    # Deterministic parameter init mirroring _reset_parameters():
    #   Linear weights: trunc_normal std=0.02, biases 0; LayerNorm: gamma=1, beta=0.
    params = {
        'wq': trunc_normal(keys[4], (C, C)), 'bq': jnp.zeros((1, C), jnp.float32),
        'wk': trunc_normal(keys[5], (C, C)), 'bk': jnp.zeros((1, C), jnp.float32),
        'wv': trunc_normal(keys[6], (C, C)), 'bv': jnp.zeros((1, C), jnp.float32),
        'wo': trunc_normal(keys[7], (C, C)), 'bo': jnp.zeros((1, C), jnp.float32),
        'ln_g': jnp.ones((1, C), jnp.float32), 'ln_b': jnp.zeros((1, C), jnp.float32),
        'wm': trunc_normal(keys[8], (C, OUT_CHANNELS)),
        'bm': jnp.zeros((1, OUT_CHANNELS), jnp.float32),
    }

    # One-time weight prep (fuse + bf16 cast) hoisted out of the forward call.
    prepped = prepare_seq_atten_params(params)

    out = seq_atten(fvec_c, fvec_seq, dis_enc_c, dis_enc_seq, prepped,
                    n_heads=N_HEADS)
    out = jax.block_until_ready(out)

    ref = seq_atten_ref(fvec_c, fvec_seq, dis_enc_c, dis_enc_seq, params,
                        n_heads=N_HEADS)
    assert out.shape == (B, OUT_CHANNELS)
    # Weights are intentionally streamed in bf16 (per the perf review), so the
    # tolerance vs the pure-f32 reference is widened accordingly.
    assert jnp.allclose(out, ref, rtol=5e-2, atol=5e-2), "mismatch vs JAX reference"

    print("KERNEL_OK")
</pallas_src>

<mosaic_0001>
module attributes {stable_mosaic.version = 11 : i64} {
  func.func @seq_atten_kernel(%arg0: i32, %arg1: memref<2x1x1024xf32, #tpu.memory_space<vmem>>, %arg2: memref<2x8x1024xf32, #tpu.memory_space<vmem>>, %arg3: memref<2x1x1024xf32, #tpu.memory_space<vmem>>, %arg4: memref<2x8x1024xf32, #tpu.memory_space<vmem>>, %arg5: memref<1024x1024xbf16, #tpu.memory_space<vmem>>, %arg6: memref<1x1024xf32, #tpu.memory_space<vmem>>, %arg7: memref<1x1024xf32, #tpu.memory_space<vmem>>, %arg8: memref<1x1024xf32, #tpu.memory_space<vmem>>, %arg9: memref<1x1024xf32, #tpu.memory_space<vmem>>, %arg10: memref<1x1024xf32, #tpu.memory_space<vmem>>, %arg11: memref<1x1024xf32, #tpu.memory_space<vmem>>, %arg12: memref<1024x32xbf16, #tpu.memory_space<vmem>>, %arg13: memref<1x32xf32, #tpu.memory_space<vmem>>, %arg14: memref<2x32xf32, #tpu.memory_space<vmem>>, %arg15: memref<18x1024xbf16, #tpu.memory_space<vmem>>, %arg16: memref<3x18x1024xf32, #tpu.memory_space<vmem>>, %arg17: memref<2x1024xbf16, #tpu.memory_space<vmem>>) attributes {dimension_semantics = [#tpu.dimension_semantics<arbitrary>], iteration_bounds = array<i64: 4>, scalar_prefetch = 0 : i64, scratch_operands = 3 : i64, tpu.core_type = #tpu.core_type<tc>, window_params = [{pipeline_mode = #tpu.pipeline_mode<synchronous>, transform_indices = @transform_0, window_bounds = array<i64: 2, 1, 1024>}, {pipeline_mode = #tpu.pipeline_mode<synchronous>, transform_indices = @transform_1, window_bounds = array<i64: 2, 8, 1024>}, {pipeline_mode = #tpu.pipeline_mode<synchronous>, transform_indices = @transform_2, window_bounds = array<i64: 2, 1, 1024>}, {pipeline_mode = #tpu.pipeline_mode<synchronous>, transform_indices = @transform_3, window_bounds = array<i64: 2, 8, 1024>}, {transform_indices = @transform_4, window_bounds = array<i64: 1024, 1024>}, {pipeline_mode = #tpu.pipeline_mode<synchronous>, transform_indices = @transform_5, window_bounds = array<i64: 1, 1024>}, {pipeline_mode = #tpu.pipeline_mode<synchronous>, transform_indices = @transform_6, window_bounds = array<i64: 1, 1024>}, {pipeline_mode = #tpu.pipeline_mode<synchronous>, transform_indices = @transform_7, window_bounds = array<i64: 1, 1024>}, {pipeline_mode = #tpu.pipeline_mode<synchronous>, transform_indices = @transform_8, window_bounds = array<i64: 1, 1024>}, {pipeline_mode = #tpu.pipeline_mode<synchronous>, transform_indices = @transform_9, window_bounds = array<i64: 1, 1024>}, {pipeline_mode = #tpu.pipeline_mode<synchronous>, transform_indices = @transform_10, window_bounds = array<i64: 1, 1024>}, {pipeline_mode = #tpu.pipeline_mode<synchronous>, transform_indices = @transform_11, window_bounds = array<i64: 1024, 32>}, {pipeline_mode = #tpu.pipeline_mode<synchronous>, transform_indices = @transform_12, window_bounds = array<i64: 1, 32>}, {pipeline_mode = #tpu.pipeline_mode<synchronous>, transform_indices = @transform_13, window_bounds = array<i64: 2, 32>}]} {
    %c0_i32 = arith.constant 0 : i32
    %0 = arith.cmpi eq, %arg0, %c0_i32 : i32
    %1 = arith.extui %0 : i1 to i32
    %c0_i32_0 = arith.constant 0 : i32
    %2 = arith.cmpi ne, %1, %c0_i32_0 : i32
    scf.if %2 {
      %c0 = arith.constant 0 : index
      %c0_5 = arith.constant 0 : index
      %c0_6 = arith.constant 0 : index
      %12 = vector.load %arg2[%c0, %c0_5, %c0_6] : memref<2x8x1024xf32, #tpu.memory_space<vmem>>, vector<2x8x1024xf32>
      %c0_7 = arith.constant 0 : index
      %c0_8 = arith.constant 0 : index
      %c0_9 = arith.constant 0 : index
      %13 = vector.load %arg4[%c0_7, %c0_8, %c0_9] : memref<2x8x1024xf32, #tpu.memory_space<vmem>>, vector<2x8x1024xf32>
      %14 = arith.addf %12, %13 : vector<2x8x1024xf32>
      %15 = vector.shape_cast %14 : vector<2x8x1024xf32> to vector<16x1024xf32>
      %c0_10 = arith.constant 0 : index
      %c0_11 = arith.constant 0 : index
      %c0_12 = arith.constant 0 : index
      %16 = vector.load %arg1[%c0_10, %c0_11, %c0_12] : memref<2x1x1024xf32, #tpu.memory_space<vmem>>, vector<2x1x1024xf32>
      %c0_13 = arith.constant 0 : index
      %c0_14 = arith.constant 0 : index
      %c0_15 = arith.constant 0 : index
      %17 = vector.load %arg3[%c0_13, %c0_14, %c0_15] : memref<2x1x1024xf32, #tpu.memory_space<vmem>>, vector<2x1x1024xf32>
      %18 = arith.addf %16, %17 : vector<2x1x1024xf32>
      %19 = vector.shape_cast %18 : vector<2x1x1024xf32> to vector<2x1024xf32>
      %20 = tpu.concatenate %15, %19 in 0 : vector<16x1024xf32>, vector<2x1024xf32> -> vector<18x1024xf32>
      %21 = arith.truncf %20 : vector<18x1024xf32> to vector<18x1024xbf16>
      %c0_16 = arith.constant 0 : index
      %c0_17 = arith.constant 0 : index
      %22 = vector.load %arg15[%c0_16, %c0_17] : memref<18x1024xbf16, #tpu.memory_space<vmem>>, vector<18x1024xbf16>
      tpu.vector_store %arg15[%c0_16, %c0_17], %21 {strides = array<i32>} : memref<18x1024xbf16, #tpu.memory_space<vmem>>, vector<18x1024xbf16>,
    } else {
    }
    %c3_i32 = arith.constant 3 : i32
    %3 = arith.cmpi slt, %arg0, %c3_i32 : i32
    %4 = arith.extui %3 : i1 to i32
    %c0_i32_1 = arith.constant 0 : i32
    %5 = arith.cmpi ne, %4, %c0_i32_1 : i32
    scf.if %5 {
      %c0 = arith.constant 0 : index
      %c0_5 = arith.constant 0 : index
      %12 = vector.load %arg15[%c0, %c0_5] : memref<18x1024xbf16, #tpu.memory_space<vmem>>, vector<18x1024xbf16>
      %c0_6 = arith.constant 0 : index
      %c0_7 = arith.constant 0 : index
      %13 = vector.load %arg5[%c0_6, %c0_7] : memref<1024x1024xbf16, #tpu.memory_space<vmem>>, vector<1024x1024xbf16>
      %cst = arith.constant dense<0.000000e+00> : vector<18x1024xf32>
      %14 = tpu.matmul %12, %13, %cst {dimension_numbers = #tpu.dot_dimension_numbers<[1], [0], [0], [1], [0, 0, 1, 1], [], []>} : vector<18x1024xbf16>, vector<1024x1024xbf16>, vector<18x1024xf32> -> vector<18x1024xf32>
      %15 = arith.index_cast %arg0 : i32 to index
      %c0_8 = arith.constant 0 : index
      %c0_9 = arith.constant 0 : index
      %16 = vector.load %arg16[%15, %c0_8, %c0_9] : memref<3x18x1024xf32, #tpu.memory_space<vmem>>, vector<1x18x1024xf32>
      %17 = vector.shape_cast %16 : vector<1x18x1024xf32> to vector<18x1024xf32>
      %18 = vector.shape_cast %14 : vector<18x1024xf32> to vector<1x18x1024xf32>
      tpu.vector_store %arg16[%15, %c0_8, %c0_9], %18 {strides = array<i32>} : memref<3x18x1024xf32, #tpu.memory_space<vmem>>, vector<1x18x1024xf32>,
    } else {
    }
    %c2_i32 = arith.constant 2 : i32
    %6 = arith.cmpi eq, %arg0, %c2_i32 : i32
    %7 = arith.extui %6 : i1 to i32
    %c0_i32_2 = arith.constant 0 : i32
    %8 = arith.cmpi ne, %7, %c0_i32_2 : i32
    scf.if %8 {
      %c0 = arith.constant 0 : index
      %c16 = arith.constant 16 : index
      %c0_5 = arith.constant 0 : index
      %12 = vector.load %arg16[%c0, %c16, %c0_5] : memref<3x18x1024xf32, #tpu.memory_space<vmem>>, vector<1x2x1024xf32>
      %13 = vector.shape_cast %12 : vector<1x2x1024xf32> to vector<2x1024xf32>
      %c0_6 = arith.constant 0 : index
      %c0_7 = arith.constant 0 : index
      %14 = vector.load %arg6[%c0_6, %c0_7] : memref<1x1024xf32, #tpu.memory_space<vmem>>, vector<1x1024xf32>
      %15 = vector.broadcast %14 : vector<1x1024xf32> to vector<2x1024xf32>
      %16 = arith.addf %13, %15 : vector<2x1024xf32>
      %c1 = arith.constant 1 : index
      %c0_8 = arith.constant 0 : index
      %c0_9 = arith.constant 0 : index
      %17 = vector.load %arg16[%c1, %c0_8, %c0_9] : memref<3x18x1024xf32, #tpu.memory_space<vmem>>, vector<1x16x1024xf32>
      %18 = vector.shape_cast %17 : vector<1x16x1024xf32> to vector<16x1024xf32>
      %c0_10 = arith.constant 0 : index
      %c0_11 = arith.constant 0 : index
      %19 = vector.load %arg7[%c0_10, %c0_11] : memref<1x1024xf32, #tpu.memory_space<vmem>>, vector<1x1024xf32>
      %20 = vector.broadcast %19 : vector<1x1024xf32> to vector<16x1024xf32>
      %21 = arith.addf %18, %20 : vector<16x1024xf32>
      %22 = vector.shape_cast %21 : vector<16x1024xf32> to vector<2x8x1024xf32>
      %c2 = arith.constant 2 : index
      %c0_12 = arith.constant 0 : index
      %c0_13 = arith.constant 0 : index
      %23 = vector.load %arg16[%c2, %c0_12, %c0_13] : memref<3x18x1024xf32, #tpu.memory_space<vmem>>, vector<1x16x1024xf32>
      %24 = vector.shape_cast %23 : vector<1x16x1024xf32> to vector<16x1024xf32>
      %c0_14 = arith.constant 0 : index
      %c0_15 = arith.constant 0 : index
      %25 = vector.load %arg8[%c0_14, %c0_15] : memref<1x1024xf32, #tpu.memory_space<vmem>>, vector<1x1024xf32>
      %26 = vector.broadcast %25 : vector<1x1024xf32> to vector<16x1024xf32>
      %27 = arith.addf %24, %26 : vector<16x1024xf32>
      %28 = vector.shape_cast %27 : vector<16x1024xf32> to vector<2x8x1024xf32>
      %29 = vector.extract_strided_slice %16 {offsets = [0, 0], sizes = [2, 256], strides = [1, 1]} : vector<2x1024xf32> to vector<2x256xf32>
      %cst = arith.constant 6.250000e-02 : f32
      %30 = vector.broadcast %cst : f32 to vector<2x256xf32>
      %31 = arith.mulf %29, %30 : vector<2x256xf32>
      %32 = vector.extract_strided_slice %22 {offsets = [0, 0, 0], sizes = [2, 8, 256], strides = [1, 1, 1]} : vector<2x8x1024xf32> to vector<2x8x256xf32>
      %33 = vector.extract_strided_slice %28 {offsets = [0, 0, 0], sizes = [2, 8, 256], strides = [1, 1, 1]} : vector<2x8x1024xf32> to vector<2x8x256xf32>
      %34 = vector.shape_cast %31 : vector<2x256xf32> to vector<2x1x256xf32>
      %35 = vector.broadcast %34 : vector<2x1x256xf32> to vector<2x8x256xf32>
      %36 = arith.mulf %35, %32 : vector<2x8x256xf32>
      %cst_16 = arith.constant dense<0.000000e+00> : vector<2x8xf32>
      %37 = vector.multi_reduction <add>, %36, %cst_16 [2] : vector<2x8x256xf32> to vector<2x8xf32>
      %cst_17 = arith.constant dense<0xFF800000> : vector<2xf32>
      %38 = vector.multi_reduction <maximumf>, %37, %cst_17 [1] : vector<2x8xf32> to vector<2xf32>
      %39 = vector.shape_cast %38 : vector<2xf32> to vector<2x1xf32>
      %40 = vector.broadcast %39 : vector<2x1xf32> to vector<2x8xf32>
      %41 = arith.subf %37, %40 : vector<2x8xf32>
      %42 = math.exp %41 : vector<2x8xf32>
      %cst_18 = arith.constant dense<0.000000e+00> : vector<2xf32>
      %43 = vector.multi_reduction <add>, %42, %cst_18 [1] : vector<2x8xf32> to vector<2xf32>
      %44 = vector.shape_cast %43 : vector<2xf32> to vector<2x1xf32>
      %45 = vector.broadcast %44 : vector<2x1xf32> to vector<2x8xf32>
      %46 = arith.divf %42, %45 : vector<2x8xf32>
      %47 = vector.shape_cast %46 : vector<2x8xf32> to vector<2x8x1xf32>
      %48 = vector.broadcast %47 : vector<2x8x1xf32> to vector<2x8x256xf32>
      %49 = arith.mulf %48, %33 : vector<2x8x256xf32>
      %cst_19 = arith.constant dense<0.000000e+00> : vector<2x256xf32>
      %50 = vector.multi_reduction <add>, %49, %cst_19 [1] : vector<2x8x256xf32> to vector<2x256xf32>
      %51 = vector.extract_strided_slice %16 {offsets = [0, 256], sizes = [2, 256], strides = [1, 1]} : vector<2x1024xf32> to vector<2x256xf32>
      %cst_20 = arith.constant 6.250000e-02 : f32
      %52 = vector.broadcast %cst_20 : f32 to vector<2x256xf32>
      %53 = arith.mulf %51, %52 : vector<2x256xf32>
      %54 = vector.extract_strided_slice %22 {offsets = [0, 0, 256], sizes = [2, 8, 256], strides = [1, 1, 1]} : vector<2x8x1024xf32> to vector<2x8x256xf32>
      %55 = vector.extract_strided_slice %28 {offsets = [0, 0, 256], sizes = [2, 8, 256], strides = [1, 1, 1]} : vector<2x8x1024xf32> to vector<2x8x256xf32>
      %56 = vector.shape_cast %53 : vector<2x256xf32> to vector<2x1x256xf32>
      %57 = vector.broadcast %56 : vector<2x1x256xf32> to vector<2x8x256xf32>
      %58 = arith.mulf %57, %54 : vector<2x8x256xf32>
      %cst_21 = arith.constant dense<0.000000e+00> : vector<2x8xf32>
      %59 = vector.multi_reduction <add>, %58, %cst_21 [2] : vector<2x8x256xf32> to vector<2x8xf32>
      %cst_22 = arith.constant dense<0xFF800000> : vector<2xf32>
      %60 = vector.multi_reduction <maximumf>, %59, %cst_22 [1] : vector<2x8xf32> to vector<2xf32>
      %61 = vector.shape_cast %60 : vector<2xf32> to vector<2x1xf32>
      %62 = vector.broadcast %61 : vector<2x1xf32> to vector<2x8xf32>
      %63 = arith.subf %59, %62 : vector<2x8xf32>
      %64 = math.exp %63 : vector<2x8xf32>
      %cst_23 = arith.constant dense<0.000000e+00> : vector<2xf32>
      %65 = vector.multi_reduction <add>, %64, %cst_23 [1] : vector<2x8xf32> to vector<2xf32>
      %66 = vector.shape_cast %65 : vector<2xf32> to vector<2x1xf32>
      %67 = vector.broadcast %66 : vector<2x1xf32> to vector<2x8xf32>
      %68 = arith.divf %64, %67 : vector<2x8xf32>
      %69 = vector.shape_cast %68 : vector<2x8xf32> to vector<2x8x1xf32>
      %70 = vector.broadcast %69 : vector<2x8x1xf32> to vector<2x8x256xf32>
      %71 = arith.mulf %70, %55 : vector<2x8x256xf32>
      %cst_24 = arith.constant dense<0.000000e+00> : vector<2x256xf32>
      %72 = vector.multi_reduction <add>, %71, %cst_24 [1] : vector<2x8x256xf32> to vector<2x256xf32>
      %73 = vector.extract_strided_slice %16 {offsets = [0, 512], sizes = [2, 256], strides = [1, 1]} : vector<2x1024xf32> to vector<2x256xf32>
      %cst_25 = arith.constant 6.250000e-02 : f32
      %74 = vector.broadcast %cst_25 : f32 to vector<2x256xf32>
      %75 = arith.mulf %73, %74 : vector<2x256xf32>
      %76 = vector.extract_strided_slice %22 {offsets = [0, 0, 512], sizes = [2, 8, 256], strides = [1, 1, 1]} : vector<2x8x1024xf32> to vector<2x8x256xf32>
      %77 = vector.extract_strided_slice %28 {offsets = [0, 0, 512], sizes = [2, 8, 256], strides = [1, 1, 1]} : vector<2x8x1024xf32> to vector<2x8x256xf32>
      %78 = vector.shape_cast %75 : vector<2x256xf32> to vector<2x1x256xf32>
      %79 = vector.broadcast %78 : vector<2x1x256xf32> to vector<2x8x256xf32>
      %80 = arith.mulf %79, %76 : vector<2x8x256xf32>
      %cst_26 = arith.constant dense<0.000000e+00> : vector<2x8xf32>
      %81 = vector.multi_reduction <add>, %80, %cst_26 [2] : vector<2x8x256xf32> to vector<2x8xf32>
      %cst_27 = arith.constant dense<0xFF800000> : vector<2xf32>
      %82 = vector.multi_reduction <maximumf>, %81, %cst_27 [1] : vector<2x8xf32> to vector<2xf32>
      %83 = vector.shape_cast %82 : vector<2xf32> to vector<2x1xf32>
      %84 = vector.broadcast %83 : vector<2x1xf32> to vector<2x8xf32>
      %85 = arith.subf %81, %84 : vector<2x8xf32>
      %86 = math.exp %85 : vector<2x8xf32>
      %cst_28 = arith.constant dense<0.000000e+00> : vector<2xf32>
      %87 = vector.multi_reduction <add>, %86, %cst_28 [1] : vector<2x8xf32> to vector<2xf32>
      %88 = vector.shape_cast %87 : vector<2xf32> to vector<2x1xf32>
      %89 = vector.broadcast %88 : vector<2x1xf32> to vector<2x8xf32>
      %90 = arith.divf %86, %89 : vector<2x8xf32>
      %91 = vector.shape_cast %90 : vector<2x8xf32> to vector<2x8x1xf32>
      %92 = vector.broadcast %91 : vector<2x8x1xf32> to vector<2x8x256xf32>
      %93 = arith.mulf %92, %77 : vector<2x8x256xf32>
      %cst_29 = arith.constant dense<0.000000e+00> : vector<2x256xf32>
      %94 = vector.multi_reduction <add>, %93, %cst_29 [1] : vector<2x8x256xf32> to vector<2x256xf32>
      %95 = vector.extract_strided_slice %16 {offsets = [0, 768], sizes = [2, 256], strides = [1, 1]} : vector<2x1024xf32> to vector<2x256xf32>
      %cst_30 = arith.constant 6.250000e-02 : f32
      %96 = vector.broadcast %cst_30 : f32 to vector<2x256xf32>
      %97 = arith.mulf %95, %96 : vector<2x256xf32>
      %98 = vector.extract_strided_slice %22 {offsets = [0, 0, 768], sizes = [2, 8, 256], strides = [1, 1, 1]} : vector<2x8x1024xf32> to vector<2x8x256xf32>
      %99 = vector.extract_strided_slice %28 {offsets = [0, 0, 768], sizes = [2, 8, 256], strides = [1, 1, 1]} : vector<2x8x1024xf32> to vector<2x8x256xf32>
      %100 = vector.shape_cast %97 : vector<2x256xf32> to vector<2x1x256xf32>
      %101 = vector.broadcast %100 : vector<2x1x256xf32> to vector<2x8x256xf32>
      %102 = arith.mulf %101, %98 : vector<2x8x256xf32>
      %cst_31 = arith.constant dense<0.000000e+00> : vector<2x8xf32>
      %103 = vector.multi_reduction <add>, %102, %cst_31 [2] : vector<2x8x256xf32> to vector<2x8xf32>
      %cst_32 = arith.constant dense<0xFF800000> : vector<2xf32>
      %104 = vector.multi_reduction <maximumf>, %103, %cst_32 [1] : vector<2x8xf32> to vector<2xf32>
      %105 = vector.shape_cast %104 : vector<2xf32> to vector<2x1xf32>
      %106 = vector.broadcast %105 : vector<2x1xf32> to vector<2x8xf32>
      %107 = arith.subf %103, %106 : vector<2x8xf32>
      %108 = math.exp %107 : vector<2x8xf32>
      %cst_33 = arith.constant dense<0.000000e+00> : vector<2xf32>
      %109 = vector.multi_reduction <add>, %108, %cst_33 [1] : vector<2x8xf32> to vector<2xf32>
      %110 = vector.shape_cast %109 : vector<2xf32> to vector<2x1xf32>
      %111 = vector.broadcast %110 : vector<2x1xf32> to vector<2x8xf32>
      %112 = arith.divf %108, %111 : vector<2x8xf32>
      %113 = vector.shape_cast %112 : vector<2x8xf32> to vector<2x8x1xf32>
      %114 = vector.broadcast %113 : vector<2x8x1xf32> to vector<2x8x256xf32>
      %115 = arith.mulf %114, %99 : vector<2x8x256xf32>
      %cst_34 = arith.constant dense<0.000000e+00> : vector<2x256xf32>
      %116 = vector.multi_reduction <add>, %115, %cst_34 [1] : vector<2x8x256xf32> to vector<2x256xf32>
      %117 = tpu.concatenate %50, %72, %94, %116 in 1 : vector<2x256xf32>, vector<2x256xf32>, vector<2x256xf32>, vector<2x256xf32> -> vector<2x1024xf32>
      %118 = arith.truncf %117 : vector<2x1024xf32> to vector<2x1024xbf16>
      %c0_35 = arith.constant 0 : index
      %c0_36 = arith.constant 0 : index
      %119 = vector.load %arg17[%c0_35, %c0_36] : memref<2x1024xbf16, #tpu.memory_space<vmem>>, vector<2x1024xbf16>
      tpu.vector_store %arg17[%c0_35, %c0_36], %118 {strides = array<i32>} : memref<2x1024xbf16, #tpu.memory_space<vmem>>, vector<2x1024xbf16>,
    } else {
    }
    %c3_i32_3 = arith.constant 3 : i32
    %9 = arith.cmpi eq, %arg0, %c3_i32_3 : i32
    %10 = arith.extui %9 : i1 to i32
    %c0_i32_4 = arith.constant 0 : i32
    %11 = arith.cmpi ne, %10, %c0_i32_4 : i32
    scf.if %11 {
      %c0 = arith.constant 0 : index
      %c0_5 = arith.constant 0 : index
      %12 = vector.load %arg17[%c0, %c0_5] : memref<2x1024xbf16, #tpu.memory_space<vmem>>, vector<2x1024xbf16>
      %c0_6 = arith.constant 0 : index
      %c0_7 = arith.constant 0 : index
      %13 = vector.load %arg5[%c0_6, %c0_7] : memref<1024x1024xbf16, #tpu.memory_space<vmem>>, vector<1024x1024xbf16>
      %cst = arith.constant dense<0.000000e+00> : vector<2x1024xf32>
      %14 = tpu.matmul %12, %13, %cst {dimension_numbers = #tpu.dot_dimension_numbers<[1], [0], [0], [1], [0, 0, 1, 1], [], []>} : vector<2x1024xbf16>, vector<1024x1024xbf16>, vector<2x1024xf32> -> vector<2x1024xf32>
      %c0_8 = arith.constant 0 : index
      %c0_9 = arith.constant 0 : index
      %15 = vector.load %arg9[%c0_8, %c0_9] : memref<1x1024xf32, #tpu.memory_space<vmem>>, vector<1x1024xf32>
      %16 = vector.broadcast %15 : vector<1x1024xf32> to vector<2x1024xf32>
      %17 = arith.addf %14, %16 : vector<2x1024xf32>
      %cst_10 = arith.constant dense<0.000000e+00> : vector<2xf32>
      %18 = vector.multi_reduction <add>, %17, %cst_10 [1] : vector<2x1024xf32> to vector<2xf32>
      %19 = vector.shape_cast %18 : vector<2xf32> to vector<2x1xf32>
      %cst_11 = arith.constant 1.024000e+03 : f32
      %20 = vector.broadcast %cst_11 : f32 to vector<2x1xf32>
      %21 = arith.divf %19, %20 : vector<2x1xf32>
      %22 = vector.broadcast %21 : vector<2x1xf32> to vector<2x1024xf32>
      %23 = arith.subf %17, %22 : vector<2x1024xf32>
      %24 = arith.mulf %23, %23 : vector<2x1024xf32>
      %cst_12 = arith.constant dense<0.000000e+00> : vector<2xf32>
      %25 = vector.multi_reduction <add>, %24, %cst_12 [1] : vector<2x1024xf32> to vector<2xf32>
      %26 = vector.shape_cast %25 : vector<2xf32> to vector<2x1xf32>
      %cst_13 = arith.constant 1.024000e+03 : f32
      %27 = vector.broadcast %cst_13 : f32 to vector<2x1xf32>
      %28 = arith.divf %26, %27 : vector<2x1xf32>
      %29 = vector.broadcast %21 : vector<2x1xf32> to vector<2x1024xf32>
      %30 = arith.subf %17, %29 : vector<2x1024xf32>
      %cst_14 = arith.constant 9.99999974E-6 : f32
      %31 = vector.broadcast %cst_14 : f32 to vector<2x1xf32>
      %32 = arith.addf %28, %31 : vector<2x1xf32>
      %33 = math.rsqrt %32 : vector<2x1xf32>
      %34 = vector.broadcast %33 : vector<2x1xf32> to vector<2x1024xf32>
      %35 = arith.mulf %30, %34 : vector<2x1024xf32>
      %c0_15 = arith.constant 0 : index
      %c0_16 = arith.constant 0 : index
      %36 = vector.load %arg10[%c0_15, %c0_16] : memref<1x1024xf32, #tpu.memory_space<vmem>>, vector<1x1024xf32>
      %37 = vector.broadcast %36 : vector<1x1024xf32> to vector<2x1024xf32>
      %38 = arith.mulf %35, %37 : vector<2x1024xf32>
      %c0_17 = arith.constant 0 : index
      %c0_18 = arith.constant 0 : index
      %39 = vector.load %arg11[%c0_17, %c0_18] : memref<1x1024xf32, #tpu.memory_space<vmem>>, vector<1x1024xf32>
      %40 = vector.broadcast %39 : vector<1x1024xf32> to vector<2x1024xf32>
      %41 = arith.addf %38, %40 : vector<2x1024xf32>
      %42 = arith.truncf %41 : vector<2x1024xf32> to vector<2x1024xbf16>
      %c0_19 = arith.constant 0 : index
      %c0_20 = arith.constant 0 : index
      %43 = vector.load %arg12[%c0_19, %c0_20] : memref<1024x32xbf16, #tpu.memory_space<vmem>>, vector<1024x32xbf16>
      %cst_21 = arith.constant dense<0.000000e+00> : vector<2x32xf32>
      %44 = tpu.matmul %42, %43, %cst_21 {dimension_numbers = #tpu.dot_dimension_numbers<[1], [0], [0], [1], [0, 0, 1, 1], [], []>} : vector<2x1024xbf16>, vector<1024x32xbf16>, vector<2x32xf32> -> vector<2x32xf32>
      %c0_22 = arith.constant 0 : index
      %c0_23 = arith.constant 0 : index
      %45 = vector.load %arg13[%c0_22, %c0_23] : memref<1x32xf32, #tpu.memory_space<vmem>>, vector<1x32xf32>
      %46 = vector.broadcast %45 : vector<1x32xf32> to vector<2x32xf32>
      %47 = arith.addf %44, %46 : vector<2x32xf32>
      %c0_24 = arith.constant 0 : index
      %c0_25 = arith.constant 0 : index
      %48 = vector.load %arg14[%c0_24, %c0_25] : memref<2x32xf32, #tpu.memory_space<vmem>>, vector<2x32xf32>
      tpu.vector_store %arg14[%c0_24, %c0_25], %47 {strides = array<i32>} : memref<2x32xf32, #tpu.memory_space<vmem>>, vector<2x32xf32>,
    } else {
    }
    return
  }
  func.func @transform_0(%arg0: i32) -> (i32, i32, i32) {
    %c0_i32 = arith.constant 0 : i32
    %c0_i32_0 = arith.constant 0 : i32
    %c0_i32_1 = arith.constant 0 : i32
    %c0_i32_2 = arith.constant 0 : i32
    return %c0_i32, %c0_i32_0, %c0_i32_1 : i32, i32, i32
  }
  func.func @transform_1(%arg0: i32) -> (i32, i32, i32) {
    %c0_i32 = arith.constant 0 : i32
    %c0_i32_0 = arith.constant 0 : i32
    %c0_i32_1 = arith.constant 0 : i32
    %c0_i32_2 = arith.constant 0 : i32
    return %c0_i32, %c0_i32_0, %c0_i32_1 : i32, i32, i32
  }
  func.func @transform_2(%arg0: i32) -> (i32, i32, i32) {
    %c0_i32 = arith.constant 0 : i32
    %c0_i32_0 = arith.constant 0 : i32
    %c0_i32_1 = arith.constant 0 : i32
    %c0_i32_2 = arith.constant 0 : i32
    return %c0_i32, %c0_i32_0, %c0_i32_1 : i32, i32, i32
  }
  func.func @transform_3(%arg0: i32) -> (i32, i32, i32) {
    %c0_i32 = arith.constant 0 : i32
    %c0_i32_0 = arith.constant 0 : i32
    %c0_i32_1 = arith.constant 0 : i32
    %c0_i32_2 = arith.constant 0 : i32
    return %c0_i32, %c0_i32_0, %c0_i32_1 : i32, i32, i32
  }
  func.func @transform_4(%arg0: i32) -> (i32, i32) {
    %c0_i32 = arith.constant 0 : i32
    %c0_i32_0 = arith.constant 0 : i32
    return %c0_i32, %arg0 : i32, i32
  }
  func.func @transform_5(%arg0: i32) -> (i32, i32) {
    %c0_i32 = arith.constant 0 : i32
    %c0_i32_0 = arith.constant 0 : i32
    %c0_i32_1 = arith.constant 0 : i32
    return %c0_i32, %c0_i32_0 : i32, i32
  }
  func.func @transform_6(%arg0: i32) -> (i32, i32) {
    %c0_i32 = arith.constant 0 : i32
    %c0_i32_0 = arith.constant 0 : i32
    %c0_i32_1 = arith.constant 0 : i32
    return %c0_i32, %c0_i32_0 : i32, i32
  }
  func.func @transform_7(%arg0: i32) -> (i32, i32) {
    %c0_i32 = arith.constant 0 : i32
    %c0_i32_0 = arith.constant 0 : i32
    %c0_i32_1 = arith.constant 0 : i32
    return %c0_i32, %c0_i32_0 : i32, i32
  }
  func.func @transform_8(%arg0: i32) -> (i32, i32) {
    %c0_i32 = arith.constant 0 : i32
    %c0_i32_0 = arith.constant 0 : i32
    %c0_i32_1 = arith.constant 0 : i32
    return %c0_i32, %c0_i32_0 : i32, i32
  }
  func.func @transform_9(%arg0: i32) -> (i32, i32) {
    %c0_i32 = arith.constant 0 : i32
    %c0_i32_0 = arith.constant 0 : i32
    %c0_i32_1 = arith.constant 0 : i32
    return %c0_i32, %c0_i32_0 : i32, i32
  }
  func.func @transform_10(%arg0: i32) -> (i32, i32) {
    %c0_i32 = arith.constant 0 : i32
    %c0_i32_0 = arith.constant 0 : i32
    %c0_i32_1 = arith.constant 0 : i32
    return %c0_i32, %c0_i32_0 : i32, i32
  }
  func.func @transform_11(%arg0: i32) -> (i32, i32) {
    %c0_i32 = arith.constant 0 : i32
    %c0_i32_0 = arith.constant 0 : i32
    %c0_i32_1 = arith.constant 0 : i32
    return %c0_i32, %c0_i32_0 : i32, i32
  }
  func.func @transform_12(%arg0: i32) -> (i32, i32) {
    %c0_i32 = arith.constant 0 : i32
    %c0_i32_0 = arith.constant 0 : i32
    %c0_i32_1 = arith.constant 0 : i32
    return %c0_i32, %c0_i32_0 : i32, i32
  }
  func.func @transform_13(%arg0: i32) -> (i32, i32) {
    %c0_i32 = arith.constant 0 : i32
    %c0_i32_0 = arith.constant 0 : i32
    %c0_i32_1 = arith.constant 0 : i32
    return %c0_i32, %c0_i32_0 : i32, i32
  }
}

</mosaic_0001>

<bundles_post_ra>
// kernel: tpu_custom_call.1
= control target key start
LH: loop header
LB: loop body
LE: loop exit
PB: predicated region body
PF: predicated region fallthrough
CT: control target
= control target key end

     0   :  { %s15056_s0 = inlined_call_operand.hbm [shape: f32[2,1,1024], index: 0, kind: input, shape index: {}]   ;;  %s15057_s1 = inlined_call_operand.hbm [shape: f32[2,8,1024], index: 1, kind: input, shape index: {}]   ;;  %s15058_s2 = inlined_call_operand.hbm [shape: f32[2,1,1024], index: 2, kind: input, shape index: {}]   ;;  %s15059_s3 = inlined_call_operand.hbm [shape: f32[2,8,1024], index: 3, kind: input, shape index: {}]   ;;  %s15060_s4 = inlined_call_operand.hbm [shape: bf16[1024,4096], index: 4, kind: input, shape index: {}]   ;;  %s15061_s5 = inlined_call_operand.hbm [shape: f32[1,1024], index: 5, kind: input, shape index: {}]   ;;  %s15062_s6 = inlined_call_operand.hbm [shape: f32[1,1024], index: 6, kind: input, shape index: {}]   ;;  %s15063_s7 = inlined_call_operand.hbm [shape: f32[1,1024], index: 7, kind: input, shape index: {}]   ;;  %s15064_s8 = inlined_call_operand.hbm [shape: f32[1,1024], index: 8, kind: input, shape index: {}]   ;;  %s15065_s9 = inlined_call_operand.hbm [shape: f32[1,1024], index: 9, kind: input, shape index: {}]   ;;  %s15066_s10 = inlined_call_operand.hbm [shape: f32[1,1024], index: 10, kind: input, shape index: {}]   ;;  %s15067_s11 = inlined_call_operand.vmem [shape: bf16[1024,32], index: 11, kind: input, shape index: {}]   ;;  %s15068_s12 = inlined_call_operand.hbm [shape: f32[1,32], index: 12, kind: input, shape index: {}]   ;;  %s15069_s13 = inlined_call_operand.hbm [shape: f32[2,32], index: 13, kind: output, shape index: {}]  }
   0x1   :  { %15081 = sst [smem:[#allocation37_spill]] %s15056_s0 }
   0x2   :  { %15082 = sst [smem:[#allocation38_spill]] %s15060_s4 }
   0x3   :  { %15083 = sst [smem:[#allocation39_spill]] %s15067_s11 }
   0x4   :  { %15084 = sst [smem:[#allocation40_spill]] %s15069_s13 }
   0x5   :  { %18 = vsyncpa [#allocation6], 0 }
   0x6   :  { %19 = vsyncpa [#allocation9], 0 }
   0x7   :  { %20 = vsyncpa [#allocation12], 0 }
   0x8   :  { %21 = vsyncpa [#allocation17], 0 }
   0x9   :  { %22 = vsyncpa [#allocation20], 0 }
   0xa   :  { %23 = vsyncpa [#allocation23], 0 }
   0xb   :  { %24 = vsyncpa [#allocation7], 0  ;;  %s12838_s25 = smov 0   ;;  %s12840_s26 = smov 0  }
   0xc   :  { %s12842_s27 = smov 0   ;;  %s12844_s28 = smov 0  }
   0xd LB: > { %s12744_s29 = smov [#allocation8]   ;;  %s12859_s14 = sadd.s32 4294967295, %s12742_s28   ;;  %s12742_s28 = sphi %s12844_s28, %s15128_s28   ;;  %s12738_s27 = sphi %s12842_s27, %s15127_s27   ;;  %s12734_s26 = sphi %s12840_s26, %s15126_s26   ;;  %s12730_s25 = sphi %s12838_s25, %s15125_s25  }
   0xe   : > { %s359_s30 = sshll.u32 %s12744_s29, 4  ;;  %15085 = sst [smem:[#allocation35_spill]] %s12859_s14  ;;  %s12865_s30 = int_to_ptr.vmem [resolvable:$true] %s359_s30 }
   0xf   : > { %p10618_p0 = scmp.ge.s32.totalorder %s12742_s28, 1  ;;  %p15078_p1 = scmp.eq.s32.totalorder %s12859_s14, 0 }
  0x10   : > { %p334_p2 = scmp.lt.s32.totalorder %s12742_s28, 5  ;;  %s12745_s16 = smov [#allocation5]  }
  0x11   : > { %s346_s17 = sshll.u32 %s12745_s16, 4  ;;  %s12746_s19 = smov [#allocation10]   ;;  %s12879_s17 = int_to_ptr.vmem [resolvable:$true] %s346_s17 }
  0x12   : > { %p12867_p4 = pnand %p10618_p0, %p334_p2  ;;  %s12881_s20 = sshll.u32 %s12746_s19, 4  ;;  %s373_s20 = int_to_ptr.vmem [resolvable:$true] %s12881_s20 }
  0x13   : > { %s12308_s23 = scalar_lea.hbm %s15057_s1, 2048 }
  0x14   : > { %s15086_s15 = scalar_select %p12867_p4, 1, 0 }
  0x15   : > { %p12081_p5 = pneg %p12867_p4  ;;  %p12309_p7 = scmp.ne.s32.totalorder %s15057_s1, %s12308_s23 }
  0x16   : > { %15087 = sst [smem:[#allocation36_spill]] %s15086_s15  ;;  %p12315_p11 = scmp.lt.u32.totalorder %s12308_s23, %s15057_s1 }
  0x17   : > { %p12875_p6 = pnand %p12081_p5, %p15078_p1 }
  0x19   : > { %p12891_p8 = pneg %p12875_p6 }
  0x1b   : > { %p12311_p9 = pnand %p12891_p8, %p12309_p7 }
  0x1d   : > { %p12312_p10 = pneg %p12311_p9 }
  0x1f   : > { %p12317_p12 = pnand %p12315_p11, %p12312_p10 }
  0x21   : > { %12320 = shalt.err (!%p12317_p12)
}
  0x22   : > { %s12321_s21 = scalar_lea.vmem %s12865_s30, 2048  ;;  %p12329_p5 = scmp.lt.s32.totalorder %s12865_s30, %s12865_s30 }
  0x23   : > { %p12322_p13 = scmp.ne.s32.totalorder %s12865_s30, %s12321_s21  ;;  %p12330_p3 = scmp.lt.s32.totalorder %s12321_s21, %s12321_s21 }
  0x25   : > { %p12324_p0 = pnand %p12322_p13, %p12891_p8  ;;  %p12331_p7 = por %p12330_p3, %p12329_p5 }
  0x27   : > { %p12325_p2 = pneg %p12324_p0 }
  0x29   : > { %p12332_p9 = pnand %p12331_p7, %p12325_p2 }
  0x2b   : > { %12335 = shalt.err (!%p12332_p9)
}
  0x2c   : > { %s15077_s22 = smov 1024   ;;  %s15080_s13 = smov 64  }
  0x2d   : > { %12087 = dma.hbm_to_vmem [thread:$0]  (!%p12875_p6), %s15057_s1, 2048, %s12865_s30, [#allocation9], %s15077_s22, %s15077_s22, %s15080_s13  }
  0x2e   : > { %s15090_s0 = sld [smem:[#allocation37_spill]] }
  0x34   : > { %s12336_s21 = scalar_lea.hbm %s15090_s0, 256 }
  0x35   : > { %p12337_p3 = scmp.ne.s32.totalorder %s15090_s0, %s12336_s21  ;;  %p12343_p12 = scmp.lt.u32.totalorder %s12336_s21, %s15090_s0 }
  0x37   : > { %p12339_p10 = pnand %p12337_p3, %p12891_p8 }
  0x39   : > { %p12340_p11 = pneg %p12339_p10 }
  0x3b   : > { %p12345_p13 = pnand %p12343_p12, %p12340_p11 }
  0x3d   : > { %12348 = shalt.err (!%p12345_p13)
}
  0x3e   : > { %s12349_s30 = scalar_lea.vmem %s12879_s17, 256  ;;  %p12357_p7 = scmp.lt.s32.totalorder %s12879_s17, %s12879_s17 }
  0x3f   : > { %p12350_p0 = scmp.ne.s32.totalorder %s12879_s17, %s12349_s30  ;;  %p12358_p9 = scmp.lt.s32.totalorder %s12349_s30, %s12349_s30 }
  0x41   : > { %p12352_p2 = pnand %p12350_p0, %p12891_p8  ;;  %p12359_p3 = por %p12358_p9, %p12357_p7 }
  0x43   : > { %p12353_p5 = pneg %p12352_p2 }
  0x45   : > { %p12360_p10 = pnand %p12359_p3, %p12353_p5 }
  0x47   : > { %12363 = shalt.err (!%p12360_p10)
}
  0x48   : > { %s12749_s11 = smov 128   ;;  %s12750_s4 = smov 8  }
  0x49   : > { %12084 = dma.hbm_to_vmem [thread:$0]  (!%p12875_p6), %s15090_s0, 256, %s12879_s17, [#allocation6], %s12749_s11, %s12749_s11, %s12750_s4  }
  0x4a   : > { %s12364_s29 = scalar_lea.hbm %s15058_s2, 256 }
  0x4b   : > { %p12365_p11 = scmp.ne.s32.totalorder %s15058_s2, %s12364_s29  ;;  %p12371_p0 = scmp.lt.u32.totalorder %s12364_s29, %s15058_s2 }
  0x4d   : > { %p12367_p12 = pnand %p12365_p11, %p12891_p8 }
  0x4f   : > { %p12368_p13 = pneg %p12367_p12 }
  0x51   : > { %p12373_p2 = pnand %p12371_p0, %p12368_p13 }
  0x53   : > { %12376 = shalt.err (!%p12373_p2)
}
  0x54   : > { %s12377_s14 = scalar_lea.vmem %s373_s20, 256  ;;  %p12385_p3 = scmp.lt.s32.totalorder %s373_s20, %s373_s20 }
  0x55   : > { %p12378_p5 = scmp.ne.s32.totalorder %s373_s20, %s12377_s14  ;;  %p12386_p10 = scmp.lt.s32.totalorder %s12377_s14, %s12377_s14 }
  0x57   : > { %p12380_p7 = pnand %p12378_p5, %p12891_p8  ;;  %p12387_p1 = por %p12386_p10, %p12385_p3 }
  0x59   : > { %p12381_p9 = pneg %p12380_p7 }
  0x5b   : > { %p12388_p4 = pnand %p12387_p1, %p12381_p9 }
  0x5d   : > { %12391 = shalt.err (!%p12388_p4)
}
  0x5e   : > { %12090 = dma.hbm_to_vmem [thread:$0]  (!%p12875_p6), %s15058_s2, 256, %s373_s20, [#allocation9], %s12749_s11, %s12749_s11, %s12750_s4  }
  0x5f   : > { %s12751_s22 = smov [#allocation11]   ;;  %s12752_s24 = smov [#allocation16]  }
  0x60   : > { %s385_s23 = sshll.u32 %s12751_s22, 4  ;;  %s421_s29 = sshll.u32 %s12752_s24, 4  ;;  %s386_s23 = int_to_ptr.vmem [resolvable:$true] %s385_s23  ;;  %s422_s29 = int_to_ptr.vmem [resolvable:$true] %s421_s29 }
  0x61   : > { %s12392_s30 = scalar_lea.hbm %s15059_s3, 2048 }
  0x62   : > { %p12393_p1 = scmp.ne.s32.totalorder %s15059_s3, %s12392_s30  ;;  %p12399_p12 = scmp.lt.u32.totalorder %s12392_s30, %s15059_s3 }
  0x64   : > { %p12395_p4 = pnand %p12393_p1, %p12891_p8 }
  0x66   : > { %p12396_p11 = pneg %p12395_p4 }
  0x68   : > { %p12401_p13 = pnand %p12399_p12, %p12396_p11 }
  0x6a   : > { %12404 = shalt.err (!%p12401_p13)
}
  0x6b   : > { %s12405_s20 = scalar_lea.vmem %s386_s23, 2048  ;;  %p12413_p7 = scmp.lt.s32.totalorder %s386_s23, %s386_s23 }
  0x6c   : > { %p12406_p0 = scmp.ne.s32.totalorder %s386_s23, %s12405_s20  ;;  %p12414_p9 = scmp.lt.s32.totalorder %s12405_s20, %s12405_s20 }
  0x6e   : > { %p12408_p2 = pnand %p12406_p0, %p12891_p8  ;;  %p12415_p3 = por %p12414_p9, %p12413_p7 }
  0x70   : > { %p12409_p5 = pneg %p12408_p2 }
  0x72   : > { %p12416_p10 = pnand %p12415_p3, %p12409_p5 }
  0x74   : > { %12419 = shalt.err (!%p12416_p10)
}
  0x75   : > { %s15091_s13 = smov 64   ;;  %s15092_s11 = smov 1024  }
  0x76   : > { %12093 = dma.hbm_to_vmem [thread:$0]  (!%p12875_p6), %s15059_s3, 2048, %s386_s23, [#allocation12], %s15092_s11, %s15092_s11, %s15091_s13  }
  0x77   : > { %s12420_s24 = scalar_lea.hbm %s15063_s7, 128 }
  0x78   : > { %p12421_p1 = scmp.ne.s32.totalorder %s15063_s7, %s12420_s24  ;;  %p12427_p12 = scmp.lt.u32.totalorder %s12420_s24, %s15063_s7 }
  0x7a   : > { %p12423_p4 = pnand %p12421_p1, %p12891_p8 }
  0x7c   : > { %p12424_p11 = pneg %p12423_p4 }
  0x7e   : > { %p12429_p13 = pnand %p12427_p12, %p12424_p11 }
  0x80   : > { %12432 = shalt.err (!%p12429_p13)
}
  0x81   : > { %s12433_s17 = scalar_lea.vmem %s422_s29, 128  ;;  %p12441_p7 = scmp.lt.s32.totalorder %s422_s29, %s422_s29 }
  0x82   : > { %p12434_p0 = scmp.ne.s32.totalorder %s422_s29, %s12433_s17  ;;  %p12442_p9 = scmp.lt.s32.totalorder %s12433_s17, %s12433_s17 }
  0x84   : > { %p12436_p2 = pnand %p12434_p0, %p12891_p8  ;;  %p12443_p3 = por %p12442_p9, %p12441_p7 }
  0x86   : > { %p12437_p5 = pneg %p12436_p2 }
  0x88   : > { %p12444_p10 = pnand %p12443_p3, %p12437_p5 }
  0x8a   : > { %12447 = shalt.err (!%p12444_p10)
}
  0x8b   : > { %12102 = dma.hbm_to_vmem [thread:$0]  (!%p12875_p6), %s15063_s7, 128, %s422_s29, [#allocation17]  }
  0x8c   : > { %s12753_s13 = smov [#allocation19]   ;;  %s12754_s0 = smov [#allocation14]  }
  0x8d   : > { %s443_s11 = sshll.u32 %s12753_s13, 4  ;;  %s399_s4 = sshll.u32 %s12754_s0, 4  ;;  %s444_s11 = int_to_ptr.vmem [resolvable:$true] %s443_s11  ;;  %s400_s4 = int_to_ptr.vmem [resolvable:$true] %s399_s4 }
  0x8e   : > { %s12448_s24 = scalar_lea.hbm %s15065_s9, 128 }
  0x8f   : > { %p12449_p1 = scmp.ne.s32.totalorder %s15065_s9, %s12448_s24  ;;  %p12455_p12 = scmp.lt.u32.totalorder %s12448_s24, %s15065_s9 }
  0x91   : > { %p12451_p4 = pnand %p12449_p1, %p12891_p8 }
  0x93   : > { %p12452_p11 = pneg %p12451_p4 }
  0x95   : > { %p12457_p13 = pnand %p12455_p12, %p12452_p11 }
  0x97   : > { %12460 = shalt.err (!%p12457_p13)
}
  0x98   : > { %s12461_s29 = scalar_lea.vmem %s444_s11, 128  ;;  %p12469_p7 = scmp.lt.s32.totalorder %s444_s11, %s444_s11 }
  0x99   : > { %p12462_p0 = scmp.ne.s32.totalorder %s444_s11, %s12461_s29  ;;  %p12470_p9 = scmp.lt.s32.totalorder %s12461_s29, %s12461_s29 }
  0x9b   : > { %p12464_p2 = pnand %p12462_p0, %p12891_p8  ;;  %p12471_p3 = por %p12470_p9, %p12469_p7 }
  0x9d   : > { %p12465_p5 = pneg %p12464_p2 }
  0x9f   : > { %p12472_p10 = pnand %p12471_p3, %p12465_p5 }
  0xa1   : > { %12475 = shalt.err (!%p12472_p10)
}
  0xa2   : > { %12108 = dma.hbm_to_vmem [thread:$0]  (!%p12875_p6), %s15065_s9, 128, %s444_s11, [#allocation20]  }
  0xa3   : > { %s12476_s0 = scalar_lea.hbm %s15061_s5, 128 }
  0xa4   : > { %p12477_p1 = scmp.ne.s32.totalorder %s15061_s5, %s12476_s0  ;;  %p12483_p12 = scmp.lt.u32.totalorder %s12476_s0, %s15061_s5 }
  0xa6   : > { %p12479_p4 = pnand %p12477_p1, %p12891_p8 }
  0xa8   : > { %p12480_p11 = pneg %p12479_p4 }
  0xaa   : > { %p12485_p13 = pnand %p12483_p12, %p12480_p11 }
  0xac   : > { %12488 = shalt.err (!%p12485_p13)
}
  0xad   : > { %s12489_s21 = scalar_lea.vmem %s400_s4, 128  ;;  %p12497_p7 = scmp.lt.s32.totalorder %s400_s4, %s400_s4 }
  0xae   : > { %p12490_p0 = scmp.ne.s32.totalorder %s400_s4, %s12489_s21  ;;  %p12498_p9 = scmp.lt.s32.totalorder %s12489_s21, %s12489_s21 }
  0xb0   : > { %p12492_p2 = pnand %p12490_p0, %p12891_p8  ;;  %p12499_p3 = por %p12498_p9, %p12497_p7 }
  0xb2   : > { %p12493_p5 = pneg %p12492_p2 }
  0xb4   : > { %p12500_p10 = pnand %p12499_p3, %p12493_p5 }
  0xb6   : > { %12503 = shalt.err (!%p12500_p10)
}
  0xb7   : > { %12096 = dma.hbm_to_vmem [thread:$0]  (!%p12875_p6), %s15061_s5, 128, %s400_s4, [#allocation9]  }
  0xb8   : > { %s12755_s14 = smov [#allocation15]   ;;  %s12756_s17 = smov [#allocation18]  }
  0xb9   : > { %s410_s29 = sshll.u32 %s12755_s14, 4  ;;  %s432_s23 = sshll.u32 %s12756_s17, 4  ;;  %s411_s29 = int_to_ptr.vmem [resolvable:$true] %s410_s29  ;;  %s433_s23 = int_to_ptr.vmem [resolvable:$true] %s432_s23 }
  0xba   : > { %s12504_s0 = scalar_lea.hbm %s15062_s6, 128 }
  0xbb   : > { %p12505_p1 = scmp.ne.s32.totalorder %s15062_s6, %s12504_s0  ;;  %p12511_p12 = scmp.lt.u32.totalorder %s12504_s0, %s15062_s6 }
  0xbd   : > { %p12507_p4 = pnand %p12505_p1, %p12891_p8 }
  0xbf   : > { %p12508_p11 = pneg %p12507_p4 }
  0xc1   : > { %p12513_p13 = pnand %p12511_p12, %p12508_p11 }
  0xc3   : > { %12516 = shalt.err (!%p12513_p13)
}
  0xc4   : > { %s12517_s4 = scalar_lea.vmem %s411_s29, 128  ;;  %p12525_p7 = scmp.lt.s32.totalorder %s411_s29, %s411_s29 }
  0xc5   : > { %p12518_p0 = scmp.ne.s32.totalorder %s411_s29, %s12517_s4  ;;  %p12526_p9 = scmp.lt.s32.totalorder %s12517_s4, %s12517_s4 }
  0xc7   : > { %p12520_p2 = pnand %p12518_p0, %p12891_p8  ;;  %p12527_p3 = por %p12526_p9, %p12525_p7 }
  0xc9   : > { %p12521_p5 = pneg %p12520_p2 }
  0xcb   : > { %p12528_p10 = pnand %p12527_p3, %p12521_p5 }
  0xcd   : > { %12531 = shalt.err (!%p12528_p10)
}
  0xce   : > { %12099 = dma.hbm_to_vmem [thread:$0]  (!%p12875_p6), %s15062_s6, 128, %s411_s29, [#allocation12]  }
  0xcf   : > { %s12532_s17 = scalar_lea.hbm %s15064_s8, 128 }
  0xd0   : > { %p12533_p1 = scmp.ne.s32.totalorder %s15064_s8, %s12532_s17  ;;  %p12539_p12 = scmp.lt.u32.totalorder %s12532_s17, %s15064_s8 }
  0xd2   : > { %p12535_p4 = pnand %p12533_p1, %p12891_p8 }
  0xd4   : > { %p12536_p11 = pneg %p12535_p4 }
  0xd6   : > { %p12541_p13 = pnand %p12539_p12, %p12536_p11 }
  0xd8   : > { %12544 = shalt.err (!%p12541_p13)
}
  0xd9   : > { %s12545_s22 = scalar_lea.vmem %s433_s23, 128  ;;  %p12553_p7 = scmp.lt.s32.totalorder %s433_s23, %s433_s23 }
  0xda   : > { %p12546_p0 = scmp.ne.s32.totalorder %s433_s23, %s12545_s22  ;;  %p12554_p9 = scmp.lt.s32.totalorder %s12545_s22, %s12545_s22 }
  0xdc   : > { %p12548_p2 = pnand %p12546_p0, %p12891_p8  ;;  %p12555_p3 = por %p12554_p9, %p12553_p7 }
  0xde   : > { %p12549_p5 = pneg %p12548_p2 }
  0xe0   : > { %p12556_p10 = pnand %p12555_p3, %p12549_p5 }
  0xe2   : > { %12559 = shalt.err (!%p12556_p10)
}
  0xe3   : > { %12105 = dma.hbm_to_vmem [thread:$0]  (!%p12875_p6), %s15064_s8, 128, %s433_s23, [#allocation17]  }
  0xe4   : > { %s12757_s19 = smov [#allocation21]   ;;  %s12758_s21 = smov [#allocation22]  }
  0xe5   : > { %s454_s4 = sshll.u32 %s12757_s19, 4  ;;  %s468_s11 = sshll.u32 %s12758_s21, 4  ;;  %s455_s4 = int_to_ptr.vmem [resolvable:$true] %s454_s4  ;;  %s469_s11 = int_to_ptr.vmem [resolvable:$true] %s468_s11 }
  0xe6   : > { %s12560_s17 = scalar_lea.hbm %s15066_s10, 128 }
  0xe7   : > { %p12561_p1 = scmp.ne.s32.totalorder %s15066_s10, %s12560_s17  ;;  %p12567_p12 = scmp.lt.u32.totalorder %s12560_s17, %s15066_s10 }
  0xe9   : > { %p12563_p4 = pnand %p12561_p1, %p12891_p8 }
  0xeb   : > { %p12564_p11 = pneg %p12563_p4 }
  0xed   : > { %p12569_p13 = pnand %p12567_p12, %p12564_p11 }
  0xef   : > { %12572 = shalt.err (!%p12569_p13)
}
  0xf0   : > { %s12573_s23 = scalar_lea.vmem %s455_s4, 128  ;;  %p12581_p7 = scmp.lt.s32.totalorder %s455_s4, %s455_s4 }
  0xf1   : > { %p12574_p0 = scmp.ne.s32.totalorder %s455_s4, %s12573_s23  ;;  %p12582_p9 = scmp.lt.s32.totalorder %s12573_s23, %s12573_s23 }
  0xf3   : > { %p12576_p2 = pnand %p12574_p0, %p12891_p8  ;;  %p12583_p3 = por %p12582_p9, %p12581_p7 }
  0xf5   : > { %p12577_p5 = pneg %p12576_p2 }
  0xf7   : > { %p12584_p10 = pnand %p12583_p3, %p12577_p5 }
  0xf9   : > { %12587 = shalt.err (!%p12584_p10)
}
  0xfa   : > { %12111 = dma.hbm_to_vmem [thread:$0]  (!%p12875_p6), %s15066_s10, 128, %s455_s4, [#allocation20]  }
  0xfb   : > { %s12588_s21 = scalar_lea.hbm %s15068_s12, 16 }
  0xfc   : > { %p12589_p1 = scmp.ne.s32.totalorder %s15068_s12, %s12588_s21  ;;  %p12595_p12 = scmp.lt.u32.totalorder %s12588_s21, %s15068_s12 }
  0xfe   : > { %p12591_p4 = pnand %p12589_p1, %p12891_p8 }
 0x100   : > { %p12592_p11 = pneg %p12591_p4 }
 0x102   : > { %p12597_p13 = pnand %p12595_p12, %p12592_p11 }
 0x104   : > { %12600 = shalt.err (!%p12597_p13)
}
 0x105   : > { %s12601_s13 = scalar_lea.vmem %s469_s11, 16  ;;  %s12608_s4 = scalar_lea.vmem %s469_s11, 32 }
 0x106   : > { %p12602_p0 = scmp.ne.s32.totalorder %s469_s11, %s12601_s13  ;;  %p12609_p7 = scmp.lt.s32.totalorder %s469_s11, %s469_s11 }
 0x107   : > { %p12610_p9 = scmp.lt.s32.totalorder %s12608_s4, %s12601_s13 }
 0x108   : > { %p12604_p2 = pnand %p12602_p0, %p12891_p8 }
 0x109   : > { %p12611_p3 = por %p12610_p9, %p12609_p7 }
 0x10a   : > { %p12605_p5 = pneg %p12604_p2 }
 0x10c   : > { %p12612_p10 = pnand %p12611_p3, %p12605_p5 }
 0x10e   : > { %12615 = shalt.err (!%p12612_p10)
}
 0x10f   : > { %s15093_s16 = sld [smem:[#allocation35_spill]]  ;;  %s13105_s23 = sadd.s32 1, %s12742_s28  }
 0x110   : > { %12114 = dma.hbm_to_vmem [thread:$0]  (!%p12875_p6), %s15068_s12, 16, %s469_s11, [#allocation23]  }
 0x111   : > { %s118_s18 = ssub.s32 %s12742_s28, %s13105_s23  ;;  %s121_s22 = sadd.s32 1, %s12738_s27 }
 0x112   : > { %p119_p8 = scmp.eq.s32.totalorder %s118_s18, 0  ;;  %p128_p1 = scmp.ne.s32.totalorder %s12738_s27, %s12734_s26 }
 0x113   : > { %p129_p4 = scmp.eq.s32.totalorder %s12742_s28, 0  ;;  %p134_p11 = scmp.ne.s32.totalorder %s12734_s26, %s12730_s25 }
 0x114   : > { %s13116_s29 = scalar_select %p119_p8, %s12738_s27, %s121_s22  }
 0x115   : > { %p130_p12 = por %p129_p4, %p128_p1  ;;  %p15094_p13 = scmp.eq.s32.totalorder %s15093_s16, 0 }
 0x116   : > { %p12130_p2 = scmp.lt.s32.totalorder %s12742_s28, 4  ;;  %s479_s19 = sand.u32 1, %s12742_s28  }
 0x117   : > { %p13120_p0 = por %p15094_p13, %p134_p11  ;;  %s481_s11 = sand.u32 1, %s12738_s27  }
 0x118   : > { %s10631_s21 = sshll.u32 %s481_s11, 12  ;;  %s11777_s30 = sshll.u32 %s12742_s28, 9 }
 0x119   : > { %s15096_s20 = sld [smem:[#allocation38_spill]]  ;;  %s483_s25 = scalar_lea.vmem [#allocation13], %s10631_s21 }
 0x11a   : > { %s490_s4 = sshll.u32 %s483_s25, 4  ;;  %p13133_p6 = pnand %p12130_p2, %p130_p12  ;;  %s13137_s4 = int_to_ptr.vmem [resolvable:$true] %s490_s4 }
 0x11b   : > { %s13139_s28 = scalar_lea.sflag [#allocation6], %s479_s19 }
 0x11c   : > { %p12618_p7 = pneg %p13133_p6 }
 0x11f   : > { %s13131_s13 = scalar_lea.hbm %s15096_s20, %s11777_s30  ;;  %s12621_s22 = scalar_lea.hbm %s15096_s20, 262144 }
 0x120   : > { %s12616_s15 = scalar_lea.hbm %s13131_s13, 65536  ;;  %p12622_p10 = scmp.lt.u32.totalorder %s13131_s13, %s15096_s20 }
 0x121   : > { %p12617_p5 = scmp.ne.s32.totalorder %s13131_s13, %s12616_s15  ;;  %p12623_p8 = scmp.lt.u32.totalorder %s12621_s22, %s12616_s15 }
 0x122   : > { %p12625_p4 = scmp.lt.u32.totalorder %s12616_s15, %s13131_s13 }
 0x123   : > { %p12619_p9 = pnand %p12618_p7, %p12617_p5  ;;  %p12624_p1 = por %p12623_p8, %p12622_p10 }
 0x125   : > { %p12620_p3 = pneg %p12619_p9  ;;  %p12626_p11 = por %p12625_p4, %p12624_p1 }
 0x127   : > { %p12627_p12 = pnand %p12626_p11, %p12620_p3 }
 0x129   : > { %12630 = shalt.err (!%p12627_p12)
}
 0x12a   : > { %s12631_s19 = scalar_lea.vmem %s13137_s4, 65536  ;;  %s12759_s30 = smov [#allocation13]  }
 0x12b   : > { %p12632_p13 = scmp.ne.s32.totalorder %s13137_s4, %s12631_s19  ;;  %s12636_s14 = sshll.u32 %s12759_s30, 4  ;;  %s12637_s14 = int_to_ptr.vmem [resolvable:$false] %s12636_s14 }
 0x12c   : > { %s12638_s17 = scalar_lea.vmem %s12637_s14, 131072  ;;  %p12639_p9 = scmp.lt.s32.totalorder %s13137_s4, %s12637_s14 }
 0x12d   : > { %p12634_p2 = pnand %p12632_p13, %p12618_p7  ;;  %p12640_p10 = scmp.lt.s32.totalorder %s12638_s17, %s12631_s19 }
 0x12f   : > { %p12635_p5 = pneg %p12634_p2  ;;  %p12641_p8 = por %p12640_p10, %p12639_p9 }
 0x131   : > { %p12642_p1 = pnand %p12641_p8, %p12635_p5 }
 0x133   : > { %12645 = shalt.err (!%p12642_p1)
}
 0x134   : > { %s12760_s25 = smov 2048   ;;  %s12761_s15 = smov 512  }
 0x135   : > { %s12762_s16 = smov 32   ;;  %s15098_s18 = sld [smem:[#allocation36_spill]] }
 0x136   : > { %12118 = dma.hbm_to_vmem [thread:$0]  (!%p13133_p6), %s13131_s13, 65536, %s13137_s4, %s13139_s28, %s12760_s25, %s12761_s15, %s12762_s16  }
 0x13b   : > { %p15099_p7 = scmp.ne.s32.totalorder %s15098_s18, 0 }
 0x13c   : > { %s15100_s22 = sld [smem:[#allocation35_spill]] (!%p15099_p7) }
 0x13d   : > { %502 = sbr.rel (%p15099_p7) target bundleno = 3302 (0xce6), region = 72 }
 0x142   : > { %p15101_p3 = scmp.eq.s32.totalorder (!%p15099_p7), %s15100_s22, 0 }
 0x144   : > { %12689 = dma.done.wait (%p15101_p3), [#allocation6], 256   ;;  %p15102_p4 = pmov %p15101_p3 }
 0x145   : > { %p15103_p11 = pmov %p15101_p3 }
 0x146   : > { %12691 = vsyncadd (%p15102_p4), [#allocation6], 4294967040 }
 0x147   : > { %12693 = dma.done.wait (%p15103_p11), [#allocation9], 2304   ;;  %p15104_p12 = pmov %p15101_p3 }
 0x148   : > { %p15105_p13 = pmov %p15101_p3 }
 0x149   : > { %12695 = vsyncadd (%p15104_p12), [#allocation9], 4294964992 }
 0x14a   : > { %12697 = dma.done.wait (%p15105_p13), [#allocation12], 2048   ;;  %p15106_p6 = pmov %p15101_p3 }
 0x14b   : > { %s520_s13 = sand.u32 1, %s15100_s22   ;;  %s522_s4 = sand.u32 1, %s12734_s26  }
 0x14c   : > { %12699 = vsyncadd (%p15106_p6), [#allocation12], 4294965248  ;;  %s10639_s0 = sshll.u32 %s522_s4, 12  ;;  %s521_s28 = scalar_lea.sflag [#allocation6], %s520_s13 }
 0x14d   : > { %s13183_s11 = scalar_lea.vmem [#allocation13], %s10639_s0 }
 0x14e   : > { %12701 = dma.done.wait (%p13120_p0), %s521_s28, 65536  }
 0x14f   : > { %12703 = vsyncadd (%p13120_p0), %s521_s28, 4294901760  ;;  %p15107_p2 = pmov %p15101_p3 }
 0x151   : > { %12705 = dma.done.wait (%p15107_p2), [#allocation9], 128   ;;  %p15108_p5 = pmov %p15107_p2 }
 0x152   : > { %p15109_p9 = pmov %p15107_p2 }
 0x153   : > { %12707 = vsyncadd (%p15108_p5), [#allocation9], 4294967168 }
 0x154   : > { %12709 = dma.done.wait (%p15109_p9), [#allocation12], 128   ;;  %p15110_p10 = pmov %p15107_p2 }
 0x155   : > { %p15111_p8 = pmov %p15107_p2 }
 0x156   : > { %12711 = vsyncadd (%p15110_p10), [#allocation12], 4294967168 }
 0x157   : > { %12713 = dma.done.wait (%p15111_p8), [#allocation17], 256   ;;  %p15112_p1 = pmov %p15107_p2 }
 0x159   : > { %12715 = vsyncadd (%p15112_p1), [#allocation17], 4294967040  ;;  %p15113_p0 = pmov %p15112_p1 }
 0x15b   : > { %12717 = dma.done.wait (%p15113_p0), [#allocation20], 256   ;;  %p15114_p7 = pmov %p15113_p0 }
 0x15c   : > { %p15115_p3 = pmov %p15113_p0 }
 0x15d   : > { %12719 = vsyncadd (%p15114_p7), [#allocation20], 4294967040 }
 0x15e   : > { %12721 = dma.done.wait (%p15115_p3), [#allocation23], 16   ;;  %p15116_p4 = pmov %p15113_p0 }
 0x15f   : > { %p15117_p11 = scmp.ne.s32.totalorder %s15100_s22, 0 }
 0x160   : > { %12723 = vsyncadd (%p15116_p4), [#allocation23], 4294967280  ;;  %v596_v0 = vld [vmem:[#allocation8] sm:$0xff] (!%p15117_p11)  ;;  %v597_v1 = vld [vmem:[#allocation8 + $0x8] sm:$0xff] (!%p15117_p11)  ;;  %v657_v16 = vlaneseq (!%p15117_p11)  ;;  %v12763_v23 = vmov (!%p15117_p11), 1966171168  }
 0x161   : > { %595 = sbr.rel (%p15117_p11) target bundleno = 380 (0x17c), region = 124  ;;  %v612_v2 = vld [vmem:[#allocation11] sm:$0xff] (!%p15117_p11)  ;;  %v613_v3 = vld [vmem:[#allocation11 + $0x8] sm:$0xff] (!%p15117_p11)  ;;  %v614_v8 = vld [vmem:[#allocation11 + $0x10] sm:$0xff] (!%p15117_p11)  ;;  %v655_v24 = vunpack.c.l.s4 (!%p15117_p11), %v12763_v23 }
 0x162   : > { %v628_v4 = vadd.f32 (!%p15117_p11), %v612_v2, %v596_v0  ;;  %v598_v5 = vld [vmem:[#allocation8 + $0x10] sm:$0xff] (!%p15117_p11)  ;;  %v599_v6 = vld [vmem:[#allocation8 + $0x18] sm:$0xff] (!%p15117_p11)  ;;  %v629_v7 = vadd.f32 (!%p15117_p11), %v613_v3, %v597_v1  ;;  %v615_v9 = vld [vmem:[#allocation11 + $0x18] sm:$0xff] (!%p15117_p11)  ;;  %v658_v40 = vshrl.u32 (!%p15117_p11), %v657_v16, 7 }
 0x163   : > { %v600_v10 = vld [vmem:[#allocation8 + $0x20] sm:$0xff] (!%p15117_p11)  ;;  %v630_v11 = vadd.f32 (!%p15117_p11), %v614_v8, %v598_v5  ;;  %v631_v12 = vadd.f32 (!%p15117_p11), %v615_v9, %v599_v6  ;;  %v601_v13 = vld [vmem:[#allocation8 + $0x28] sm:$0xff] (!%p15117_p11)  ;;  %v616_v14 = vld [vmem:[#allocation11 + $0x20] sm:$0xff] (!%p15117_p11)  ;;  %v656_v47 = vunpack.c.0.s8 (!%p15117_p11), %v655_v24 }
 0x164   : > { %v617_v15 = vld [vmem:[#allocation11 + $0x28] sm:$0xff] (!%p15117_p11)  ;;  %v11778_v17 = vpack.c.bf16 (!%p15117_p11), %v629_v7, %v628_v4  ;;  %v632_v18 = vadd.f32 (!%p15117_p11), %v616_v14, %v600_v10  ;;  %v602_v20 = vld [vmem:[#allocation8 + $0x30] sm:$0xff] (!%p15117_p11)  ;;  %v618_v22 = vld [vmem:[#allocation11 + $0x30] sm:$0xff] (!%p15117_p11) }
 0x165   : > { %v633_v19 = vadd.f32 (!%p15117_p11), %v617_v15, %v601_v13  ;;  %v603_v21 = vld [vmem:[#allocation8 + $0x38] sm:$0xff] (!%p15117_p11)  ;;  %v11779_v25 = vpack.c.bf16 (!%p15117_p11), %v631_v12, %v630_v11  ;;  %v619_v26 = vld [vmem:[#allocation11 + $0x38] sm:$0xff] (!%p15117_p11)  ;;  %v634_v27 = vadd.f32 (!%p15117_p11), %v618_v22, %v602_v20  ;;  %v604_v28 = vld [vmem:[#allocation8 + $0x40] sm:$0xff] (!%p15117_p11)  ;;  %v659_v2 = vsub.s32 (!%p15117_p11), %v656_v47, %v658_v40 }
 0x166   : > { %v605_v29 = vld [vmem:[#allocation8 + $0x48] sm:$0xff] (!%p15117_p11)  ;;  %790 = vst [vmem:[#allocation2] sm:$0xff] (!%p15117_p11), %v11778_v17  ;;  %v635_v31 = vadd.f32 (!%p15117_p11), %v619_v26, %v603_v21  ;;  %v620_v32 = vld [vmem:[#allocation11 + $0x40] sm:$0xff] (!%p15117_p11)  ;;  %v621_v33 = vld [vmem:[#allocation11 + $0x48] sm:$0xff] (!%p15117_p11) }
 0x167   : > { %v11780_v30 = vpack.c.bf16 (!%p15117_p11), %v633_v19, %v632_v18  ;;  %v606_v34 = vld [vmem:[#allocation8 + $0x50] sm:$0xff] (!%p15117_p11)  ;;  %791 = vst [vmem:[#allocation2 + $0x8] sm:$0xff] (!%p15117_p11), %v11779_v25  ;;  %v636_v35 = vadd.f32 (!%p15117_p11), %v620_v32, %v604_v28  ;;  %v637_v36 = vadd.f32 (!%p15117_p11), %v621_v33, %v605_v29  ;;  %v607_v37 = vld [vmem:[#allocation8 + $0x58] sm:$0xff] (!%p15117_p11)  ;;  %v622_v38 = vld [vmem:[#allocation11 + $0x50] sm:$0xff] (!%p15117_p11) }
 0x168   : > { %v623_v39 = vld [vmem:[#allocation11 + $0x58] sm:$0xff]  ;;  %v11781_v41 = vpack.c.bf16 %v635_v31, %v634_v27  ;;  %v638_v42 = vadd.f32 %v622_v38, %v606_v34  ;;  %v608_v44 = vld [vmem:[#allocation8 + $0x60] sm:$0xff]  ;;  %v624_v46 = vld [vmem:[#allocation11 + $0x60] sm:$0xff] }
 0x169   : > { %792 = vst [vmem:[#allocation2 + $0x10] sm:$0xff] %v11780_v30  ;;  %v639_v43 = vadd.f32 %v623_v39, %v607_v37  ;;  %v609_v45 = vld [vmem:[#allocation8 + $0x68] sm:$0xff]  ;;  %v11782_v48 = vpack.c.bf16 %v637_v36, %v636_v35  ;;  %v625_v49 = vld [vmem:[#allocation11 + $0x68] sm:$0xff]  ;;  %v640_v50 = vadd.f32 %v624_v46, %v608_v44  ;;  %v610_v51 = vld [vmem:[#allocation8 + $0x70] sm:$0xff] }
 0x16a   : > { %v611_v52 = vld [vmem:[#allocation8 + $0x78] sm:$0xff]  ;;  %793 = vst [vmem:[#allocation2 + $0x18] sm:$0xff] %v11781_v41  ;;  %v641_v54 = vadd.f32 %v625_v49, %v609_v45  ;;  %v626_v55 = vld [vmem:[#allocation11 + $0x70] sm:$0xff]  ;;  %v627_v56 = vld [vmem:[#allocation11 + $0x78] sm:$0xff] }
 0x16b   : > { %v11783_v53 = vpack.c.bf16 %v639_v43, %v638_v42  ;;  %v644_v57 = vld [vmem:[#allocation5] sm:$0xff]  ;;  %794 = vst [vmem:[#allocation2 + $0x20] sm:$0xff] %v11782_v48  ;;  %v642_v58 = vadd.f32 %v626_v55, %v610_v51  ;;  %v643_v59 = vadd.f32 %v627_v56, %v611_v52  ;;  %v645_v60 = vld [vmem:[#allocation5 + $0x8] sm:$0xff]  ;;  %v646_v61 = vld [vmem:[#allocation10] sm:$0xff] }
 0x16c   : > { %v647_v62 = vld [vmem:[#allocation10 + $0x8] sm:$0xff]  ;;  %v11784_v63 = vpack.c.bf16 %v641_v54, %v640_v50  ;;  %v648_v0 = vadd.f32 %v646_v61, %v644_v57 }
 0x16d   : > { %795 = vst [vmem:[#allocation2 + $0x28] sm:$0xff] %v11783_v53  ;;  %v649_v1 = vadd.f32 %v647_v62, %v645_v60  ;;  %v11785_v3 = vpack.c.bf16 %v643_v59, %v642_v58 }
 0x16e   : > { %796 = vst [vmem:[#allocation2 + $0x30] sm:$0xff] %v11784_v63 }
 0x16f   : > { %v652_v4 = vcombine.low %v648_v0, %v649_v1  ;;  %v653_v5 = vcombine.high %v648_v0, %v649_v1  ;;  %797 = vst [vmem:[#allocation2 + $0x38] sm:$0xff] %v11785_v3 }
 0x171   : > { %v660_v6 = vrot.slane %v652_v4, %v659_v2  ;;  %v667_v7 = vrot.slane %v653_v5, %v659_v2 }
 0x173   : > { %v668_v8 = vcombine.high %v660_v6, %v660_v6  ;;  %v676_v9 = vrot.slane %v660_v6, %v659_v2  ;;  %v669_v10 = vcombine.high %v667_v7, %v667_v7  ;;  %v683_v11 = vrot.slane %v667_v7, %v659_v2 }
 0x175   : > { %v690_v12 = vrot.slane %v668_v8, %v659_v2  ;;  %v698_v13 = vcombine.high %v676_v9, %v676_v9  ;;  %v697_v14 = vrot.slane %v669_v10, %v659_v2  ;;  %v699_v15 = vcombine.high %v683_v11, %v683_v11 }
 0x177   : > { %v11786_v16 = vpack.c.bf16 %v690_v12, %v676_v9  ;;  %v700_v17 = vcombine.high %v690_v12, %v690_v12  ;;  %v11788_v18 = vpack.c.bf16 %v697_v14, %v683_v11  ;;  %v701_v19 = vcombine.high %v697_v14, %v697_v14 }
 0x179   : > { %798 = vst [vmem:[#allocation2 + $0x40] sm:$0x11] %v11786_v16  ;;  %v11787_v20 = vpack.c.bf16 %v700_v17, %v698_v13  ;;  %800 = vst [vmem:[#allocation2 + $0x50] sm:$0x11] %v11788_v18  ;;  %v11789_v21 = vpack.c.bf16 %v701_v19, %v699_v15 }
 0x17b   : > { %799 = vst [vmem:[#allocation2 + $0x48] sm:$0x11] %v11787_v20  ;;  %801 = vst [vmem:[#allocation2 + $0x58] sm:$0x11] %v11789_v21 }
 0x17c PF: > { %s15118_s24 = sld [smem:[#allocation35_spill]] }
 0x182   : > { %p10660_p12 = scmp.ge.s32.totalorder %s15118_s24, 3 }
 0x183   : > { %v818_v22 = vld [vmem:[%s13183_s11] sm:$0xff] (!%p10660_p12)  ;;  %v819_v24 = vld [vmem:[%s13183_s11 + $0x8] sm:$0xff] (!%p10660_p12)  ;;  %v13240_v11 = vld [vmem:[#allocation2] sm:$0xff] (!%p10660_p12)  ;;  %s15119_s21 = sld [smem:[#allocation35_spill]] (!%p10660_p12) }
 0x184   : > { %805 = sbr.rel (%p10660_p12) target bundleno = 1126 (0x466), region = 128  ;;  %v822_v23 = vld [vmem:[%s13183_s11 + $0x20] sm:$0xff] (!%p10660_p12)  ;;  %v823_v26 = vld [vmem:[%s13183_s11 + $0x28] sm:$0xff] (!%p10660_p12)  ;;  %v13242_v12 = vld [vmem:[#allocation2 + $0x20] sm:$0xff] (!%p10660_p12) }
 0x185   : > { %v10678_v25 = vcombine.high (!%p10660_p12), %v818_v22, %v822_v23  ;;  %v10677_v27 = vcombine.low (!%p10660_p12), %v818_v22, %v822_v23  ;;  %v826_v28 = vld [vmem:[%s13183_s11 + $0x40] sm:$0xff] (!%p10660_p12)  ;;  %v10680_v30 = vcombine.high (!%p10660_p12), %v819_v24, %v823_v26  ;;  %v10679_v31 = vcombine.low (!%p10660_p12), %v819_v24, %v823_v26  ;;  %v827_v33 = vld [vmem:[%s13183_s11 + $0x48] sm:$0xff] (!%p10660_p12) }
 0x186   : > { %v830_v29 = vld [vmem:[%s13183_s11 + $0x60] sm:$0xff] (!%p10660_p12)  ;;  %v831_v34 = vld [vmem:[%s13183_s11 + $0x68] sm:$0xff] (!%p10660_p12)  ;;  %v13248_v16 = vcombine.high (!%p10660_p12), %v13240_v11, %v13242_v12 }
 0x187   : > { %v10686_v32 = vcombine.high (!%p10660_p12), %v826_v28, %v830_v29  ;;  %v834_v35 = vld [vmem:[%s13183_s11 + $0x80] sm:$0xff] (!%p10660_p12)  ;;  %3958 = vmatprep.subr.bf16.mxu0 (!%p10660_p12), %v10678_v25  ;;  %v10688_v36 = vcombine.high (!%p10660_p12), %v827_v33, %v831_v34  ;;  %v835_v38 = vld [vmem:[%s13183_s11 + $0x88] sm:$0xff] (!%p10660_p12)  ;;  %4162 = vmatprep.subr.bf16.mxu1 (!%p10660_p12), %v10680_v30  ;;  %v10685_v40 = vcombine.low (!%p10660_p12), %v826_v28, %v830_v29 }
 0x188   : > { %v838_v37 = vld [vmem:[%s13183_s11 + $0xa0] sm:$0xff] (!%p10660_p12)  ;;  %v839_v39 = vld [vmem:[%s13183_s11 + $0xa8] sm:$0xff] (!%p10660_p12)  ;;  %3959 = vmatpush1.bf16.msra.mxu0 (!%p10660_p12), %v10677_v27  ;;  %4163 = vmatpush1.bf16.msra.mxu1 (!%p10660_p12), %v10679_v31  ;;  %v10687_v41 = vcombine.low (!%p10660_p12), %v827_v33, %v831_v34 }
 0x189   : > { %3960 = vmatprep.subr.bf16.mxu0 (!%p10660_p12), %v10686_v32  ;;  %v10694_v42 = vcombine.high (!%p10660_p12), %v834_v35, %v838_v37  ;;  %4164 = vmatprep.subr.bf16.mxu1 (!%p10660_p12), %v10688_v36  ;;  %v10696_v43 = vcombine.high (!%p10660_p12), %v835_v38, %v839_v39  ;;  %v842_v44 = vld [vmem:[%s13183_s11 + $0xc0] sm:$0xff] (!%p10660_p12)  ;;  %v843_v46 = vld [vmem:[%s13183_s11 + $0xc8] sm:$0xff] (!%p10660_p12)  ;;  %v10693_v48 = vcombine.low (!%p10660_p12), %v834_v35, %v838_v37  ;;  %s11790_s19 = smul.u32 (!%p10660_p12), 192, %s15119_s21 }
 0x18a   : > { %v846_v45 = vld [vmem:[%s13183_s11 + $0xe0] sm:$0xff] (!%p10660_p12)  ;;  %v847_v47 = vld [vmem:[%s13183_s11 + $0xe8] sm:$0xff] (!%p10660_p12)  ;;  %v10695_v49 = vcombine.low (!%p10660_p12), %v835_v38, %v839_v39  ;;  %3990 = vmatprep.mubr.bf16.mxu0 (!%p10660_p12), %v13248_v16  ;;  %4194 = vmatprep.mubr.bf16.mxu1 (!%p10660_p12), %v13248_v16 }
 0x18b   : > { %v10702_v50 = vcombine.high %v842_v44, %v846_v45  ;;  %v10704_v51 = vcombine.high %v843_v46, %v847_v47  ;;  %v850_v52 = vld [vmem:[%s13183_s11 + $0x100] sm:$0xff]  ;;  %v851_v54 = vld [vmem:[%s13183_s11 + $0x108] sm:$0xff]  ;;  %v10701_v56 = vcombine.low %v842_v44, %v846_v45  ;;  %v10703_v57 = vcombine.low %v843_v46, %v847_v47  ;;  %s13813_s30 = scalar_lea.vmem [#allocation3], %s11790_s19 }
 0x18c   : > { %3961 = vmatpush1.bf16.msra.mxu0 %v10685_v40  ;;  %4165 = vmatpush1.bf16.msra.mxu1 %v10687_v41  ;;  %v854_v53 = vld [vmem:[%s13183_s11 + $0x120] sm:$0xff]  ;;  %v855_v55 = vld [vmem:[%s13183_s11 + $0x128] sm:$0xff] }
 0x18d   : > { %3962 = vmatprep.subr.bf16.mxu0 %v10694_v42  ;;  %4166 = vmatprep.subr.bf16.mxu1 %v10696_v43  ;;  %v10710_v58 = vcombine.high %v850_v52, %v854_v53  ;;  %v10712_v59 = vcombine.high %v851_v54, %v855_v55  ;;  %v858_v60 = vld [vmem:[%s13183_s11 + $0x140] sm:$0xff]  ;;  %v859_v62 = vld [vmem:[%s13183_s11 + $0x148] sm:$0xff]  ;;  %v10709_v0 = vcombine.low %v850_v52, %v854_v53 }
 0x18e   : > { %v862_v61 = vld [vmem:[%s13183_s11 + $0x160] sm:$0xff]  ;;  %v863_v63 = vld [vmem:[%s13183_s11 + $0x168] sm:$0xff]  ;;  %v10711_v1 = vcombine.low %v851_v54, %v855_v55 }
 0x18f   : > { %v10718_v2 = vcombine.high %v858_v60, %v862_v61  ;;  %v10720_v3 = vcombine.high %v859_v62, %v863_v63  ;;  %v866_v4 = vld [vmem:[%s13183_s11 + $0x180] sm:$0xff]  ;;  %v867_v6 = vld [vmem:[%s13183_s11 + $0x188] sm:$0xff]  ;;  %v10717_v8 = vcombine.low %v858_v60, %v862_v61  ;;  %v10719_v9 = vcombine.low %v859_v62, %v863_v63 }
 0x190   : > { %3963 = vmatpush1.bf16.msra.mxu0 %v10693_v48  ;;  %4167 = vmatpush1.bf16.msra.mxu1 %v10695_v49  ;;  %v870_v5 = vld [vmem:[%s13183_s11 + $0x1a0] sm:$0xff]  ;;  %v871_v7 = vld [vmem:[%s13183_s11 + $0x1a8] sm:$0xff] }
 0x191   : > { %3964 = vmatprep.subr.bf16.mxu0 %v10702_v50  ;;  %4168 = vmatprep.subr.bf16.mxu1 %v10704_v51  ;;  %v10726_v10 = vcombine.high %v866_v4, %v870_v5  ;;  %v10728_v13 = vcombine.high %v867_v6, %v871_v7  ;;  %v874_v14 = vld [vmem:[%s13183_s11 + $0x1c0] sm:$0xff]  ;;  %v875_v17 = vld [vmem:[%s13183_s11 + $0x1c8] sm:$0xff]  ;;  %v10725_v19 = vcombine.low %v866_v4, %v870_v5 }
 0x192   : > { %v878_v15 = vld [vmem:[%s13183_s11 + $0x1e0] sm:$0xff]  ;;  %v879_v18 = vld [vmem:[%s13183_s11 + $0x1e8] sm:$0xff]  ;;  %v10727_v20 = vcombine.low %v867_v6, %v871_v7 }
 0x193   : > { %v10734_v21 = vcombine.high %v874_v14, %v878_v15  ;;  %v10736_v22 = vcombine.high %v875_v17, %v879_v18  ;;  %v882_v23 = vld [vmem:[%s13183_s11 + $0x200] sm:$0xff]  ;;  %v883_v25 = vld [vmem:[%s13183_s11 + $0x208] sm:$0xff]  ;;  %v10733_v27 = vcombine.low %v874_v14, %v878_v15  ;;  %v10735_v28 = vcombine.low %v875_v17, %v879_v18 }
 0x194   : > { %3965 = vmatpush1.bf16.msra.mxu0 %v10701_v56  ;;  %4169 = vmatpush1.bf16.msra.mxu1 %v10703_v57  ;;  %v886_v24 = vld [vmem:[%s13183_s11 + $0x220] sm:$0xff]  ;;  %v887_v26 = vld [vmem:[%s13183_s11 + $0x228] sm:$0xff] }
 0x195   : > { %3966 = vmatprep.subr.bf16.mxu0 %v10710_v58  ;;  %4170 = vmatprep.subr.bf16.mxu1 %v10712_v59  ;;  %v10742_v29 = vcombine.high %v882_v23, %v886_v24  ;;  %v10744_v30 = vcombine.high %v883_v25, %v887_v26  ;;  %v890_v31 = vld [vmem:[%s13183_s11 + $0x240] sm:$0xff]  ;;  %v891_v33 = vld [vmem:[%s13183_s11 + $0x248] sm:$0xff]  ;;  %v10741_v35 = vcombine.low %v882_v23, %v886_v24 }
 0x196   : > { %v894_v32 = vld [vmem:[%s13183_s11 + $0x260] sm:$0xff]  ;;  %v895_v34 = vld [vmem:[%s13183_s11 + $0x268] sm:$0xff]  ;;  %v10743_v36 = vcombine.low %v883_v25, %v887_v26 }
 0x197   : > { %v10750_v37 = vcombine.high %v890_v31, %v894_v32  ;;  %v10752_v38 = vcombine.high %v891_v33, %v895_v34  ;;  %v898_v39 = vld [vmem:[%s13183_s11 + $0x280] sm:$0xff]  ;;  %v899_v41 = vld [vmem:[%s13183_s11 + $0x288] sm:$0xff]  ;;  %v10749_v43 = vcombine.low %v890_v31, %v894_v32  ;;  %v10751_v44 = vcombine.low %v891_v33, %v895_v34 }
 0x198   : > { %3967 = vmatpush1.bf16.msra.mxu0 %v10709_v0  ;;  %4171 = vmatpush1.bf16.msra.mxu1 %v10711_v1  ;;  %v902_v40 = vld [vmem:[%s13183_s11 + $0x2a0] sm:$0xff]  ;;  %v903_v42 = vld [vmem:[%s13183_s11 + $0x2a8] sm:$0xff] }
 0x199   : > { %3968 = vmatprep.subr.bf16.mxu0 %v10718_v2  ;;  %4172 = vmatprep.subr.bf16.mxu1 %v10720_v3  ;;  %v10758_v45 = vcombine.high %v898_v39, %v902_v40  ;;  %v10760_v46 = vcombine.high %v899_v41, %v903_v42  ;;  %v906_v47 = vld [vmem:[%s13183_s11 + $0x2c0] sm:$0xff]  ;;  %v907_v49 = vld [vmem:[%s13183_s11 + $0x2c8] sm:$0xff]  ;;  %v10757_v51 = vcombine.low %v898_v39, %v902_v40  ;;  %v814_v39 = vld [vmem:[#allocation2 + $0x40] sm:$0x11] }
 0x19a   : > { %v910_v48 = vld [vmem:[%s13183_s11 + $0x2e0] sm:$0xff]  ;;  %v911_v50 = vld [vmem:[%s13183_s11 + $0x2e8] sm:$0xff]  ;;  %v10759_v52 = vcombine.low %v899_v41, %v903_v42 }
 0x19b   : > { %v10766_v53 = vcombine.high %v906_v47, %v910_v48  ;;  %v10768_v54 = vcombine.high %v907_v49, %v911_v50  ;;  %v914_v55 = vld [vmem:[%s13183_s11 + $0x300] sm:$0xff]  ;;  %v915_v57 = vld [vmem:[%s13183_s11 + $0x308] sm:$0xff]  ;;  %v10765_v59 = vcombine.low %v906_v47, %v910_v48  ;;  %v10767_v60 = vcombine.low %v907_v49, %v911_v50 }
 0x19c   : > { %3969 = vmatpush1.bf16.msra.mxu0 %v10717_v8  ;;  %4173 = vmatpush1.bf16.msra.mxu1 %v10719_v9  ;;  %v918_v56 = vld [vmem:[%s13183_s11 + $0x320] sm:$0xff]  ;;  %v919_v58 = vld [vmem:[%s13183_s11 + $0x328] sm:$0xff] }
 0x19d   : > { %3970 = vmatprep.subr.bf16.mxu0 %v10726_v10  ;;  %4174 = vmatprep.subr.bf16.mxu1 %v10728_v13  ;;  %v10774_v61 = vcombine.high %v914_v55, %v918_v56  ;;  %v10776_v62 = vcombine.high %v915_v57, %v919_v58  ;;  %v922_v63 = vld [vmem:[%s13183_s11 + $0x340] sm:$0xff]  ;;  %v923_v1 = vld [vmem:[%s13183_s11 + $0x348] sm:$0xff]  ;;  %v10773_v3 = vcombine.low %v914_v55, %v918_v56 }
 0x19e   : > { %v926_v0 = vld [vmem:[%s13183_s11 + $0x360] sm:$0xff]  ;;  %v927_v2 = vld [vmem:[%s13183_s11 + $0x368] sm:$0xff]  ;;  %v10775_v4 = vcombine.low %v915_v57, %v919_v58  ;;  %v13312_v55 = vcombine.low %v814_v39, %v814_v39 }
 0x19f   : > { %v10782_v5 = vcombine.high %v922_v63, %v926_v0  ;;  %v10784_v6 = vcombine.high %v923_v1, %v927_v2  ;;  %v930_v7 = vld [vmem:[%s13183_s11 + $0x380] sm:$0xff]  ;;  %v931_v9 = vld [vmem:[%s13183_s11 + $0x388] sm:$0xff]  ;;  %v10781_v13 = vcombine.low %v922_v63, %v926_v0  ;;  %v10783_v14 = vcombine.low %v923_v1, %v927_v2 }
 0x1a0   : > { %3971 = vmatpush1.bf16.msra.mxu0 %v10725_v19  ;;  %4175 = vmatpush1.bf16.msra.mxu1 %v10727_v20  ;;  %v934_v8 = vld [vmem:[%s13183_s11 + $0x3a0] sm:$0xff]  ;;  %v935_v10 = vld [vmem:[%s13183_s11 + $0x3a8] sm:$0xff] }
 0x1a1   : > { %3972 = vmatprep.subr.bf16.mxu0 %v10734_v21  ;;  %4176 = vmatprep.subr.bf16.mxu1 %v10736_v22  ;;  %v10790_v15 = vcombine.high %v930_v7, %v934_v8  ;;  %v10792_v17 = vcombine.high %v931_v9, %v935_v10  ;;  %v938_v18 = vld [vmem:[%s13183_s11 + $0x3c0] sm:$0xff]  ;;  %v939_v20 = vld [vmem:[%s13183_s11 + $0x3c8] sm:$0xff]  ;;  %v10789_v22 = vcombine.low %v930_v7, %v934_v8 }
 0x1a2   : > { %v942_v19 = vld [vmem:[%s13183_s11 + $0x3e0] sm:$0xff]  ;;  %v943_v21 = vld [vmem:[%s13183_s11 + $0x3e8] sm:$0xff]  ;;  %v10791_v23 = vcombine.low %v931_v9, %v935_v10 }
 0x1a3   : > { %v10798_v24 = vcombine.high %v938_v18, %v942_v19  ;;  %v10800_v25 = vcombine.high %v939_v20, %v943_v21  ;;  %v946_v26 = vld [vmem:[%s13183_s11 + $0x400] sm:$0xff]  ;;  %v10799_v31 = vcombine.low %v939_v20, %v943_v21  ;;  %v979_v1 = vld [vmem:[%s13183_s11 + $0x508] sm:$0xff] }
 0x1a4   : > { %3973 = vmatpush1.bf16.msra.mxu0 %v10733_v27  ;;  %4177 = vmatpush1.bf16.msra.mxu1 %v10735_v28  ;;  %v950_v27 = vld [vmem:[%s13183_s11 + $0x420] sm:$0xff]  ;;  %v947_v28 = vld [vmem:[%s13183_s11 + $0x408] sm:$0xff] }
 0x1a5   : > { %3974 = vmatprep.subr.bf16.mxu0 %v10742_v29  ;;  %4178 = vmatprep.subr.bf16.mxu1 %v10744_v30  ;;  %v951_v29 = vld [vmem:[%s13183_s11 + $0x428] sm:$0xff]  ;;  %v10797_v30 = vcombine.low %v938_v18, %v942_v19  ;;  %v10806_v32 = vcombine.high %v946_v26, %v950_v27  ;;  %v954_v34 = vld [vmem:[%s13183_s11 + $0x440] sm:$0xff]  ;;  %v10805_v40 = vcombine.low %v946_v26, %v950_v27 }
 0x1a6   : > { %v10808_v33 = vcombine.high %v947_v28, %v951_v29  ;;  %v10807_v41 = vcombine.low %v947_v28, %v951_v29  ;;  %v13314_v56 = vld [vmem:[#allocation2 + $0x8] sm:$0xff]  ;;  %v983_v2 = vld [vmem:[%s13183_s11 + $0x528] sm:$0xff] }
 0x1a7   : > { %v13316_v57 = vld [vmem:[#allocation2 + $0x28] sm:$0xff]  ;;  %v987_v9 = vld [vmem:[%s13183_s11 + $0x548] sm:$0xff] }
 0x1a8   : > { %3975 = vmatpush1.bf16.msra.mxu0 %v10741_v35  ;;  %4179 = vmatpush1.bf16.msra.mxu1 %v10743_v36  ;;  %v958_v35 = vld [vmem:[%s13183_s11 + $0x460] sm:$0xff]  ;;  %v13294_v36 = vcombine.low %v13240_v11, %v13242_v12  ;;  %v13300_v11 = vcombine.high %v814_v39, %v814_v39  ;;  %v963_v12 = vld [vmem:[%s13183_s11 + $0x488] sm:$0xff]  ;;  %v13322_v0 = vcombine.high %v13314_v56, %v13316_v57 }
 0x1a9   : > { %3976 = vmatprep.subr.bf16.mxu0 %v10750_v37  ;;  %4180 = vmatprep.subr.bf16.mxu1 %v10752_v38  ;;  %v955_v37 = vld [vmem:[%s13183_s11 + $0x448] sm:$0xff]  ;;  %v10814_v42 = vcombine.high %v954_v34, %v958_v35  ;;  %v10813_v47 = vcombine.low %v954_v34, %v958_v35  ;;  %v982_v63 = vld [vmem:[%s13183_s11 + $0x520] sm:$0xff] }
 0x1aa   : > { %v959_v38 = vld [vmem:[%s13183_s11 + $0x468] sm:$0xff]  ;;  %v986_v7 = vld [vmem:[%s13183_s11 + $0x540] sm:$0xff] }
 0x1ab   : > { %v10815_v48 = vcombine.low %v955_v37, %v959_v38  ;;  %v990_v8 = vld [vmem:[%s13183_s11 + $0x560] sm:$0xff]  ;;  %v991_v10 = vld [vmem:[%s13183_s11 + $0x568] sm:$0xff] }
 0x1ac   : > { %3977 = vmatpush1.bf16.msra.mxu0 %v10749_v43  ;;  %4181 = vmatpush1.bf16.msra.mxu1 %v10751_v44  ;;  %v10816_v43 = vcombine.high %v955_v37, %v959_v38  ;;  %v962_v44 = vld [vmem:[%s13183_s11 + $0x480] sm:$0xff]  ;;  %v995_v20 = vld [vmem:[%s13183_s11 + $0x588] sm:$0xff] }
 0x1ad   : > { %3978 = vmatprep.subr.bf16.mxu0 %v10758_v45  ;;  %4182 = vmatprep.subr.bf16.mxu1 %v10760_v46  ;;  %v966_v45 = vld [vmem:[%s13183_s11 + $0x4a0] sm:$0xff]  ;;  %v967_v46 = vld [vmem:[%s13183_s11 + $0x4a8] sm:$0xff] }
 0x1ae   : > { %v10822_v49 = vcombine.high %v962_v44, %v966_v45  ;;  %v10824_v50 = vcombine.high %v963_v12, %v967_v46  ;;  %v10821_v58 = vcombine.low %v962_v44, %v966_v45  ;;  %v994_v18 = vld [vmem:[%s13183_s11 + $0x580] sm:$0xff]  ;;  %v999_v21 = vld [vmem:[%s13183_s11 + $0x5a8] sm:$0xff] }
 0x1af   : > { %v998_v19 = vld [vmem:[%s13183_s11 + $0x5a0] sm:$0xff]  ;;  %v1003_v28 = vld [vmem:[%s13183_s11 + $0x5c8] sm:$0xff] }
 0x1b0   : > { %3979 = vmatpush1.bf16.msra.mxu0 %v10757_v51  ;;  %4183 = vmatpush1.bf16.msra.mxu1 %v10759_v52  ;;  %v970_v51 = vld [vmem:[%s13183_s11 + $0x4c0] sm:$0xff]  ;;  %v1007_v29 = vld [vmem:[%s13183_s11 + $0x5e8] sm:$0xff] }
 0x1b1   : > { %3980 = vmatprep.subr.bf16.mxu0 %v10766_v53  ;;  %4184 = vmatprep.subr.bf16.mxu1 %v10768_v54  ;;  %v974_v52 = vld [vmem:[%s13183_s11 + $0x4e0] sm:$0xff]  ;;  %v971_v53 = vld [vmem:[%s13183_s11 + $0x4c8] sm:$0xff] }
 0x1b2   : > { %v975_v54 = vld [vmem:[%s13183_s11 + $0x4e8] sm:$0xff]  ;;  %v1002_v26 = vld [vmem:[%s13183_s11 + $0x5c0] sm:$0xff] }
 0x1b3   : > { %v1006_v27 = vld [vmem:[%s13183_s11 + $0x5e0] sm:$0xff]  ;;  %v1011_v37 = vld [vmem:[%s13183_s11 + $0x608] sm:$0xff] }
 0x1b4   : > { %3981 = vmatpush1.bf16.msra.mxu0 %v10765_v59  ;;  %4185 = vmatpush1.bf16.msra.mxu1 %v10767_v60  ;;  %v10823_v59 = vcombine.low %v963_v12, %v967_v46  ;;  %v10830_v60 = vcombine.high %v970_v51, %v974_v52  ;;  %v1010_v34 = vld [vmem:[%s13183_s11 + $0x600] sm:$0xff]  ;;  %v1015_v38 = vld [vmem:[%s13183_s11 + $0x628] sm:$0xff]  ;;  %v10861_v39 = vcombine.low %v1002_v26, %v1006_v27 }
 0x1b5   : > { %3982 = vmatprep.subr.bf16.mxu0 %v10774_v61  ;;  %4186 = vmatprep.subr.bf16.mxu1 %v10776_v62  ;;  %v10832_v61 = vcombine.high %v971_v53, %v975_v54  ;;  %v978_v62 = vld [vmem:[%s13183_s11 + $0x500] sm:$0xff]  ;;  %v1019_v45 = vld [vmem:[%s13183_s11 + $0x648] sm:$0xff] }
 0x1b6   : > { %v1014_v35 = vld [vmem:[%s13183_s11 + $0x620] sm:$0xff]  ;;  %v1023_v12 = vld [vmem:[%s13183_s11 + $0x668] sm:$0xff] }
 0x1b7   : > { %v1022_v44 = vld [vmem:[%s13183_s11 + $0x660] sm:$0xff]  ;;  %v10869_v46 = vcombine.low %v1010_v34, %v1014_v35 }
 0x1b8   : > { %3983 = vmatpush1.bf16.msra.mxu0 %v10773_v3  ;;  %4187 = vmatpush1.bf16.msra.mxu1 %v10775_v4  ;;  %v10829_v3 = vcombine.low %v970_v51, %v974_v52  ;;  %v10831_v4 = vcombine.low %v971_v53, %v975_v54  ;;  %v1030_v51 = vld [vmem:[%s13183_s11 + $0x6a0] sm:$0xff]  ;;  %v1027_v52 = vld [vmem:[%s13183_s11 + $0x688] sm:$0xff] }
 0x1b9   : > { %3984 = vmatprep.subr.bf16.mxu0 %v10782_v5  ;;  %4188 = vmatprep.subr.bf16.mxu1 %v10784_v6  ;;  %v10838_v5 = vcombine.high %v978_v62, %v982_v63  ;;  %v10840_v6 = vcombine.high %v979_v1, %v983_v2  ;;  %v1031_v53 = vld [vmem:[%s13183_s11 + $0x6a8] sm:$0xff] }
 0x1bc   : > { %3985 = vmatpush1.bf16.msra.mxu0 %v10781_v13  ;;  %4189 = vmatpush1.bf16.msra.mxu1 %v10783_v14  ;;  %v10837_v13 = vcombine.low %v978_v62, %v982_v63  ;;  %v10839_v14 = vcombine.low %v979_v1, %v983_v2  ;;  %v1038_v62 = vld [vmem:[%s13183_s11 + $0x6e0] sm:$0xff]  ;;  %v1035_v63 = vld [vmem:[%s13183_s11 + $0x6c8] sm:$0xff] }
 0x1bd   : > { %3986 = vmatprep.subr.bf16.mxu0 %v10790_v15  ;;  %4190 = vmatprep.subr.bf16.mxu1 %v10792_v17  ;;  %v10846_v15 = vcombine.high %v986_v7, %v990_v8  ;;  %v10848_v17 = vcombine.high %v987_v9, %v991_v10  ;;  %v1039_v1 = vld [vmem:[%s13183_s11 + $0x6e8] sm:$0xff] }
 0x1c0   : > { %3987 = vmatpush1.bf16.msra.mxu0 %v10789_v22  ;;  %4191 = vmatpush1.bf16.msra.mxu1 %v10791_v23  ;;  %v10845_v22 = vcombine.low %v986_v7, %v990_v8  ;;  %v10847_v23 = vcombine.low %v987_v9, %v991_v10  ;;  %v1046_v7 = vld [vmem:[%s13183_s11 + $0x720] sm:$0xff]  ;;  %v1043_v8 = vld [vmem:[%s13183_s11 + $0x708] sm:$0xff] }
 0x1c1   : > { %3988 = vmatprep.subr.bf16.mxu0 %v10798_v24  ;;  %4192 = vmatprep.subr.bf16.mxu1 %v10800_v25  ;;  %v10854_v24 = vcombine.high %v994_v18, %v998_v19  ;;  %v10856_v25 = vcombine.high %v995_v20, %v999_v21  ;;  %v1047_v9 = vld [vmem:[%s13183_s11 + $0x728] sm:$0xff] }
 0x1c4   : > { %3989 = vmatpush1.bf16.msra.mxu0 %v10797_v30  ;;  %4193 = vmatpush1.bf16.msra.mxu1 %v10799_v31  ;;  %v10853_v30 = vcombine.low %v994_v18, %v998_v19  ;;  %v10855_v31 = vcombine.low %v995_v20, %v999_v21  ;;  %v1054_v18 = vld [vmem:[%s13183_s11 + $0x760] sm:$0xff]  ;;  %v1051_v19 = vld [vmem:[%s13183_s11 + $0x748] sm:$0xff] }
 0x1c5   : > { %4009 = vmatprep.subr.bf16.mxu0 %v10806_v32  ;;  %4213 = vmatprep.subr.bf16.mxu1 %v10808_v33  ;;  %v10862_v32 = vcombine.high %v1002_v26, %v1006_v27  ;;  %v10864_v33 = vcombine.high %v1003_v28, %v1007_v29  ;;  %v1055_v20 = vld [vmem:[%s13183_s11 + $0x768] sm:$0xff]  ;;  %v1062_v26 = vld [vmem:[%s13183_s11 + $0x7a0] sm:$0xff] }
 0x1c6   : > { %v1059_v27 = vld [vmem:[%s13183_s11 + $0x788] sm:$0xff] }
 0x1c7   : > { %3991 = vmatmul.mubr.bf16.vlgmr.msra.gmra.mrb[0].mxu0 %v13294_v36  ;;  %4195 = vmatmul.mubr.bf16.vlgmr.msra.gmra.mrb[0].mxu1 %v13294_v36 }
 0x1c8   : > { %4010 = vmatpush1.bf16.msra.mxu0 %v10805_v40  ;;  %4214 = vmatpush1.bf16.msra.mxu1 %v10807_v41  ;;  %v10863_v40 = vcombine.low %v1003_v28, %v1007_v29  ;;  %v10870_v41 = vcombine.high %v1010_v34, %v1014_v35  ;;  %v1063_v28 = vld [vmem:[%s13183_s11 + $0x7a8] sm:$0xff]  ;;  %v1070_v34 = vld [vmem:[%s13183_s11 + $0x7e0] sm:$0xff] }
 0x1c9   : > { %4011 = vmatprep.subr.bf16.mxu0 %v10814_v42  ;;  %4215 = vmatprep.subr.bf16.mxu1 %v10816_v43  ;;  %v10872_v42 = vcombine.high %v1011_v37, %v1015_v38  ;;  %v1018_v43 = vld [vmem:[%s13183_s11 + $0x640] sm:$0xff]  ;;  %v1067_v35 = vld [vmem:[%s13183_s11 + $0x7c8] sm:$0xff] }
 0x1ca   : > { %4000 = vmatprep.mubr.bf16.mxu0 %v13300_v11  ;;  %4204 = vmatprep.mubr.bf16.mxu1 %v13300_v11  ;;  %v10877_v54 = vcombine.low %v1018_v43, %v1022_v44 }
 0x1cc   : > { %4012 = vmatpush1.bf16.msra.mxu0 %v10813_v47  ;;  %4216 = vmatpush1.bf16.msra.mxu1 %v10815_v48  ;;  %v10871_v47 = vcombine.low %v1011_v37, %v1015_v38  ;;  %v10878_v48 = vcombine.high %v1018_v43, %v1022_v44  ;;  %v1071_v37 = vld [vmem:[%s13183_s11 + $0x7e8] sm:$0xff]  ;;  %v1078_v43 = vld [vmem:[%s13183_s11 + $0x820] sm:$0xff] }
 0x1cd   : > { %4013 = vmatprep.subr.bf16.mxu0 %v10822_v49  ;;  %4217 = vmatprep.subr.bf16.mxu1 %v10824_v50  ;;  %v10880_v49 = vcombine.high %v1019_v45, %v1023_v12  ;;  %v1026_v50 = vld [vmem:[%s13183_s11 + $0x680] sm:$0xff]  ;;  %v1075_v44 = vld [vmem:[%s13183_s11 + $0x808] sm:$0xff] }
 0x1ce   : > { %v10885_v2 = vcombine.low %v1026_v50, %v1030_v51 }
 0x1cf   : > { %4001 = vmatmul.mubr.bf16.gmra.mrb[4].mxu0 %v13312_v55  ;;  %4205 = vmatmul.mubr.bf16.gmra.mrb[4].mxu1 %v13312_v55 }
 0x1d0   : > { %4014 = vmatpush1.bf16.msra.mxu0 %v10821_v58  ;;  %4218 = vmatpush1.bf16.msra.mxu1 %v10823_v59  ;;  %v10879_v58 = vcombine.low %v1019_v45, %v1023_v12  ;;  %v10886_v59 = vcombine.high %v1026_v50, %v1030_v51  ;;  %v1079_v45 = vld [vmem:[%s13183_s11 + $0x828] sm:$0xff]  ;;  %v1086_v50 = vld [vmem:[%s13183_s11 + $0x860] sm:$0xff]  ;;  %v13382_v51 = vcombine.low %v13314_v56, %v13316_v57 }
 0x1d1   : > { %4015 = vmatprep.subr.bf16.mxu0 %v10830_v60  ;;  %4219 = vmatprep.subr.bf16.mxu1 %v10832_v61  ;;  %v10888_v60 = vcombine.high %v1027_v52, %v1031_v53  ;;  %v1034_v61 = vld [vmem:[%s13183_s11 + $0x6c0] sm:$0xff]  ;;  %v1091_v57 = vld [vmem:[%s13183_s11 + $0x888] sm:$0xff] }
 0x1d2   : > { %4041 = vmatprep.mubr.bf16.mxu0 %v13322_v0  ;;  %4245 = vmatprep.mubr.bf16.mxu1 %v13322_v0  ;;  %v10893_v10 = vcombine.low %v1034_v61, %v1038_v62 }
 0x1d4   : > { %4016 = vmatpush1.bf16.msra.mxu0 %v10829_v3  ;;  %4220 = vmatpush1.bf16.msra.mxu1 %v10831_v4  ;;  %v10887_v3 = vcombine.low %v1027_v52, %v1031_v53  ;;  %v10894_v4 = vcombine.high %v1034_v61, %v1038_v62  ;;  %v1083_v52 = vld [vmem:[%s13183_s11 + $0x848] sm:$0xff]  ;;  %v1090_v62 = vld [vmem:[%s13183_s11 + $0x880] sm:$0xff] }
 0x1d5   : > { %4017 = vmatprep.subr.bf16.mxu0 %v10838_v5  ;;  %4221 = vmatprep.subr.bf16.mxu1 %v10840_v6  ;;  %v10896_v5 = vcombine.high %v1035_v63, %v1039_v1  ;;  %v1042_v6 = vld [vmem:[%s13183_s11 + $0x700] sm:$0xff]  ;;  %v1087_v53 = vld [vmem:[%s13183_s11 + $0x868] sm:$0xff] }
 0x1d6   : > { %v10901_v21 = vcombine.low %v1042_v6, %v1046_v7  ;;  %v10944_v61 = vcombine.high %v1083_v52, %v1087_v53 }
 0x1d8   : > { %4018 = vmatpush1.bf16.msra.mxu0 %v10837_v13  ;;  %4222 = vmatpush1.bf16.msra.mxu1 %v10839_v14  ;;  %v10895_v13 = vcombine.low %v1035_v63, %v1039_v1  ;;  %v10902_v14 = vcombine.high %v1042_v6, %v1046_v7  ;;  %v1094_v63 = vld [vmem:[%s13183_s11 + $0x8a0] sm:$0xff]  ;;  %v1095_v1 = vld [vmem:[%s13183_s11 + $0x8a8] sm:$0xff] }
 0x1d9   : > { %4019 = vmatprep.subr.bf16.mxu0 %v10846_v15  ;;  %4223 = vmatprep.subr.bf16.mxu1 %v10848_v17  ;;  %v10904_v15 = vcombine.high %v1043_v8, %v1047_v9  ;;  %v1050_v17 = vld [vmem:[%s13183_s11 + $0x740] sm:$0xff] }
 0x1da   : > { %v10909_v29 = vcombine.low %v1050_v17, %v1054_v18  ;;  %v1098_v6 = vld [vmem:[%s13183_s11 + $0x8c0] sm:$0xff] }
 0x1db   : > { %v1102_v7 = vld [vmem:[%s13183_s11 + $0x8e0] sm:$0xff] }
 0x1dc   : > { %4020 = vmatpush1.bf16.msra.mxu0 %v10845_v22  ;;  %4224 = vmatpush1.bf16.msra.mxu1 %v10847_v23  ;;  %v10903_v22 = vcombine.low %v1043_v8, %v1047_v9  ;;  %v10910_v23 = vcombine.high %v1050_v17, %v1054_v18  ;;  %v1099_v8 = vld [vmem:[%s13183_s11 + $0x8c8] sm:$0xff]  ;;  %v10951_v17 = vcombine.low %v1091_v57, %v1095_v1 }
 0x1dd   : > { %4021 = vmatprep.subr.bf16.mxu0 %v10854_v24  ;;  %4225 = vmatprep.subr.bf16.mxu1 %v10856_v25  ;;  %v10912_v24 = vcombine.high %v1051_v19, %v1055_v20  ;;  %v1058_v25 = vld [vmem:[%s13183_s11 + $0x780] sm:$0xff]  ;;  %v1103_v9 = vld [vmem:[%s13183_s11 + $0x8e8] sm:$0xff]  ;;  %v10958_v18 = vcombine.high %v1098_v6, %v1102_v7 }
 0x1de   : > { %v10917_v38 = vcombine.low %v1058_v25, %v1062_v26 }
 0x1e0   : > { %4022 = vmatpush1.bf16.msra.mxu0 %v10853_v30  ;;  %4226 = vmatpush1.bf16.msra.mxu1 %v10855_v31  ;;  %v10911_v30 = vcombine.low %v1051_v19, %v1055_v20  ;;  %v10918_v31 = vcombine.high %v1058_v25, %v1062_v26  ;;  %v10960_v19 = vcombine.high %v1099_v8, %v1103_v9  ;;  %v1106_v20 = vld [vmem:[%s13183_s11 + $0x900] sm:$0xff] }
 0x1e1   : > { %4023 = vmatprep.subr.bf16.mxu0 %v10862_v32  ;;  %4227 = vmatprep.subr.bf16.mxu1 %v10864_v33  ;;  %v10920_v32 = vcombine.high %v1059_v27, %v1063_v28  ;;  %v1066_v33 = vld [vmem:[%s13183_s11 + $0x7c0] sm:$0xff]  ;;  %v10957_v25 = vcombine.low %v1098_v6, %v1102_v7  ;;  %v10959_v26 = vcombine.low %v1099_v8, %v1103_v9 }
 0x1e2   : > { %v10925_v12 = vcombine.low %v1066_v33, %v1070_v34  ;;  %v1154_v9 = vld [vmem:[%s13183_s11 + $0xa80] sm:$0xff] }
 0x1e4   : > { %4024 = vmatpush1.bf16.msra.mxu0 %v10861_v39  ;;  %4228 = vmatpush1.bf16.msra.mxu1 %v10863_v40  ;;  %v10919_v39 = vcombine.low %v1059_v27, %v1063_v28  ;;  %v10926_v40 = vcombine.high %v1066_v33, %v1070_v34 }
 0x1e5   : > { %4025 = vmatprep.subr.bf16.mxu0 %v10870_v41  ;;  %4229 = vmatprep.subr.bf16.mxu1 %v10872_v42  ;;  %v10928_v41 = vcombine.high %v1067_v35, %v1071_v37  ;;  %v1074_v42 = vld [vmem:[%s13183_s11 + $0x800] sm:$0xff] }
 0x1e8   : > { %4026 = vmatpush1.bf16.msra.mxu0 %v10869_v46  ;;  %4230 = vmatpush1.bf16.msra.mxu1 %v10871_v47  ;;  %v10927_v46 = vcombine.low %v1067_v35, %v1071_v37  ;;  %v10934_v47 = vcombine.high %v1074_v42, %v1078_v43 }
 0x1e9   : > { %4027 = vmatprep.subr.bf16.mxu0 %v10878_v48  ;;  %4231 = vmatprep.subr.bf16.mxu1 %v10880_v49  ;;  %v10936_v48 = vcombine.high %v1075_v44, %v1079_v45  ;;  %v1082_v49 = vld [vmem:[%s13183_s11 + $0x840] sm:$0xff] }
 0x1ec   : > { %4028 = vmatpush1.bf16.msra.mxu0 %v10877_v54  ;;  %4232 = vmatpush1.bf16.msra.mxu1 %v10879_v58  ;;  %v815_v54 = vld [vmem:[#allocation2 + $0x48] sm:$0x11]  ;;  %v10933_v58 = vcombine.low %v1074_v42, %v1078_v43 }
 0x1ed   : > { %4029 = vmatprep.subr.bf16.mxu0 %v10886_v59  ;;  %4233 = vmatprep.subr.bf16.mxu1 %v10888_v60  ;;  %v10935_v59 = vcombine.low %v1075_v44, %v1079_v45  ;;  %v10942_v60 = vcombine.high %v1082_v49, %v1086_v50  ;;  %v13388_v56 = vcombine.high %v815_v54, %v815_v54 }
 0x1f0   : > { %4030 = vmatpush1.bf16.msra.mxu0 %v10885_v2  ;;  %4234 = vmatpush1.bf16.msra.mxu1 %v10887_v3  ;;  %v10941_v2 = vcombine.low %v1082_v49, %v1086_v50  ;;  %v10943_v3 = vcombine.low %v1083_v52, %v1087_v53 }
 0x1f1   : > { %4031 = vmatprep.subr.bf16.mxu0 %v10894_v4  ;;  %4235 = vmatprep.subr.bf16.mxu1 %v10896_v5  ;;  %v10950_v4 = vcombine.high %v1090_v62, %v1094_v63  ;;  %v10952_v5 = vcombine.high %v1091_v57, %v1095_v1  ;;  %v1146_v1 = vld [vmem:[%s13183_s11 + $0xa40] sm:$0xff] }
 0x1f4   : > { %4032 = vmatpush1.bf16.msra.mxu0 %v10893_v10  ;;  %4236 = vmatpush1.bf16.msra.mxu1 %v10895_v13  ;;  %v13400_v10 = vcombine.low %v815_v54, %v815_v54  ;;  %v13402_v13 = vld [vmem:[#allocation2 + $0x10] sm:$0xff]  ;;  %v1138_v54 = vld [vmem:[%s13183_s11 + $0xa00] sm:$0xff] }
 0x1f5   : > { %4033 = vmatprep.subr.bf16.mxu0 %v10902_v14  ;;  %4237 = vmatprep.subr.bf16.mxu1 %v10904_v15  ;;  %v13404_v14 = vld [vmem:[#allocation2 + $0x30] sm:$0xff]  ;;  %v10949_v15 = vcombine.low %v1090_v62, %v1094_v63 }
 0x1f8   : > { %4034 = vmatpush1.bf16.msra.mxu0 %v10901_v21  ;;  %4238 = vmatpush1.bf16.msra.mxu1 %v10903_v22  ;;  %v1110_v21 = vld [vmem:[%s13183_s11 + $0x920] sm:$0xff]  ;;  %v13410_v22 = vcombine.high %v13402_v13, %v13404_v14 }
 0x1f9   : > { %4035 = vmatprep.subr.bf16.mxu0 %v10910_v23  ;;  %4239 = vmatprep.subr.bf16.mxu1 %v10912_v24  ;;  %v1107_v23 = vld [vmem:[%s13183_s11 + $0x908] sm:$0xff]  ;;  %v10966_v27 = vcombine.high %v1106_v20, %v1110_v21  ;;  %v10965_v33 = vcombine.low %v1106_v20, %v1110_v21 }
 0x1fa   : > { %v1111_v24 = vld [vmem:[%s13183_s11 + $0x928] sm:$0xff] }
 0x1fb   : > { %v10968_v28 = vcombine.high %v1107_v23, %v1111_v24  ;;  %v10967_v34 = vcombine.low %v1107_v23, %v1111_v24  ;;  %v1162_v24 = vld [vmem:[%s13183_s11 + $0xac0] sm:$0xff] }
 0x1fc   : > { %4036 = vmatpush1.bf16.msra.mxu0 %v10909_v29  ;;  %4240 = vmatpush1.bf16.msra.mxu1 %v10911_v30  ;;  %v1114_v29 = vld [vmem:[%s13183_s11 + $0x940] sm:$0xff] }
 0x1fd   : > { %4037 = vmatprep.subr.bf16.mxu0 %v10918_v31  ;;  %4241 = vmatprep.subr.bf16.mxu1 %v10920_v32  ;;  %v1118_v30 = vld [vmem:[%s13183_s11 + $0x960] sm:$0xff]  ;;  %v1115_v31 = vld [vmem:[%s13183_s11 + $0x948] sm:$0xff] }
 0x1fe   : > { %v1119_v32 = vld [vmem:[%s13183_s11 + $0x968] sm:$0xff]  ;;  %v10974_v35 = vcombine.high %v1114_v29, %v1118_v30  ;;  %v10973_v42 = vcombine.low %v1114_v29, %v1118_v30 }
 0x1ff   : > { %v10976_v37 = vcombine.high %v1115_v31, %v1119_v32  ;;  %v10975_v43 = vcombine.low %v1115_v31, %v1119_v32  ;;  %v1170_v32 = vld [vmem:[%s13183_s11 + $0xb00] sm:$0xff] }
 0x200   : > { %4038 = vmatpush1.bf16.msra.mxu0 %v10917_v38  ;;  %4242 = vmatpush1.bf16.msra.mxu1 %v10919_v39  ;;  %v1122_v38 = vld [vmem:[%s13183_s11 + $0x980] sm:$0xff] }
 0x201   : > { %4039 = vmatprep.subr.bf16.mxu0 %v10926_v40  ;;  %4243 = vmatprep.subr.bf16.mxu1 %v10928_v41  ;;  %v1126_v39 = vld [vmem:[%s13183_s11 + $0x9a0] sm:$0xff]  ;;  %v1123_v40 = vld [vmem:[%s13183_s11 + $0x988] sm:$0xff] }
 0x202   : > { %v1127_v41 = vld [vmem:[%s13183_s11 + $0x9a8] sm:$0xff]  ;;  %v10982_v44 = vcombine.high %v1122_v38, %v1126_v39  ;;  %v10981_v49 = vcombine.low %v1122_v38, %v1126_v39 }
 0x203   : > { %v10984_v45 = vcombine.high %v1123_v40, %v1127_v41  ;;  %v10983_v50 = vcombine.low %v1123_v40, %v1127_v41  ;;  %v1178_v41 = vld [vmem:[%s13183_s11 + $0xb40] sm:$0xff] }
 0x204   : > { %4040 = vmatpush1.bf16.msra.mxu0 %v10925_v12  ;;  %4244 = vmatpush1.bf16.msra.mxu1 %v10927_v46  ;;  %v1130_v12 = vld [vmem:[%s13183_s11 + $0x9c0] sm:$0xff] }
 0x205   : > { %4060 = vmatprep.subr.bf16.mxu0 %v10934_v47  ;;  %4264 = vmatprep.subr.bf16.mxu1 %v10936_v48  ;;  %v1134_v46 = vld [vmem:[%s13183_s11 + $0x9e0] sm:$0xff]  ;;  %v1131_v47 = vld [vmem:[%s13183_s11 + $0x9c8] sm:$0xff] }
 0x206   : > { %v1135_v48 = vld [vmem:[%s13183_s11 + $0x9e8] sm:$0xff]  ;;  %v10990_v52 = vcombine.high %v1130_v12, %v1134_v46 }
 0x207   : > { %4042 = vmatmul.mubr.bf16.vlgmr.msra.gmra.mrb[0].mxu0 %v13382_v51  ;;  %4246 = vmatmul.mubr.bf16.vlgmr.msra.gmra.mrb[0].mxu1 %v13382_v51  ;;  %v10992_v53 = vcombine.high %v1131_v47, %v1135_v48  ;;  %v10991_v62 = vcombine.low %v1131_v47, %v1135_v48  ;;  %v1186_v48 = vld [vmem:[%s13183_s11 + $0xb80] sm:$0xff] }
 0x208   : > { %4061 = vmatpush1.bf16.msra.mxu0 %v10933_v58  ;;  %4265 = vmatpush1.bf16.msra.mxu1 %v10935_v59  ;;  %v1142_v58 = vld [vmem:[%s13183_s11 + $0xa20] sm:$0xff]  ;;  %v1139_v59 = vld [vmem:[%s13183_s11 + $0xa08] sm:$0xff] }
 0x209   : > { %4062 = vmatprep.subr.bf16.mxu0 %v10942_v60  ;;  %4266 = vmatprep.subr.bf16.mxu1 %v10944_v61  ;;  %v1143_v60 = vld [vmem:[%s13183_s11 + $0xa28] sm:$0xff]  ;;  %v10989_v61 = vcombine.low %v1130_v12, %v1134_v46  ;;  %v10998_v63 = vcombine.high %v1138_v54, %v1142_v58 }
 0x20a   : > { %4051 = vmatprep.mubr.bf16.mxu0 %v13388_v56  ;;  %4255 = vmatprep.mubr.bf16.mxu1 %v13388_v56  ;;  %v11000_v57 = vcombine.high %v1139_v59, %v1143_v60  ;;  %v10999_v6 = vcombine.low %v1139_v59, %v1143_v60  ;;  %v1194_v60 = vld [vmem:[%s13183_s11 + $0xbc0] sm:$0xff] }
 0x20c   : > { %4063 = vmatpush1.bf16.msra.mxu0 %v10941_v2  ;;  %4267 = vmatpush1.bf16.msra.mxu1 %v10943_v3  ;;  %v1150_v2 = vld [vmem:[%s13183_s11 + $0xa60] sm:$0xff]  ;;  %v1147_v3 = vld [vmem:[%s13183_s11 + $0xa48] sm:$0xff] }
 0x20d   : > { %4064 = vmatprep.subr.bf16.mxu0 %v10950_v4  ;;  %4268 = vmatprep.subr.bf16.mxu1 %v10952_v5  ;;  %v1151_v4 = vld [vmem:[%s13183_s11 + $0xa68] sm:$0xff]  ;;  %v10997_v5 = vcombine.low %v1138_v54, %v1142_v58  ;;  %v11006_v7 = vcombine.high %v1146_v1, %v1150_v2 }
 0x20e   : > { %v11008_v8 = vcombine.high %v1147_v3, %v1151_v4  ;;  %v11007_v20 = vcombine.low %v1147_v3, %v1151_v4  ;;  %v1202_v4 = vld [vmem:[%s13183_s11 + $0xc00] sm:$0xff] }
 0x20f   : > { %4052 = vmatmul.mubr.bf16.gmra.mrb[4].mxu0 %v13400_v10  ;;  %4256 = vmatmul.mubr.bf16.gmra.mrb[4].mxu1 %v13400_v10 }
 0x210   : > { %4065 = vmatpush1.bf16.msra.mxu0 %v10949_v15  ;;  %4269 = vmatpush1.bf16.msra.mxu1 %v10951_v17  ;;  %v1158_v15 = vld [vmem:[%s13183_s11 + $0xaa0] sm:$0xff]  ;;  %v1155_v17 = vld [vmem:[%s13183_s11 + $0xa88] sm:$0xff] }
 0x211   : > { %4066 = vmatprep.subr.bf16.mxu0 %v10958_v18  ;;  %4270 = vmatprep.subr.bf16.mxu1 %v10960_v19  ;;  %v1159_v18 = vld [vmem:[%s13183_s11 + $0xaa8] sm:$0xff]  ;;  %v11005_v19 = vcombine.low %v1146_v1, %v1150_v2  ;;  %v11014_v21 = vcombine.high %v1154_v9, %v1158_v15 }
 0x212   : > { %4092 = vmatprep.mubr.bf16.mxu0 %v13410_v22  ;;  %4296 = vmatprep.mubr.bf16.mxu1 %v13410_v22  ;;  %v11016_v23 = vcombine.high %v1155_v17, %v1159_v18  ;;  %v11015_v29 = vcombine.low %v1155_v17, %v1159_v18  ;;  %v1210_v18 = vld [vmem:[%s13183_s11 + $0xc40] sm:$0xff] }
 0x214   : > { %4067 = vmatpush1.bf16.msra.mxu0 %v10957_v25  ;;  %4271 = vmatpush1.bf16.msra.mxu1 %v10959_v26  ;;  %v1166_v25 = vld [vmem:[%s13183_s11 + $0xae0] sm:$0xff]  ;;  %v1163_v26 = vld [vmem:[%s13183_s11 + $0xac8] sm:$0xff] }
 0x215   : > { %4068 = vmatprep.subr.bf16.mxu0 %v10966_v27  ;;  %4272 = vmatprep.subr.bf16.mxu1 %v10968_v28  ;;  %v1167_v27 = vld [vmem:[%s13183_s11 + $0xae8] sm:$0xff]  ;;  %v11013_v28 = vcombine.low %v1154_v9, %v1158_v15  ;;  %v11022_v30 = vcombine.high %v1162_v24, %v1166_v25 }
 0x216   : > { %v11024_v31 = vcombine.high %v1163_v26, %v1167_v27  ;;  %v11023_v38 = vcombine.low %v1163_v26, %v1167_v27 }
 0x218   : > { %4069 = vmatpush1.bf16.msra.mxu0 %v10965_v33  ;;  %4273 = vmatpush1.bf16.msra.mxu1 %v10967_v34  ;;  %v1174_v33 = vld [vmem:[%s13183_s11 + $0xb20] sm:$0xff]  ;;  %v1171_v34 = vld [vmem:[%s13183_s11 + $0xb08] sm:$0xff] }
 0x219   : > { %4070 = vmatprep.subr.bf16.mxu0 %v10974_v35  ;;  %4274 = vmatprep.subr.bf16.mxu1 %v10976_v37  ;;  %v1175_v35 = vld [vmem:[%s13183_s11 + $0xb28] sm:$0xff]  ;;  %v11021_v37 = vcombine.low %v1162_v24, %v1166_v25  ;;  %v11030_v39 = vcombine.high %v1170_v32, %v1174_v33 }
 0x21a   : > { %v11032_v40 = vcombine.high %v1171_v34, %v1175_v35  ;;  %v11031_v12 = vcombine.low %v1171_v34, %v1175_v35  ;;  %v816_v24 = vld [vmem:[#allocation2 + $0x50] sm:$0x11] }
 0x21c   : > { %4071 = vmatpush1.bf16.msra.mxu0 %v10973_v42  ;;  %4275 = vmatpush1.bf16.msra.mxu1 %v10975_v43  ;;  %v1182_v42 = vld [vmem:[%s13183_s11 + $0xb60] sm:$0xff]  ;;  %v1179_v43 = vld [vmem:[%s13183_s11 + $0xb48] sm:$0xff] }
 0x21d   : > { %4072 = vmatprep.subr.bf16.mxu0 %v10982_v44  ;;  %4276 = vmatprep.subr.bf16.mxu1 %v10984_v45  ;;  %v1183_v44 = vld [vmem:[%s13183_s11 + $0xb68] sm:$0xff]  ;;  %v11029_v45 = vcombine.low %v1170_v32, %v1174_v33  ;;  %v11038_v46 = vcombine.high %v1178_v41, %v1182_v42 }
 0x21e   : > { %v11040_v47 = vcombine.high %v1179_v43, %v1183_v44  ;;  %v11039_v54 = vcombine.low %v1179_v43, %v1183_v44  ;;  %v13492_v43 = vld [vmem:[#allocation2 + $0x38] sm:$0xff] }
 0x220   : > { %4073 = vmatpush1.bf16.msra.mxu0 %v10981_v49  ;;  %4277 = vmatpush1.bf16.msra.mxu1 %v10983_v50  ;;  %v1190_v49 = vld [vmem:[%s13183_s11 + $0xba0] sm:$0xff]  ;;  %v1187_v50 = vld [vmem:[%s13183_s11 + $0xb88] sm:$0xff] }
 0x221   : > { %4074 = vmatprep.subr.bf16.mxu0 %v10990_v52  ;;  %4278 = vmatprep.subr.bf16.mxu1 %v10992_v53  ;;  %v1191_v52 = vld [vmem:[%s13183_s11 + $0xba8] sm:$0xff]  ;;  %v11037_v53 = vcombine.low %v1178_v41, %v1182_v42  ;;  %v11046_v58 = vcombine.high %v1186_v48, %v1190_v49  ;;  %v13488_v41 = vcombine.low %v816_v24, %v816_v24  ;;  %v13490_v42 = vld [vmem:[#allocation2 + $0x18] sm:$0xff] }
 0x222   : > { %v11048_v59 = vcombine.high %v1187_v50, %v1191_v52  ;;  %v11047_v1 = vcombine.low %v1187_v50, %v1191_v52  ;;  %v1235_v50 = vld [vmem:[%s13183_s11 + $0xd08] sm:$0xff] }
 0x223   : > { %v1239_v52 = vld [vmem:[%s13183_s11 + $0xd28] sm:$0xff] }
 0x224   : > { %4075 = vmatpush1.bf16.msra.mxu0 %v10989_v61  ;;  %4279 = vmatpush1.bf16.msra.mxu1 %v10991_v62  ;;  %v1198_v61 = vld [vmem:[%s13183_s11 + $0xbe0] sm:$0xff]  ;;  %v1195_v62 = vld [vmem:[%s13183_s11 + $0xbc8] sm:$0xff] }
 0x225   : > { %4076 = vmatprep.subr.bf16.mxu0 %v10998_v63  ;;  %4280 = vmatprep.subr.bf16.mxu1 %v11000_v57  ;;  %v1199_v63 = vld [vmem:[%s13183_s11 + $0xbe8] sm:$0xff]  ;;  %v11045_v57 = vcombine.low %v1186_v48, %v1190_v49  ;;  %v11054_v2 = vcombine.high %v1194_v60, %v1198_v61  ;;  %v1238_v48 = vld [vmem:[%s13183_s11 + $0xd20] sm:$0xff]  ;;  %v13498_v49 = vcombine.high %v13490_v42, %v13492_v43 }
 0x226   : > { %v11056_v3 = vcombine.high %v1195_v62, %v1199_v63  ;;  %v11055_v9 = vcombine.low %v1195_v62, %v1199_v63  ;;  %v1243_v62 = vld [vmem:[%s13183_s11 + $0xd48] sm:$0xff] }
 0x227   : > { %v1247_v63 = vld [vmem:[%s13183_s11 + $0xd68] sm:$0xff] }
 0x228   : > { %4077 = vmatpush1.bf16.msra.mxu0 %v10997_v5  ;;  %4281 = vmatpush1.bf16.msra.mxu1 %v10999_v6  ;;  %v1206_v5 = vld [vmem:[%s13183_s11 + $0xc20] sm:$0xff]  ;;  %v1203_v6 = vld [vmem:[%s13183_s11 + $0xc08] sm:$0xff] }
 0x229   : > { %4078 = vmatprep.subr.bf16.mxu0 %v11006_v7  ;;  %4282 = vmatprep.subr.bf16.mxu1 %v11008_v8  ;;  %v1207_v7 = vld [vmem:[%s13183_s11 + $0xc28] sm:$0xff]  ;;  %v11053_v8 = vcombine.low %v1194_v60, %v1198_v61  ;;  %v11062_v15 = vcombine.high %v1202_v4, %v1206_v5  ;;  %v11061_v25 = vcombine.low %v1202_v4, %v1206_v5  ;;  %v1242_v60 = vld [vmem:[%s13183_s11 + $0xd40] sm:$0xff] }
 0x22a   : > { %v11064_v17 = vcombine.high %v1203_v6, %v1207_v7  ;;  %v11063_v26 = vcombine.low %v1203_v6, %v1207_v7  ;;  %v1246_v61 = vld [vmem:[%s13183_s11 + $0xd60] sm:$0xff]  ;;  %v1251_v6 = vld [vmem:[%s13183_s11 + $0xd88] sm:$0xff] }
 0x22b   : > { %v1250_v4 = vld [vmem:[%s13183_s11 + $0xd80] sm:$0xff]  ;;  %v1255_v7 = vld [vmem:[%s13183_s11 + $0xda8] sm:$0xff] }
 0x22c   : > { %4079 = vmatpush1.bf16.msra.mxu0 %v11005_v19  ;;  %4283 = vmatpush1.bf16.msra.mxu1 %v11007_v20  ;;  %v1214_v19 = vld [vmem:[%s13183_s11 + $0xc60] sm:$0xff]  ;;  %v13470_v20 = vcombine.low %v13402_v13, %v13404_v14  ;;  %v13476_v13 = vcombine.high %v816_v24, %v816_v24  ;;  %v1219_v14 = vld [vmem:[%s13183_s11 + $0xc88] sm:$0xff] }
 0x22d   : > { %4080 = vmatprep.subr.bf16.mxu0 %v11014_v21  ;;  %4284 = vmatprep.subr.bf16.mxu1 %v11016_v23  ;;  %v1211_v21 = vld [vmem:[%s13183_s11 + $0xc48] sm:$0xff]  ;;  %v11070_v27 = vcombine.high %v1210_v18, %v1214_v19  ;;  %v11069_v32 = vcombine.low %v1210_v18, %v1214_v19  ;;  %v1254_v5 = vld [vmem:[%s13183_s11 + $0xda0] sm:$0xff] }
 0x22e   : > { %v1215_v23 = vld [vmem:[%s13183_s11 + $0xc68] sm:$0xff]  ;;  %v1258_v18 = vld [vmem:[%s13183_s11 + $0xdc0] sm:$0xff]  ;;  %v11109_v24 = vcombine.low %v1250_v4, %v1254_v5 }
 0x22f   : > { %v11071_v33 = vcombine.low %v1211_v21, %v1215_v23  ;;  %v1262_v19 = vld [vmem:[%s13183_s11 + $0xde0] sm:$0xff] }
 0x230   : > { %4081 = vmatpush1.bf16.msra.mxu0 %v11013_v28  ;;  %4285 = vmatpush1.bf16.msra.mxu1 %v11015_v29  ;;  %v11072_v28 = vcombine.high %v1211_v21, %v1215_v23  ;;  %v1218_v29 = vld [vmem:[%s13183_s11 + $0xc80] sm:$0xff]  ;;  %v1259_v21 = vld [vmem:[%s13183_s11 + $0xdc8] sm:$0xff] }
 0x231   : > { %4082 = vmatprep.subr.bf16.mxu0 %v11022_v30  ;;  %4286 = vmatprep.subr.bf16.mxu1 %v11024_v31  ;;  %v1222_v30 = vld [vmem:[%s13183_s11 + $0xca0] sm:$0xff]  ;;  %v1223_v31 = vld [vmem:[%s13183_s11 + $0xca8] sm:$0xff] }
 0x232   : > { %v11078_v34 = vcombine.high %v1218_v29, %v1222_v30  ;;  %v11080_v35 = vcombine.high %v1219_v14, %v1223_v31  ;;  %v11077_v44 = vcombine.low %v1218_v29, %v1222_v30  ;;  %v1263_v23 = vld [vmem:[%s13183_s11 + $0xde8] sm:$0xff]  ;;  %v1270_v29 = vld [vmem:[%s13183_s11 + $0xe20] sm:$0xff] }
 0x233   : > { %v1267_v30 = vld [vmem:[%s13183_s11 + $0xe08] sm:$0xff] }
 0x234   : > { %4083 = vmatpush1.bf16.msra.mxu0 %v11021_v37  ;;  %4287 = vmatpush1.bf16.msra.mxu1 %v11023_v38  ;;  %v1226_v37 = vld [vmem:[%s13183_s11 + $0xcc0] sm:$0xff] }
 0x235   : > { %4084 = vmatprep.subr.bf16.mxu0 %v11030_v39  ;;  %4288 = vmatprep.subr.bf16.mxu1 %v11032_v40  ;;  %v1230_v38 = vld [vmem:[%s13183_s11 + $0xce0] sm:$0xff]  ;;  %v1227_v39 = vld [vmem:[%s13183_s11 + $0xcc8] sm:$0xff] }
 0x236   : > { %v1231_v40 = vld [vmem:[%s13183_s11 + $0xce8] sm:$0xff] }
 0x238   : > { %4085 = vmatpush1.bf16.msra.mxu0 %v11029_v45  ;;  %4289 = vmatpush1.bf16.msra.mxu1 %v11031_v12  ;;  %v11079_v45 = vcombine.low %v1219_v14, %v1223_v31  ;;  %v11086_v12 = vcombine.high %v1226_v37, %v1230_v38  ;;  %v1271_v14 = vld [vmem:[%s13183_s11 + $0xe28] sm:$0xff]  ;;  %v11117_v31 = vcombine.low %v1258_v18, %v1262_v19 }
 0x239   : > { %4086 = vmatprep.subr.bf16.mxu0 %v11038_v46  ;;  %4290 = vmatprep.subr.bf16.mxu1 %v11040_v47  ;;  %v11088_v46 = vcombine.high %v1227_v39, %v1231_v40  ;;  %v1234_v47 = vld [vmem:[%s13183_s11 + $0xd00] sm:$0xff] }
 0x23c   : > { %4087 = vmatpush1.bf16.msra.mxu0 %v11037_v53  ;;  %4291 = vmatpush1.bf16.msra.mxu1 %v11039_v54  ;;  %v11085_v53 = vcombine.low %v1226_v37, %v1230_v38  ;;  %v11087_v54 = vcombine.low %v1227_v39, %v1231_v40  ;;  %v1278_v37 = vld [vmem:[%s13183_s11 + $0xe60] sm:$0xff]  ;;  %v1275_v38 = vld [vmem:[%s13183_s11 + $0xe48] sm:$0xff] }
 0x23d   : > { %4088 = vmatprep.subr.bf16.mxu0 %v11046_v58  ;;  %4292 = vmatprep.subr.bf16.mxu1 %v11048_v59  ;;  %v11094_v58 = vcombine.high %v1234_v47, %v1238_v48  ;;  %v11096_v59 = vcombine.high %v1235_v50, %v1239_v52  ;;  %v1279_v39 = vld [vmem:[%s13183_s11 + $0xe68] sm:$0xff] }
 0x240   : > { %4089 = vmatpush1.bf16.msra.mxu0 %v11045_v57  ;;  %4293 = vmatpush1.bf16.msra.mxu1 %v11047_v1  ;;  %v11093_v57 = vcombine.low %v1234_v47, %v1238_v48  ;;  %v11095_v1 = vcombine.low %v1235_v50, %v1239_v52  ;;  %v1286_v47 = vld [vmem:[%s13183_s11 + $0xea0] sm:$0xff]  ;;  %v1283_v48 = vld [vmem:[%s13183_s11 + $0xe88] sm:$0xff] }
 0x241   : > { %4090 = vmatprep.subr.bf16.mxu0 %v11054_v2  ;;  %4294 = vmatprep.subr.bf16.mxu1 %v11056_v3  ;;  %v11102_v2 = vcombine.high %v1242_v60, %v1246_v61  ;;  %v11104_v3 = vcombine.high %v1243_v62, %v1247_v63  ;;  %v1287_v50 = vld [vmem:[%s13183_s11 + $0xea8] sm:$0xff] }
 0x244   : > { %4091 = vmatpush1.bf16.msra.mxu0 %v11053_v8  ;;  %4295 = vmatpush1.bf16.msra.mxu1 %v11055_v9  ;;  %v11101_v8 = vcombine.low %v1242_v60, %v1246_v61  ;;  %v11103_v9 = vcombine.low %v1243_v62, %v1247_v63  ;;  %v1294_v60 = vld [vmem:[%s13183_s11 + $0xee0] sm:$0xff]  ;;  %v1291_v61 = vld [vmem:[%s13183_s11 + $0xec8] sm:$0xff] }
 0x245   : > { %4111 = vmatprep.subr.bf16.mxu0 %v11062_v15  ;;  %4315 = vmatprep.subr.bf16.mxu1 %v11064_v17  ;;  %v11110_v15 = vcombine.high %v1250_v4, %v1254_v5  ;;  %v11112_v17 = vcombine.high %v1251_v6, %v1255_v7  ;;  %v1295_v62 = vld [vmem:[%s13183_s11 + $0xee8] sm:$0xff]  ;;  %v1302_v4 = vld [vmem:[%s13183_s11 + $0xf20] sm:$0xff] }
 0x246   : > { %v1299_v5 = vld [vmem:[%s13183_s11 + $0xf08] sm:$0xff] }
 0x247   : > { %4093 = vmatmul.mubr.bf16.vlgmr.msra.gmra.mrb[0].mxu0 %v13470_v20  ;;  %4297 = vmatmul.mubr.bf16.vlgmr.msra.gmra.mrb[0].mxu1 %v13470_v20 }
 0x248   : > { %4112 = vmatpush1.bf16.msra.mxu0 %v11061_v25  ;;  %4316 = vmatpush1.bf16.msra.mxu1 %v11063_v26  ;;  %v11111_v25 = vcombine.low %v1251_v6, %v1255_v7  ;;  %v11118_v26 = vcombine.high %v1258_v18, %v1262_v19  ;;  %v1303_v6 = vld [vmem:[%s13183_s11 + $0xf28] sm:$0xff]  ;;  %v1310_v18 = vld [vmem:[%s13183_s11 + $0xf60] sm:$0xff] }
 0x249   : > { %4113 = vmatprep.subr.bf16.mxu0 %v11070_v27  ;;  %4317 = vmatprep.subr.bf16.mxu1 %v11072_v28  ;;  %v11120_v27 = vcombine.high %v1259_v21, %v1263_v23  ;;  %v1266_v28 = vld [vmem:[%s13183_s11 + $0xe00] sm:$0xff]  ;;  %v1307_v19 = vld [vmem:[%s13183_s11 + $0xf48] sm:$0xff] }
 0x24a   : > { %4102 = vmatprep.mubr.bf16.mxu0 %v13476_v13  ;;  %4306 = vmatprep.mubr.bf16.mxu1 %v13476_v13  ;;  %v11125_v40 = vcombine.low %v1266_v28, %v1270_v29 }
 0x24c   : > { %4114 = vmatpush1.bf16.msra.mxu0 %v11069_v32  ;;  %4318 = vmatpush1.bf16.msra.mxu1 %v11071_v33  ;;  %v11119_v32 = vcombine.low %v1259_v21, %v1263_v23  ;;  %v11126_v33 = vcombine.high %v1266_v28, %v1270_v29  ;;  %v1311_v21 = vld [vmem:[%s13183_s11 + $0xf68] sm:$0xff]  ;;  %v1318_v28 = vld [vmem:[%s13183_s11 + $0xfa0] sm:$0xff] }
 0x24d   : > { %4115 = vmatprep.subr.bf16.mxu0 %v11078_v34  ;;  %4319 = vmatprep.subr.bf16.mxu1 %v11080_v35  ;;  %v11128_v34 = vcombine.high %v1267_v30, %v1271_v14  ;;  %v1274_v35 = vld [vmem:[%s13183_s11 + $0xe40] sm:$0xff]  ;;  %v1315_v29 = vld [vmem:[%s13183_s11 + $0xf88] sm:$0xff] }
 0x24e   : > { %v11133_v52 = vcombine.low %v1274_v35, %v1278_v37 }
 0x24f   : > { %4103 = vmatmul.mubr.bf16.gmra.mrb[4].mxu0 %v13488_v41  ;;  %4307 = vmatmul.mubr.bf16.gmra.mrb[4].mxu1 %v13488_v41 }
 0x250   : > { %4116 = vmatpush1.bf16.msra.mxu0 %v11077_v44  ;;  %4320 = vmatpush1.bf16.msra.mxu1 %v11079_v45  ;;  %v11127_v44 = vcombine.low %v1267_v30, %v1271_v14  ;;  %v11134_v45 = vcombine.high %v1274_v35, %v1278_v37  ;;  %v1319_v30 = vld [vmem:[%s13183_s11 + $0xfa8] sm:$0xff]  ;;  %v1326_v35 = vld [vmem:[%s13183_s11 + $0xfe0] sm:$0xff] }
 0x251   : > { %4117 = vmatprep.subr.bf16.mxu0 %v11086_v12  ;;  %4321 = vmatprep.subr.bf16.mxu1 %v11088_v46  ;;  %v11136_v12 = vcombine.high %v1275_v38, %v1279_v39  ;;  %v1282_v46 = vld [vmem:[%s13183_s11 + $0xe80] sm:$0xff]  ;;  %v1323_v37 = vld [vmem:[%s13183_s11 + $0xfc8] sm:$0xff] }
 0x252   : > { %4143 = vmatprep.mubr.bf16.mxu0 %v13498_v49  ;;  %4347 = vmatprep.mubr.bf16.mxu1 %v13498_v49  ;;  %v11141_v63 = vcombine.low %v1282_v46, %v1286_v47 }
 0x254   : > { %4118 = vmatpush1.bf16.msra.mxu0 %v11085_v53  ;;  %4322 = vmatpush1.bf16.msra.mxu1 %v11087_v54  ;;  %v11135_v53 = vcombine.low %v1275_v38, %v1279_v39  ;;  %v11142_v54 = vcombine.high %v1282_v46, %v1286_v47  ;;  %v1327_v38 = vld [vmem:[%s13183_s11 + $0xfe8] sm:$0xff]  ;;  %v824_v46 = vld [vmem:[%s13183_s11 + $0x30] sm:$0xff]  ;;  %v821_v47 = vld [vmem:[%s13183_s11 + $0x18] sm:$0xff] }
 0x255   : > { %4119 = vmatprep.subr.bf16.mxu0 %v11094_v58  ;;  %4323 = vmatprep.subr.bf16.mxu1 %v11096_v59  ;;  %v11144_v58 = vcombine.high %v1283_v48, %v1287_v50  ;;  %v1290_v59 = vld [vmem:[%s13183_s11 + $0xec0] sm:$0xff] }
 0x256   : > { %v11149_v7 = vcombine.low %v1290_v59, %v1294_v60 }
 0x258   : > { %4120 = vmatpush1.bf16.msra.mxu0 %v11093_v57  ;;  %4324 = vmatpush1.bf16.msra.mxu1 %v11095_v1  ;;  %v11143_v57 = vcombine.low %v1283_v48, %v1287_v50  ;;  %v11150_v1 = vcombine.high %v1290_v59, %v1294_v60  ;;  %v825_v48 = vld [vmem:[%s13183_s11 + $0x38] sm:$0xff]  ;;  %v832_v59 = vld [vmem:[%s13183_s11 + $0x70] sm:$0xff]  ;;  %v13558_v60 = vcombine.low %v13490_v42, %v13492_v43 }
 0x259   : > { %4121 = vmatprep.subr.bf16.mxu0 %v11102_v2  ;;  %4325 = vmatprep.subr.bf16.mxu1 %v11104_v3  ;;  %v11152_v2 = vcombine.high %v1291_v61, %v1295_v62  ;;  %v1298_v3 = vld [vmem:[%s13183_s11 + $0xf00] sm:$0xff]  ;;  %v840_v42 = vld [vmem:[%s13183_s11 + $0xb0] sm:$0xff]  ;;  %v837_v43 = vld [vmem:[%s13183_s11 + $0x98] sm:$0xff] }
 0x25a   : > { %v11157_v23 = vcombine.low %v1298_v3, %v1302_v4 }
 0x25c   : > { %4122 = vmatpush1.bf16.msra.mxu0 %v11101_v8  ;;  %4326 = vmatpush1.bf16.msra.mxu1 %v11103_v9  ;;  %v11151_v8 = vcombine.low %v1291_v61, %v1295_v62  ;;  %v11158_v9 = vcombine.high %v1298_v3, %v1302_v4  ;;  %v829_v61 = vld [vmem:[%s13183_s11 + $0x58] sm:$0xff] }
 0x25d   : > { %4123 = vmatprep.subr.bf16.mxu0 %v11110_v15  ;;  %4327 = vmatprep.subr.bf16.mxu1 %v11112_v17  ;;  %v11160_v15 = vcombine.high %v1299_v5, %v1303_v6  ;;  %v1306_v17 = vld [vmem:[%s13183_s11 + $0xf40] sm:$0xff]  ;;  %v833_v62 = vld [vmem:[%s13183_s11 + $0x78] sm:$0xff] }
 0x25e   : > { %v11165_v14 = vcombine.low %v1306_v17, %v1310_v18  ;;  %v10692_v3 = vcombine.high %v829_v61, %v833_v62 }
 0x260   : > { %4124 = vmatpush1.bf16.msra.mxu0 %v11109_v24  ;;  %4328 = vmatpush1.bf16.msra.mxu1 %v11111_v25  ;;  %v11159_v24 = vcombine.low %v1299_v5, %v1303_v6  ;;  %v11166_v25 = vcombine.high %v1306_v17, %v1310_v18  ;;  %v836_v5 = vld [vmem:[%s13183_s11 + $0x90] sm:$0xff]  ;;  %v841_v6 = vld [vmem:[%s13183_s11 + $0xb8] sm:$0xff] }
 0x261   : > { %4125 = vmatprep.subr.bf16.mxu0 %v11118_v26  ;;  %4329 = vmatprep.subr.bf16.mxu1 %v11120_v27  ;;  %v11168_v26 = vcombine.high %v1307_v19, %v1311_v21  ;;  %v1314_v27 = vld [vmem:[%s13183_s11 + $0xf80] sm:$0xff]  ;;  %v844_v17 = vld [vmem:[%s13183_s11 + $0xd0] sm:$0xff] }
 0x262   : > { %v11173_v39 = vcombine.low %v1314_v27, %v1318_v28  ;;  %v848_v18 = vld [vmem:[%s13183_s11 + $0xf0] sm:$0xff] }
 0x264   : > { %4126 = vmatpush1.bf16.msra.mxu0 %v11117_v31  ;;  %4330 = vmatpush1.bf16.msra.mxu1 %v11119_v32  ;;  %v11167_v31 = vcombine.low %v1307_v19, %v1311_v21  ;;  %v11174_v32 = vcombine.high %v1314_v27, %v1318_v28  ;;  %v845_v21 = vld [vmem:[%s13183_s11 + $0xd8] sm:$0xff]  ;;  %v852_v28 = vld [vmem:[%s13183_s11 + $0x110] sm:$0xff] }
 0x265   : > { %4127 = vmatprep.subr.bf16.mxu0 %v11126_v33  ;;  %4331 = vmatprep.subr.bf16.mxu1 %v11128_v34  ;;  %v11176_v33 = vcombine.high %v1315_v29, %v1319_v30  ;;  %v1322_v34 = vld [vmem:[%s13183_s11 + $0xfc0] sm:$0xff] }
 0x266   : > { %v11181_v50 = vcombine.low %v1322_v34, %v1326_v35 }
 0x268   : > { %4128 = vmatpush1.bf16.msra.mxu0 %v11125_v40  ;;  %4332 = vmatpush1.bf16.msra.mxu1 %v11127_v44  ;;  %v11175_v40 = vcombine.low %v1315_v29, %v1319_v30  ;;  %v11182_v44 = vcombine.high %v1322_v34, %v1326_v35  ;;  %v856_v29 = vld [vmem:[%s13183_s11 + $0x130] sm:$0xff]  ;;  %v853_v30 = vld [vmem:[%s13183_s11 + $0x118] sm:$0xff] }
 0x269   : > { %4129 = vmatprep.subr.bf16.mxu0 %v11134_v45  ;;  %4333 = vmatprep.subr.bf16.mxu1 %v11136_v12  ;;  %v11184_v45 = vcombine.high %v1323_v37, %v1327_v38  ;;  %v820_v12 = vld [vmem:[%s13183_s11 + $0x10] sm:$0xff] }
 0x26a   : > { %v860_v35 = vld [vmem:[%s13183_s11 + $0x150] sm:$0xff] }
 0x26c   : > { %4130 = vmatpush1.bf16.msra.mxu0 %v11133_v52  ;;  %4334 = vmatpush1.bf16.msra.mxu1 %v11135_v53  ;;  %v11183_v52 = vcombine.low %v1323_v37, %v1327_v38  ;;  %v10682_v53 = vcombine.high %v820_v12, %v824_v46  ;;  %v864_v37 = vld [vmem:[%s13183_s11 + $0x170] sm:$0xff]  ;;  %v861_v38 = vld [vmem:[%s13183_s11 + $0x158] sm:$0xff] }
 0x26d   : > { %4131 = vmatprep.subr.bf16.mxu0 %v11142_v54  ;;  %4335 = vmatprep.subr.bf16.mxu1 %v11144_v58  ;;  %v10684_v54 = vcombine.high %v821_v47, %v825_v48  ;;  %v828_v58 = vld [vmem:[%s13183_s11 + $0x50] sm:$0xff] }
 0x270   : > { %4132 = vmatpush1.bf16.msra.mxu0 %v11141_v63  ;;  %4336 = vmatpush1.bf16.msra.mxu1 %v11143_v57  ;;  %v817_v63 = vld [vmem:[#allocation2 + $0x58] sm:$0x11]  ;;  %v10681_v57 = vcombine.low %v820_v12, %v824_v46 }
 0x271   : > { %4133 = vmatprep.subr.bf16.mxu0 %v11150_v1  ;;  %4337 = vmatprep.subr.bf16.mxu1 %v11152_v2  ;;  %v10683_v1 = vcombine.low %v821_v47, %v825_v48  ;;  %v10690_v2 = vcombine.high %v828_v58, %v832_v59  ;;  %v13562_v4 = vcombine.high %v817_v63, %v817_v63  ;;  %v868_v46 = vld [vmem:[%s13183_s11 + $0x190] sm:$0xff]  ;;  %v869_v48 = vld [vmem:[%s13183_s11 + $0x198] sm:$0xff] }
 0x272   : > { %v13574_v19 = vcombine.low %v817_v63, %v817_v63  ;;  %v872_v47 = vld [vmem:[%s13183_s11 + $0x1b0] sm:$0xff] }
 0x273   : > { %v10729_v63 = vcombine.low %v868_v46, %v872_v47 }
 0x274   : > { %4134 = vmatpush1.bf16.msra.mxu0 %v11149_v7  ;;  %4338 = vmatpush1.bf16.msra.mxu1 %v11151_v8  ;;  %v10689_v7 = vcombine.low %v828_v58, %v832_v59  ;;  %v10691_v8 = vcombine.low %v829_v61, %v833_v62  ;;  %v876_v58 = vld [vmem:[%s13183_s11 + $0x1d0] sm:$0xff]  ;;  %v877_v61 = vld [vmem:[%s13183_s11 + $0x1d8] sm:$0xff] }
 0x275   : > { %4135 = vmatprep.subr.bf16.mxu0 %v11158_v9  ;;  %4339 = vmatprep.subr.bf16.mxu1 %v11160_v15  ;;  %v10698_v9 = vcombine.high %v836_v5, %v840_v42  ;;  %v10700_v15 = vcombine.high %v837_v43, %v841_v6  ;;  %v880_v59 = vld [vmem:[%s13183_s11 + $0x1f0] sm:$0xff]  ;;  %v881_v62 = vld [vmem:[%s13183_s11 + $0x1f8] sm:$0xff] }
 0x278   : > { %4136 = vmatpush1.bf16.msra.mxu0 %v11157_v23  ;;  %4340 = vmatpush1.bf16.msra.mxu1 %v11159_v24  ;;  %v849_v23 = vld [vmem:[%s13183_s11 + $0xf8] sm:$0xff]  ;;  %v10697_v24 = vcombine.low %v836_v5, %v840_v42  ;;  %v888_v5 = vld [vmem:[%s13183_s11 + $0x230] sm:$0xff] }
 0x279   : > { %4137 = vmatprep.subr.bf16.mxu0 %v11166_v25  ;;  %4341 = vmatprep.subr.bf16.mxu1 %v11168_v26  ;;  %v10699_v25 = vcombine.low %v837_v43, %v841_v6  ;;  %v10706_v26 = vcombine.high %v844_v17, %v848_v18  ;;  %v10708_v27 = vcombine.high %v845_v21, %v849_v23  ;;  %v885_v42 = vld [vmem:[%s13183_s11 + $0x218] sm:$0xff] }
 0x27a   : > { %v889_v43 = vld [vmem:[%s13183_s11 + $0x238] sm:$0xff]  ;;  %v10737_v6 = vcombine.low %v876_v58, %v880_v59 }
 0x27c   : > { %4138 = vmatpush1.bf16.msra.mxu0 %v11165_v14  ;;  %4342 = vmatpush1.bf16.msra.mxu1 %v11167_v31  ;;  %v857_v14 = vld [vmem:[%s13183_s11 + $0x138] sm:$0xff]  ;;  %v10705_v31 = vcombine.low %v844_v17, %v848_v18  ;;  %v896_v17 = vld [vmem:[%s13183_s11 + $0x270] sm:$0xff] }
 0x27d   : > { %4139 = vmatprep.subr.bf16.mxu0 %v11174_v32  ;;  %4343 = vmatprep.subr.bf16.mxu1 %v11176_v33  ;;  %v10707_v32 = vcombine.low %v845_v21, %v849_v23  ;;  %v10714_v33 = vcombine.high %v852_v28, %v856_v29  ;;  %v10716_v34 = vcombine.high %v853_v30, %v857_v14  ;;  %v893_v18 = vld [vmem:[%s13183_s11 + $0x258] sm:$0xff] }
 0x27e   : > { %v897_v21 = vld [vmem:[%s13183_s11 + $0x278] sm:$0xff] }
 0x280   : > { %4140 = vmatpush1.bf16.msra.mxu0 %v11173_v39  ;;  %4344 = vmatpush1.bf16.msra.mxu1 %v11175_v40  ;;  %v865_v39 = vld [vmem:[%s13183_s11 + $0x178] sm:$0xff]  ;;  %v10713_v40 = vcombine.low %v852_v28, %v856_v29  ;;  %v904_v28 = vld [vmem:[%s13183_s11 + $0x2b0] sm:$0xff] }
 0x281   : > { %4141 = vmatprep.subr.bf16.mxu0 %v11182_v44  ;;  %4345 = vmatprep.subr.bf16.mxu1 %v11184_v45  ;;  %v10715_v44 = vcombine.low %v853_v30, %v857_v14  ;;  %v10722_v45 = vcombine.high %v860_v35, %v864_v37  ;;  %v10724_v12 = vcombine.high %v861_v38, %v865_v39  ;;  %v901_v29 = vld [vmem:[%s13183_s11 + $0x298] sm:$0xff] }
 0x282   : > { %v905_v30 = vld [vmem:[%s13183_s11 + $0x2b8] sm:$0xff] }
 0x284   : > { %4142 = vmatpush1.bf16.msra.mxu0 %v11181_v50  ;;  %4346 = vmatpush1.bf16.msra.mxu1 %v11183_v52  ;;  %v873_v50 = vld [vmem:[%s13183_s11 + $0x1b8] sm:$0xff]  ;;  %v10721_v52 = vcombine.low %v860_v35, %v864_v37  ;;  %v912_v35 = vld [vmem:[%s13183_s11 + $0x2f0] sm:$0xff] }
 0x285   : > { %4366 = vmatprep.subr.bf16.mxu0 %v10682_v53  ;;  %4570 = vmatprep.subr.bf16.mxu1 %v10684_v54  ;;  %v10730_v53 = vcombine.high %v868_v46, %v872_v47  ;;  %v10732_v54 = vcombine.high %v869_v48, %v873_v50  ;;  %v909_v37 = vld [vmem:[%s13183_s11 + $0x2d8] sm:$0xff]  ;;  %v920_v46 = vld [vmem:[%s13183_s11 + $0x330] sm:$0xff] }
 0x286   : > { %v917_v47 = vld [vmem:[%s13183_s11 + $0x318] sm:$0xff] }
 0x287   : > { %4144 = vmatmul.mubr.bf16.vlgmr.msra.gmra.mrb[0].mxu0 %v13558_v60  ;;  %4348 = vmatmul.mubr.bf16.vlgmr.msra.gmra.mrb[0].mxu1 %v13558_v60 }
 0x288   : > { %4367 = vmatpush1.bf16.msra.mxu0 %v10681_v57  ;;  %4571 = vmatpush1.bf16.msra.mxu1 %v10683_v1  ;;  %v10731_v57 = vcombine.low %v869_v48, %v873_v50  ;;  %v10738_v1 = vcombine.high %v876_v58, %v880_v59  ;;  %v921_v48 = vld [vmem:[%s13183_s11 + $0x338] sm:$0xff]  ;;  %v928_v58 = vld [vmem:[%s13183_s11 + $0x370] sm:$0xff] }
 0x289   : > { %4368 = vmatprep.subr.bf16.mxu0 %v10690_v2  ;;  %4572 = vmatprep.subr.bf16.mxu1 %v10692_v3  ;;  %v10740_v2 = vcombine.high %v877_v61, %v881_v62  ;;  %v884_v3 = vld [vmem:[%s13183_s11 + $0x210] sm:$0xff]  ;;  %v925_v59 = vld [vmem:[%s13183_s11 + $0x358] sm:$0xff] }
 0x28a   : > { %4153 = vmatprep.mubr.bf16.mxu0 %v13562_v4  ;;  %4357 = vmatprep.mubr.bf16.mxu1 %v13562_v4  ;;  %v10745_v23 = vcombine.low %v884_v3, %v888_v5 }
 0x28c   : > { %4369 = vmatpush1.bf16.msra.mxu0 %v10689_v7  ;;  %4573 = vmatpush1.bf16.msra.mxu1 %v10691_v8  ;;  %v10739_v7 = vcombine.low %v877_v61, %v881_v62  ;;  %v10746_v8 = vcombine.high %v884_v3, %v888_v5  ;;  %v929_v61 = vld [vmem:[%s13183_s11 + $0x378] sm:$0xff]  ;;  %v936_v3 = vld [vmem:[%s13183_s11 + $0x3b0] sm:$0xff] }
 0x28d   : > { %4370 = vmatprep.subr.bf16.mxu0 %v10698_v9  ;;  %4574 = vmatprep.subr.bf16.mxu1 %v10700_v15  ;;  %v10748_v9 = vcombine.high %v885_v42, %v889_v43  ;;  %v892_v15 = vld [vmem:[%s13183_s11 + $0x250] sm:$0xff]  ;;  %v933_v5 = vld [vmem:[%s13183_s11 + $0x398] sm:$0xff] }
 0x28e   : > { %v10753_v14 = vcombine.low %v892_v15, %v896_v17 }
 0x28f   : > { %4154 = vmatmul.mubr.bf16.gmra.mrb[4].mxu0 %v13574_v19  ;;  %4358 = vmatmul.mubr.bf16.gmra.mrb[4].mxu1 %v13574_v19 }
 0x290   : > { %4371 = vmatpush1.bf16.msra.mxu0 %v10697_v24  ;;  %4575 = vmatpush1.bf16.msra.mxu1 %v10699_v25  ;;  %v10747_v24 = vcombine.low %v885_v42, %v889_v43  ;;  %v10754_v25 = vcombine.high %v892_v15, %v896_v17  ;;  %v937_v42 = vld [vmem:[%s13183_s11 + $0x3b8] sm:$0xff]  ;;  %v944_v15 = vld [vmem:[%s13183_s11 + $0x3f0] sm:$0xff] }
 0x291   : > { %4372 = vmatprep.subr.bf16.mxu0 %v10706_v26  ;;  %4576 = vmatprep.subr.bf16.mxu1 %v10708_v27  ;;  %v10756_v26 = vcombine.high %v893_v18, %v897_v21  ;;  %v900_v27 = vld [vmem:[%s13183_s11 + $0x290] sm:$0xff]  ;;  %v941_v17 = vld [vmem:[%s13183_s11 + $0x3d8] sm:$0xff] }
 0x292   : > { %4398 = vmatprep.mubr.bf16.mxu0 %v13248_v16  ;;  %4602 = vmatprep.mubr.bf16.mxu1 %v13248_v16  ;;  %v10723_v16 = vcombine.low %v861_v38, %v865_v39  ;;  %v913_v38 = vld [vmem:[%s13183_s11 + $0x2f8] sm:$0xff]  ;;  %v10761_v39 = vcombine.low %v900_v27, %v904_v28 }
 0x294   : > { %4373 = vmatpush1.bf16.msra.mxu0 %v10705_v31  ;;  %4577 = vmatpush1.bf16.msra.mxu1 %v10707_v32  ;;  %v10755_v31 = vcombine.low %v893_v18, %v897_v21  ;;  %v10762_v32 = vcombine.high %v900_v27, %v904_v28  ;;  %v945_v18 = vld [vmem:[%s13183_s11 + $0x3f8] sm:$0xff]  ;;  %v952_v27 = vld [vmem:[%s13183_s11 + $0x430] sm:$0xff] }
 0x295   : > { %4374 = vmatprep.subr.bf16.mxu0 %v10714_v33  ;;  %4578 = vmatprep.subr.bf16.mxu1 %v10716_v34  ;;  %v10764_v33 = vcombine.high %v901_v29, %v905_v30  ;;  %v908_v34 = vld [vmem:[%s13183_s11 + $0x2d0] sm:$0xff]  ;;  %v949_v28 = vld [vmem:[%s13183_s11 + $0x418] sm:$0xff] }
 0x296   : > { %v10769_v50 = vcombine.low %v908_v34, %v912_v35 }
 0x298   : > { %4375 = vmatpush1.bf16.msra.mxu0 %v10713_v40  ;;  %4579 = vmatpush1.bf16.msra.mxu1 %v10715_v44  ;;  %v10763_v40 = vcombine.low %v901_v29, %v905_v30  ;;  %v10770_v44 = vcombine.high %v908_v34, %v912_v35  ;;  %v953_v29 = vld [vmem:[%s13183_s11 + $0x438] sm:$0xff]  ;;  %v960_v34 = vld [vmem:[%s13183_s11 + $0x470] sm:$0xff] }
 0x299   : > { %4376 = vmatprep.subr.bf16.mxu0 %v10722_v45  ;;  %4580 = vmatprep.subr.bf16.mxu1 %v10724_v12  ;;  %v10772_v45 = vcombine.high %v909_v37, %v913_v38  ;;  %v916_v12 = vld [vmem:[%s13183_s11 + $0x310] sm:$0xff]  ;;  %v957_v35 = vld [vmem:[%s13183_s11 + $0x458] sm:$0xff] }
 0x29a   : > { %v10777_v62 = vcombine.low %v916_v12, %v920_v46 }
 0x29c   : > { %4377 = vmatpush1.bf16.msra.mxu0 %v10721_v52  ;;  %4581 = vmatpush1.bf16.msra.mxu1 %v10723_v16  ;;  %v10771_v52 = vcombine.low %v909_v37, %v913_v38  ;;  %v10778_v16 = vcombine.high %v916_v12, %v920_v46  ;;  %v961_v37 = vld [vmem:[%s13183_s11 + $0x478] sm:$0xff]  ;;  %v968_v12 = vld [vmem:[%s13183_s11 + $0x4b0] sm:$0xff] }
 0x29d   : > { %4378 = vmatprep.subr.bf16.mxu0 %v10730_v53  ;;  %4582 = vmatprep.subr.bf16.mxu1 %v10732_v54  ;;  %v10780_v53 = vcombine.high %v917_v47, %v921_v48  ;;  %v924_v54 = vld [vmem:[%s13183_s11 + $0x350] sm:$0xff]  ;;  %v965_v46 = vld [vmem:[%s13183_s11 + $0x498] sm:$0xff] }
 0x29e   : > { %v10785_v43 = vcombine.low %v924_v54, %v928_v58 }
 0x2a0   : > { %4379 = vmatpush1.bf16.msra.mxu0 %v10729_v63  ;;  %4583 = vmatpush1.bf16.msra.mxu1 %v10731_v57  ;;  %v10779_v63 = vcombine.low %v917_v47, %v921_v48  ;;  %v10786_v57 = vcombine.high %v924_v54, %v928_v58  ;;  %v969_v47 = vld [vmem:[%s13183_s11 + $0x4b8] sm:$0xff]  ;;  %v976_v54 = vld [vmem:[%s13183_s11 + $0x4f0] sm:$0xff] }
 0x2a1   : > { %4380 = vmatprep.subr.bf16.mxu0 %v10738_v1  ;;  %4584 = vmatprep.subr.bf16.mxu1 %v10740_v2  ;;  %v10788_v1 = vcombine.high %v925_v59, %v929_v61  ;;  %v932_v2 = vld [vmem:[%s13183_s11 + $0x390] sm:$0xff]  ;;  %v973_v58 = vld [vmem:[%s13183_s11 + $0x4d8] sm:$0xff] }
 0x2a2   : > { %v10793_v21 = vcombine.low %v932_v2, %v936_v3 }
 0x2a4   : > { %4381 = vmatpush1.bf16.msra.mxu0 %v10737_v6  ;;  %4585 = vmatpush1.bf16.msra.mxu1 %v10739_v7  ;;  %v10787_v6 = vcombine.low %v925_v59, %v929_v61  ;;  %v10794_v7 = vcombine.high %v932_v2, %v936_v3  ;;  %v977_v59 = vld [vmem:[%s13183_s11 + $0x4f8] sm:$0xff]  ;;  %v10827_v61 = vcombine.low %v965_v46, %v969_v47 }
 0x2a5   : > { %4382 = vmatprep.subr.bf16.mxu0 %v10746_v8  ;;  %4586 = vmatprep.subr.bf16.mxu1 %v10748_v9  ;;  %v10796_v8 = vcombine.high %v933_v5, %v937_v42  ;;  %v940_v9 = vld [vmem:[%s13183_s11 + $0x3d0] sm:$0xff]  ;;  %v981_v2 = vld [vmem:[%s13183_s11 + $0x518] sm:$0xff] }
 0x2a6   : > { %v10801_v30 = vcombine.low %v940_v9, %v944_v15  ;;  %v985_v3 = vld [vmem:[%s13183_s11 + $0x538] sm:$0xff] }
 0x2a8   : > { %4383 = vmatpush1.bf16.msra.mxu0 %v10745_v23  ;;  %4587 = vmatpush1.bf16.msra.mxu1 %v10747_v24  ;;  %v10795_v23 = vcombine.low %v933_v5, %v937_v42  ;;  %v10802_v24 = vcombine.high %v940_v9, %v944_v15  ;;  %v10835_v5 = vcombine.low %v973_v58, %v977_v59  ;;  %v993_v9 = vld [vmem:[%s13183_s11 + $0x578] sm:$0xff] }
 0x2a9   : > { %4384 = vmatprep.subr.bf16.mxu0 %v10754_v25  ;;  %4588 = vmatprep.subr.bf16.mxu1 %v10756_v26  ;;  %v10804_v25 = vcombine.high %v941_v17, %v945_v18  ;;  %v948_v26 = vld [vmem:[%s13183_s11 + $0x410] sm:$0xff]  ;;  %v10843_v15 = vcombine.low %v981_v2, %v985_v3 }
 0x2aa   : > { %v10809_v38 = vcombine.low %v948_v26, %v952_v27 }
 0x2ac   : > { %4385 = vmatpush1.bf16.msra.mxu0 %v10753_v14  ;;  %4589 = vmatpush1.bf16.msra.mxu1 %v10755_v31  ;;  %v10803_v14 = vcombine.low %v941_v17, %v945_v18  ;;  %v10810_v31 = vcombine.high %v948_v26, %v952_v27 }
 0x2ad   : > { %4386 = vmatprep.subr.bf16.mxu0 %v10762_v32  ;;  %4590 = vmatprep.subr.bf16.mxu1 %v10764_v33  ;;  %v10812_v32 = vcombine.high %v949_v28, %v953_v29  ;;  %v956_v33 = vld [vmem:[%s13183_s11 + $0x450] sm:$0xff] }
 0x2ae   : > { %v10817_v48 = vcombine.low %v956_v33, %v960_v34 }
 0x2b0   : > { %4387 = vmatpush1.bf16.msra.mxu0 %v10761_v39  ;;  %4591 = vmatpush1.bf16.msra.mxu1 %v10763_v40  ;;  %v10811_v39 = vcombine.low %v949_v28, %v953_v29  ;;  %v10818_v40 = vcombine.high %v956_v33, %v960_v34  ;;  %v1004_v29 = vld [vmem:[%s13183_s11 + $0x5d0] sm:$0xff] }
 0x2b1   : > { %4388 = vmatprep.subr.bf16.mxu0 %v10770_v44  ;;  %4592 = vmatprep.subr.bf16.mxu1 %v10772_v45  ;;  %v10820_v44 = vcombine.high %v957_v35, %v961_v37  ;;  %v964_v45 = vld [vmem:[%s13183_s11 + $0x490] sm:$0xff] }
 0x2b4   : > { %4389 = vmatpush1.bf16.msra.mxu0 %v10769_v50  ;;  %4593 = vmatpush1.bf16.msra.mxu1 %v10771_v52  ;;  %v10819_v50 = vcombine.low %v957_v35, %v961_v37  ;;  %v10826_v52 = vcombine.high %v964_v45, %v968_v12  ;;  %v1012_v37 = vld [vmem:[%s13183_s11 + $0x610] sm:$0xff] }
 0x2b5   : > { %4390 = vmatprep.subr.bf16.mxu0 %v10778_v16  ;;  %4594 = vmatprep.subr.bf16.mxu1 %v10780_v53  ;;  %v10828_v16 = vcombine.high %v965_v46, %v969_v47  ;;  %v972_v53 = vld [vmem:[%s13183_s11 + $0x4d0] sm:$0xff] }
 0x2b6   : > { %v1020_v47 = vld [vmem:[%s13183_s11 + $0x650] sm:$0xff] }
 0x2b8   : > { %4391 = vmatpush1.bf16.msra.mxu0 %v10777_v62  ;;  %4595 = vmatpush1.bf16.msra.mxu1 %v10779_v63  ;;  %v10834_v62 = vcombine.high %v972_v53, %v976_v54  ;;  %v10836_v63 = vcombine.high %v973_v58, %v977_v59  ;;  %v1028_v59 = vld [vmem:[%s13183_s11 + $0x690] sm:$0xff] }
 0x2b9   : > { %4392 = vmatprep.subr.bf16.mxu0 %v10786_v57  ;;  %4596 = vmatprep.subr.bf16.mxu1 %v10788_v1  ;;  %v980_v57 = vld [vmem:[%s13183_s11 + $0x510] sm:$0xff] }
 0x2ba   : > { %v984_v1 = vld [vmem:[%s13183_s11 + $0x530] sm:$0xff] }
 0x2bb   : > { %v10842_v42 = vcombine.high %v980_v57, %v984_v1 }
 0x2bc   : > { %4393 = vmatpush1.bf16.msra.mxu0 %v10785_v43  ;;  %4597 = vmatpush1.bf16.msra.mxu1 %v10787_v6  ;;  %v10844_v43 = vcombine.high %v981_v2, %v985_v3  ;;  %v988_v6 = vld [vmem:[%s13183_s11 + $0x550] sm:$0xff] }
 0x2bd   : > { %4394 = vmatprep.subr.bf16.mxu0 %v10794_v7  ;;  %4598 = vmatprep.subr.bf16.mxu1 %v10796_v8  ;;  %v992_v7 = vld [vmem:[%s13183_s11 + $0x570] sm:$0xff]  ;;  %v989_v8 = vld [vmem:[%s13183_s11 + $0x558] sm:$0xff] }
 0x2be   : > { %v10850_v17 = vcombine.high %v988_v6, %v992_v7  ;;  %v10852_v18 = vcombine.high %v989_v8, %v993_v9  ;;  %v10849_v26 = vcombine.low %v988_v6, %v992_v7  ;;  %v1036_v3 = vld [vmem:[%s13183_s11 + $0x6d0] sm:$0xff] }
 0x2c0   : > { %4395 = vmatpush1.bf16.msra.mxu0 %v10793_v21  ;;  %4599 = vmatpush1.bf16.msra.mxu1 %v10795_v23  ;;  %v996_v21 = vld [vmem:[%s13183_s11 + $0x590] sm:$0xff] }
 0x2c1   : > { %4396 = vmatprep.subr.bf16.mxu0 %v10802_v24  ;;  %4600 = vmatprep.subr.bf16.mxu1 %v10804_v25  ;;  %v1000_v23 = vld [vmem:[%s13183_s11 + $0x5b0] sm:$0xff]  ;;  %v997_v24 = vld [vmem:[%s13183_s11 + $0x598] sm:$0xff] }
 0x2c2   : > { %v1001_v25 = vld [vmem:[%s13183_s11 + $0x5b8] sm:$0xff]  ;;  %v10858_v27 = vcombine.high %v996_v21, %v1000_v23 }
 0x2c3   : > { %v10860_v28 = vcombine.high %v997_v24, %v1001_v25  ;;  %v10859_v33 = vcombine.low %v997_v24, %v1001_v25  ;;  %v1052_v25 = vld [vmem:[%s13183_s11 + $0x750] sm:$0xff] }
 0x2c4   : > { %4397 = vmatpush1.bf16.msra.mxu0 %v10801_v30  ;;  %4601 = vmatpush1.bf16.msra.mxu1 %v10803_v14  ;;  %v1008_v30 = vld [vmem:[%s13183_s11 + $0x5f0] sm:$0xff]  ;;  %v1005_v14 = vld [vmem:[%s13183_s11 + $0x5d8] sm:$0xff] }
 0x2c5   : > { %4417 = vmatprep.subr.bf16.mxu0 %v10810_v31  ;;  %4621 = vmatprep.subr.bf16.mxu1 %v10812_v32  ;;  %v1009_v31 = vld [vmem:[%s13183_s11 + $0x5f8] sm:$0xff]  ;;  %v10857_v32 = vcombine.low %v996_v21, %v1000_v23  ;;  %v10866_v34 = vcombine.high %v1004_v29, %v1008_v30 }
 0x2c6   : > { %v10868_v35 = vcombine.high %v1005_v14, %v1009_v31 }
 0x2c7   : > { %4399 = vmatmul.mubr.bf16.vlgmr.msra.gmra.mrb[8].mxu0 %v13294_v36  ;;  %4603 = vmatmul.mubr.bf16.vlgmr.msra.gmra.mrb[8].mxu1 %v13294_v36  ;;  %v10825_v36 = vcombine.low %v964_v45, %v968_v12  ;;  %v10867_v45 = vcombine.low %v1005_v14, %v1009_v31  ;;  %v1060_v31 = vld [vmem:[%s13183_s11 + $0x790] sm:$0xff] }
 0x2c8   : > { %4418 = vmatpush1.bf16.msra.mxu0 %v10809_v38  ;;  %4622 = vmatpush1.bf16.msra.mxu1 %v10811_v39  ;;  %v1016_v38 = vld [vmem:[%s13183_s11 + $0x630] sm:$0xff]  ;;  %v1013_v39 = vld [vmem:[%s13183_s11 + $0x618] sm:$0xff] }
 0x2c9   : > { %4419 = vmatprep.subr.bf16.mxu0 %v10818_v40  ;;  %4623 = vmatprep.subr.bf16.mxu1 %v10820_v44  ;;  %v1017_v40 = vld [vmem:[%s13183_s11 + $0x638] sm:$0xff]  ;;  %v10865_v44 = vcombine.low %v1004_v29, %v1008_v30  ;;  %v10874_v12 = vcombine.high %v1012_v37, %v1016_v38 }
 0x2ca   : > { %4408 = vmatprep.mubr.bf16.mxu0 %v13300_v11  ;;  %4612 = vmatprep.mubr.bf16.mxu1 %v13300_v11  ;;  %v10833_v11 = vcombine.low %v972_v53, %v976_v54  ;;  %v10876_v46 = vcombine.high %v1013_v39, %v1017_v40  ;;  %v10875_v53 = vcombine.low %v1013_v39, %v1017_v40  ;;  %v1068_v40 = vld [vmem:[%s13183_s11 + $0x7d0] sm:$0xff] }
 0x2cc   : > { %4420 = vmatpush1.bf16.msra.mxu0 %v10817_v48  ;;  %4624 = vmatpush1.bf16.msra.mxu1 %v10819_v50  ;;  %v1024_v48 = vld [vmem:[%s13183_s11 + $0x670] sm:$0xff]  ;;  %v1021_v50 = vld [vmem:[%s13183_s11 + $0x658] sm:$0xff] }
 0x2cd   : > { %4421 = vmatprep.subr.bf16.mxu0 %v10826_v52  ;;  %4625 = vmatprep.subr.bf16.mxu1 %v10828_v16  ;;  %v1025_v52 = vld [vmem:[%s13183_s11 + $0x678] sm:$0xff]  ;;  %v10873_v16 = vcombine.low %v1012_v37, %v1016_v38  ;;  %v10882_v54 = vcombine.high %v1020_v47, %v1024_v48 }
 0x2ce   : > { %v10884_v58 = vcombine.high %v1021_v50, %v1025_v52 }
 0x2cf   : > { %4409 = vmatmul.mubr.bf16.gmra.mrb[12].mxu0 %v13312_v55  ;;  %4613 = vmatmul.mubr.bf16.gmra.mrb[12].mxu1 %v13312_v55  ;;  %v10841_v55 = vcombine.low %v980_v57, %v984_v1  ;;  %v10883_v57 = vcombine.low %v1021_v50, %v1025_v52  ;;  %v1076_v52 = vld [vmem:[%s13183_s11 + $0x810] sm:$0xff] }
 0x2d0   : > { %4422 = vmatpush1.bf16.msra.mxu0 %v10825_v36  ;;  %4626 = vmatpush1.bf16.msra.mxu1 %v10827_v61  ;;  %v1032_v36 = vld [vmem:[%s13183_s11 + $0x6b0] sm:$0xff]  ;;  %v1029_v61 = vld [vmem:[%s13183_s11 + $0x698] sm:$0xff] }
 0x2d1   : > { %4423 = vmatprep.subr.bf16.mxu0 %v10834_v62  ;;  %4627 = vmatprep.subr.bf16.mxu1 %v10836_v63  ;;  %v1033_v62 = vld [vmem:[%s13183_s11 + $0x6b8] sm:$0xff]  ;;  %v10881_v63 = vcombine.low %v1020_v47, %v1024_v48  ;;  %v10890_v1 = vcombine.high %v1028_v59, %v1032_v36 }
 0x2d2   : > { %4449 = vmatprep.mubr.bf16.mxu0 %v13322_v0  ;;  %4653 = vmatprep.mubr.bf16.mxu1 %v13322_v0  ;;  %v10851_v0 = vcombine.low %v989_v8, %v993_v9  ;;  %v10892_v2 = vcombine.high %v1029_v61, %v1033_v62  ;;  %v10891_v6 = vcombine.low %v1029_v61, %v1033_v62  ;;  %v1044_v9 = vld [vmem:[%s13183_s11 + $0x710] sm:$0xff] }
 0x2d3   : > { %v1084_v62 = vld [vmem:[%s13183_s11 + $0x850] sm:$0xff] }
 0x2d4   : > { %4424 = vmatpush1.bf16.msra.mxu0 %v10833_v11  ;;  %4628 = vmatpush1.bf16.msra.mxu1 %v10835_v5  ;;  %v1040_v11 = vld [vmem:[%s13183_s11 + $0x6f0] sm:$0xff]  ;;  %v1037_v5 = vld [vmem:[%s13183_s11 + $0x6d8] sm:$0xff] }
 0x2d5   : > { %4425 = vmatprep.subr.bf16.mxu0 %v10842_v42  ;;  %4629 = vmatprep.subr.bf16.mxu1 %v10844_v43  ;;  %v1041_v42 = vld [vmem:[%s13183_s11 + $0x6f8] sm:$0xff]  ;;  %v10889_v43 = vcombine.low %v1028_v59, %v1032_v36  ;;  %v10898_v7 = vcombine.high %v1036_v3, %v1040_v11 }
 0x2d6   : > { %v10900_v8 = vcombine.high %v1037_v5, %v1041_v42  ;;  %v10899_v21 = vcombine.low %v1037_v5, %v1041_v42  ;;  %v1092_v42 = vld [vmem:[%s13183_s11 + $0x890] sm:$0xff] }
 0x2d8   : > { %4426 = vmatpush1.bf16.msra.mxu0 %v10841_v55  ;;  %4630 = vmatpush1.bf16.msra.mxu1 %v10843_v15  ;;  %v1048_v55 = vld [vmem:[%s13183_s11 + $0x730] sm:$0xff]  ;;  %v1045_v15 = vld [vmem:[%s13183_s11 + $0x718] sm:$0xff] }
 0x2d9   : > { %4427 = vmatprep.subr.bf16.mxu0 %v10850_v17  ;;  %4631 = vmatprep.subr.bf16.mxu1 %v10852_v18  ;;  %v1049_v17 = vld [vmem:[%s13183_s11 + $0x738] sm:$0xff]  ;;  %v10897_v18 = vcombine.low %v1036_v3, %v1040_v11  ;;  %v10906_v23 = vcombine.high %v1044_v9, %v1048_v55 }
 0x2da   : > { %v10908_v24 = vcombine.high %v1045_v15, %v1049_v17  ;;  %v10907_v29 = vcombine.low %v1045_v15, %v1049_v17  ;;  %v1100_v17 = vld [vmem:[%s13183_s11 + $0x8d0] sm:$0xff] }
 0x2dc   : > { %4428 = vmatpush1.bf16.msra.mxu0 %v10849_v26  ;;  %4632 = vmatpush1.bf16.msra.mxu1 %v10851_v0  ;;  %v1056_v26 = vld [vmem:[%s13183_s11 + $0x770] sm:$0xff]  ;;  %v1053_v0 = vld [vmem:[%s13183_s11 + $0x758] sm:$0xff] }
 0x2dd   : > { %4429 = vmatprep.subr.bf16.mxu0 %v10858_v27  ;;  %4633 = vmatprep.subr.bf16.mxu1 %v10860_v28  ;;  %v1057_v27 = vld [vmem:[%s13183_s11 + $0x778] sm:$0xff]  ;;  %v10905_v28 = vcombine.low %v1044_v9, %v1048_v55  ;;  %v10914_v30 = vcombine.high %v1052_v25, %v1056_v26 }
 0x2de   : > { %v10916_v14 = vcombine.high %v1053_v0, %v1057_v27  ;;  %v10915_v37 = vcombine.low %v1053_v0, %v1057_v27  ;;  %v1108_v0 = vld [vmem:[%s13183_s11 + $0x910] sm:$0xff] }
 0x2df   : > { %v1112_v27 = vld [vmem:[%s13183_s11 + $0x930] sm:$0xff] }
 0x2e0   : > { %4430 = vmatpush1.bf16.msra.mxu0 %v10857_v32  ;;  %4634 = vmatpush1.bf16.msra.mxu1 %v10859_v33  ;;  %v1064_v32 = vld [vmem:[%s13183_s11 + $0x7b0] sm:$0xff]  ;;  %v1061_v33 = vld [vmem:[%s13183_s11 + $0x798] sm:$0xff] }
 0x2e1   : > { %4431 = vmatprep.subr.bf16.mxu0 %v10866_v34  ;;  %4635 = vmatprep.subr.bf16.mxu1 %v10868_v35  ;;  %v1065_v34 = vld [vmem:[%s13183_s11 + $0x7b8] sm:$0xff]  ;;  %v10913_v35 = vcombine.low %v1052_v25, %v1056_v26  ;;  %v10922_v38 = vcombine.high %v1060_v31, %v1064_v32 }
 0x2e2   : > { %v10924_v39 = vcombine.high %v1061_v33, %v1065_v34  ;;  %v10923_v47 = vcombine.low %v1061_v33, %v1065_v34  ;;  %v1120_v33 = vld [vmem:[%s13183_s11 + $0x970] sm:$0xff]  ;;  %v1117_v34 = vld [vmem:[%s13183_s11 + $0x958] sm:$0xff] }
 0x2e4   : > { %4432 = vmatpush1.bf16.msra.mxu0 %v10865_v44  ;;  %4636 = vmatpush1.bf16.msra.mxu1 %v10867_v45  ;;  %v1072_v44 = vld [vmem:[%s13183_s11 + $0x7f0] sm:$0xff]  ;;  %v1069_v45 = vld [vmem:[%s13183_s11 + $0x7d8] sm:$0xff] }
 0x2e5   : > { %4433 = vmatprep.subr.bf16.mxu0 %v10874_v12  ;;  %4637 = vmatprep.subr.bf16.mxu1 %v10876_v46  ;;  %v1073_v12 = vld [vmem:[%s13183_s11 + $0x7f8] sm:$0xff]  ;;  %v10921_v46 = vcombine.low %v1060_v31, %v1064_v32  ;;  %v10930_v48 = vcombine.high %v1068_v40, %v1072_v44  ;;  %v1116_v32 = vld [vmem:[%s13183_s11 + $0x950] sm:$0xff] }
 0x2e6   : > { %v10932_v50 = vcombine.high %v1069_v45, %v1073_v12  ;;  %v10931_v59 = vcombine.low %v1069_v45, %v1073_v12  ;;  %v1125_v45 = vld [vmem:[%s13183_s11 + $0x998] sm:$0xff] }
 0x2e7   : > { %v1129_v12 = vld [vmem:[%s13183_s11 + $0x9b8] sm:$0xff] }
 0x2e8   : > { %4434 = vmatpush1.bf16.msra.mxu0 %v10873_v16  ;;  %4638 = vmatpush1.bf16.msra.mxu1 %v10875_v53  ;;  %v1080_v16 = vld [vmem:[%s13183_s11 + $0x830] sm:$0xff]  ;;  %v1077_v53 = vld [vmem:[%s13183_s11 + $0x818] sm:$0xff] }
 0x2e9   : > { %4435 = vmatprep.subr.bf16.mxu0 %v10882_v54  ;;  %4639 = vmatprep.subr.bf16.mxu1 %v10884_v58  ;;  %v1081_v54 = vld [vmem:[%s13183_s11 + $0x838] sm:$0xff]  ;;  %v10929_v58 = vcombine.low %v1068_v40, %v1072_v44  ;;  %v10938_v36 = vcombine.high %v1076_v52, %v1080_v16  ;;  %v1124_v40 = vld [vmem:[%s13183_s11 + $0x990] sm:$0xff] }
 0x2ea   : > { %v10940_v61 = vcombine.high %v1077_v53, %v1081_v54  ;;  %v10939_v3 = vcombine.low %v1077_v53, %v1081_v54  ;;  %v1128_v44 = vld [vmem:[%s13183_s11 + $0x9b0] sm:$0xff]  ;;  %v1137_v53 = vld [vmem:[%s13183_s11 + $0x9f8] sm:$0xff] }
 0x2eb   : > { %v10985_v54 = vcombine.low %v1124_v40, %v1128_v44 }
 0x2ec   : > { %4436 = vmatpush1.bf16.msra.mxu0 %v10881_v63  ;;  %4640 = vmatpush1.bf16.msra.mxu1 %v10883_v57  ;;  %v1088_v63 = vld [vmem:[%s13183_s11 + $0x870] sm:$0xff]  ;;  %v1085_v57 = vld [vmem:[%s13183_s11 + $0x858] sm:$0xff] }
 0x2ed   : > { %4437 = vmatprep.subr.bf16.mxu0 %v10890_v1  ;;  %4641 = vmatprep.subr.bf16.mxu1 %v10892_v2  ;;  %v1089_v1 = vld [vmem:[%s13183_s11 + $0x878] sm:$0xff]  ;;  %v10937_v2 = vcombine.low %v1076_v52, %v1080_v16  ;;  %v10946_v11 = vcombine.high %v1084_v62, %v1088_v63  ;;  %v1136_v52 = vld [vmem:[%s13183_s11 + $0x9f0] sm:$0xff] }
 0x2ee   : > { %v10948_v5 = vcombine.high %v1085_v57, %v1089_v1  ;;  %v10947_v9 = vcombine.low %v1085_v57, %v1089_v1  ;;  %v1133_v16 = vld [vmem:[%s13183_s11 + $0x9d8] sm:$0xff] }
 0x2ef   : > { %v1145_v57 = vld [vmem:[%s13183_s11 + $0xa38] sm:$0xff] }
 0x2f0   : > { %4438 = vmatpush1.bf16.msra.mxu0 %v10889_v43  ;;  %4642 = vmatpush1.bf16.msra.mxu1 %v10891_v6  ;;  %v1096_v43 = vld [vmem:[%s13183_s11 + $0x8b0] sm:$0xff]  ;;  %v1093_v6 = vld [vmem:[%s13183_s11 + $0x898] sm:$0xff] }
 0x2f1   : > { %4439 = vmatprep.subr.bf16.mxu0 %v10898_v7  ;;  %4643 = vmatprep.subr.bf16.mxu1 %v10900_v8  ;;  %v1097_v7 = vld [vmem:[%s13183_s11 + $0x8b8] sm:$0xff]  ;;  %v10945_v8 = vcombine.low %v1084_v62, %v1088_v63  ;;  %v10954_v55 = vcombine.high %v1092_v42, %v1096_v43  ;;  %v1144_v62 = vld [vmem:[%s13183_s11 + $0xa30] sm:$0xff] }
 0x2f2   : > { %v10956_v15 = vcombine.high %v1093_v6, %v1097_v7  ;;  %v1141_v63 = vld [vmem:[%s13183_s11 + $0xa18] sm:$0xff] }
 0x2f4   : > { %4440 = vmatpush1.bf16.msra.mxu0 %v10897_v18  ;;  %4644 = vmatpush1.bf16.msra.mxu1 %v10899_v21  ;;  %v1104_v18 = vld [vmem:[%s13183_s11 + $0x8f0] sm:$0xff]  ;;  %v1101_v21 = vld [vmem:[%s13183_s11 + $0x8d8] sm:$0xff] }
 0x2f5   : > { %4441 = vmatprep.subr.bf16.mxu0 %v10906_v23  ;;  %4645 = vmatprep.subr.bf16.mxu1 %v10908_v24  ;;  %v1105_v23 = vld [vmem:[%s13183_s11 + $0x8f8] sm:$0xff]  ;;  %v10955_v24 = vcombine.low %v1093_v6, %v1097_v7  ;;  %v10962_v25 = vcombine.high %v1100_v17, %v1104_v18 }
 0x2f6   : > { %v10964_v26 = vcombine.high %v1101_v21, %v1105_v23  ;;  %v1153_v6 = vld [vmem:[%s13183_s11 + $0xa78] sm:$0xff] }
 0x2f8   : > { %4442 = vmatpush1.bf16.msra.mxu0 %v10905_v28  ;;  %4646 = vmatpush1.bf16.msra.mxu1 %v10907_v29  ;;  %v1109_v28 = vld [vmem:[%s13183_s11 + $0x918] sm:$0xff] }
 0x2f9   : > { %4443 = vmatprep.subr.bf16.mxu0 %v10914_v30  ;;  %4647 = vmatprep.subr.bf16.mxu1 %v10916_v14  ;;  %v1113_v29 = vld [vmem:[%s13183_s11 + $0x938] sm:$0xff]  ;;  %v10963_v30 = vcombine.low %v1101_v21, %v1105_v23  ;;  %v10970_v14 = vcombine.high %v1108_v0, %v1112_v27 }
 0x2fa   : > { %v10972_v31 = vcombine.high %v1109_v28, %v1113_v29  ;;  %v1161_v21 = vld [vmem:[%s13183_s11 + $0xab8] sm:$0xff] }
 0x2fc   : > { %4444 = vmatpush1.bf16.msra.mxu0 %v10913_v35  ;;  %4648 = vmatpush1.bf16.msra.mxu1 %v10915_v37  ;;  %v1121_v35 = vld [vmem:[%s13183_s11 + $0x978] sm:$0xff]  ;;  %v10971_v37 = vcombine.low %v1109_v28, %v1113_v29 }
 0x2fd   : > { %4445 = vmatprep.subr.bf16.mxu0 %v10922_v38  ;;  %4649 = vmatprep.subr.bf16.mxu1 %v10924_v39  ;;  %v10978_v38 = vcombine.high %v1116_v32, %v1120_v33  ;;  %v10980_v39 = vcombine.high %v1117_v34, %v1121_v35  ;;  %v1169_v28 = vld [vmem:[%s13183_s11 + $0xaf8] sm:$0xff] }
 0x300   : > { %4446 = vmatpush1.bf16.msra.mxu0 %v10921_v46  ;;  %4650 = vmatpush1.bf16.msra.mxu1 %v10923_v47  ;;  %v10977_v46 = vcombine.low %v1116_v32, %v1120_v33  ;;  %v10986_v47 = vcombine.high %v1124_v40, %v1128_v44  ;;  %v1176_v32 = vld [vmem:[%s13183_s11 + $0xb30] sm:$0xff]  ;;  %v1173_v33 = vld [vmem:[%s13183_s11 + $0xb18] sm:$0xff] }
 0x301   : > { %4447 = vmatprep.subr.bf16.mxu0 %v10930_v48  ;;  %4651 = vmatprep.subr.bf16.mxu1 %v10932_v50  ;;  %v10988_v48 = vcombine.high %v1125_v45, %v1129_v12  ;;  %v1132_v50 = vld [vmem:[%s13183_s11 + $0x9d0] sm:$0xff]  ;;  %v1181_v44 = vld [vmem:[%s13183_s11 + $0xb58] sm:$0xff] }
 0x302   : > { %v10993_v1 = vcombine.low %v1132_v50, %v1136_v52  ;;  %v1184_v40 = vld [vmem:[%s13183_s11 + $0xb70] sm:$0xff] }
 0x304   : > { %4448 = vmatpush1.bf16.msra.mxu0 %v10929_v58  ;;  %4652 = vmatpush1.bf16.msra.mxu1 %v10931_v59  ;;  %v10987_v58 = vcombine.low %v1125_v45, %v1129_v12  ;;  %v10994_v59 = vcombine.high %v1132_v50, %v1136_v52  ;;  %v1185_v45 = vld [vmem:[%s13183_s11 + $0xb78] sm:$0xff]  ;;  %v1192_v50 = vld [vmem:[%s13183_s11 + $0xbb0] sm:$0xff] }
 0x305   : > { %4468 = vmatprep.subr.bf16.mxu0 %v10938_v36  ;;  %4672 = vmatprep.subr.bf16.mxu1 %v10940_v61  ;;  %v10996_v36 = vcombine.high %v1133_v16, %v1137_v53  ;;  %v1140_v61 = vld [vmem:[%s13183_s11 + $0xa10] sm:$0xff]  ;;  %v1189_v52 = vld [vmem:[%s13183_s11 + $0xb98] sm:$0xff] }
 0x306   : > { %v11001_v7 = vcombine.low %v1140_v61, %v1144_v62 }
 0x307   : > { %4450 = vmatmul.mubr.bf16.vlgmr.msra.gmra.mrb[8].mxu0 %v13382_v51  ;;  %4654 = vmatmul.mubr.bf16.vlgmr.msra.gmra.mrb[8].mxu1 %v13382_v51  ;;  %v10953_v51 = vcombine.low %v1092_v42, %v1096_v43  ;;  %v1152_v42 = vld [vmem:[%s13183_s11 + $0xa70] sm:$0xff]  ;;  %v1149_v43 = vld [vmem:[%s13183_s11 + $0xa58] sm:$0xff] }
 0x308   : > { %4469 = vmatpush1.bf16.msra.mxu0 %v10937_v2  ;;  %4673 = vmatpush1.bf16.msra.mxu1 %v10939_v3  ;;  %v10995_v2 = vcombine.low %v1133_v16, %v1137_v53  ;;  %v11002_v3 = vcombine.high %v1140_v61, %v1144_v62  ;;  %v1193_v16 = vld [vmem:[%s13183_s11 + $0xbb8] sm:$0xff]  ;;  %v1200_v61 = vld [vmem:[%s13183_s11 + $0xbf0] sm:$0xff] }
 0x309   : > { %4470 = vmatprep.subr.bf16.mxu0 %v10946_v11  ;;  %4674 = vmatprep.subr.bf16.mxu1 %v10948_v5  ;;  %v11004_v11 = vcombine.high %v1141_v63, %v1145_v57  ;;  %v1148_v5 = vld [vmem:[%s13183_s11 + $0xa50] sm:$0xff]  ;;  %v1197_v62 = vld [vmem:[%s13183_s11 + $0xbd8] sm:$0xff] }
 0x30a   : > { %4459 = vmatprep.mubr.bf16.mxu0 %v13388_v56  ;;  %4663 = vmatprep.mubr.bf16.mxu1 %v13388_v56  ;;  %v10961_v56 = vcombine.low %v1100_v17, %v1104_v18  ;;  %v1160_v17 = vld [vmem:[%s13183_s11 + $0xab0] sm:$0xff]  ;;  %v1157_v18 = vld [vmem:[%s13183_s11 + $0xa98] sm:$0xff]  ;;  %v11009_v23 = vcombine.low %v1148_v5, %v1152_v42 }
 0x30c   : > { %4471 = vmatpush1.bf16.msra.mxu0 %v10945_v8  ;;  %4675 = vmatpush1.bf16.msra.mxu1 %v10947_v9  ;;  %v11003_v8 = vcombine.low %v1141_v63, %v1145_v57  ;;  %v11010_v9 = vcombine.high %v1148_v5, %v1152_v42  ;;  %v1201_v63 = vld [vmem:[%s13183_s11 + $0xbf8] sm:$0xff]  ;;  %v1208_v5 = vld [vmem:[%s13183_s11 + $0xc30] sm:$0xff] }
 0x30d   : > { %4472 = vmatprep.subr.bf16.mxu0 %v10954_v55  ;;  %4676 = vmatprep.subr.bf16.mxu1 %v10956_v15  ;;  %v11012_v55 = vcombine.high %v1149_v43, %v1153_v6  ;;  %v1156_v15 = vld [vmem:[%s13183_s11 + $0xa90] sm:$0xff]  ;;  %v1205_v42 = vld [vmem:[%s13183_s11 + $0xc18] sm:$0xff] }
 0x30e   : > { %v11017_v29 = vcombine.low %v1156_v15, %v1160_v17 }
 0x30f   : > { %4460 = vmatmul.mubr.bf16.gmra.mrb[12].mxu0 %v13400_v10  ;;  %4664 = vmatmul.mubr.bf16.gmra.mrb[12].mxu1 %v13400_v10  ;;  %v10969_v10 = vcombine.low %v1108_v0, %v1112_v27  ;;  %v1168_v0 = vld [vmem:[%s13183_s11 + $0xaf0] sm:$0xff]  ;;  %v1165_v27 = vld [vmem:[%s13183_s11 + $0xad8] sm:$0xff] }
 0x310   : > { %4473 = vmatpush1.bf16.msra.mxu0 %v10953_v51  ;;  %4677 = vmatpush1.bf16.msra.mxu1 %v10955_v24  ;;  %v11011_v51 = vcombine.low %v1149_v43, %v1153_v6  ;;  %v11018_v24 = vcombine.high %v1156_v15, %v1160_v17  ;;  %v1209_v43 = vld [vmem:[%s13183_s11 + $0xc38] sm:$0xff]  ;;  %v1216_v15 = vld [vmem:[%s13183_s11 + $0xc70] sm:$0xff] }
 0x311   : > { %4474 = vmatprep.subr.bf16.mxu0 %v10962_v25  ;;  %4678 = vmatprep.subr.bf16.mxu1 %v10964_v26  ;;  %v11020_v25 = vcombine.high %v1157_v18, %v1161_v21  ;;  %v1164_v26 = vld [vmem:[%s13183_s11 + $0xad0] sm:$0xff]  ;;  %v1213_v17 = vld [vmem:[%s13183_s11 + $0xc58] sm:$0xff] }
 0x312   : > { %4500 = vmatprep.mubr.bf16.mxu0 %v13410_v22  ;;  %4704 = vmatprep.mubr.bf16.mxu1 %v13410_v22  ;;  %v10979_v22 = vcombine.low %v1117_v34, %v1121_v35  ;;  %v1177_v34 = vld [vmem:[%s13183_s11 + $0xb38] sm:$0xff]  ;;  %v11025_v35 = vcombine.low %v1164_v26, %v1168_v0 }
 0x314   : > { %4475 = vmatpush1.bf16.msra.mxu0 %v10961_v56  ;;  %4679 = vmatpush1.bf16.msra.mxu1 %v10963_v30  ;;  %v11019_v56 = vcombine.low %v1157_v18, %v1161_v21  ;;  %v11026_v30 = vcombine.high %v1164_v26, %v1168_v0  ;;  %v1217_v18 = vld [vmem:[%s13183_s11 + $0xc78] sm:$0xff]  ;;  %v1224_v26 = vld [vmem:[%s13183_s11 + $0xcb0] sm:$0xff] }
 0x315   : > { %4476 = vmatprep.subr.bf16.mxu0 %v10970_v14  ;;  %4680 = vmatprep.subr.bf16.mxu1 %v10972_v31  ;;  %v11028_v14 = vcombine.high %v1165_v27, %v1169_v28  ;;  %v1172_v31 = vld [vmem:[%s13183_s11 + $0xb10] sm:$0xff]  ;;  %v1221_v0 = vld [vmem:[%s13183_s11 + $0xc98] sm:$0xff] }
 0x316   : > { %v11033_v12 = vcombine.low %v1172_v31, %v1176_v32 }
 0x318   : > { %4477 = vmatpush1.bf16.msra.mxu0 %v10969_v10  ;;  %4681 = vmatpush1.bf16.msra.mxu1 %v10971_v37  ;;  %v11027_v10 = vcombine.low %v1165_v27, %v1169_v28  ;;  %v11034_v37 = vcombine.high %v1172_v31, %v1176_v32  ;;  %v1225_v27 = vld [vmem:[%s13183_s11 + $0xcb8] sm:$0xff]  ;;  %v1232_v31 = vld [vmem:[%s13183_s11 + $0xcf0] sm:$0xff] }
 0x319   : > { %4478 = vmatprep.subr.bf16.mxu0 %v10978_v38  ;;  %4682 = vmatprep.subr.bf16.mxu1 %v10980_v39  ;;  %v11036_v38 = vcombine.high %v1173_v33, %v1177_v34  ;;  %v1180_v39 = vld [vmem:[%s13183_s11 + $0xb50] sm:$0xff]  ;;  %v1229_v32 = vld [vmem:[%s13183_s11 + $0xcd8] sm:$0xff] }
 0x31a   : > { %v11041_v53 = vcombine.low %v1180_v39, %v1184_v40 }
 0x31c   : > { %4479 = vmatpush1.bf16.msra.mxu0 %v10977_v46  ;;  %4683 = vmatpush1.bf16.msra.mxu1 %v10979_v22  ;;  %v11035_v46 = vcombine.low %v1173_v33, %v1177_v34  ;;  %v11042_v22 = vcombine.high %v1180_v39, %v1184_v40  ;;  %v1233_v33 = vld [vmem:[%s13183_s11 + $0xcf8] sm:$0xff]  ;;  %v11083_v34 = vcombine.low %v1221_v0, %v1225_v27 }
 0x31d   : > { %4480 = vmatprep.subr.bf16.mxu0 %v10986_v47  ;;  %4684 = vmatprep.subr.bf16.mxu1 %v10988_v48  ;;  %v11044_v47 = vcombine.high %v1181_v44, %v1185_v45  ;;  %v1188_v48 = vld [vmem:[%s13183_s11 + $0xb90] sm:$0xff]  ;;  %v1237_v39 = vld [vmem:[%s13183_s11 + $0xd18] sm:$0xff] }
 0x31e   : > { %v11049_v57 = vcombine.low %v1188_v48, %v1192_v50  ;;  %v1241_v40 = vld [vmem:[%s13183_s11 + $0xd38] sm:$0xff] }
 0x320   : > { %4481 = vmatpush1.bf16.msra.mxu0 %v10985_v54  ;;  %4685 = vmatpush1.bf16.msra.mxu1 %v10987_v58  ;;  %v11043_v54 = vcombine.low %v1181_v44, %v1185_v45  ;;  %v11050_v58 = vcombine.high %v1188_v48, %v1192_v50  ;;  %v11091_v44 = vcombine.low %v1229_v32, %v1233_v33  ;;  %v1249_v48 = vld [vmem:[%s13183_s11 + $0xd78] sm:$0xff] }
 0x321   : > { %4482 = vmatprep.subr.bf16.mxu0 %v10994_v59  ;;  %4686 = vmatprep.subr.bf16.mxu1 %v10996_v36  ;;  %v11052_v59 = vcombine.high %v1189_v52, %v1193_v16  ;;  %v1196_v36 = vld [vmem:[%s13183_s11 + $0xbd0] sm:$0xff]  ;;  %v11099_v50 = vcombine.low %v1237_v39, %v1241_v40 }
 0x322   : > { %v11057_v6 = vcombine.low %v1196_v36, %v1200_v61 }
 0x324   : > { %4483 = vmatpush1.bf16.msra.mxu0 %v10993_v1  ;;  %4687 = vmatpush1.bf16.msra.mxu1 %v10995_v2  ;;  %v11051_v1 = vcombine.low %v1189_v52, %v1193_v16  ;;  %v11058_v2 = vcombine.high %v1196_v36, %v1200_v61 }
 0x325   : > { %4484 = vmatprep.subr.bf16.mxu0 %v11002_v3  ;;  %4688 = vmatprep.subr.bf16.mxu1 %v11004_v11  ;;  %v11060_v3 = vcombine.high %v1197_v62, %v1201_v63  ;;  %v1204_v11 = vld [vmem:[%s13183_s11 + $0xc10] sm:$0xff] }
 0x326   : > { %v11065_v21 = vcombine.low %v1204_v11, %v1208_v5 }
 0x328   : > { %4485 = vmatpush1.bf16.msra.mxu0 %v11001_v7  ;;  %4689 = vmatpush1.bf16.msra.mxu1 %v11003_v8  ;;  %v11059_v7 = vcombine.low %v1197_v62, %v1201_v63  ;;  %v11066_v8 = vcombine.high %v1204_v11, %v1208_v5  ;;  %v1261_v11 = vld [vmem:[%s13183_s11 + $0xdd8] sm:$0xff] }
 0x329   : > { %4486 = vmatprep.subr.bf16.mxu0 %v11010_v9  ;;  %4690 = vmatprep.subr.bf16.mxu1 %v11012_v55  ;;  %v11068_v9 = vcombine.high %v1205_v42, %v1209_v43  ;;  %v1212_v55 = vld [vmem:[%s13183_s11 + $0xc50] sm:$0xff]  ;;  %v1265_v5 = vld [vmem:[%s13183_s11 + $0xdf8] sm:$0xff] }
 0x32a   : > { %v11073_v28 = vcombine.low %v1212_v55, %v1216_v15 }
 0x32c   : > { %4487 = vmatpush1.bf16.msra.mxu0 %v11009_v23  ;;  %4691 = vmatpush1.bf16.msra.mxu1 %v11011_v51  ;;  %v11067_v23 = vcombine.low %v1205_v42, %v1209_v43  ;;  %v11074_v51 = vcombine.high %v1212_v55, %v1216_v15 }
 0x32d   : > { %4488 = vmatprep.subr.bf16.mxu0 %v11018_v24  ;;  %4692 = vmatprep.subr.bf16.mxu1 %v11020_v25  ;;  %v11076_v24 = vcombine.high %v1213_v17, %v1217_v18  ;;  %v1220_v25 = vld [vmem:[%s13183_s11 + $0xc90] sm:$0xff] }
 0x330   : > { %4489 = vmatpush1.bf16.msra.mxu0 %v11017_v29  ;;  %4693 = vmatpush1.bf16.msra.mxu1 %v11019_v56  ;;  %v11075_v29 = vcombine.low %v1213_v17, %v1217_v18  ;;  %v11082_v56 = vcombine.high %v1220_v25, %v1224_v26  ;;  %v11124_v17 = vcombine.high %v1261_v11, %v1265_v5  ;;  %v1268_v18 = vld [vmem:[%s13183_s11 + $0xe10] sm:$0xff] }
 0x331   : > { %4490 = vmatprep.subr.bf16.mxu0 %v11026_v30  ;;  %4694 = vmatprep.subr.bf16.mxu1 %v11028_v14  ;;  %v11084_v30 = vcombine.high %v1221_v0, %v1225_v27  ;;  %v1228_v14 = vld [vmem:[%s13183_s11 + $0xcd0] sm:$0xff] }
 0x334   : > { %4491 = vmatpush1.bf16.msra.mxu0 %v11025_v35  ;;  %4695 = vmatpush1.bf16.msra.mxu1 %v11027_v10  ;;  %v11090_v35 = vcombine.high %v1228_v14, %v1232_v31  ;;  %v11092_v10 = vcombine.high %v1229_v32, %v1233_v33 }
 0x335   : > { %4492 = vmatprep.subr.bf16.mxu0 %v11034_v37  ;;  %4696 = vmatprep.subr.bf16.mxu1 %v11036_v38  ;;  %v1236_v37 = vld [vmem:[%s13183_s11 + $0xd10] sm:$0xff] }
 0x336   : > { %v1240_v38 = vld [vmem:[%s13183_s11 + $0xd30] sm:$0xff] }
 0x337   : > { %v11098_v45 = vcombine.high %v1236_v37, %v1240_v38 }
 0x338   : > { %4493 = vmatpush1.bf16.msra.mxu0 %v11033_v12  ;;  %4697 = vmatpush1.bf16.msra.mxu1 %v11035_v46  ;;  %v11100_v12 = vcombine.high %v1237_v39, %v1241_v40  ;;  %v1244_v46 = vld [vmem:[%s13183_s11 + $0xd50] sm:$0xff] }
 0x339   : > { %4494 = vmatprep.subr.bf16.mxu0 %v11042_v22  ;;  %4698 = vmatprep.subr.bf16.mxu1 %v11044_v47  ;;  %v1248_v22 = vld [vmem:[%s13183_s11 + $0xd70] sm:$0xff]  ;;  %v1245_v47 = vld [vmem:[%s13183_s11 + $0xd58] sm:$0xff] }
 0x33a   : > { %v11106_v52 = vcombine.high %v1244_v46, %v1248_v22  ;;  %v11108_v16 = vcombine.high %v1245_v47, %v1249_v48  ;;  %v11105_v36 = vcombine.low %v1244_v46, %v1248_v22  ;;  %v1284_v40 = vld [vmem:[%s13183_s11 + $0xe90] sm:$0xff] }
 0x33c   : > { %4495 = vmatpush1.bf16.msra.mxu0 %v11041_v53  ;;  %4699 = vmatpush1.bf16.msra.mxu1 %v11043_v54  ;;  %v1252_v53 = vld [vmem:[%s13183_s11 + $0xd90] sm:$0xff] }
 0x33d   : > { %4496 = vmatprep.subr.bf16.mxu0 %v11050_v58  ;;  %4700 = vmatprep.subr.bf16.mxu1 %v11052_v59  ;;  %v1256_v54 = vld [vmem:[%s13183_s11 + $0xdb0] sm:$0xff]  ;;  %v1253_v58 = vld [vmem:[%s13183_s11 + $0xd98] sm:$0xff] }
 0x33e   : > { %v1257_v59 = vld [vmem:[%s13183_s11 + $0xdb8] sm:$0xff]  ;;  %v11114_v61 = vcombine.high %v1252_v53, %v1256_v54 }
 0x33f   : > { %v11116_v63 = vcombine.high %v1253_v58, %v1257_v59 }
 0x340   : > { %4497 = vmatpush1.bf16.msra.mxu0 %v11049_v57  ;;  %4701 = vmatpush1.bf16.msra.mxu1 %v11051_v1  ;;  %v1260_v57 = vld [vmem:[%s13183_s11 + $0xdd0] sm:$0xff] }
 0x341   : > { %4498 = vmatprep.subr.bf16.mxu0 %v11058_v2  ;;  %4702 = vmatprep.subr.bf16.mxu1 %v11060_v3  ;;  %v1264_v1 = vld [vmem:[%s13183_s11 + $0xdf0] sm:$0xff] }
 0x342   : > { %v11122_v55 = vcombine.high %v1260_v57, %v1264_v1 }
 0x344   : > { %4499 = vmatpush1.bf16.msra.mxu0 %v11057_v6  ;;  %4703 = vmatpush1.bf16.msra.mxu1 %v11059_v7  ;;  %v11113_v6 = vcombine.low %v1252_v53, %v1256_v54 }
 0x345   : > { %4519 = vmatprep.subr.bf16.mxu0 %v11066_v8  ;;  %4723 = vmatprep.subr.bf16.mxu1 %v11068_v9  ;;  %v11115_v9 = vcombine.low %v1253_v58, %v1257_v59  ;;  %v1300_v59 = vld [vmem:[%s13183_s11 + $0xf10] sm:$0xff] }
 0x347   : > { %4501 = vmatmul.mubr.bf16.vlgmr.msra.gmra.mrb[8].mxu0 %v13470_v20  ;;  %4705 = vmatmul.mubr.bf16.vlgmr.msra.gmra.mrb[8].mxu1 %v13470_v20  ;;  %v11081_v20 = vcombine.low %v1220_v25, %v1224_v26  ;;  %v11123_v25 = vcombine.low %v1261_v11, %v1265_v5  ;;  %v1309_v11 = vld [vmem:[%s13183_s11 + $0xf58] sm:$0xff] }
 0x348   : > { %4520 = vmatpush1.bf16.msra.mxu0 %v11065_v21  ;;  %4724 = vmatpush1.bf16.msra.mxu1 %v11067_v23  ;;  %v1272_v21 = vld [vmem:[%s13183_s11 + $0xe30] sm:$0xff]  ;;  %v1269_v23 = vld [vmem:[%s13183_s11 + $0xe18] sm:$0xff] }
 0x349   : > { %4521 = vmatprep.subr.bf16.mxu0 %v11074_v51  ;;  %4725 = vmatprep.subr.bf16.mxu1 %v11076_v24  ;;  %v1273_v51 = vld [vmem:[%s13183_s11 + $0xe38] sm:$0xff]  ;;  %v11121_v24 = vcombine.low %v1260_v57, %v1264_v1  ;;  %v11130_v26 = vcombine.high %v1268_v18, %v1272_v21 }
 0x34a   : > { %4510 = vmatprep.mubr.bf16.mxu0 %v13476_v13  ;;  %4714 = vmatprep.mubr.bf16.mxu1 %v13476_v13  ;;  %v11089_v13 = vcombine.low %v1228_v14, %v1232_v31  ;;  %v11132_v27 = vcombine.high %v1269_v23, %v1273_v51  ;;  %v1277_v14 = vld [vmem:[%s13183_s11 + $0xe58] sm:$0xff] }
 0x34b   : > { %v1281_v31 = vld [vmem:[%s13183_s11 + $0xe78] sm:$0xff] }
 0x34c   : > { %4522 = vmatpush1.bf16.msra.mxu0 %v11073_v28  ;;  %4726 = vmatpush1.bf16.msra.mxu1 %v11075_v29  ;;  %v1276_v28 = vld [vmem:[%s13183_s11 + $0xe50] sm:$0xff]  ;;  %v11140_v39 = vcombine.high %v1277_v14, %v1281_v31  ;;  %v11139_v46 = vcombine.low %v1277_v14, %v1281_v31  ;;  %v1313_v5 = vld [vmem:[%s13183_s11 + $0xf78] sm:$0xff] }
 0x34d   : > { %4523 = vmatprep.subr.bf16.mxu0 %v11082_v56  ;;  %4727 = vmatprep.subr.bf16.mxu1 %v11084_v30  ;;  %v1280_v29 = vld [vmem:[%s13183_s11 + $0xe70] sm:$0xff] }
 0x34f   : > { %4511 = vmatmul.mubr.bf16.gmra.mrb[12].mxu0 %v13488_v41  ;;  %4715 = vmatmul.mubr.bf16.gmra.mrb[12].mxu1 %v13488_v41  ;;  %v11097_v41 = vcombine.low %v1236_v37, %v1240_v38  ;;  %v11138_v37 = vcombine.high %v1276_v28, %v1280_v29 }
 0x350   : > { %4524 = vmatpush1.bf16.msra.mxu0 %v11081_v20  ;;  %4728 = vmatpush1.bf16.msra.mxu1 %v11083_v34  ;;  %v11129_v20 = vcombine.low %v1268_v18, %v1272_v21  ;;  %v11171_v18 = vcombine.low %v1309_v11, %v1313_v5 }
 0x351   : > { %4525 = vmatprep.subr.bf16.mxu0 %v11090_v35  ;;  %4729 = vmatprep.subr.bf16.mxu1 %v11092_v10  ;;  %v11131_v10 = vcombine.low %v1269_v23, %v1273_v51  ;;  %v1324_v51 = vld [vmem:[%s13183_s11 + $0xfd0] sm:$0xff] }
 0x352   : > { %4551 = vmatprep.mubr.bf16.mxu0 %v13498_v49  ;;  %4755 = vmatprep.mubr.bf16.mxu1 %v13498_v49  ;;  %v11107_v49 = vcombine.low %v1245_v47, %v1249_v48  ;;  %v1292_v48 = vld [vmem:[%s13183_s11 + $0xed0] sm:$0xff] }
 0x354   : > { %4526 = vmatpush1.bf16.msra.mxu0 %v11089_v13  ;;  %4730 = vmatpush1.bf16.msra.mxu1 %v11091_v44  ;;  %v1288_v13 = vld [vmem:[%s13183_s11 + $0xeb0] sm:$0xff]  ;;  %v1285_v44 = vld [vmem:[%s13183_s11 + $0xe98] sm:$0xff] }
 0x355   : > { %4527 = vmatprep.subr.bf16.mxu0 %v11098_v45  ;;  %4731 = vmatprep.subr.bf16.mxu1 %v11100_v12  ;;  %v1289_v45 = vld [vmem:[%s13183_s11 + $0xeb8] sm:$0xff]  ;;  %v11137_v12 = vcombine.low %v1276_v28, %v1280_v29  ;;  %v11146_v22 = vcombine.high %v1284_v40, %v1288_v13 }
 0x356   : > { %v11148_v47 = vcombine.high %v1285_v44, %v1289_v45  ;;  %v11147_v53 = vcombine.low %v1285_v44, %v1289_v45 }
 0x358   : > { %4528 = vmatpush1.bf16.msra.mxu0 %v11097_v41  ;;  %4732 = vmatpush1.bf16.msra.mxu1 %v11099_v50  ;;  %v1296_v41 = vld [vmem:[%s13183_s11 + $0xef0] sm:$0xff]  ;;  %v1293_v50 = vld [vmem:[%s13183_s11 + $0xed8] sm:$0xff] }
 0x359   : > { %4529 = vmatprep.subr.bf16.mxu0 %v11106_v52  ;;  %4733 = vmatprep.subr.bf16.mxu1 %v11108_v16  ;;  %v1297_v52 = vld [vmem:[%s13183_s11 + $0xef8] sm:$0xff]  ;;  %v11145_v16 = vcombine.low %v1284_v40, %v1288_v13  ;;  %v11154_v54 = vcombine.high %v1292_v48, %v1296_v41 }
 0x35a   : > { %v4145_v62 = vpop.f32.mrb[0].mxu0  ;;  %v4349_v2 = vpop.f32.mrb[0].mxu1  ;;  %v11156_v58 = vcombine.high %v1293_v50, %v1297_v52 }
 0x35b   : > { %4777 = vst [vmem:[%s13813_s30] sm:$0xff] %v4145_v62  ;;  %v4147_v3 = vpop.f32.mrb[1].mxu0  ;;  %4779 = vst [vmem:[%s13813_s30 + $0x10] sm:$0xff] %v4349_v2  ;;  %v4351_v42 = vpop.f32.mrb[1].mxu1  ;;  %v11153_v62 = vcombine.low %v1292_v48, %v1296_v41  ;;  %v1308_v2 = vld [vmem:[%s13183_s11 + $0xf50] sm:$0xff] }
 0x35c   : > { %4778 = vst [vmem:[%s13813_s30 + $0x8] sm:$0xff] %v4147_v3  ;;  %v4149_v43 = vpop.f32.mrb[2].mxu0  ;;  %4530 = vmatpush1.bf16.msra.mxu0 %v11105_v36  ;;  %4780 = vst [vmem:[%s13813_s30 + $0x18] sm:$0xff] %v4351_v42  ;;  %v4353_v7 = vpop.f32.mrb[2].mxu1  ;;  %4734 = vmatpush1.bf16.msra.mxu1 %v11107_v49  ;;  %v1304_v36 = vld [vmem:[%s13183_s11 + $0xf30] sm:$0xff]  ;;  %v1301_v49 = vld [vmem:[%s13183_s11 + $0xf18] sm:$0xff] }
 0x35d   : > { %4785 = vst [vmem:[%s13813_s30 + $0x40] sm:$0xff] %v4149_v43  ;;  %v4151_v8 = vpop.f32.mrb[3].mxu0  ;;  %4531 = vmatprep.subr.bf16.mxu0 %v11114_v61  ;;  %4787 = vst [vmem:[%s13813_s30 + $0x50] sm:$0xff] %v4353_v7  ;;  %v4355_v15 = vpop.f32.mrb[3].mxu1  ;;  %4735 = vmatprep.subr.bf16.mxu1 %v11116_v63  ;;  %v1305_v61 = vld [vmem:[%s13183_s11 + $0xf38] sm:$0xff]  ;;  %v11155_v63 = vcombine.low %v1293_v50, %v1297_v52  ;;  %v11162_v57 = vcombine.high %v1300_v59, %v1304_v36  ;;  %v1312_v3 = vld [vmem:[%s13183_s11 + $0xf70] sm:$0xff] }
 0x35e   : > { %4786 = vst [vmem:[%s13813_s30 + $0x48] sm:$0xff] %v4151_v8  ;;  %4788 = vst [vmem:[%s13813_s30 + $0x58] sm:$0xff] %v4355_v15  ;;  %v11164_v1 = vcombine.high %v1301_v49, %v1305_v61  ;;  %v11161_v42 = vcombine.low %v1300_v59, %v1304_v36  ;;  %v11163_v43 = vcombine.low %v1301_v49, %v1305_v61  ;;  %v1316_v8 = vld [vmem:[%s13183_s11 + $0xf90] sm:$0xff]  ;;  %v1321_v15 = vld [vmem:[%s13183_s11 + $0xfb8] sm:$0xff] }
 0x35f   : > { %v11172_v7 = vcombine.high %v1309_v11, %v1313_v5 }
 0x360   : > { %4532 = vmatpush1.bf16.msra.mxu0 %v11113_v6  ;;  %4736 = vmatpush1.bf16.msra.mxu1 %v11115_v9  ;;  %v11170_v6 = vcombine.high %v1308_v2, %v1312_v3  ;;  %v1320_v9 = vld [vmem:[%s13183_s11 + $0xfb0] sm:$0xff] }
 0x361   : > { %4533 = vmatprep.subr.bf16.mxu0 %v11122_v55  ;;  %4737 = vmatprep.subr.bf16.mxu1 %v11124_v17  ;;  %v1317_v55 = vld [vmem:[%s13183_s11 + $0xf98] sm:$0xff]  ;;  %v11169_v17 = vcombine.low %v1308_v2, %v1312_v3  ;;  %v11178_v21 = vcombine.high %v1316_v8, %v1320_v9 }
 0x362   : > { %v4155_v0 = vpop.f32.mrb[4].mxu0  ;;  %v4359_v56 = vpop.f32.mrb[4].mxu1  ;;  %v11180_v23 = vcombine.high %v1317_v55, %v1321_v15 }
 0x363   : > { %4793 = vst [vmem:[%s13813_s30 + $0x80] sm:$0x3] %v4155_v0  ;;  %v4157_v30 = vpop.f32.mrb[5].mxu0  ;;  %4795 = vst [vmem:[%s13813_s30 + $0x90] sm:$0x3] %v4359_v56  ;;  %v4361_v32 = vpop.f32.mrb[5].mxu1  ;;  %v11177_v0 = vcombine.low %v1316_v8, %v1320_v9 }
 0x364   : > { %4794 = vst [vmem:[%s13813_s30 + $0x88] sm:$0x3] %v4157_v30  ;;  %v4159_v33 = vpop.f32.mrb[6].mxu0  ;;  %4534 = vmatpush1.bf16.msra.mxu0 %v11121_v24  ;;  %4796 = vst [vmem:[%s13813_s30 + $0x98] sm:$0x3] %v4361_v32  ;;  %v4363_v34 = vpop.f32.mrb[6].mxu1  ;;  %4738 = vmatpush1.bf16.msra.mxu1 %v11123_v25 }
 0x365   : > { %v4160_v35 = vpop.f32.mrb[7].mxu0  ;;  %4535 = vmatprep.subr.bf16.mxu0 %v11130_v26  ;;  %v4364_v38 = vpop.f32.mrb[7].mxu1  ;;  %4739 = vmatprep.subr.bf16.mxu1 %v11132_v27  ;;  %v1328_v24 = vld [vmem:[%s13183_s11 + $0xff0] sm:$0xff]  ;;  %v1325_v25 = vld [vmem:[%s13183_s11 + $0xfd8] sm:$0xff]  ;;  %v11179_v27 = vcombine.low %v1317_v55, %v1321_v15 }
 0x366   : > { %v1329_v26 = vld [vmem:[%s13183_s11 + $0xff8] sm:$0xff]  ;;  %v11186_v28 = vcombine.high %v1324_v51, %v1328_v24  ;;  %v11185_v56 = vcombine.low %v1324_v51, %v1328_v24 }
 0x367   : > { %v11188_v29 = vcombine.high %v1325_v25, %v1329_v26  ;;  %v11187_v30 = vcombine.low %v1325_v25, %v1329_v26 }
 0x368   : > { %4536 = vmatpush1.bf16.msra.mxu0 %v11129_v20  ;;  %4740 = vmatpush1.bf16.msra.mxu1 %v11131_v10 }
 0x369   : > { %4537 = vmatprep.subr.bf16.mxu0 %v11138_v37  ;;  %4741 = vmatprep.subr.bf16.mxu1 %v11140_v39 }
 0x36c   : > { %4538 = vmatpush1.bf16.msra.mxu0 %v11137_v12  ;;  %4742 = vmatpush1.bf16.msra.mxu1 %v11139_v46 }
 0x36d   : > { %4539 = vmatprep.subr.bf16.mxu0 %v11146_v22  ;;  %4743 = vmatprep.subr.bf16.mxu1 %v11148_v47 }
 0x370   : > { %4540 = vmatpush1.bf16.msra.mxu0 %v11145_v16  ;;  %4744 = vmatpush1.bf16.msra.mxu1 %v11147_v53 }
 0x371   : > { %4541 = vmatprep.subr.bf16.mxu0 %v11154_v54  ;;  %4745 = vmatprep.subr.bf16.mxu1 %v11156_v58 }
 0x374   : > { %4542 = vmatpush1.bf16.msra.mxu0 %v11153_v62  ;;  %4746 = vmatpush1.bf16.msra.mxu1 %v11155_v63 }
 0x375   : > { %4543 = vmatprep.subr.bf16.mxu0 %v11162_v57  ;;  %4747 = vmatprep.subr.bf16.mxu1 %v11164_v1 }
 0x378   : > { %4544 = vmatpush1.bf16.msra.mxu0 %v11161_v42  ;;  %4748 = vmatpush1.bf16.msra.mxu1 %v11163_v43 }
 0x379   : > { %4545 = vmatprep.subr.bf16.mxu0 %v11170_v6  ;;  %4749 = vmatprep.subr.bf16.mxu1 %v11172_v7 }
 0x37c   : > { %4546 = vmatpush1.bf16.msra.mxu0 %v11169_v17  ;;  %4750 = vmatpush1.bf16.msra.mxu1 %v11171_v18 }
 0x37d   : > { %4547 = vmatprep.subr.bf16.mxu0 %v11178_v21  ;;  %4751 = vmatprep.subr.bf16.mxu1 %v11180_v23 }
 0x380   : > { %4548 = vmatpush1.bf16.msra.mxu0 %v11177_v0  ;;  %4752 = vmatpush1.bf16.msra.mxu1 %v11179_v27 }
 0x381   : > { %4549 = vmatprep.subr.bf16.mxu0 %v11186_v28  ;;  %4753 = vmatprep.subr.bf16.mxu1 %v11188_v29 }
 0x384   : > { %4550 = vmatpush1.bf16.msra.mxu0 %v11185_v56  ;;  %4754 = vmatpush1.bf16.msra.mxu1 %v11187_v30 }
 0x387   : > { %4552 = vmatmul.mubr.bf16.vlgmr.msra.gmra.mrb[8].mxu0 %v13558_v60  ;;  %4756 = vmatmul.mubr.bf16.vlgmr.msra.gmra.mrb[8].mxu1 %v13558_v60 }
 0x388   : > { %4561 = vmatprep.mubr.bf16.mxu0 %v13562_v4  ;;  %4765 = vmatprep.mubr.bf16.mxu1 %v13562_v4 }
 0x38f   : > { %4562 = vmatmul.mubr.bf16.gmra.mrb[12].mxu0 %v13574_v19  ;;  %4766 = vmatmul.mubr.bf16.gmra.mrb[12].mxu1 %v13574_v19 }
 0x45a   : > { %v4553_v14 = vpop.f32.mrb[8].mxu0  ;;  %v4757_v31 = vpop.f32.mrb[8].mxu1 }
 0x45b   : > { %4781 = vst [vmem:[%s13813_s30 + $0x20] sm:$0xff] %v4553_v14  ;;  %v4555_v32 = vpop.f32.mrb[9].mxu0  ;;  %4783 = vst [vmem:[%s13813_s30 + $0x30] sm:$0xff] %v4757_v31  ;;  %v4759_v60 = vpop.f32.mrb[9].mxu1 }
 0x45c   : > { %4782 = vst [vmem:[%s13813_s30 + $0x28] sm:$0xff] %v4555_v32  ;;  %v4557_v33 = vpop.f32.mrb[10].mxu0  ;;  %4784 = vst [vmem:[%s13813_s30 + $0x38] sm:$0xff] %v4759_v60  ;;  %v4761_v4 = vpop.f32.mrb[10].mxu1 }
 0x45d   : > { %4789 = vst [vmem:[%s13813_s30 + $0x60] sm:$0xff] %v4557_v33  ;;  %v4559_v20 = vpop.f32.mrb[11].mxu0  ;;  %4791 = vst [vmem:[%s13813_s30 + $0x70] sm:$0xff] %v4761_v4  ;;  %v4763_v19 = vpop.f32.mrb[11].mxu1 }
 0x45e   : > { %4790 = vst [vmem:[%s13813_s30 + $0x68] sm:$0xff] %v4559_v20  ;;  %4792 = vst [vmem:[%s13813_s30 + $0x78] sm:$0xff] %v4763_v19 }
 0x462   : > { %v4563_v34 = vpop.f32.mrb[12].mxu0  ;;  %v4767_v35 = vpop.f32.mrb[12].mxu1 }
 0x463   : > { %4797 = vst [vmem:[%s13813_s30 + $0xa0] sm:$0x3] %v4563_v34  ;;  %v4565_v10 = vpop.f32.mrb[13].mxu0  ;;  %4799 = vst [vmem:[%s13813_s30 + $0xb0] sm:$0x3] %v4767_v35  ;;  %v4769_v37 = vpop.f32.mrb[13].mxu1 }
 0x464   : > { %4798 = vst [vmem:[%s13813_s30 + $0xa8] sm:$0x3] %v4565_v10  ;;  %v4567_v38 = vpop.f32.mrb[14].mxu0  ;;  %4800 = vst [vmem:[%s13813_s30 + $0xb8] sm:$0x3] %v4769_v37  ;;  %v4771_v39 = vpop.f32.mrb[14].mxu1 }
 0x465   : > { %v4568_v40 = vpop.f32.mrb[15].mxu0  ;;  %v4772_v13 = vpop.f32.mrb[15].mxu1 }
 0x466 PF: > { %s15120_s14 = sld [smem:[#allocation35_spill]] }
 0x46c   : > { %p11190_p13 = scmp.ne.s32.totalorder %s15120_s14, 2 }
 0x46d   : > { %v4815_v44 = vlaneseq (!%p11190_p13)  ;;  %v12764_v12 = vmov (!%p11190_p13), 1966171168   ;;  %v13882_v47 = vld [vmem:[#allocation14] sm:$0xff] (!%p11190_p13)  ;;  %v13884_v48 = vld [vmem:[#allocation15] sm:$0xff] (!%p11190_p13)  ;;  %v4808_v54 = vld [vmem:[#allocation3 + $0x98] sm:$0x3] (!%p11190_p13) }
 0x46e   : > { %4804 = sbr.rel (%p11190_p13) target bundleno = 1941 (0x795), region = 132  ;;  %v5019_v46 = vunpack.c.l.s4 (!%p11190_p13), %v12764_v12  ;;  %v4807_v53 = vld [vmem:[#allocation3 + $0x90] sm:$0x3] (!%p11190_p13)  ;;  %v4805_v62 = vld [vmem:[#allocation3 + $0x80] sm:$0x3] (!%p11190_p13)  ;;  %v4867_v43 = vld [vmem:[#allocation3 + $0xd8] sm:$0xff] (!%p11190_p13) }
 0x46f   : > { %v13880_v45 = vshrl.u32 (!%p11190_p13), %v4815_v44, 7  ;;  %v5073_v22 = vand.u32 (!%p11190_p13), 127, %v4815_v44  ;;  %v4806_v63 = vld [vmem:[#allocation3 + $0x88] sm:$0x3] (!%p11190_p13)  ;;  %v4866_v57 = vld [vmem:[#allocation3 + $0xd0] sm:$0xff] (!%p11190_p13)  ;;  %v4864_v15 = vld [vmem:[#allocation3 + $0xc0] sm:$0xff] (!%p11190_p13) }
 0x470   : > { %v5020_v58 = vunpack.c.0.s8 (!%p11190_p13), %v5019_v46  ;;  %v4874_v17 = vld [vmem:[#allocation3 + $0x110] sm:$0xff] (!%p11190_p13)  ;;  %v4875_v24 = vld [vmem:[#allocation3 + $0x118] sm:$0xff] (!%p11190_p13)  ;;  %v4809_v25 = vld [vmem:[#allocation3 + $0xa0] sm:$0x3] (!%p11190_p13)  ;;  %vm5082_vm0 = vcmask (!%p11190_p13), 1041409   ;;  %vm5085_vm1 = vcmask (!%p11190_p13), 58368  }
 0x471   : > { %v13887_v41 = vsub.s32 (!%p11190_p13), 0, %v13880_v45  ;;  %v13890_v50 = vsub.s32 (!%p11190_p13), 1, %v13880_v45  ;;  %v13893_v52 = vsub.s32 (!%p11190_p13), 2, %v13880_v45  ;;  %v13896_v16 = vsub.s32 (!%p11190_p13), 3, %v13880_v45  ;;  %v4865_v0 = vld [vmem:[#allocation3 + $0xc8] sm:$0xff] (!%p11190_p13)  ;;  %v4872_v60 = vld [vmem:[#allocation3 + $0x100] sm:$0xff] (!%p11190_p13) }
 0x472   : > { %v13899_v59 = vsub.s32 (!%p11190_p13), %v5073_v22, %v13880_v45  ;;  %v13914_v11 = vsub.s32 (!%p11190_p13), 4, %v13880_v45  ;;  %v13919_v7 = vsub.s32 (!%p11190_p13), 5, %v13880_v45  ;;  %v13922_v8 = vsub.s32 (!%p11190_p13), %v5020_v58, %v13880_v45  ;;  %v4810_v29 = vld [vmem:[#allocation3 + $0xa8] sm:$0x3] (!%p11190_p13)  ;;  %v4868_v38 = vld [vmem:[#allocation3 + $0xe0] sm:$0xff] (!%p11190_p13) }
 0x473   : > { %v4826_v36 = vrot.slane (!%p11190_p13), %v13882_v47, %v13893_v52  ;;  %v4830_v49 = vrot.slane (!%p11190_p13), %v13882_v47, %v13896_v16  ;;  %v4893_v61 = vrot.slane (!%p11190_p13), %v13884_v48, %v13893_v52  ;;  %v4897_v1 = vrot.slane (!%p11190_p13), %v13884_v48, %v13896_v16  ;;  %v4873_v33 = vld [vmem:[#allocation3 + $0x108] sm:$0xff] (!%p11190_p13) }
 0x474   : > { %v4818_v2 = vrot.slane (!%p11190_p13), %v13882_v47, %v13887_v41  ;;  %v4822_v3 = vrot.slane (!%p11190_p13), %v13882_v47, %v13890_v50  ;;  %v4885_v6 = vrot.slane (!%p11190_p13), %v13884_v48, %v13887_v41  ;;  %v4889_v51 = vrot.slane (!%p11190_p13), %v13884_v48, %v13890_v50 }
 0x475   : > { %v4857_v5 = vadd.f32 %v4826_v36, %v4807_v53  ;;  %v4858_v42 = vadd.f32 %v4830_v49, %v4808_v54  ;;  %v4924_v18 = vadd.f32 %v4893_v61, %v4866_v57  ;;  %v4925_v26 = vadd.f32 %v4897_v1, %v4867_v43 }
 0x476   : > { %v4855_v9 = vadd.f32 %v4818_v2, %v4805_v62  ;;  %v4856_v55 = vadd.f32 %v4822_v3, %v4806_v63  ;;  %v4834_v56 = vrot.slane %v13882_v47, %v13914_v11  ;;  %v4922_v14 = vadd.f32 %v4885_v6, %v4864_v15 }
 0x477   : > { %v5180_v21 = vmul.f32 0.0625, %v4857_v5  ;;  %v5181_v23 = vmul.f32 0.0625, %v4858_v42  ;;  %v4932_v31 = vadd.f32 %v4893_v61, %v4874_v17  ;;  %v4838_v32 = vrot.slane %v13882_v47, %v13919_v7 }
 0x478   : > { %v5013_v27 = vmul.f32 0.0625, %v4855_v9  ;;  %v5014_v28 = vmul.f32 0.0625, %v4856_v55  ;;  %v4933_v20 = vadd.f32 %v4897_v1, %v4875_v24  ;;  %v4859_v19 = vadd.f32 %v4834_v56, %v4809_v25  ;;  %v4869_v55 = vld [vmem:[#allocation3 + $0xe8] sm:$0xff]  ;;  %v4811_v24 = vld [vmem:[#allocation3 + $0xb0] sm:$0x3] }
 0x479   : > { %v5184_v30 = vcombine.low %v5180_v21, %v5181_v23  ;;  %v4901_v34 = vrot.slane %v13884_v48, %v13914_v11  ;;  %v4923_v10 = vadd.f32 %v4889_v51, %v4865_v0  ;;  %v4860_v37 = vadd.f32 %v4838_v32, %v4810_v29  ;;  %v4876_v23 = vld [vmem:[#allocation3 + $0x120] sm:$0xff]  ;;  %v4812_v32 = vld [vmem:[#allocation3 + $0xb8] sm:$0x3] }
 0x47a   : > { %v5017_v4 = vcombine.low %v5013_v27, %v5014_v28  ;;  %v4905_v39 = vrot.slane %v13884_v48, %v13919_v7  ;;  %v5343_v13 = vmul.f32 0.0625, %v4859_v19  ;;  %v4930_v44 = vadd.f32 %v4885_v6, %v4872_v60  ;;  %v4877_v28 = vld [vmem:[#allocation3 + $0x128] sm:$0xff] }
 0x47b   : > { %v5191_v35 = vrot.slane %v5184_v30, %v13922_v8  ;;  %v4931_v12 = vadd.f32 %v4889_v51, %v4873_v33  ;;  %v5344_v53 = vmul.f32 0.0625, %v4860_v37  ;;  %v13938_v54 = vsub.s32 6, %v13880_v45 }
 0x47c   : > { %v5024_v40 = vrot.slane %v5017_v4, %v13922_v8  ;;  %v4926_v36 = vadd.f32 %v4901_v34, %v4868_v38  ;;  %v13942_v61 = vsub.s32 7, %v13880_v45  ;;  %v4927_v29 = vadd.f32 %v4905_v39, %v4869_v55 }
 0x47d   : > { %v5199_v46 = vrot.slane %v5191_v35, %v13922_v8  ;;  %v5192_v22 = vcombine.high %v5191_v35, %v5191_v35  ;;  %v5347_v1 = vcombine.low %v5343_v13, %v5344_v53  ;;  %v4842_v42 = vrot.slane %v13882_v47, %v13938_v54 }
 0x47e   : > { %v5032_v58 = vrot.slane %v5024_v40, %v13922_v8  ;;  %v5025_v49 = vcombine.high %v5024_v40, %v5024_v40  ;;  %v4934_v60 = vadd.f32 %v4901_v34, %v4876_v23  ;;  %v4846_v33 = vrot.slane %v13882_v47, %v13942_v61 }
 0x47f   : > { %v5210_v62 = vrot.slane %v5199_v46, %v13887_v41  ;;  %v5214_v63 = vrot.slane %v5199_v46, %v13890_v50  ;;  %v5206_v57 = vrot.slane %v5192_v22, %v13922_v8  ;;  %v5354_v21 = vrot.slane %v5347_v1, %v13922_v8  ;;  %v4878_v1 = vld [vmem:[#allocation3 + $0x130] sm:$0xff] }
 0x480   : > { %v5043_v2 = vrot.slane %v5032_v58, %v13887_v41  ;;  %v5047_v3 = vrot.slane %v5032_v58, %v13890_v50  ;;  %v5039_v5 = vrot.slane %v5025_v49, %v13922_v8  ;;  %v4861_v4 = vadd.f32 %v4842_v42, %v4811_v24 }
 0x481   : > { %v5227_v43 = vmul.f32 %v5210_v62, %v4924_v18  ;;  %v5228_v6 = vmul.f32 %v5214_v63, %v4925_v26  ;;  %v5218_v45 = vrot.slane %v5206_v57, %v13887_v41  ;;  %v5222_v9 = vrot.slane %v5206_v57, %v13890_v50  ;;  %v4870_v63 = vld [vmem:[#allocation3 + $0xf0] sm:$0xff]  ;;  %v4871_v57 = vld [vmem:[#allocation3 + $0xf8] sm:$0xff] }
 0x482   : > { %v5060_v15 = vmul.f32 %v5043_v2, %v4922_v14  ;;  %v5061_v17 = vmul.f32 %v5047_v3, %v4923_v10  ;;  %v5051_v51 = vrot.slane %v5039_v5, %v13887_v41  ;;  %v5055_v18 = vrot.slane %v5039_v5, %v13890_v50  ;;  %v4879_v3 = vld [vmem:[#allocation3 + $0x138] sm:$0xff] }
 0x483   : > { %v5231_v25 = vadd.f32 %v5228_v6, %v5227_v43  ;;  %v5229_v0 = vmul.f32 %v5218_v45, %v4932_v31  ;;  %v5230_v27 = vmul.f32 %v5222_v9, %v4933_v20  ;;  %v5362_v56 = vrot.slane %v5354_v21, %v13922_v8 }
 0x484   : > { %v5064_v26 = vadd.f32 %v5061_v17, %v5060_v15  ;;  %v5355_v30 = vcombine.high %v5354_v21, %v5354_v21  ;;  %v4935_v19 = vadd.f32 %v4905_v39, %v4877_v28  ;;  %v5062_v10 = vmul.f32 %v5051_v51, %v4930_v44 }
 0x485   : > { %5232 = vadd.xlane.f32.xlu1 %v5231_v25  ;;  %v5234_v14 = vadd.f32 %v5230_v27, %v5229_v0  ;;  %v5373_v31 = vrot.slane %v5362_v56, %v13887_v41  ;;  %v5377_v20 = vrot.slane %v5362_v56, %v13890_v50  ;;  %v5063_v37 = vmul.f32 %v5055_v18, %v4931_v12 }
 0x486   : > { %5065 = vadd.xlane.f32.xlu0 %v5064_v26  ;;  %v5369_v35 = vrot.slane %v5355_v30, %v13922_v8  ;;  %v4862_v38 = vadd.f32 %v4846_v33, %v4812_v32  ;;  %v5506_v40 = vmul.f32 0.0625, %v4861_v4  ;;  %v4909_v39 = vrot.slane %v13884_v48, %v13938_v54 }
 0x487   : > { %v5390_v13 = vmul.f32 %v5373_v31, %v4926_v36  ;;  %v5391_v46 = vmul.f32 %v5377_v20, %v4927_v29  ;;  %v4913_v44 = vrot.slane %v13884_v48, %v13942_v61  ;;  %v5067_v36 = vadd.f32 %v5063_v37, %v5062_v10 }
 0x488   : > { %v5381_v34 = vrot.slane %v5369_v35, %v13887_v41  ;;  %v5385_v22 = vrot.slane %v5369_v35, %v13890_v50  ;;  %v5507_v47 = vmul.f32 0.0625, %v4862_v38  ;;  %v4928_v42 = vadd.f32 %v4909_v39, %v4870_v63 }
 0x489   : > { %5235 = vadd.xlane.f32.xlu1 %v5234_v14  ;;  %v5394_v53 = vadd.f32 %v5391_v46, %v5390_v13  ;;  %v4929_v43 = vadd.f32 %v4913_v44, %v4871_v57  ;;  %v4936_v45 = vadd.f32 %v4909_v39, %v4878_v1  ;;  %v4937_v9 = vadd.f32 %v4913_v44, %v4879_v3 }
 0x48a   : > { %v5392_v58 = vmul.f32 %v5381_v34, %v4934_v60  ;;  %v5393_v49 = vmul.f32 %v5385_v22, %v4935_v19  ;;  %v5510_v12 = vcombine.low %v5506_v40, %v5507_v47 }
 0x48b   : > { %5395 = vadd.xlane.f32.xlu0 %v5394_v53  ;;  %v12765_v53 = vmov 0  }
 0x48c   : > { %v5397_v62 = vadd.f32 %v5393_v49, %v5392_v58  ;;  %v5517_v2 = vrot.slane %v5510_v12, %v13922_v8  ;;  %12208 = vset.pattern.permute.xlu1 %v12765_v53  ;;  %12207 = vset.pattern.permute.xlu0 %v12765_v53 }
 0x48e   : > { %5398 = vadd.xlane.f32.xlu1 %v5397_v62  ;;  %v5518_v5 = vcombine.high %v5517_v2, %v5517_v2  ;;  %v5525_v6 = vrot.slane %v5517_v2, %v13922_v8 }
 0x48f   : > { %5068 = vadd.xlane.f32.xlu0 %v5067_v36 }
 0x490   : > { %v5532_v48 = vrot.slane %v5518_v5, %v13922_v8  ;;  %v5536_v55 = vrot.slane %v5525_v6, %v13887_v41  ;;  %v5540_v15 = vrot.slane %v5525_v6, %v13890_v50 }
 0x492   : > { %v5544_v17 = vrot.slane %v5532_v48, %v13887_v41  ;;  %v5548_v21 = vrot.slane %v5532_v48, %v13890_v50  ;;  %v5553_v23 = vmul.f32 %v5536_v55, %v4928_v42  ;;  %v5554_v51 = vmul.f32 %v5540_v15, %v4929_v43 }
 0x494   : > { %v5555_v24 = vmul.f32 %v5544_v17, %v4936_v45  ;;  %v5556_v25 = vmul.f32 %v5548_v21, %v4937_v9  ;;  %v5557_v0 = vadd.f32 %v5554_v51, %v5553_v23 }
 0x496   : > { %v5560_v27 = vadd.f32 %v5556_v25, %v5555_v24  ;;  %5558 = vadd.xlane.f32.xlu0 %v5557_v0 }
 0x498   : > { %5561 = vadd.xlane.f32.xlu1 %v5560_v27 }
 0x512   : > { %v5233_v28 = vpop.xlane.xlu1 %5232 }
 0x513   : > { %v5066_v18 = vpop.xlane.xlu0 %5065  ;;  %v5242_v26 = vrot.slane %v5233_v28, %v13899_v59 }
 0x514   : > { %v5077_v4 = vrot.slane %v5066_v18, %v13899_v59 }
 0x516   : > { %v5236_v29 = vpop.xlane.xlu1 %5235 }
 0x517   : > { %v5246_v56 = vrot.slane %v5236_v29, %v13899_v59 }
 0x518   : > { %v5396_v30 = vpop.xlane.xlu0 %5395 }
 0x519   : > { %v5247_v32 = vsel %vm5082_vm0, %v5246_v56, %v5242_v26  ;;  %v5405_v19 = vrot.slane %v5396_v30, %v13899_v59 }
 0x51a   : > { %v5249_v14 = vsel %vm5085_vm1, %v5247_v32, -inf }
 0x51b   : > { %v5399_v60 = vpop.xlane.xlu1 %5398  ;;  %5250 = vmax.xlane.f32.xlu1 %v5249_v14 }
 0x51c   : > { %v5069_v33 = vpop.xlane.xlu0 %5068  ;;  %v5409_v31 = vrot.slane %v5399_v60, %v13899_v59 }
 0x51d   : > { %v5081_v20 = vrot.slane %v5069_v33, %v13899_v59 }
 0x51e   : > { %v5410_v37 = vsel %vm5082_vm0, %v5409_v31, %v5405_v19 }
 0x51f   : > { %v5083_v35 = vsel %vm5082_vm0, %v5081_v20, %v5077_v4  ;;  %v5412_v13 = vsel %vm5085_vm1, %v5410_v37, -inf }
 0x520   : > { %v5086_v10 = vsel %vm5085_vm1, %v5083_v35, -inf }
 0x521   : > { %5087 = vmax.xlane.f32.xlu0 %v5086_v10 }
 0x523   : > { %v5559_v38 = vpop.xlane.xlu0 %5558 }
 0x524   : > { %v5568_v40 = vrot.slane %v5559_v38, %v13899_v59 }
 0x525   : > { %v5562_v46 = vpop.xlane.xlu1 %5561  ;;  %5413 = vmax.xlane.f32.xlu0 %v5412_v13 }
 0x526   : > { %v5572_v34 = vrot.slane %v5562_v46, %v13899_v59 }
 0x528   : > { %v5573_v22 = vsel %vm5082_vm0, %v5572_v34, %v5568_v40 }
 0x529   : > { %v5575_v47 = vsel %vm5085_vm1, %v5573_v22, -inf }
 0x52a   : > { %5576 = vmax.xlane.f32.xlu1 %v5575_v47 }
 0x5a8   : > { %v5251_v58 = vpop.xlane.xlu1 %5250 }
 0x5a9   : > { %v5256_v49 = vrot.slane %v5251_v58, %v13887_v41  ;;  %v5260_v39 = vrot.slane %v5251_v58, %v13890_v50 }
 0x5ab   : > { %v5263_v36 = vsub.f32 %v5233_v28, %v5256_v49  ;;  %v5264_v1 = vsub.f32 %v5236_v29, %v5260_v39 }
 0x5ad   : > { %v5265_v43 = vmul.f32 1.442695, %v5263_v36  ;;  %v5267_v9 = vmul.f32 1.442695, %v5264_v1 }
 0x5ae   : > { %v5088_v44 = vpop.xlane.xlu0 %5087 }
 0x5af   : > { %v5093_v12 = vrot.slane %v5088_v44, %v13887_v41  ;;  %v5097_v62 = vrot.slane %v5088_v44, %v13890_v50 }
 0x5b1   : > { %v5100_v63 = vsub.f32 %v5066_v18, %v5093_v12  ;;  %v5101_v57 = vsub.f32 %v5069_v33, %v5097_v62 }
 0x5b2   : > { %v5414_v2 = vpop.xlane.xlu0 %5413 }
 0x5b3   : > { %v5102_v3 = vmul.f32 1.442695, %v5100_v63  ;;  %v5104_v5 = vmul.f32 1.442695, %v5101_v57  ;;  %v5419_v42 = vrot.slane %v5414_v2, %v13887_v41  ;;  %v5423_v6 = vrot.slane %v5414_v2, %v13890_v50 }
 0x5b5   : > { %12209 = vpow2.f32 %v5102_v3  ;;  %v5426_v45 = vsub.f32 %v5396_v30, %v5419_v42  ;;  %v5427_v15 = vsub.f32 %v5399_v60, %v5423_v6 }
 0x5b6   : > { %12211 = vpow2.f32 %v5104_v5 }
 0x5b7   : > { %v5577_v48 = vpop.xlane.xlu1 %5576  ;;  %12213 = vpow2.f32 %v5265_v43  ;;  %v5428_v17 = vmul.f32 1.442695, %v5426_v45  ;;  %v5430_v51 = vmul.f32 1.442695, %v5427_v15 }
 0x5b8   : > { %v5582_v55 = vrot.slane %v5577_v48, %v13887_v41  ;;  %12215 = vpow2.f32 %v5267_v9  ;;  %v5586_v21 = vrot.slane %v5577_v48, %v13890_v50 }
 0x5b9   : > { %12217 = vpow2.f32 %v5428_v17 }
 0x5ba   : > { %v5589_v23 = vsub.f32 %v5559_v38, %v5582_v55  ;;  %v5590_v0 = vsub.f32 %v5562_v46, %v5586_v21  ;;  %12219 = vpow2.f32 %v5430_v51 }
 0x5bc   : > { %v5591_v27 = vmul.f32 1.442695, %v5589_v23  ;;  %v5593_v26 = vmul.f32 1.442695, %v5590_v0 }
 0x5be   : > { %12221 = vpow2.f32 %v5591_v27 }
 0x5bf   : > { %v14000_v24 = vpop.eup %12209  ;;  %12223 = vpow2.f32 %v5593_v26 }
 0x5c0   : > { %v14002_v25 = vpop.eup %12211  ;;  %5109 = vperm.xlu0 %12207, %v14000_v24  }
 0x5c1   : > { %5112 = vperm.xlu1 %12208, %v14002_v25   ;;  %v14006_v28 = vpop.eup %12213 }
 0x5c2   : > { %v14008_v18 = vpop.eup %12215 }
 0x5c3   : > { %v14012_v29 = vpop.eup %12217 }
 0x5c4   : > { %5272 = vperm.xlu0 %12207, %v14006_v28   ;;  %v14015_v56 = vpop.eup %12219 }
 0x5c5   : > { %5275 = vperm.xlu1 %12208, %v14008_v18  }
 0x5c8   : > { %5435 = vperm.xlu0 %12207, %v14012_v29   ;;  %v14018_v30 = vpop.eup %12221 }
 0x5c9   : > { %v14021_v32 = vpop.eup %12223 }
 0x5cc   : > { %5438 = vperm.xlu0 %12207, %v14015_v56  }
 0x5d0   : > { %5598 = vperm.xlu0 %12207, %v14018_v30  }
 0x5d4   : > { %5601 = vperm.xlu0 %12207, %v14021_v32  }
 0x63f   : > { %v5110_v14 = vpop.permute.xlu0 %5109 }
 0x640   : > { %v5113_v60 = vpop.permute.xlu1 %5112  ;;  %v5117_v33 = vrot.slane %v5110_v14, %v13899_v59 }
 0x641   : > { %v5121_v4 = vrot.slane %v5113_v60, %v13899_v59 }
 0x643   : > { %v5273_v31 = vpop.permute.xlu0 %5272  ;;  %v5122_v20 = vsel %vm5082_vm0, %v5121_v4, %v5117_v33  ;;  %v4955_v33 = vld [vmem:[#allocation16] sm:$0xff] }
 0x644   : > { %v5276_v19 = vpop.permute.xlu1 %5275  ;;  %v5280_v35 = vrot.slane %v5273_v31, %v13899_v59  ;;  %v5124_v10 = vsel %vm5085_vm1, %v5122_v20, 0.0  ;;  %v4960_v4 = vrot.slane %v4955_v33, %v13887_v41  ;;  %v4940_v31 = vld [vmem:[#allocation3 + $0x188] sm:$0xff] }
 0x645   : > { %v5284_v37 = vrot.slane %v5276_v19, %v13899_v59  ;;  %5125 = vadd.xlane.f32.xlu1 %v5124_v10 }
 0x647   : > { %v5436_v38 = vpop.permute.xlu0 %5435  ;;  %v5285_v40 = vsel %vm5082_vm0, %v5284_v37, %v5280_v35  ;;  %v4947_v35 = vld [vmem:[#allocation3 + $0x1c0] sm:$0xff] }
 0x648   : > { %v5287_v13 = vsel %vm5085_vm1, %v5285_v40, 0.0  ;;  %v5443_v34 = vrot.slane %v5436_v38, %v13899_v59 }
 0x649   : > { %5288 = vadd.xlane.f32.xlu1 %v5287_v13  ;;  %v4968_v13 = vrot.slane %v4955_v33, %v13893_v52  ;;  %v4949_v52 = vld [vmem:[#allocation3 + $0x1d0] sm:$0xff] }
 0x64b   : > { %v5439_v46 = vpop.permute.xlu0 %5438 }
 0x64c   : > { %v5447_v22 = vrot.slane %v5439_v46, %v13899_v59 }
 0x64e   : > { %v5448_v47 = vsel %vm5082_vm0, %v5447_v22, %v5443_v34  ;;  %v4942_v22 = vld [vmem:[#allocation3 + $0x198] sm:$0xff] }
 0x64f   : > { %v5599_v53 = vpop.permute.xlu0 %5598  ;;  %v5450_v58 = vsel %vm5085_vm1, %v5448_v47, 0.0  ;;  %v4976_v47 = vrot.slane %v4955_v33, %v13914_v11 }
 0x650   : > { %5451 = vadd.xlane.f32.xlu0 %v5450_v58  ;;  %v5606_v39 = vrot.slane %v5599_v53, %v13899_v59  ;;  %v4980_v53 = vrot.slane %v4955_v33, %v13919_v7 }
 0x653   : > { %v5602_v49 = vpop.permute.xlu0 %5601 }
 0x654   : > { %v5610_v44 = vrot.slane %v5602_v49, %v13899_v59 }
 0x656   : > { %v5611_v12 = vsel %vm5082_vm0, %v5610_v44, %v5606_v39 }
 0x657   : > { %v5613_v62 = vsel %vm5085_vm1, %v5611_v12, 0.0  ;;  %v4943_v12 = vld [vmem:[#allocation3 + $0x1a0] sm:$0xff] }
 0x658   : > { %5614 = vadd.xlane.f32.xlu1 %v5613_v62  ;;  %v4944_v62 = vld [vmem:[#allocation3 + $0x1a8] sm:$0xff] }
 0x659   : > { %v5002_v11 = vadd.f32 %v4980_v53, %v4944_v62 }
 0x6d2   : > { %v5126_v36 = vpop.xlane.xlu1 %5125 }
 0x6d3   : > { %v5131_v63 = vrot.slane %v5126_v36, %v13887_v41  ;;  %v5135_v57 = vrot.slane %v5126_v36, %v13890_v50 }
 0x6d5   : > { %12225 = vrcp.f32 %v5131_v63 }
 0x6d6   : > { %v5289_v1 = vpop.xlane.xlu1 %5288  ;;  %12227 = vrcp.f32 %v5135_v57 }
 0x6d7   : > { %v5294_v2 = vrot.slane %v5289_v1, %v13887_v41  ;;  %v5298_v3 = vrot.slane %v5289_v1, %v13890_v50 }
 0x6d9   : > { %12229 = vrcp.f32 %v5294_v2 }
 0x6da   : > { %12231 = vrcp.f32 %v5298_v3  ;;  %v4950_v3 = vld [vmem:[#allocation3 + $0x1d8] sm:$0xff] }
 0x6dd   : > { %v5452_v5 = vpop.xlane.xlu0 %5451 }
 0x6de   : > { %v5457_v59 = vrot.slane %v5452_v5, %v13887_v41  ;;  %v5461_v43 = vrot.slane %v5452_v5, %v13890_v50  ;;  %v4951_v5 = vld [vmem:[#allocation3 + $0x1e0] sm:$0xff] }
 0x6df   : > { %v12226_v42 = vpop.eup %12225 }
 0x6e0   : > { %12233 = vrcp.f32 %v5457_v59  ;;  %v5139_v6 = vmul.f32 %v12226_v42, %v14000_v24  ;;  %v12228_v45 = vpop.eup %12227  ;;  %v5001_v42 = vadd.f32 %v4976_v47, %v4943_v12 }
 0x6e1   : > { %12235 = vrcp.f32 %v5461_v43  ;;  %v5141_v9 = vmul.f32 %v12228_v45, %v14002_v25  ;;  %v5007_v45 = vadd.f32 %v4968_v13, %v4949_v52  ;;  %v4954_v52 = vld [vmem:[#allocation3 + $0x1f8] sm:$0xff] }
 0x6e2   : > { %5144 = vperm.xlu0 %12207, %v5139_v6  }
 0x6e3   : > { %v12230_v48 = vpop.eup %12229 }
 0x6e4   : > { %v5302_v21 = vmul.f32 %v12230_v48, %v14006_v28  ;;  %v12232_v23 = vpop.eup %12231 }
 0x6e5   : > { %v5615_v55 = vpop.xlane.xlu1 %5614  ;;  %v5304_v0 = vmul.f32 %v12232_v23, %v14008_v18  ;;  %v4939_v18 = vld [vmem:[#allocation3 + $0x180] sm:$0xff] }
 0x6e6   : > { %5149 = vperm.xlu0 %12207, %v5141_v9   ;;  %v5620_v15 = vrot.slane %v5615_v55, %v13887_v41  ;;  %v5624_v17 = vrot.slane %v5615_v55, %v13890_v50  ;;  %v4997_v20 = vadd.f32 %v4960_v4, %v4939_v18  ;;  %v4941_v41 = vld [vmem:[#allocation3 + $0x190] sm:$0xff] }
 0x6e7   : > { %v4999_v36 = vadd.f32 %v4968_v13, %v4941_v41 }
 0x6e8   : > { %12237 = vrcp.f32 %v5620_v15  ;;  %v5009_v15 = vadd.f32 %v4976_v47, %v4951_v5 }
 0x6e9   : > { %12239 = vrcp.f32 %v5624_v17 }
 0x6ea   : > { %v12234_v51 = vpop.eup %12233  ;;  %5307 = vperm.xlu0 %12207, %v5302_v21  }
 0x6eb   : > { %v5465_v24 = vmul.f32 %v12234_v51, %v14012_v29  ;;  %v12236_v27 = vpop.eup %12235  ;;  %v4964_v29 = vrot.slane %v4955_v33, %v13890_v50 }
 0x6ec   : > { %v5467_v25 = vmul.f32 %v12236_v27, %v14015_v56  ;;  %v4948_v56 = vld [vmem:[#allocation3 + $0x1c8] sm:$0xff] }
 0x6ed   : > { %5470 = vperm.xlu1 %12208, %v5465_v24   ;;  %v4998_v19 = vadd.f32 %v4964_v29, %v4940_v31  ;;  %v5006_v40 = vadd.f32 %v4964_v29, %v4948_v56  ;;  %v4984_v24 = vrot.slane %v4955_v33, %v13938_v54  ;;  %v4988_v29 = vrot.slane %v4955_v33, %v13942_v61  ;;  %v4945_v54 = vld [vmem:[#allocation3 + $0x1b0] sm:$0xff] }
 0x6ee   : > { %5312 = vperm.xlu0 %12207, %v5304_v0   ;;  %v4953_v61 = vld [vmem:[#allocation3 + $0x1f0] sm:$0xff] }
 0x6f2   : > { %v12238_v26 = vpop.eup %12237  ;;  %5475 = vperm.xlu0 %12207, %v5467_v25  }
 0x6f3   : > { %v5628_v14 = vmul.f32 %v12238_v26, %v14018_v30  ;;  %v12240_v60 = vpop.eup %12239  ;;  %v5005_v30 = vadd.f32 %v4960_v4, %v4947_v35  ;;  %v4952_v35 = vld [vmem:[#allocation3 + $0x1e8] sm:$0xff] }
 0x6f4   : > { %v5630_v28 = vmul.f32 %v12240_v60, %v14021_v32  ;;  %v4972_v32 = vrot.slane %v4955_v33, %v13896_v16 }
 0x6f5   : > { %5633 = vperm.xlu1 %12208, %v5628_v14  }
 0x6f6   : > { %v5000_v63 = vadd.f32 %v4972_v32, %v4942_v22  ;;  %v5008_v55 = vadd.f32 %v4972_v32, %v4950_v3 }
 0x6f9   : > { %5638 = vperm.xlu1 %12208, %v5630_v28  }
 0x761   : > { %v5145_v10 = vpop.permute.xlu0 %5144 }
 0x762   : > { %v5152_v37 = vmul.f32 %v5145_v10, %v4997_v20  ;;  %v5153_v38 = vmul.f32 %v5145_v10, %v4998_v19 }
 0x764   : > { %v5156_v46 = vrot.slane %v5152_v37, 4  ;;  %v5162_v34 = vrot.slane %v5153_v38, 4 }
 0x765   : > { %v5150_v50 = vpop.permute.xlu0 %5149 }
 0x766   : > { %v5157_v58 = vadd.f32 %v5156_v46, %v5152_v37  ;;  %v5163_v49 = vadd.f32 %v5162_v34, %v5153_v38  ;;  %v5154_v39 = vmul.f32 %v5150_v50, %v5005_v30  ;;  %v5155_v44 = vmul.f32 %v5150_v50, %v5006_v40  ;;  %v4946_v46 = vld [vmem:[#allocation3 + $0x1b8] sm:$0xff] }
 0x767   : > { %v5010_v50 = vadd.f32 %v4980_v53, %v4952_v35 }
 0x768   : > { %v5158_v57 = vrot.slane %v5157_v58, 2  ;;  %v5164_v16 = vrot.slane %v5163_v49, 2  ;;  %v5168_v1 = vrot.slane %v5154_v39, 4  ;;  %v5174_v2 = vrot.slane %v5155_v44, 4 }
 0x769   : > { %v5308_v59 = vpop.permute.xlu0 %5307 }
 0x76a   : > { %v5159_v43 = vadd.f32 %v5158_v57, %v5157_v58  ;;  %v5169_v7 = vadd.f32 %v5168_v1, %v5154_v39  ;;  %v5175_v6 = vadd.f32 %v5174_v2, %v5155_v44  ;;  %v5315_v9 = vmul.f32 %v5308_v59, %v4999_v36 }
 0x76b   : > { %v5316_v48 = vmul.f32 %v5308_v59, %v5000_v63  ;;  %v5165_v17 = vadd.f32 %v5164_v16, %v5163_v49  ;;  %v5003_v39 = vadd.f32 %v4984_v24, %v4945_v54  ;;  %v5004_v36 = vadd.f32 %v4988_v29, %v4946_v46 }
 0x76c   : > { %v5170_v21 = vrot.slane %v5169_v7, 2  ;;  %v5176_v23 = vrot.slane %v5175_v6, 2  ;;  %v5471_v51 = vpop.permute.xlu1 %5470  ;;  %v5319_v0 = vrot.slane %v5315_v9, 4  ;;  %v5160_v60 = vrot.slane %v5159_v43, 1 }
 0x76d   : > { %v5325_v27 = vrot.slane %v5316_v48, 4  ;;  %v5478_v25 = vmul.f32 %v5471_v51, %v5001_v42  ;;  %v5479_v26 = vmul.f32 %v5471_v51, %v5002_v11  ;;  %v5313_v14 = vpop.permute.xlu0 %5312  ;;  %v5166_v30 = vrot.slane %v5165_v17, 1 }
 0x76e   : > { %v5171_v28 = vadd.f32 %v5170_v21, %v5169_v7  ;;  %v5177_v4 = vadd.f32 %v5176_v23, %v5175_v6  ;;  %v5320_v18 = vadd.f32 %v5319_v0, %v5315_v9  ;;  %v5317_v37 = vmul.f32 %v5313_v14, %v5007_v45 }
 0x76f   : > { %v5326_v31 = vadd.f32 %v5325_v27, %v5316_v48  ;;  %v5482_v20 = vrot.slane %v5478_v25, 4  ;;  %v5488_v19 = vrot.slane %v5479_v26, 4  ;;  %v5318_v38 = vmul.f32 %v5313_v14, %v5008_v55 }
 0x770   : > { %v5172_v56 = vrot.slane %v5171_v28, 1  ;;  %v5178_v10 = vrot.slane %v5177_v4, 1  ;;  %v5321_v40 = vrot.slane %v5320_v18, 2  ;;  %v5331_v41 = vrot.slane %v5317_v37, 4 }
 0x771   : > { %v5327_v13 = vrot.slane %v5326_v31, 2  ;;  %v5483_v32 = vadd.f32 %v5482_v20, %v5478_v25  ;;  %v5489_v34 = vadd.f32 %v5488_v19, %v5479_v26  ;;  %v5337_v22 = vrot.slane %v5318_v38, 4  ;;  %v5476_v49 = vpop.permute.xlu0 %5475 }
 0x772   : > { %v5173_v33 = vadd.f32 %v5172_v56, %v5171_v28  ;;  %v5179_v47 = vadd.f32 %v5178_v10, %v5177_v4  ;;  %v5322_v58 = vadd.f32 %v5321_v40, %v5320_v18  ;;  %v5332_v12 = vadd.f32 %v5331_v41, %v5317_v37 }
 0x773   : > { %v5328_v44 = vadd.f32 %v5327_v13, %v5326_v31  ;;  %v5338_v62 = vadd.f32 %v5337_v22, %v5318_v38  ;;  %v5161_v57 = vadd.f32 %v5160_v60, %v5159_v43  ;;  %v5167_v16 = vadd.f32 %v5166_v30, %v5165_v17 }
 0x774   : > { %v5634_v63 = vpop.permute.xlu1 %5633  ;;  %v5484_v1 = vrot.slane %v5483_v32, 2  ;;  %v5011_v2 = vadd.f32 %v4984_v24, %v4953_v61  ;;  %v5490_v3 = vrot.slane %v5489_v34, 2  ;;  %v5333_v5 = vrot.slane %v5332_v12, 2 }
 0x775   : > { %v5339_v59 = vrot.slane %v5338_v62, 2  ;;  %v5480_v53 = vmul.f32 %v5476_v49, %v5009_v15  ;;  %v14065_v42 = vsel %vm5082_vm0, %v5173_v33, %v5161_v57  ;;  %v14068_v11 = vsel %vm5082_vm0, %v5179_v47, %v5167_v16 }
 0x776   : > { %v5323_v7 = vrot.slane %v5322_v58, 1  ;;  %v5012_v6 = vadd.f32 %v4988_v29, %v4954_v52  ;;  %v5329_v45 = vrot.slane %v5328_v44, 1  ;;  %v5334_v9 = vadd.f32 %v5333_v5, %v5332_v12 }
 0x777   : > { %v5340_v48 = vadd.f32 %v5339_v59, %v5338_v62  ;;  %v5481_v55 = vmul.f32 %v5476_v49, %v5010_v50  ;;  %v5485_v17 = vadd.f32 %v5484_v1, %v5483_v32  ;;  %v5494_v21 = vrot.slane %v5480_v53, 4 }
 0x778   : > { %v5639_v43 = vpop.permute.xlu1 %5638  ;;  %v5641_v23 = vmul.f32 %v5634_v63, %v5003_v39  ;;  %v5642_v51 = vmul.f32 %v5634_v63, %v5004_v36  ;;  %v5491_v24 = vadd.f32 %v5490_v3, %v5489_v34  ;;  %v5335_v0 = vrot.slane %v5334_v9, 1 }
 0x779   : > { %v5341_v15 = vrot.slane %v5340_v48, 1  ;;  %v5500_v27 = vrot.slane %v5481_v55, 4  ;;  %v5495_v25 = vadd.f32 %v5494_v21, %v5480_v53  ;;  %v5643_v60 = vmul.f32 %v5639_v43, %v5011_v2 }
 0x77a   : > { %v5645_v26 = vrot.slane %v5641_v23, 4  ;;  %v5651_v14 = vrot.slane %v5642_v51, 4  ;;  %v5324_v28 = vadd.f32 %v5323_v7, %v5322_v58  ;;  %v5336_v4 = vadd.f32 %v5335_v0, %v5334_v9 }
 0x77b   : > { %v5501_v29 = vadd.f32 %v5500_v27, %v5481_v55  ;;  %v5644_v18 = vmul.f32 %v5639_v43, %v5012_v6  ;;  %v5496_v31 = vrot.slane %v5495_v25, 2  ;;  %v5657_v35 = vrot.slane %v5643_v60, 4 }
 0x77c   : > { %v5646_v20 = vadd.f32 %v5645_v26, %v5641_v23  ;;  %v5652_v19 = vadd.f32 %v5651_v14, %v5642_v51  ;;  %v5486_v56 = vrot.slane %v5485_v17, 1  ;;  %v5342_v10 = vadd.f32 %v5341_v15, %v5340_v48 }
 0x77d   : > { %v5502_v37 = vrot.slane %v5501_v29, 2  ;;  %v5663_v38 = vrot.slane %v5644_v18, 4  ;;  %v5492_v54 = vrot.slane %v5491_v24, 1  ;;  %v5497_v30 = vadd.f32 %v5496_v31, %v5495_v25 }
 0x77e   : > { %v5647_v40 = vrot.slane %v5646_v20, 2  ;;  %v5653_v13 = vrot.slane %v5652_v19, 2  ;;  %v5330_v32 = vadd.f32 %v5329_v45, %v5328_v44  ;;  %v5658_v34 = vadd.f32 %v5657_v35, %v5643_v60 }
 0x77f   : > { %v5503_v46 = vadd.f32 %v5502_v37, %v5501_v29  ;;  %v5664_v41 = vadd.f32 %v5663_v38, %v5644_v18  ;;  %v5681_v22 = vsel %vm5082_vm0, %v5336_v4, %v5324_v28  ;;  %v5498_v50 = vrot.slane %v5497_v30, 1 }
 0x780   : > { %v5648_v61 = vadd.f32 %v5647_v40, %v5646_v20  ;;  %v5654_v33 = vadd.f32 %v5653_v13, %v5652_v19  ;;  %v5682_v47 = vsel %vm5082_vm0, %v5342_v10, %v5330_v32  ;;  %v5659_v49 = vrot.slane %v5658_v34, 2 }
 0x781   : > { %v5504_v58 = vrot.slane %v5503_v46, 1  ;;  %v5665_v39 = vrot.slane %v5664_v41, 2  ;;  %v5487_v12 = vadd.f32 %v5486_v56, %v5485_v17  ;;  %v5493_v62 = vadd.f32 %v5492_v54, %v5491_v24 }
 0x782   : > { %v5499_v36 = vadd.f32 %v5498_v50, %v5497_v30  ;;  %v5649_v63 = vrot.slane %v5648_v61, 1  ;;  %v5655_v57 = vrot.slane %v5654_v33, 1  ;;  %v5660_v44 = vadd.f32 %v5659_v49, %v5658_v34 }
 0x783   : > { %v5505_v52 = vadd.f32 %v5504_v58, %v5503_v46  ;;  %v5666_v16 = vadd.f32 %v5665_v39, %v5664_v41  ;;  %v11192_v1 = vpack.c.bf16 %v5682_v47, %v5681_v22  ;;  %v11191_v53 = vpack.c.bf16 %v14068_v11, %v14065_v42 }
 0x784   : > { %v5689_v2 = vsel %vm5082_vm0, %v5499_v36, %v5487_v12  ;;  %v5661_v5 = vrot.slane %v5660_v44, 1  ;;  %v5650_v7 = vadd.f32 %v5649_v63, %v5648_v61  ;;  %v5656_v6 = vadd.f32 %v5655_v57, %v5654_v33 }
 0x785   : > { %v5690_v3 = vsel %vm5082_vm0, %v5505_v52, %v5493_v62  ;;  %v5667_v59 = vrot.slane %v5666_v16, 1  ;;  %v5734_v48 = vrot.slane %v11192_v1, %v13922_v8  ;;  %v5727_v21 = vrot.slane %v11191_v53, %v13922_v8 }
 0x786   : > { %v5662_v45 = vadd.f32 %v5661_v5, %v5660_v44  ;;  %v11193_v55 = vpack.c.bf16 %v5690_v3, %v5689_v2 }
 0x787   : > { %v5668_v9 = vadd.f32 %v5667_v59, %v5666_v16  ;;  %v5749_v51 = vcombine.low %v5727_v21, %v5734_v48 }
 0x788   : > { %v5697_v43 = vsel %vm5082_vm0, %v5662_v45, %v5650_v7  ;;  %v5741_v24 = vrot.slane %v11193_v55, %v13922_v8 }
 0x789   : > { %v5698_v17 = vsel %vm5082_vm0, %v5668_v9, %v5656_v6  ;;  %v5757_v11 = vrot.slane %v5749_v51, %v13922_v8 }
 0x78a   : > { %v11194_v23 = vpack.c.bf16 %v5698_v17, %v5697_v43 }
 0x78c   : > { %v5748_v0 = vrot.slane %v11194_v23, %v13922_v8 }
 0x78e   : > { %v5750_v42 = vcombine.low %v5741_v24, %v5748_v0 }
 0x790   : > { %v5764_v15 = vrot.slane %v5750_v42, %v13922_v8 }
 0x792   : > { %v5765_v27 = vcombine.low %v5757_v11, %v5764_v15 }
 0x794   : > { %5767 = vst [vmem:[#allocation4] sm:$0xff] %v5765_v27 }
 0x795 PF: > { %s15121_s17 = sld [smem:[#allocation35_spill]] }
 0x79b   : > { %p11195_p6 = scmp.ne.s32.totalorder %s15121_s17, 3 }
 0x79c   : > { %v5773_v25 = vld [vmem:[%s13183_s11] sm:$0xff] (!%p11195_p6)  ;;  %v5774_v8 = vld [vmem:[%s13183_s11 + $0x8] sm:$0xff] (!%p11195_p6)  ;;  %v6287_v39 = vlaneseq (!%p11195_p6)  ;;  %v12766_v12 = vmov (!%p11195_p6), 1966171168   ;;  %v14118_v0 = vld [vmem:[#allocation4] sm:$0xff] (!%p11195_p6)  ;;  %vm9601_vm2 = vcmask (!%p11195_p6), 1041408  }
 0x79d   : > { %5771 = sbr.rel (%p11195_p6) target bundleno = 3268 (0xcc4), region = 136  ;;  %v5777_v26 = vld [vmem:[%s13183_s11 + $0x20] sm:$0xff] (!%p11195_p6)  ;;  %v5778_v60 = vld [vmem:[%s13183_s11 + $0x28] sm:$0xff] (!%p11195_p6)  ;;  %v6330_v62 = vunpack.c.l.s4 (!%p11195_p6), %v12766_v12  ;;  %s15122_s16 = sld [smem:[#allocation39_spill]] (!%p11195_p6)  ;;  %vm10452_vm3 = vcmask (!%p11195_p6), 254976  }
 0x79e   : > { %v11197_v14 = vcombine.high (!%p11195_p6), %v5773_v25, %v5777_v26  ;;  %v11196_v28 = vcombine.low (!%p11195_p6), %v5773_v25, %v5777_v26  ;;  %v5781_v4 = vld [vmem:[%s13183_s11 + $0x40] sm:$0xff] (!%p11195_p6)  ;;  %v11199_v18 = vcombine.high (!%p11195_p6), %v5774_v8, %v5778_v60  ;;  %v11198_v31 = vcombine.low (!%p11195_p6), %v5774_v8, %v5778_v60  ;;  %v5782_v19 = vld [vmem:[%s13183_s11 + $0x48] sm:$0xff] (!%p11195_p6) }
 0x79f   : > { %v5785_v29 = vld [vmem:[%s13183_s11 + $0x60] sm:$0xff] (!%p11195_p6)  ;;  %v5786_v35 = vld [vmem:[%s13183_s11 + $0x68] sm:$0xff] (!%p11195_p6)  ;;  %v14107_v3 = vshrl.u32 (!%p11195_p6), %v6287_v39, 7  ;;  %v6331_v5 = vunpack.c.0.s8 (!%p11195_p6), %v6330_v62 }
 0x7a0   : > { %v11205_v20 = vcombine.high (!%p11195_p6), %v5781_v4, %v5785_v29  ;;  %v5789_v56 = vld [vmem:[%s13183_s11 + $0x80] sm:$0xff] (!%p11195_p6)  ;;  %8945 = vmatprep.subr.bf16.mxu0 (!%p11195_p6), %v11197_v14  ;;  %v11207_v10 = vcombine.high (!%p11195_p6), %v5782_v19, %v5786_v35  ;;  %v5790_v38 = vld [vmem:[%s13183_s11 + $0x88] sm:$0xff] (!%p11195_p6)  ;;  %9109 = vmatprep.subr.bf16.mxu1 (!%p11195_p6), %v11199_v18  ;;  %v11204_v30 = vcombine.low (!%p11195_p6), %v5781_v4, %v5785_v29 }
 0x7a1   : > { %v5793_v37 = vld [vmem:[%s13183_s11 + $0xa0] sm:$0xff] (!%p11195_p6)  ;;  %v5794_v54 = vld [vmem:[%s13183_s11 + $0xa8] sm:$0xff] (!%p11195_p6)  ;;  %8946 = vmatpush1.bf16.msra.mxu0 (!%p11195_p6), %v11196_v28  ;;  %9110 = vmatpush1.bf16.msra.mxu1 (!%p11195_p6), %v11198_v31  ;;  %v11206_v40 = vcombine.low (!%p11195_p6), %v5782_v19, %v5786_v35  ;;  %v14114_v43 = vsub.s32 (!%p11195_p6), %v6331_v5, %v14107_v3 }
 0x7a2   : > { %8947 = vmatprep.subr.bf16.mxu0 (!%p11195_p6), %v11205_v20  ;;  %v11213_v13 = vcombine.high (!%p11195_p6), %v5789_v56, %v5793_v37  ;;  %9111 = vmatprep.subr.bf16.mxu1 (!%p11195_p6), %v11207_v10  ;;  %v11215_v32 = vcombine.high (!%p11195_p6), %v5790_v38, %v5794_v54  ;;  %v5797_v46 = vld [vmem:[%s13183_s11 + $0xc0] sm:$0xff] (!%p11195_p6)  ;;  %v5798_v41 = vld [vmem:[%s13183_s11 + $0xc8] sm:$0xff] (!%p11195_p6)  ;;  %v11212_v50 = vcombine.low (!%p11195_p6), %v5789_v56, %v5793_v37 }
 0x7a3   : > { %v5801_v34 = vld [vmem:[%s13183_s11 + $0xe0] sm:$0xff] (!%p11195_p6)  ;;  %v5802_v22 = vld [vmem:[%s13183_s11 + $0xe8] sm:$0xff] (!%p11195_p6)  ;;  %v11214_v61 = vcombine.low (!%p11195_p6), %v5790_v38, %v5794_v54  ;;  %v14124_v27 = vrot.slane (!%p11195_p6), %v14118_v0, %v14114_v43 }
 0x7a4   : > { %v11221_v33 = vcombine.high %v5797_v46, %v5801_v34  ;;  %v11223_v47 = vcombine.high %v5798_v41, %v5802_v22  ;;  %v5805_v58 = vld [vmem:[%s13183_s11 + $0x100] sm:$0xff]  ;;  %v5806_v36 = vld [vmem:[%s13183_s11 + $0x108] sm:$0xff]  ;;  %v11220_v52 = vcombine.low %v5797_v46, %v5801_v34  ;;  %v11222_v57 = vcombine.low %v5798_v41, %v5802_v22 }
 0x7a5   : > { %8948 = vmatpush1.bf16.msra.mxu0 %v11204_v30  ;;  %9112 = vmatpush1.bf16.msra.mxu1 %v11206_v40  ;;  %v5809_v49 = vld [vmem:[%s13183_s11 + $0x120] sm:$0xff]  ;;  %v5810_v63 = vld [vmem:[%s13183_s11 + $0x128] sm:$0xff]  ;;  %v6343_v14 = vcombine.high %v14124_v27, %v14124_v27 }
 0x7a6   : > { %8949 = vmatprep.subr.bf16.mxu0 %v11213_v13  ;;  %9113 = vmatprep.subr.bf16.mxu1 %v11215_v32  ;;  %v11229_v44 = vcombine.high %v5805_v58, %v5809_v49  ;;  %v11231_v16 = vcombine.high %v5806_v36, %v5810_v63  ;;  %v5813_v1 = vld [vmem:[%s13183_s11 + $0x140] sm:$0xff]  ;;  %v5814_v59 = vld [vmem:[%s13183_s11 + $0x148] sm:$0xff]  ;;  %v11228_v7 = vcombine.low %v5805_v58, %v5809_v49 }
 0x7a7   : > { %v5817_v2 = vld [vmem:[%s13183_s11 + $0x160] sm:$0xff]  ;;  %v5818_v53 = vld [vmem:[%s13183_s11 + $0x168] sm:$0xff]  ;;  %v11230_v6 = vcombine.low %v5806_v36, %v5810_v63  ;;  %v14133_v31 = vrot.slane %v6343_v14, %v14114_v43 }
 0x7a8   : > { %v11237_v45 = vcombine.high %v5813_v1, %v5817_v2  ;;  %v11239_v9 = vcombine.high %v5814_v59, %v5818_v53  ;;  %v5821_v48 = vld [vmem:[%s13183_s11 + $0x180] sm:$0xff]  ;;  %v5822_v17 = vld [vmem:[%s13183_s11 + $0x188] sm:$0xff]  ;;  %v11236_v23 = vcombine.low %v5813_v1, %v5817_v2  ;;  %v11238_v51 = vcombine.low %v5814_v59, %v5818_v53 }
 0x7a9   : > { %8950 = vmatpush1.bf16.msra.mxu0 %v11212_v50  ;;  %9114 = vmatpush1.bf16.msra.mxu1 %v11214_v61  ;;  %v5825_v55 = vld [vmem:[%s13183_s11 + $0x1a0] sm:$0xff]  ;;  %v5826_v21 = vld [vmem:[%s13183_s11 + $0x1a8] sm:$0xff] }
 0x7aa   : > { %8951 = vmatprep.subr.bf16.mxu0 %v11221_v33  ;;  %9115 = vmatprep.subr.bf16.mxu1 %v11223_v47  ;;  %v11245_v24 = vcombine.high %v5821_v48, %v5825_v55  ;;  %v11247_v42 = vcombine.high %v5822_v17, %v5826_v21  ;;  %v5829_v11 = vld [vmem:[%s13183_s11 + $0x1c0] sm:$0xff]  ;;  %v5830_v25 = vld [vmem:[%s13183_s11 + $0x1c8] sm:$0xff]  ;;  %v11244_v8 = vcombine.low %v5821_v48, %v5825_v55 }
 0x7ab   : > { %v5833_v15 = vld [vmem:[%s13183_s11 + $0x1e0] sm:$0xff]  ;;  %v5834_v26 = vld [vmem:[%s13183_s11 + $0x1e8] sm:$0xff]  ;;  %v11246_v60 = vcombine.low %v5822_v17, %v5826_v21  ;;  %8977 = vmatprep.mubr.bf16.mxu0 %v14133_v31  ;;  %9141 = vmatprep.mubr.bf16.mxu1 %v14133_v31 }
 0x7ac   : > { %v11253_v28 = vcombine.high %v5829_v11, %v5833_v15  ;;  %v11255_v4 = vcombine.high %v5830_v25, %v5834_v26  ;;  %v5837_v29 = vld [vmem:[%s13183_s11 + $0x200] sm:$0xff]  ;;  %v5838_v20 = vld [vmem:[%s13183_s11 + $0x208] sm:$0xff]  ;;  %v11252_v35 = vcombine.low %v5829_v11, %v5833_v15  ;;  %v11254_v56 = vcombine.low %v5830_v25, %v5834_v26 }
 0x7ad   : > { %8952 = vmatpush1.bf16.msra.mxu0 %v11220_v52  ;;  %9116 = vmatpush1.bf16.msra.mxu1 %v11222_v57  ;;  %v5841_v18 = vld [vmem:[%s13183_s11 + $0x220] sm:$0xff]  ;;  %v5842_v19 = vld [vmem:[%s13183_s11 + $0x228] sm:$0xff] }
 0x7ae   : > { %8953 = vmatprep.subr.bf16.mxu0 %v11229_v44  ;;  %9117 = vmatprep.subr.bf16.mxu1 %v11231_v16  ;;  %v11261_v10 = vcombine.high %v5837_v29, %v5841_v18  ;;  %v11263_v37 = vcombine.high %v5838_v20, %v5842_v19  ;;  %v5845_v38 = vld [vmem:[%s13183_s11 + $0x240] sm:$0xff]  ;;  %v5846_v30 = vld [vmem:[%s13183_s11 + $0x248] sm:$0xff]  ;;  %v11260_v13 = vcombine.low %v5837_v29, %v5841_v18 }
 0x7af   : > { %v5849_v54 = vld [vmem:[%s13183_s11 + $0x260] sm:$0xff]  ;;  %v5850_v40 = vld [vmem:[%s13183_s11 + $0x268] sm:$0xff]  ;;  %v11262_v32 = vcombine.low %v5838_v20, %v5842_v19 }
 0x7b0   : > { %v11269_v46 = vcombine.high %v5845_v38, %v5849_v54  ;;  %v11271_v34 = vcombine.high %v5846_v30, %v5850_v40  ;;  %v5853_v41 = vld [vmem:[%s13183_s11 + $0x280] sm:$0xff]  ;;  %v5854_v50 = vld [vmem:[%s13183_s11 + $0x288] sm:$0xff]  ;;  %v11268_v33 = vcombine.low %v5845_v38, %v5849_v54  ;;  %v11270_v47 = vcombine.low %v5846_v30, %v5850_v40 }
 0x7b1   : > { %8954 = vmatpush1.bf16.msra.mxu0 %v11228_v7  ;;  %9118 = vmatpush1.bf16.msra.mxu1 %v11230_v6  ;;  %v5857_v22 = vld [vmem:[%s13183_s11 + $0x2a0] sm:$0xff]  ;;  %v5858_v61 = vld [vmem:[%s13183_s11 + $0x2a8] sm:$0xff]  ;;  %v6328_v30 = vcombine.high %v14118_v0, %v14118_v0 }
 0x7b2   : > { %8955 = vmatprep.subr.bf16.mxu0 %v11237_v45  ;;  %9119 = vmatprep.subr.bf16.mxu1 %v11239_v9  ;;  %v11277_v58 = vcombine.high %v5853_v41, %v5857_v22  ;;  %v11279_v49 = vcombine.high %v5854_v50, %v5858_v61  ;;  %v5861_v39 = vld [vmem:[%s13183_s11 + $0x2c0] sm:$0xff]  ;;  %v5862_v62 = vld [vmem:[%s13183_s11 + $0x2c8] sm:$0xff]  ;;  %v11276_v63 = vcombine.low %v5853_v41, %v5857_v22 }
 0x7b3   : > { %v5865_v12 = vld [vmem:[%s13183_s11 + $0x2e0] sm:$0xff]  ;;  %v5866_v36 = vld [vmem:[%s13183_s11 + $0x2e8] sm:$0xff]  ;;  %v11278_v52 = vcombine.low %v5854_v50, %v5858_v61  ;;  %v6342_v41 = vrot.slane %v6328_v30, %v14114_v43  ;;  %v14178_v22 = vrot.slane %v14124_v27, %v14114_v43  ;;  %v14188_v27 = vcombine.high %v14133_v31, %v14133_v31 }
 0x7b4   : > { %v11285_v57 = vcombine.high %v5861_v39, %v5865_v12  ;;  %v11287_v44 = vcombine.high %v5862_v62, %v5866_v36  ;;  %v5869_v16 = vld [vmem:[%s13183_s11 + $0x300] sm:$0xff]  ;;  %v5870_v2 = vld [vmem:[%s13183_s11 + $0x308] sm:$0xff]  ;;  %v11284_v59 = vcombine.low %v5861_v39, %v5865_v12  ;;  %v11286_v53 = vcombine.low %v5862_v62, %v5866_v36 }
 0x7b5   : > { %8956 = vmatpush1.bf16.msra.mxu0 %v11236_v23  ;;  %9120 = vmatpush1.bf16.msra.mxu1 %v11238_v51  ;;  %v5873_v1 = vld [vmem:[%s13183_s11 + $0x320] sm:$0xff]  ;;  %v5874_v5 = vld [vmem:[%s13183_s11 + $0x328] sm:$0xff] }
 0x7b6   : > { %8957 = vmatprep.subr.bf16.mxu0 %v11245_v24  ;;  %9121 = vmatprep.subr.bf16.mxu1 %v11247_v42  ;;  %v11293_v7 = vcombine.high %v5869_v16, %v5873_v1  ;;  %v11295_v6 = vcombine.high %v5870_v2, %v5874_v5  ;;  %v5877_v45 = vld [vmem:[%s13183_s11 + $0x340] sm:$0xff]  ;;  %v5878_v48 = vld [vmem:[%s13183_s11 + $0x348] sm:$0xff]  ;;  %v11292_v17 = vcombine.low %v5869_v16, %v5873_v1 }
 0x7b7   : > { %v5881_v9 = vld [vmem:[%s13183_s11 + $0x360] sm:$0xff]  ;;  %v5882_v55 = vld [vmem:[%s13183_s11 + $0x368] sm:$0xff]  ;;  %v11294_v21 = vcombine.low %v5870_v2, %v5874_v5 }
 0x7b8   : > { %v11301_v23 = vcombine.high %v5877_v45, %v5881_v9  ;;  %v11303_v51 = vcombine.high %v5878_v48, %v5882_v55  ;;  %v5885_v24 = vld [vmem:[%s13183_s11 + $0x380] sm:$0xff]  ;;  %v5886_v11 = vld [vmem:[%s13183_s11 + $0x388] sm:$0xff]  ;;  %v11300_v25 = vcombine.low %v5877_v45, %v5881_v9  ;;  %v11302_v26 = vcombine.low %v5878_v48, %v5882_v55 }
 0x7b9   : > { %8958 = vmatpush1.bf16.msra.mxu0 %v11244_v8  ;;  %9122 = vmatpush1.bf16.msra.mxu1 %v11246_v60  ;;  %v5889_v42 = vld [vmem:[%s13183_s11 + $0x3a0] sm:$0xff]  ;;  %v5890_v15 = vld [vmem:[%s13183_s11 + $0x3a8] sm:$0xff] }
 0x7ba   : > { %8959 = vmatprep.subr.bf16.mxu0 %v11253_v28  ;;  %9123 = vmatprep.subr.bf16.mxu1 %v11255_v4  ;;  %v11309_v8 = vcombine.high %v5885_v24, %v5889_v42  ;;  %v11311_v14 = vcombine.high %v5886_v11, %v5890_v15  ;;  %v5893_v60 = vld [vmem:[%s13183_s11 + $0x3c0] sm:$0xff]  ;;  %v5894_v4 = vld [vmem:[%s13183_s11 + $0x3c8] sm:$0xff]  ;;  %v11308_v18 = vcombine.low %v5885_v24, %v5889_v42 }
 0x7bb   : > { %v5897_v28 = vld [vmem:[%s13183_s11 + $0x3e0] sm:$0xff]  ;;  %v5898_v29 = vld [vmem:[%s13183_s11 + $0x3e8] sm:$0xff]  ;;  %v11310_v20 = vcombine.low %v5886_v11, %v5890_v15 }
 0x7bc   : > { %v11317_v19 = vcombine.high %v5893_v60, %v5897_v28  ;;  %v5906_v38 = vld [vmem:[%s13183_s11 + $0x428] sm:$0xff]  ;;  %v11316_v54 = vcombine.low %v5893_v60, %v5897_v28  ;;  %v11318_v40 = vcombine.low %v5894_v4, %v5898_v29  ;;  %v5921_v39 = vld [vmem:[%s13183_s11 + $0x4a0] sm:$0xff] }
 0x7bd   : > { %8960 = vmatpush1.bf16.msra.mxu0 %v11252_v35  ;;  %9124 = vmatpush1.bf16.msra.mxu1 %v11254_v56  ;;  %v11319_v35 = vcombine.high %v5894_v4, %v5898_v29  ;;  %v5901_v56 = vld [vmem:[%s13183_s11 + $0x400] sm:$0xff]  ;;  %v5910_v50 = vld [vmem:[%s13183_s11 + $0x448] sm:$0xff] }
 0x7be   : > { %8961 = vmatprep.subr.bf16.mxu0 %v11261_v10  ;;  %9125 = vmatprep.subr.bf16.mxu1 %v11263_v37  ;;  %v5905_v10 = vld [vmem:[%s13183_s11 + $0x420] sm:$0xff]  ;;  %v5902_v37 = vld [vmem:[%s13183_s11 + $0x408] sm:$0xff] }
 0x7bf   : > { %v5914_v0 = vld [vmem:[%s13183_s11 + $0x468] sm:$0xff]  ;;  %v11324_v61 = vcombine.low %v5901_v56, %v5905_v10  ;;  %v5925_v1 = vld [vmem:[%s13183_s11 + $0x4c0] sm:$0xff] }
 0x7c0   : > { %v5918_v12 = vld [vmem:[%s13183_s11 + $0x488] sm:$0xff]  ;;  %v11335_v62 = vcombine.high %v5910_v50, %v5914_v0  ;;  %v5929_v2 = vld [vmem:[%s13183_s11 + $0x4e0] sm:$0xff] }
 0x7c1   : > { %8962 = vmatpush1.bf16.msra.mxu0 %v11260_v13  ;;  %9126 = vmatpush1.bf16.msra.mxu1 %v11262_v32  ;;  %v11325_v13 = vcombine.high %v5901_v56, %v5905_v10  ;;  %v11327_v32 = vcombine.high %v5902_v37, %v5906_v38  ;;  %v5922_v36 = vld [vmem:[%s13183_s11 + $0x4a8] sm:$0xff]  ;;  %v5933_v45 = vld [vmem:[%s13183_s11 + $0x500] sm:$0xff] }
 0x7c2   : > { %8963 = vmatprep.subr.bf16.mxu0 %v11269_v46  ;;  %9127 = vmatprep.subr.bf16.mxu1 %v11271_v34  ;;  %v5909_v46 = vld [vmem:[%s13183_s11 + $0x440] sm:$0xff]  ;;  %v5926_v5 = vld [vmem:[%s13183_s11 + $0x4c8] sm:$0xff] }
 0x7c3   : > { %v5913_v34 = vld [vmem:[%s13183_s11 + $0x460] sm:$0xff]  ;;  %v5934_v48 = vld [vmem:[%s13183_s11 + $0x508] sm:$0xff] }
 0x7c4   : > { %v5937_v9 = vld [vmem:[%s13183_s11 + $0x520] sm:$0xff]  ;;  %v5942_v11 = vld [vmem:[%s13183_s11 + $0x548] sm:$0xff] }
 0x7c5   : > { %8964 = vmatpush1.bf16.msra.mxu0 %v11268_v33  ;;  %9128 = vmatpush1.bf16.msra.mxu1 %v11270_v47  ;;  %v6344_v33 = vcombine.high %v6342_v41, %v6342_v41  ;;  %v11326_v47 = vcombine.low %v5902_v37, %v5906_v38  ;;  %v5941_v24 = vld [vmem:[%s13183_s11 + $0x540] sm:$0xff]  ;;  %v5950_v4 = vld [vmem:[%s13183_s11 + $0x588] sm:$0xff] }
 0x7c6   : > { %8965 = vmatprep.subr.bf16.mxu0 %v11277_v58  ;;  %9129 = vmatprep.subr.bf16.mxu1 %v11279_v49  ;;  %v11333_v58 = vcombine.high %v5909_v46, %v5913_v34  ;;  %v5917_v49 = vld [vmem:[%s13183_s11 + $0x480] sm:$0xff]  ;;  %v5958_v37 = vld [vmem:[%s13183_s11 + $0x5c8] sm:$0xff] }
 0x7c7   : > { %v11341_v16 = vcombine.high %v5917_v49, %v5921_v39  ;;  %v5945_v42 = vld [vmem:[%s13183_s11 + $0x560] sm:$0xff] }
 0x7c8   : > { %v5949_v60 = vld [vmem:[%s13183_s11 + $0x580] sm:$0xff] }
 0x7c9   : > { %8966 = vmatpush1.bf16.msra.mxu0 %v11276_v63  ;;  %9130 = vmatpush1.bf16.msra.mxu1 %v11278_v52  ;;  %v14191_v63 = vrot.slane %v6344_v33, %v14114_v43  ;;  %v14194_v52 = vrot.slane %v6342_v41, %v14114_v43  ;;  %v11343_v43 = vcombine.high %v5918_v12, %v5922_v36  ;;  %v5953_v28 = vld [vmem:[%s13183_s11 + $0x5a0] sm:$0xff] }
 0x7ca   : > { %8967 = vmatprep.subr.bf16.mxu0 %v11285_v57  ;;  %9131 = vmatprep.subr.bf16.mxu1 %v11287_v44  ;;  %v11332_v57 = vcombine.low %v5909_v46, %v5913_v34  ;;  %v11334_v44 = vcombine.low %v5910_v50, %v5914_v0  ;;  %v5957_v56 = vld [vmem:[%s13183_s11 + $0x5c0] sm:$0xff]  ;;  %v11372_v30 = vcombine.low %v5949_v60, %v5953_v28  ;;  %v5966_v34 = vld [vmem:[%s13183_s11 + $0x608] sm:$0xff] }
 0x7cb   : > { %v5961_v10 = vld [vmem:[%s13183_s11 + $0x5e0] sm:$0xff]  ;;  %v5970_v50 = vld [vmem:[%s13183_s11 + $0x628] sm:$0xff] }
 0x7cc   : > { %v5969_v46 = vld [vmem:[%s13183_s11 + $0x620] sm:$0xff]  ;;  %v11380_v0 = vcombine.low %v5957_v56, %v5961_v10 }
 0x7cd   : > { %8968 = vmatpush1.bf16.msra.mxu0 %v11284_v59  ;;  %9132 = vmatpush1.bf16.msra.mxu1 %v11286_v53  ;;  %v5930_v59 = vld [vmem:[%s13183_s11 + $0x4e8] sm:$0xff]  ;;  %v11340_v53 = vcombine.low %v5917_v49, %v5921_v39  ;;  %v11391_v39 = vcombine.high %v5966_v34, %v5970_v50 }
 0x7ce   : > { %8969 = vmatprep.subr.bf16.mxu0 %v11293_v7  ;;  %9133 = vmatprep.subr.bf16.mxu1 %v11295_v6  ;;  %v11342_v7 = vcombine.low %v5918_v12, %v5922_v36  ;;  %v11349_v6 = vcombine.high %v5925_v1, %v5929_v2  ;;  %v11351_v55 = vcombine.high %v5926_v5, %v5930_v59  ;;  %v5974_v49 = vld [vmem:[%s13183_s11 + $0x648] sm:$0xff] }
 0x7cf   : > { %v5978_v12 = vld [vmem:[%s13183_s11 + $0x668] sm:$0xff]  ;;  %v11390_v36 = vcombine.low %v5966_v34, %v5970_v50 }
 0x7d0   : > { %v6026_v34 = vld [vmem:[%s13183_s11 + $0x7e8] sm:$0xff] }
 0x7d1   : > { %8970 = vmatpush1.bf16.msra.mxu0 %v11292_v17  ;;  %9134 = vmatpush1.bf16.msra.mxu1 %v11294_v21  ;;  %v5938_v17 = vld [vmem:[%s13183_s11 + $0x528] sm:$0xff]  ;;  %v11348_v21 = vcombine.low %v5925_v1, %v5929_v2  ;;  %v11399_v2 = vcombine.high %v5974_v49, %v5978_v12 }
 0x7d2   : > { %8971 = vmatprep.subr.bf16.mxu0 %v11301_v23  ;;  %9135 = vmatprep.subr.bf16.mxu1 %v11303_v51  ;;  %v11350_v23 = vcombine.low %v5926_v5, %v5930_v59  ;;  %v11357_v51 = vcombine.high %v5933_v45, %v5937_v9  ;;  %v11359_v15 = vcombine.high %v5934_v48, %v5938_v17  ;;  %v5982_v1 = vld [vmem:[%s13183_s11 + $0x688] sm:$0xff] }
 0x7d3   : > { %v5986_v5 = vld [vmem:[%s13183_s11 + $0x6a8] sm:$0xff]  ;;  %v11398_v59 = vcombine.low %v5974_v49, %v5978_v12 }
 0x7d4   : > { %v6034_v49 = vld [vmem:[%s13183_s11 + $0x828] sm:$0xff] }
 0x7d5   : > { %8972 = vmatpush1.bf16.msra.mxu0 %v11300_v25  ;;  %9136 = vmatpush1.bf16.msra.mxu1 %v11302_v26  ;;  %v5946_v25 = vld [vmem:[%s13183_s11 + $0x568] sm:$0xff]  ;;  %v11356_v26 = vcombine.low %v5933_v45, %v5937_v9  ;;  %v11407_v9 = vcombine.high %v5982_v1, %v5986_v5 }
 0x7d6   : > { %8973 = vmatprep.subr.bf16.mxu0 %v11309_v8  ;;  %9137 = vmatprep.subr.bf16.mxu1 %v11311_v14  ;;  %v11358_v8 = vcombine.low %v5934_v48, %v5938_v17  ;;  %v11365_v14 = vcombine.high %v5941_v24, %v5945_v42  ;;  %v11367_v29 = vcombine.high %v5942_v11, %v5946_v25  ;;  %v5990_v45 = vld [vmem:[%s13183_s11 + $0x6c8] sm:$0xff] }
 0x7d7   : > { %v5994_v48 = vld [vmem:[%s13183_s11 + $0x6e8] sm:$0xff]  ;;  %v11406_v17 = vcombine.low %v5982_v1, %v5986_v5 }
 0x7d8   : > { %v6042_v1 = vld [vmem:[%s13183_s11 + $0x868] sm:$0xff] }
 0x7d9   : > { %8974 = vmatpush1.bf16.msra.mxu0 %v11308_v18  ;;  %9138 = vmatpush1.bf16.msra.mxu1 %v11310_v20  ;;  %v5954_v18 = vld [vmem:[%s13183_s11 + $0x5a8] sm:$0xff]  ;;  %v11364_v20 = vcombine.low %v5941_v24, %v5945_v42  ;;  %v11415_v42 = vcombine.high %v5990_v45, %v5994_v48 }
 0x7da   : > { %8975 = vmatprep.subr.bf16.mxu0 %v11317_v19  ;;  %9139 = vmatprep.subr.bf16.mxu1 %v11319_v35  ;;  %v11366_v19 = vcombine.low %v5942_v11, %v5946_v25  ;;  %v11373_v35 = vcombine.high %v5949_v60, %v5953_v28  ;;  %v11375_v38 = vcombine.high %v5950_v4, %v5954_v18  ;;  %v5998_v24 = vld [vmem:[%s13183_s11 + $0x708] sm:$0xff] }
 0x7db   : > { %v6002_v11 = vld [vmem:[%s13183_s11 + $0x728] sm:$0xff]  ;;  %v11414_v25 = vcombine.low %v5990_v45, %v5994_v48 }
 0x7dc   : > { %v6006_v60 = vld [vmem:[%s13183_s11 + $0x748] sm:$0xff]  ;;  %v11423_v28 = vcombine.high %v5998_v24, %v6002_v11 }
 0x7dd   : > { %8976 = vmatpush1.bf16.msra.mxu0 %v11316_v54  ;;  %9140 = vmatpush1.bf16.msra.mxu1 %v11318_v40  ;;  %v5962_v54 = vld [vmem:[%s13183_s11 + $0x5e8] sm:$0xff]  ;;  %v11374_v40 = vcombine.low %v5950_v4, %v5954_v18  ;;  %v11422_v18 = vcombine.low %v5998_v24, %v6002_v11 }
 0x7de   : > { %8986 = vmatprep.subr.bf16.mxu0 %v11325_v13  ;;  %9150 = vmatprep.subr.bf16.mxu1 %v11327_v32  ;;  %v11381_v13 = vcombine.high %v5957_v56, %v5961_v10  ;;  %v5965_v32 = vld [vmem:[%s13183_s11 + $0x600] sm:$0xff]  ;;  %v11383_v41 = vcombine.high %v5958_v37, %v5962_v54  ;;  %v6010_v4 = vld [vmem:[%s13183_s11 + $0x768] sm:$0xff] }
 0x7df   : > { %v11389_v33 = vcombine.high %v5965_v32, %v5969_v46  ;;  %v6014_v56 = vld [vmem:[%s13183_s11 + $0x788] sm:$0xff]  ;;  %v11431_v10 = vcombine.high %v6006_v60, %v6010_v4 }
 0x7e0   : > { %8978 = vmatmul.mubr.bf16.vlgmr.msra.gmra.mrb[0].mxu0 %v14178_v22  ;;  %9142 = vmatmul.mubr.bf16.vlgmr.msra.gmra.mrb[0].mxu1 %v14178_v22  ;;  %v6046_v45 = vld [vmem:[%s13183_s11 + $0x888] sm:$0xff] }
 0x7e1   : > { %8987 = vmatpush1.bf16.msra.mxu0 %v11324_v61  ;;  %9151 = vmatpush1.bf16.msra.mxu1 %v11326_v47  ;;  %v11382_v61 = vcombine.low %v5958_v37, %v5962_v54  ;;  %v5973_v47 = vld [vmem:[%s13183_s11 + $0x640] sm:$0xff]  ;;  %v6018_v37 = vld [vmem:[%s13183_s11 + $0x7a8] sm:$0xff]  ;;  %v11430_v54 = vcombine.low %v6006_v60, %v6010_v4 }
 0x7e2   : > { %8988 = vmatprep.subr.bf16.mxu0 %v11333_v58  ;;  %9152 = vmatprep.subr.bf16.mxu1 %v11335_v62  ;;  %v5977_v58 = vld [vmem:[%s13183_s11 + $0x660] sm:$0xff]  ;;  %v11388_v62 = vcombine.low %v5965_v32, %v5969_v46  ;;  %v6022_v32 = vld [vmem:[%s13183_s11 + $0x7c8] sm:$0xff]  ;;  %v11439_v46 = vcombine.high %v6014_v56, %v6018_v37  ;;  %v11438_v50 = vcombine.low %v6014_v56, %v6018_v37 }
 0x7e3   : > { %9018 = vmatprep.mubr.bf16.mxu0 %v14188_v27  ;;  %9182 = vmatprep.mubr.bf16.mxu1 %v14188_v27  ;;  %v11446_v12 = vcombine.low %v6022_v32, %v6026_v34  ;;  %v6054_v24 = vld [vmem:[%s13183_s11 + $0x8c8] sm:$0xff] }
 0x7e4   : > { %v6062_v60 = vld [vmem:[%s13183_s11 + $0x908] sm:$0xff] }
 0x7e5   : > { %8989 = vmatpush1.bf16.msra.mxu0 %v11332_v57  ;;  %9153 = vmatpush1.bf16.msra.mxu1 %v11334_v44  ;;  %v11397_v57 = vcombine.high %v5973_v47, %v5977_v58  ;;  %v5981_v44 = vld [vmem:[%s13183_s11 + $0x680] sm:$0xff]  ;;  %v6070_v56 = vld [vmem:[%s13183_s11 + $0x948] sm:$0xff] }
 0x7e6   : > { %8990 = vmatprep.subr.bf16.mxu0 %v11341_v16  ;;  %9154 = vmatprep.subr.bf16.mxu1 %v11343_v43  ;;  %v5985_v16 = vld [vmem:[%s13183_s11 + $0x6a0] sm:$0xff]  ;;  %v11396_v43 = vcombine.low %v5973_v47, %v5977_v58  ;;  %v6030_v47 = vld [vmem:[%s13183_s11 + $0x808] sm:$0xff]  ;;  %v11447_v58 = vcombine.high %v6022_v32, %v6026_v34 }
 0x7e7   : > { %v6078_v32 = vld [vmem:[%s13183_s11 + $0x988] sm:$0xff] }
 0x7e9   : > { %8991 = vmatpush1.bf16.msra.mxu0 %v11340_v53  ;;  %9155 = vmatpush1.bf16.msra.mxu1 %v11342_v7  ;;  %v11405_v53 = vcombine.high %v5981_v44, %v5985_v16  ;;  %v5989_v7 = vld [vmem:[%s13183_s11 + $0x6c0] sm:$0xff] }
 0x7ea   : > { %8992 = vmatprep.subr.bf16.mxu0 %v11349_v6  ;;  %9156 = vmatprep.subr.bf16.mxu1 %v11351_v55  ;;  %v5993_v6 = vld [vmem:[%s13183_s11 + $0x6e0] sm:$0xff]  ;;  %v11404_v55 = vcombine.low %v5981_v44, %v5985_v16  ;;  %v6038_v44 = vld [vmem:[%s13183_s11 + $0x848] sm:$0xff]  ;;  %v11455_v16 = vcombine.high %v6030_v47, %v6034_v49 }
 0x7ed   : > { %8993 = vmatpush1.bf16.msra.mxu0 %v11348_v21  ;;  %9157 = vmatpush1.bf16.msra.mxu1 %v11350_v23  ;;  %v11413_v21 = vcombine.high %v5989_v7, %v5993_v6  ;;  %v5997_v23 = vld [vmem:[%s13183_s11 + $0x700] sm:$0xff] }
 0x7ee   : > { %8994 = vmatprep.subr.bf16.mxu0 %v11357_v51  ;;  %9158 = vmatprep.subr.bf16.mxu1 %v11359_v15  ;;  %v6001_v51 = vld [vmem:[%s13183_s11 + $0x720] sm:$0xff]  ;;  %v11412_v15 = vcombine.low %v5989_v7, %v5993_v6 }
 0x7ef   : > { %v6045_v7 = vld [vmem:[%s13183_s11 + $0x880] sm:$0xff] }
 0x7f0   : > { %v6049_v6 = vld [vmem:[%s13183_s11 + $0x8a0] sm:$0xff] }
 0x7f1   : > { %8995 = vmatpush1.bf16.msra.mxu0 %v11356_v26  ;;  %9159 = vmatpush1.bf16.msra.mxu1 %v11358_v8  ;;  %v11421_v26 = vcombine.high %v5997_v23, %v6001_v51  ;;  %v6005_v8 = vld [vmem:[%s13183_s11 + $0x740] sm:$0xff]  ;;  %v11468_v11 = vcombine.low %v6045_v7, %v6049_v6 }
 0x7f2   : > { %8996 = vmatprep.subr.bf16.mxu0 %v11365_v14  ;;  %9160 = vmatprep.subr.bf16.mxu1 %v11367_v29  ;;  %v6009_v14 = vld [vmem:[%s13183_s11 + $0x760] sm:$0xff]  ;;  %v11420_v29 = vcombine.low %v5997_v23, %v6001_v51 }
 0x7f3   : > { %v6053_v23 = vld [vmem:[%s13183_s11 + $0x8c0] sm:$0xff] }
 0x7f4   : > { %v6057_v51 = vld [vmem:[%s13183_s11 + $0x8e0] sm:$0xff] }
 0x7f5   : > { %8997 = vmatpush1.bf16.msra.mxu0 %v11364_v20  ;;  %9161 = vmatpush1.bf16.msra.mxu1 %v11366_v19  ;;  %v11429_v20 = vcombine.high %v6005_v8, %v6009_v14  ;;  %v6013_v19 = vld [vmem:[%s13183_s11 + $0x780] sm:$0xff]  ;;  %v11476_v4 = vcombine.low %v6053_v23, %v6057_v51 }
 0x7f6   : > { %8998 = vmatprep.subr.bf16.mxu0 %v11373_v35  ;;  %9162 = vmatprep.subr.bf16.mxu1 %v11375_v38  ;;  %v6017_v35 = vld [vmem:[%s13183_s11 + $0x7a0] sm:$0xff]  ;;  %v11428_v38 = vcombine.low %v6005_v8, %v6009_v14 }
 0x7f7   : > { %v6061_v8 = vld [vmem:[%s13183_s11 + $0x900] sm:$0xff] }
 0x7f8   : > { %v6065_v14 = vld [vmem:[%s13183_s11 + $0x920] sm:$0xff] }
 0x7f9   : > { %8999 = vmatpush1.bf16.msra.mxu0 %v11372_v30  ;;  %9163 = vmatpush1.bf16.msra.mxu1 %v11374_v40  ;;  %v11437_v30 = vcombine.high %v6013_v19, %v6017_v35  ;;  %v6021_v40 = vld [vmem:[%s13183_s11 + $0x7c0] sm:$0xff]  ;;  %v11484_v37 = vcombine.low %v6061_v8, %v6065_v14 }
 0x7fa   : > { %9000 = vmatprep.subr.bf16.mxu0 %v11381_v13  ;;  %9164 = vmatprep.subr.bf16.mxu1 %v11383_v41  ;;  %v6025_v13 = vld [vmem:[%s13183_s11 + $0x7e0] sm:$0xff]  ;;  %v11436_v41 = vcombine.low %v6013_v19, %v6017_v35 }
 0x7fb   : > { %v6069_v19 = vld [vmem:[%s13183_s11 + $0x940] sm:$0xff] }
 0x7fc   : > { %v6073_v35 = vld [vmem:[%s13183_s11 + $0x960] sm:$0xff] }
 0x7fd   : > { %9001 = vmatpush1.bf16.msra.mxu0 %v11380_v0  ;;  %9165 = vmatpush1.bf16.msra.mxu1 %v11382_v61  ;;  %v11445_v0 = vcombine.high %v6021_v40, %v6025_v13  ;;  %v6029_v61 = vld [vmem:[%s13183_s11 + $0x800] sm:$0xff]  ;;  %v11492_v34 = vcombine.low %v6069_v19, %v6073_v35 }
 0x7fe   : > { %9002 = vmatprep.subr.bf16.mxu0 %v11389_v33  ;;  %9166 = vmatprep.subr.bf16.mxu1 %v11391_v39  ;;  %v6033_v33 = vld [vmem:[%s13183_s11 + $0x820] sm:$0xff]  ;;  %v11444_v39 = vcombine.low %v6021_v40, %v6025_v13 }
 0x7ff   : > { %v11452_v5 = vcombine.low %v6029_v61, %v6033_v33  ;;  %v6077_v40 = vld [vmem:[%s13183_s11 + $0x980] sm:$0xff] }
 0x800   : > { %v6081_v13 = vld [vmem:[%s13183_s11 + $0x9a0] sm:$0xff] }
 0x801   : > { %9003 = vmatpush1.bf16.msra.mxu0 %v11388_v62  ;;  %9167 = vmatpush1.bf16.msra.mxu1 %v11390_v36  ;;  %v11453_v62 = vcombine.high %v6029_v61, %v6033_v33  ;;  %v6037_v36 = vld [vmem:[%s13183_s11 + $0x840] sm:$0xff] }
 0x802   : > { %9004 = vmatprep.subr.bf16.mxu0 %v11397_v57  ;;  %9168 = vmatprep.subr.bf16.mxu1 %v11399_v2  ;;  %v6041_v57 = vld [vmem:[%s13183_s11 + $0x860] sm:$0xff]  ;;  %v14262_v2 = vcombine.high %v14178_v22, %v14178_v22 }
 0x803   : > { %v11460_v48 = vcombine.low %v6037_v36, %v6041_v57  ;;  %v6085_v61 = vld [vmem:[%s13183_s11 + $0x9c0] sm:$0xff] }
 0x804   : > { %v6089_v33 = vld [vmem:[%s13183_s11 + $0x9e0] sm:$0xff] }
 0x805   : > { %9005 = vmatpush1.bf16.msra.mxu0 %v11396_v43  ;;  %9169 = vmatpush1.bf16.msra.mxu1 %v11398_v59  ;;  %v11454_v43 = vcombine.low %v6030_v47, %v6034_v49  ;;  %v11461_v59 = vcombine.high %v6037_v36, %v6041_v57  ;;  %v6086_v47 = vld [vmem:[%s13183_s11 + $0x9c8] sm:$0xff]  ;;  %v11500_v49 = vcombine.low %v6077_v40, %v6081_v13  ;;  %v6093_v36 = vld [vmem:[%s13183_s11 + $0xa00] sm:$0xff] }
 0x806   : > { %9006 = vmatprep.subr.bf16.mxu0 %v11405_v53  ;;  %9170 = vmatprep.subr.bf16.mxu1 %v11407_v9  ;;  %v11463_v53 = vcombine.high %v6038_v44, %v6042_v1  ;;  %v6050_v9 = vld [vmem:[%s13183_s11 + $0x8a8] sm:$0xff]  ;;  %v6097_v57 = vld [vmem:[%s13183_s11 + $0xa20] sm:$0xff] }
 0x809   : > { %9007 = vmatpush1.bf16.msra.mxu0 %v11404_v55  ;;  %9171 = vmatpush1.bf16.msra.mxu1 %v11406_v17  ;;  %v11462_v55 = vcombine.low %v6038_v44, %v6042_v1  ;;  %v11469_v17 = vcombine.high %v6045_v7, %v6049_v6  ;;  %v6094_v44 = vld [vmem:[%s13183_s11 + $0xa08] sm:$0xff]  ;;  %v11508_v1 = vcombine.low %v6085_v61, %v6089_v33  ;;  %v6105_v7 = vld [vmem:[%s13183_s11 + $0xa60] sm:$0xff] }
 0x80a   : > { %9008 = vmatprep.subr.bf16.mxu0 %v11413_v21  ;;  %9172 = vmatprep.subr.bf16.mxu1 %v11415_v42  ;;  %v11471_v21 = vcombine.high %v6046_v45, %v6050_v9  ;;  %v6058_v42 = vld [vmem:[%s13183_s11 + $0x8e8] sm:$0xff] }
 0x80b   : > { %v6102_v6 = vld [vmem:[%s13183_s11 + $0xa48] sm:$0xff] }
 0x80d   : > { %9009 = vmatpush1.bf16.msra.mxu0 %v11412_v15  ;;  %9173 = vmatpush1.bf16.msra.mxu1 %v11414_v25  ;;  %v11470_v15 = vcombine.low %v6046_v45, %v6050_v9  ;;  %v11477_v25 = vcombine.high %v6053_v23, %v6057_v51  ;;  %v6106_v45 = vld [vmem:[%s13183_s11 + $0xa68] sm:$0xff]  ;;  %v11516_v9 = vcombine.low %v6093_v36, %v6097_v57  ;;  %v6113_v23 = vld [vmem:[%s13183_s11 + $0xaa0] sm:$0xff] }
 0x80e   : > { %9010 = vmatprep.subr.bf16.mxu0 %v11421_v26  ;;  %9174 = vmatprep.subr.bf16.mxu1 %v11423_v28  ;;  %v11479_v26 = vcombine.high %v6054_v24, %v6058_v42  ;;  %v6066_v28 = vld [vmem:[%s13183_s11 + $0x928] sm:$0xff] }
 0x80f   : > { %v6110_v51 = vld [vmem:[%s13183_s11 + $0xa88] sm:$0xff] }
 0x811   : > { %9011 = vmatpush1.bf16.msra.mxu0 %v11420_v29  ;;  %9175 = vmatpush1.bf16.msra.mxu1 %v11422_v18  ;;  %v11478_v29 = vcombine.low %v6054_v24, %v6058_v42  ;;  %v11485_v18 = vcombine.high %v6061_v8, %v6065_v14  ;;  %v6114_v24 = vld [vmem:[%s13183_s11 + $0xaa8] sm:$0xff]  ;;  %v6121_v8 = vld [vmem:[%s13183_s11 + $0xae0] sm:$0xff] }
 0x812   : > { %9012 = vmatprep.subr.bf16.mxu0 %v11429_v20  ;;  %9176 = vmatprep.subr.bf16.mxu1 %v11431_v10  ;;  %v11487_v20 = vcombine.high %v6062_v60, %v6066_v28  ;;  %v6074_v10 = vld [vmem:[%s13183_s11 + $0x968] sm:$0xff] }
 0x813   : > { %v6118_v14 = vld [vmem:[%s13183_s11 + $0xac8] sm:$0xff] }
 0x815   : > { %9013 = vmatpush1.bf16.msra.mxu0 %v11428_v38  ;;  %9177 = vmatpush1.bf16.msra.mxu1 %v11430_v54  ;;  %v11486_v38 = vcombine.low %v6062_v60, %v6066_v28  ;;  %v11493_v54 = vcombine.high %v6069_v19, %v6073_v35  ;;  %v6122_v60 = vld [vmem:[%s13183_s11 + $0xae8] sm:$0xff]  ;;  %v6129_v19 = vld [vmem:[%s13183_s11 + $0xb20] sm:$0xff] }
 0x816   : > { %9014 = vmatprep.subr.bf16.mxu0 %v11437_v30  ;;  %9178 = vmatprep.subr.bf16.mxu1 %v11439_v46  ;;  %v11495_v30 = vcombine.high %v6070_v56, %v6074_v10  ;;  %v6082_v46 = vld [vmem:[%s13183_s11 + $0x9a8] sm:$0xff] }
 0x817   : > { %v6126_v35 = vld [vmem:[%s13183_s11 + $0xb08] sm:$0xff] }
 0x819   : > { %9015 = vmatpush1.bf16.msra.mxu0 %v11436_v41  ;;  %9179 = vmatpush1.bf16.msra.mxu1 %v11438_v50  ;;  %v11494_v41 = vcombine.low %v6070_v56, %v6074_v10  ;;  %v11501_v50 = vcombine.high %v6077_v40, %v6081_v13  ;;  %v6130_v56 = vld [vmem:[%s13183_s11 + $0xb28] sm:$0xff]  ;;  %v6137_v40 = vld [vmem:[%s13183_s11 + $0xb60] sm:$0xff] }
 0x81a   : > { %9016 = vmatprep.subr.bf16.mxu0 %v11445_v0  ;;  %9180 = vmatprep.subr.bf16.mxu1 %v11447_v58  ;;  %v11503_v0 = vcombine.high %v6078_v32, %v6082_v46  ;;  %v6090_v58 = vld [vmem:[%s13183_s11 + $0x9e8] sm:$0xff] }
 0x81b   : > { %v6134_v13 = vld [vmem:[%s13183_s11 + $0xb48] sm:$0xff] }
 0x81d   : > { %9017 = vmatpush1.bf16.msra.mxu0 %v11444_v39  ;;  %9181 = vmatpush1.bf16.msra.mxu1 %v11446_v12  ;;  %v11502_v39 = vcombine.low %v6078_v32, %v6082_v46  ;;  %v11509_v12 = vcombine.high %v6085_v61, %v6089_v33  ;;  %v6138_v32 = vld [vmem:[%s13183_s11 + $0xb68] sm:$0xff]  ;;  %v6145_v61 = vld [vmem:[%s13183_s11 + $0xba0] sm:$0xff] }
 0x81e   : > { %9027 = vmatprep.subr.bf16.mxu0 %v11453_v62  ;;  %9191 = vmatprep.subr.bf16.mxu1 %v11455_v16  ;;  %v11511_v62 = vcombine.high %v6086_v47, %v6090_v58  ;;  %v6098_v16 = vld [vmem:[%s13183_s11 + $0xa28] sm:$0xff] }
 0x81f   : > { %v6142_v33 = vld [vmem:[%s13183_s11 + $0xb88] sm:$0xff] }
 0x820   : > { %9019 = vmatmul.mubr.bf16.vlgmr.msra.gmra.mrb[0].mxu0 %v14262_v2  ;;  %9183 = vmatmul.mubr.bf16.vlgmr.msra.gmra.mrb[0].mxu1 %v14262_v2 }
 0x821   : > { %9028 = vmatpush1.bf16.msra.mxu0 %v11452_v5  ;;  %9192 = vmatpush1.bf16.msra.mxu1 %v11454_v43  ;;  %v11510_v5 = vcombine.low %v6086_v47, %v6090_v58  ;;  %v11517_v43 = vcombine.high %v6093_v36, %v6097_v57  ;;  %v6146_v47 = vld [vmem:[%s13183_s11 + $0xba8] sm:$0xff]  ;;  %v6153_v36 = vld [vmem:[%s13183_s11 + $0xbe0] sm:$0xff] }
 0x822   : > { %9029 = vmatprep.subr.bf16.mxu0 %v11461_v59  ;;  %9193 = vmatprep.subr.bf16.mxu1 %v11463_v53  ;;  %v11519_v59 = vcombine.high %v6094_v44, %v6098_v16  ;;  %v6101_v53 = vld [vmem:[%s13183_s11 + $0xa40] sm:$0xff]  ;;  %v6150_v57 = vld [vmem:[%s13183_s11 + $0xbc8] sm:$0xff] }
 0x823   : > { %9059 = vmatprep.mubr.bf16.mxu0 %v14191_v63  ;;  %9223 = vmatprep.mubr.bf16.mxu1 %v14191_v63  ;;  %v11524_v42 = vcombine.low %v6101_v53, %v6105_v7 }
 0x825   : > { %9030 = vmatpush1.bf16.msra.mxu0 %v11460_v48  ;;  %9194 = vmatpush1.bf16.msra.mxu1 %v11462_v55  ;;  %v11518_v48 = vcombine.low %v6094_v44, %v6098_v16  ;;  %v11525_v55 = vcombine.high %v6101_v53, %v6105_v7  ;;  %v6154_v44 = vld [vmem:[%s13183_s11 + $0xbe8] sm:$0xff]  ;;  %v6161_v53 = vld [vmem:[%s13183_s11 + $0xc20] sm:$0xff] }
 0x826   : > { %9031 = vmatprep.subr.bf16.mxu0 %v11469_v17  ;;  %9195 = vmatprep.subr.bf16.mxu1 %v11471_v21  ;;  %v11527_v17 = vcombine.high %v6102_v6, %v6106_v45  ;;  %v6109_v21 = vld [vmem:[%s13183_s11 + $0xa80] sm:$0xff]  ;;  %v6158_v7 = vld [vmem:[%s13183_s11 + $0xc08] sm:$0xff] }
 0x827   : > { %v11532_v28 = vcombine.low %v6109_v21, %v6113_v23 }
 0x829   : > { %9032 = vmatpush1.bf16.msra.mxu0 %v11468_v11  ;;  %9196 = vmatpush1.bf16.msra.mxu1 %v11470_v15  ;;  %v11526_v11 = vcombine.low %v6102_v6, %v6106_v45  ;;  %v11533_v15 = vcombine.high %v6109_v21, %v6113_v23  ;;  %v6162_v6 = vld [vmem:[%s13183_s11 + $0xc28] sm:$0xff]  ;;  %v6169_v21 = vld [vmem:[%s13183_s11 + $0xc60] sm:$0xff] }
 0x82a   : > { %9033 = vmatprep.subr.bf16.mxu0 %v11477_v25  ;;  %9197 = vmatprep.subr.bf16.mxu1 %v11479_v26  ;;  %v11535_v25 = vcombine.high %v6110_v51, %v6114_v24  ;;  %v6117_v26 = vld [vmem:[%s13183_s11 + $0xac0] sm:$0xff]  ;;  %v6166_v23 = vld [vmem:[%s13183_s11 + $0xc48] sm:$0xff] }
 0x82b   : > { %v11540_v10 = vcombine.low %v6117_v26, %v6121_v8 }
 0x82d   : > { %9034 = vmatpush1.bf16.msra.mxu0 %v11476_v4  ;;  %9198 = vmatpush1.bf16.msra.mxu1 %v11478_v29  ;;  %v11534_v4 = vcombine.low %v6110_v51, %v6114_v24  ;;  %v11541_v29 = vcombine.high %v6117_v26, %v6121_v8  ;;  %v6170_v51 = vld [vmem:[%s13183_s11 + $0xc68] sm:$0xff]  ;;  %v6177_v26 = vld [vmem:[%s13183_s11 + $0xca0] sm:$0xff]  ;;  %v14336_v8 = vcombine.high %v14191_v63, %v14191_v63 }
 0x82e   : > { %9035 = vmatprep.subr.bf16.mxu0 %v11485_v18  ;;  %9199 = vmatprep.subr.bf16.mxu1 %v11487_v20  ;;  %v11543_v18 = vcombine.high %v6118_v14, %v6122_v60  ;;  %v6125_v20 = vld [vmem:[%s13183_s11 + $0xb00] sm:$0xff] }
 0x82f   : > { %v11548_v46 = vcombine.low %v6125_v20, %v6129_v19 }
 0x831   : > { %9036 = vmatpush1.bf16.msra.mxu0 %v11484_v37  ;;  %9200 = vmatpush1.bf16.msra.mxu1 %v11486_v38  ;;  %v11542_v37 = vcombine.low %v6118_v14, %v6122_v60  ;;  %v11549_v38 = vcombine.high %v6125_v20, %v6129_v19  ;;  %v6174_v14 = vld [vmem:[%s13183_s11 + $0xc88] sm:$0xff]  ;;  %v6181_v20 = vld [vmem:[%s13183_s11 + $0xcc0] sm:$0xff] }
 0x832   : > { %9037 = vmatprep.subr.bf16.mxu0 %v11493_v54  ;;  %9201 = vmatprep.subr.bf16.mxu1 %v11495_v30  ;;  %v11551_v54 = vcombine.high %v6126_v35, %v6130_v56  ;;  %v6133_v30 = vld [vmem:[%s13183_s11 + $0xb40] sm:$0xff]  ;;  %v6178_v60 = vld [vmem:[%s13183_s11 + $0xca8] sm:$0xff] }
 0x833   : > { %v11556_v58 = vcombine.low %v6133_v30, %v6137_v40  ;;  %v6185_v19 = vld [vmem:[%s13183_s11 + $0xce0] sm:$0xff] }
 0x835   : > { %9038 = vmatpush1.bf16.msra.mxu0 %v11492_v34  ;;  %9202 = vmatpush1.bf16.msra.mxu1 %v11494_v41  ;;  %v11550_v34 = vcombine.low %v6126_v35, %v6130_v56  ;;  %v11557_v41 = vcombine.high %v6133_v30, %v6137_v40  ;;  %v6182_v35 = vld [vmem:[%s13183_s11 + $0xcc8] sm:$0xff]  ;;  %v6189_v30 = vld [vmem:[%s13183_s11 + $0xd00] sm:$0xff] }
 0x836   : > { %9039 = vmatprep.subr.bf16.mxu0 %v11501_v50  ;;  %9203 = vmatprep.subr.bf16.mxu1 %v11503_v0  ;;  %v11559_v50 = vcombine.high %v6134_v13, %v6138_v32  ;;  %v6141_v0 = vld [vmem:[%s13183_s11 + $0xb80] sm:$0xff]  ;;  %v6186_v56 = vld [vmem:[%s13183_s11 + $0xce8] sm:$0xff] }
 0x837   : > { %v11564_v16 = vcombine.low %v6141_v0, %v6145_v61  ;;  %v6193_v40 = vld [vmem:[%s13183_s11 + $0xd20] sm:$0xff] }
 0x839   : > { %9040 = vmatpush1.bf16.msra.mxu0 %v11500_v49  ;;  %9204 = vmatpush1.bf16.msra.mxu1 %v11502_v39  ;;  %v11558_v49 = vcombine.low %v6134_v13, %v6138_v32  ;;  %v11565_v39 = vcombine.high %v6141_v0, %v6145_v61  ;;  %v6190_v13 = vld [vmem:[%s13183_s11 + $0xd08] sm:$0xff]  ;;  %v6197_v0 = vld [vmem:[%s13183_s11 + $0xd40] sm:$0xff] }
 0x83a   : > { %9041 = vmatprep.subr.bf16.mxu0 %v11509_v12  ;;  %9205 = vmatprep.subr.bf16.mxu1 %v11511_v62  ;;  %v11567_v12 = vcombine.high %v6142_v33, %v6146_v47  ;;  %v6149_v62 = vld [vmem:[%s13183_s11 + $0xbc0] sm:$0xff]  ;;  %v6194_v32 = vld [vmem:[%s13183_s11 + $0xd28] sm:$0xff] }
 0x83b   : > { %v11572_v45 = vcombine.low %v6149_v62, %v6153_v36  ;;  %v6201_v61 = vld [vmem:[%s13183_s11 + $0xd60] sm:$0xff] }
 0x83d   : > { %9042 = vmatpush1.bf16.msra.mxu0 %v11508_v1  ;;  %9206 = vmatpush1.bf16.msra.mxu1 %v11510_v5  ;;  %v11566_v1 = vcombine.low %v6142_v33, %v6146_v47  ;;  %v11573_v5 = vcombine.high %v6149_v62, %v6153_v36  ;;  %v6198_v33 = vld [vmem:[%s13183_s11 + $0xd48] sm:$0xff]  ;;  %v6205_v62 = vld [vmem:[%s13183_s11 + $0xd80] sm:$0xff] }
 0x83e   : > { %9043 = vmatprep.subr.bf16.mxu0 %v11517_v43  ;;  %9207 = vmatprep.subr.bf16.mxu1 %v11519_v59  ;;  %v11575_v43 = vcombine.high %v6150_v57, %v6154_v44  ;;  %v6157_v59 = vld [vmem:[%s13183_s11 + $0xc00] sm:$0xff]  ;;  %v6202_v47 = vld [vmem:[%s13183_s11 + $0xd68] sm:$0xff] }
 0x83f   : > { %v11580_v24 = vcombine.low %v6157_v59, %v6161_v53  ;;  %v6209_v36 = vld [vmem:[%s13183_s11 + $0xda0] sm:$0xff] }
 0x841   : > { %9044 = vmatpush1.bf16.msra.mxu0 %v11516_v9  ;;  %9208 = vmatpush1.bf16.msra.mxu1 %v11518_v48  ;;  %v11574_v9 = vcombine.low %v6150_v57, %v6154_v44  ;;  %v11581_v48 = vcombine.high %v6157_v59, %v6161_v53  ;;  %v6206_v57 = vld [vmem:[%s13183_s11 + $0xd88] sm:$0xff]  ;;  %v6213_v59 = vld [vmem:[%s13183_s11 + $0xdc0] sm:$0xff] }
 0x842   : > { %9045 = vmatprep.subr.bf16.mxu0 %v11525_v55  ;;  %9209 = vmatprep.subr.bf16.mxu1 %v11527_v17  ;;  %v11583_v55 = vcombine.high %v6158_v7, %v6162_v6  ;;  %v6165_v17 = vld [vmem:[%s13183_s11 + $0xc40] sm:$0xff]  ;;  %v6210_v44 = vld [vmem:[%s13183_s11 + $0xda8] sm:$0xff] }
 0x843   : > { %v6217_v53 = vld [vmem:[%s13183_s11 + $0xde0] sm:$0xff] }
 0x845   : > { %9046 = vmatpush1.bf16.msra.mxu0 %v11524_v42  ;;  %9210 = vmatpush1.bf16.msra.mxu1 %v11526_v11  ;;  %v11582_v42 = vcombine.low %v6158_v7, %v6162_v6  ;;  %v11589_v11 = vcombine.high %v6165_v17, %v6169_v21  ;;  %v6214_v7 = vld [vmem:[%s13183_s11 + $0xdc8] sm:$0xff] }
 0x846   : > { %9047 = vmatprep.subr.bf16.mxu0 %v11533_v15  ;;  %9211 = vmatprep.subr.bf16.mxu1 %v11535_v25  ;;  %v11591_v15 = vcombine.high %v6166_v23, %v6170_v51  ;;  %v6173_v25 = vld [vmem:[%s13183_s11 + $0xc80] sm:$0xff]  ;;  %v6218_v6 = vld [vmem:[%s13183_s11 + $0xde8] sm:$0xff] }
 0x849   : > { %9048 = vmatpush1.bf16.msra.mxu0 %v11532_v28  ;;  %9212 = vmatpush1.bf16.msra.mxu1 %v11534_v4  ;;  %v11588_v28 = vcombine.low %v6165_v17, %v6169_v21  ;;  %v11590_v4 = vcombine.low %v6166_v23, %v6170_v51  ;;  %v6221_v17 = vld [vmem:[%s13183_s11 + $0xe00] sm:$0xff]  ;;  %v6222_v23 = vld [vmem:[%s13183_s11 + $0xe08] sm:$0xff] }
 0x84a   : > { %9049 = vmatprep.subr.bf16.mxu0 %v11541_v29  ;;  %9213 = vmatprep.subr.bf16.mxu1 %v11543_v18  ;;  %v11597_v29 = vcombine.high %v6173_v25, %v6177_v26  ;;  %v11599_v18 = vcombine.high %v6174_v14, %v6178_v60  ;;  %v6225_v21 = vld [vmem:[%s13183_s11 + $0xe20] sm:$0xff]  ;;  %v6226_v51 = vld [vmem:[%s13183_s11 + $0xe28] sm:$0xff] }
 0x84d   : > { %9050 = vmatpush1.bf16.msra.mxu0 %v11540_v10  ;;  %9214 = vmatpush1.bf16.msra.mxu1 %v11542_v37  ;;  %v11596_v10 = vcombine.low %v6173_v25, %v6177_v26  ;;  %v11598_v37 = vcombine.low %v6174_v14, %v6178_v60  ;;  %v6229_v25 = vld [vmem:[%s13183_s11 + $0xe40] sm:$0xff]  ;;  %v6230_v14 = vld [vmem:[%s13183_s11 + $0xe48] sm:$0xff] }
 0x84e   : > { %9051 = vmatprep.subr.bf16.mxu0 %v11549_v38  ;;  %9215 = vmatprep.subr.bf16.mxu1 %v11551_v54  ;;  %v11605_v38 = vcombine.high %v6181_v20, %v6185_v19  ;;  %v11607_v54 = vcombine.high %v6182_v35, %v6186_v56  ;;  %v6233_v26 = vld [vmem:[%s13183_s11 + $0xe60] sm:$0xff]  ;;  %v6234_v60 = vld [vmem:[%s13183_s11 + $0xe68] sm:$0xff] }
 0x851   : > { %9052 = vmatpush1.bf16.msra.mxu0 %v11548_v46  ;;  %9216 = vmatpush1.bf16.msra.mxu1 %v11550_v34  ;;  %v11604_v46 = vcombine.low %v6181_v20, %v6185_v19  ;;  %v11606_v34 = vcombine.low %v6182_v35, %v6186_v56  ;;  %v6237_v20 = vld [vmem:[%s13183_s11 + $0xe80] sm:$0xff]  ;;  %v6238_v35 = vld [vmem:[%s13183_s11 + $0xe88] sm:$0xff] }
 0x852   : > { %9053 = vmatprep.subr.bf16.mxu0 %v11557_v41  ;;  %9217 = vmatprep.subr.bf16.mxu1 %v11559_v50  ;;  %v11613_v41 = vcombine.high %v6189_v30, %v6193_v40  ;;  %v11615_v50 = vcombine.high %v6190_v13, %v6194_v32  ;;  %v6241_v19 = vld [vmem:[%s13183_s11 + $0xea0] sm:$0xff]  ;;  %v6242_v56 = vld [vmem:[%s13183_s11 + $0xea8] sm:$0xff] }
 0x855   : > { %9054 = vmatpush1.bf16.msra.mxu0 %v11556_v58  ;;  %9218 = vmatpush1.bf16.msra.mxu1 %v11558_v49  ;;  %v11612_v58 = vcombine.low %v6189_v30, %v6193_v40  ;;  %v11614_v49 = vcombine.low %v6190_v13, %v6194_v32  ;;  %v6245_v30 = vld [vmem:[%s13183_s11 + $0xec0] sm:$0xff]  ;;  %v6246_v13 = vld [vmem:[%s13183_s11 + $0xec8] sm:$0xff] }
 0x856   : > { %9055 = vmatprep.subr.bf16.mxu0 %v11565_v39  ;;  %9219 = vmatprep.subr.bf16.mxu1 %v11567_v12  ;;  %v11621_v39 = vcombine.high %v6197_v0, %v6201_v61  ;;  %v11623_v12 = vcombine.high %v6198_v33, %v6202_v47  ;;  %v6249_v40 = vld [vmem:[%s13183_s11 + $0xee0] sm:$0xff]  ;;  %v6250_v32 = vld [vmem:[%s13183_s11 + $0xee8] sm:$0xff] }
 0x859   : > { %9056 = vmatpush1.bf16.msra.mxu0 %v11564_v16  ;;  %9220 = vmatpush1.bf16.msra.mxu1 %v11566_v1  ;;  %v11620_v16 = vcombine.low %v6197_v0, %v6201_v61  ;;  %v11622_v1 = vcombine.low %v6198_v33, %v6202_v47  ;;  %v6253_v0 = vld [vmem:[%s13183_s11 + $0xf00] sm:$0xff]  ;;  %v6254_v33 = vld [vmem:[%s13183_s11 + $0xf08] sm:$0xff] }
 0x85a   : > { %9057 = vmatprep.subr.bf16.mxu0 %v11573_v5  ;;  %9221 = vmatprep.subr.bf16.mxu1 %v11575_v43  ;;  %v11629_v5 = vcombine.high %v6205_v62, %v6209_v36  ;;  %v11631_v43 = vcombine.high %v6206_v57, %v6210_v44  ;;  %v6257_v61 = vld [vmem:[%s13183_s11 + $0xf20] sm:$0xff]  ;;  %v6258_v47 = vld [vmem:[%s13183_s11 + $0xf28] sm:$0xff] }
 0x85d   : > { %9058 = vmatpush1.bf16.msra.mxu0 %v11572_v45  ;;  %9222 = vmatpush1.bf16.msra.mxu1 %v11574_v9  ;;  %v11628_v45 = vcombine.low %v6205_v62, %v6209_v36  ;;  %v11630_v9 = vcombine.low %v6206_v57, %v6210_v44  ;;  %v6261_v62 = vld [vmem:[%s13183_s11 + $0xf40] sm:$0xff]  ;;  %v6262_v57 = vld [vmem:[%s13183_s11 + $0xf48] sm:$0xff] }
 0x85e   : > { %9068 = vmatprep.subr.bf16.mxu0 %v11581_v48  ;;  %9232 = vmatprep.subr.bf16.mxu1 %v11583_v55  ;;  %v11637_v48 = vcombine.high %v6213_v59, %v6217_v53  ;;  %v11639_v55 = vcombine.high %v6214_v7, %v6218_v6  ;;  %v6265_v36 = vld [vmem:[%s13183_s11 + $0xf60] sm:$0xff]  ;;  %v6266_v44 = vld [vmem:[%s13183_s11 + $0xf68] sm:$0xff] }
 0x860   : > { %9060 = vmatmul.mubr.bf16.vlgmr.msra.gmra.mrb[0].mxu0 %v14194_v52  ;;  %9224 = vmatmul.mubr.bf16.vlgmr.msra.gmra.mrb[0].mxu1 %v14194_v52 }
 0x861   : > { %9069 = vmatpush1.bf16.msra.mxu0 %v11580_v24  ;;  %9233 = vmatpush1.bf16.msra.mxu1 %v11582_v42  ;;  %v11636_v24 = vcombine.low %v6213_v59, %v6217_v53  ;;  %v11638_v42 = vcombine.low %v6214_v7, %v6218_v6  ;;  %v6269_v59 = vld [vmem:[%s13183_s11 + $0xf80] sm:$0xff]  ;;  %v6270_v7 = vld [vmem:[%s13183_s11 + $0xf88] sm:$0xff] }
 0x862   : > { %9070 = vmatprep.subr.bf16.mxu0 %v11589_v11  ;;  %9234 = vmatprep.subr.bf16.mxu1 %v11591_v15  ;;  %v11645_v11 = vcombine.high %v6221_v17, %v6225_v21  ;;  %v11647_v15 = vcombine.high %v6222_v23, %v6226_v51  ;;  %v6273_v53 = vld [vmem:[%s13183_s11 + $0xfa0] sm:$0xff]  ;;  %v6274_v6 = vld [vmem:[%s13183_s11 + $0xfa8] sm:$0xff] }
 0x863   : > { %9100 = vmatprep.mubr.bf16.mxu0 %v14336_v8  ;;  %9264 = vmatprep.mubr.bf16.mxu1 %v14336_v8 }
 0x865   : > { %9071 = vmatpush1.bf16.msra.mxu0 %v11588_v28  ;;  %9235 = vmatpush1.bf16.msra.mxu1 %v11590_v4  ;;  %v11644_v28 = vcombine.low %v6221_v17, %v6225_v21  ;;  %v11646_v4 = vcombine.low %v6222_v23, %v6226_v51  ;;  %v6277_v17 = vld [vmem:[%s13183_s11 + $0xfc0] sm:$0xff]  ;;  %v6278_v23 = vld [vmem:[%s13183_s11 + $0xfc8] sm:$0xff] }
 0x866   : > { %9072 = vmatprep.subr.bf16.mxu0 %v11597_v29  ;;  %9236 = vmatprep.subr.bf16.mxu1 %v11599_v18  ;;  %v11653_v29 = vcombine.high %v6229_v25, %v6233_v26  ;;  %v11655_v18 = vcombine.high %v6230_v14, %v6234_v60  ;;  %v6281_v21 = vld [vmem:[%s13183_s11 + $0xfe0] sm:$0xff]  ;;  %v6282_v51 = vld [vmem:[%s13183_s11 + $0xfe8] sm:$0xff] }
 0x869   : > { %9073 = vmatpush1.bf16.msra.mxu0 %v11596_v10  ;;  %9237 = vmatpush1.bf16.msra.mxu1 %v11598_v37  ;;  %v11652_v10 = vcombine.low %v6229_v25, %v6233_v26  ;;  %v11654_v37 = vcombine.low %v6230_v14, %v6234_v60  ;;  %v5775_v25 = vld [vmem:[%s13183_s11 + $0x10] sm:$0xff]  ;;  %v5776_v14 = vld [vmem:[%s13183_s11 + $0x18] sm:$0xff] }
 0x86a   : > { %9074 = vmatprep.subr.bf16.mxu0 %v11605_v38  ;;  %9238 = vmatprep.subr.bf16.mxu1 %v11607_v54  ;;  %v11661_v38 = vcombine.high %v6237_v20, %v6241_v19  ;;  %v11663_v54 = vcombine.high %v6238_v35, %v6242_v56  ;;  %v5779_v26 = vld [vmem:[%s13183_s11 + $0x30] sm:$0xff]  ;;  %v5780_v60 = vld [vmem:[%s13183_s11 + $0x38] sm:$0xff] }
 0x86d   : > { %9075 = vmatpush1.bf16.msra.mxu0 %v11604_v46  ;;  %9239 = vmatpush1.bf16.msra.mxu1 %v11606_v34  ;;  %v11660_v46 = vcombine.low %v6237_v20, %v6241_v19  ;;  %v11662_v34 = vcombine.low %v6238_v35, %v6242_v56  ;;  %v5783_v20 = vld [vmem:[%s13183_s11 + $0x50] sm:$0xff]  ;;  %v14404_v35 = vcombine.high %v14194_v52, %v14194_v52  ;;  %v5784_v56 = vld [vmem:[%s13183_s11 + $0x58] sm:$0xff] }
 0x86e   : > { %9076 = vmatprep.subr.bf16.mxu0 %v11613_v41  ;;  %9240 = vmatprep.subr.bf16.mxu1 %v11615_v50  ;;  %v11669_v41 = vcombine.high %v6245_v30, %v6249_v40  ;;  %v11671_v50 = vcombine.high %v6246_v13, %v6250_v32  ;;  %v5787_v19 = vld [vmem:[%s13183_s11 + $0x70] sm:$0xff] }
 0x871   : > { %9077 = vmatpush1.bf16.msra.mxu0 %v11612_v58  ;;  %9241 = vmatpush1.bf16.msra.mxu1 %v11614_v49  ;;  %v11668_v58 = vcombine.low %v6245_v30, %v6249_v40  ;;  %v11670_v49 = vcombine.low %v6246_v13, %v6250_v32  ;;  %v5791_v40 = vld [vmem:[%s13183_s11 + $0x90] sm:$0xff]  ;;  %v5792_v32 = vld [vmem:[%s13183_s11 + $0x98] sm:$0xff] }
 0x872   : > { %9078 = vmatprep.subr.bf16.mxu0 %v11621_v39  ;;  %9242 = vmatprep.subr.bf16.mxu1 %v11623_v12  ;;  %v11677_v39 = vcombine.high %v6253_v0, %v6257_v61  ;;  %v11679_v12 = vcombine.high %v6254_v33, %v6258_v47  ;;  %v5795_v13 = vld [vmem:[%s13183_s11 + $0xb0] sm:$0xff] }
 0x875   : > { %9079 = vmatpush1.bf16.msra.mxu0 %v11620_v16  ;;  %9243 = vmatpush1.bf16.msra.mxu1 %v11622_v1  ;;  %v11676_v16 = vcombine.low %v6253_v0, %v6257_v61  ;;  %v11678_v1 = vcombine.low %v6254_v33, %v6258_v47  ;;  %v5799_v61 = vld [vmem:[%s13183_s11 + $0xd0] sm:$0xff]  ;;  %v5800_v47 = vld [vmem:[%s13183_s11 + $0xd8] sm:$0xff] }
 0x876   : > { %9080 = vmatprep.subr.bf16.mxu0 %v11629_v5  ;;  %9244 = vmatprep.subr.bf16.mxu1 %v11631_v43  ;;  %v11685_v5 = vcombine.high %v6261_v62, %v6265_v36  ;;  %v11687_v43 = vcombine.high %v6262_v57, %v6266_v44  ;;  %v5803_v33 = vld [vmem:[%s13183_s11 + $0xf0] sm:$0xff] }
 0x879   : > { %9081 = vmatpush1.bf16.msra.mxu0 %v11628_v45  ;;  %9245 = vmatpush1.bf16.msra.mxu1 %v11630_v9  ;;  %v11684_v45 = vcombine.low %v6261_v62, %v6265_v36  ;;  %v11686_v9 = vcombine.low %v6262_v57, %v6266_v44  ;;  %v5807_v36 = vld [vmem:[%s13183_s11 + $0x110] sm:$0xff]  ;;  %v5808_v44 = vld [vmem:[%s13183_s11 + $0x118] sm:$0xff] }
 0x87a   : > { %9082 = vmatprep.subr.bf16.mxu0 %v11637_v48  ;;  %9246 = vmatprep.subr.bf16.mxu1 %v11639_v55  ;;  %v11693_v48 = vcombine.high %v6269_v59, %v6273_v53  ;;  %v11695_v55 = vcombine.high %v6270_v7, %v6274_v6  ;;  %v5811_v57 = vld [vmem:[%s13183_s11 + $0x130] sm:$0xff] }
 0x87d   : > { %9083 = vmatpush1.bf16.msra.mxu0 %v11636_v24  ;;  %9247 = vmatpush1.bf16.msra.mxu1 %v11638_v42  ;;  %v11692_v24 = vcombine.low %v6269_v59, %v6273_v53  ;;  %v11694_v42 = vcombine.low %v6270_v7, %v6274_v6  ;;  %v5815_v59 = vld [vmem:[%s13183_s11 + $0x150] sm:$0xff]  ;;  %v5816_v7 = vld [vmem:[%s13183_s11 + $0x158] sm:$0xff] }
 0x87e   : > { %9084 = vmatprep.subr.bf16.mxu0 %v11645_v11  ;;  %9248 = vmatprep.subr.bf16.mxu1 %v11647_v15  ;;  %v11701_v11 = vcombine.high %v6277_v17, %v6281_v21  ;;  %v11703_v15 = vcombine.high %v6278_v23, %v6282_v51  ;;  %v5819_v53 = vld [vmem:[%s13183_s11 + $0x170] sm:$0xff]  ;;  %v5820_v6 = vld [vmem:[%s13183_s11 + $0x178] sm:$0xff] }
 0x881   : > { %9085 = vmatpush1.bf16.msra.mxu0 %v11644_v28  ;;  %9249 = vmatpush1.bf16.msra.mxu1 %v11646_v4  ;;  %v11700_v28 = vcombine.low %v6277_v17, %v6281_v21  ;;  %v11702_v4 = vcombine.low %v6278_v23, %v6282_v51  ;;  %v5823_v17 = vld [vmem:[%s13183_s11 + $0x190] sm:$0xff]  ;;  %v5824_v23 = vld [vmem:[%s13183_s11 + $0x198] sm:$0xff] }
 0x882   : > { %9086 = vmatprep.subr.bf16.mxu0 %v11653_v29  ;;  %9250 = vmatprep.subr.bf16.mxu1 %v11655_v18  ;;  %v11201_v29 = vcombine.high %v5775_v25, %v5779_v26  ;;  %v11203_v18 = vcombine.high %v5776_v14, %v5780_v60  ;;  %v5827_v21 = vld [vmem:[%s13183_s11 + $0x1b0] sm:$0xff]  ;;  %v5828_v51 = vld [vmem:[%s13183_s11 + $0x1b8] sm:$0xff] }
 0x885   : > { %9087 = vmatpush1.bf16.msra.mxu0 %v11652_v10  ;;  %9251 = vmatpush1.bf16.msra.mxu1 %v11654_v37  ;;  %v5788_v10 = vld [vmem:[%s13183_s11 + $0x78] sm:$0xff]  ;;  %v11200_v37 = vcombine.low %v5775_v25, %v5779_v26  ;;  %v5831_v25 = vld [vmem:[%s13183_s11 + $0x1d0] sm:$0xff] }
 0x886   : > { %9088 = vmatprep.subr.bf16.mxu0 %v11661_v38  ;;  %9252 = vmatprep.subr.bf16.mxu1 %v11663_v54  ;;  %v11202_v38 = vcombine.low %v5776_v14, %v5780_v60  ;;  %v11209_v54 = vcombine.high %v5783_v20, %v5787_v19  ;;  %v11211_v30 = vcombine.high %v5784_v56, %v5788_v10  ;;  %v5835_v26 = vld [vmem:[%s13183_s11 + $0x1f0] sm:$0xff]  ;;  %v5832_v14 = vld [vmem:[%s13183_s11 + $0x1d8] sm:$0xff] }
 0x887   : > { %v5836_v60 = vld [vmem:[%s13183_s11 + $0x1f8] sm:$0xff] }
 0x889   : > { %9089 = vmatpush1.bf16.msra.mxu0 %v11660_v46  ;;  %9253 = vmatpush1.bf16.msra.mxu1 %v11662_v34  ;;  %v5796_v46 = vld [vmem:[%s13183_s11 + $0xb8] sm:$0xff]  ;;  %v11208_v34 = vcombine.low %v5783_v20, %v5787_v19  ;;  %v5839_v20 = vld [vmem:[%s13183_s11 + $0x210] sm:$0xff] }
 0x88a   : > { %9090 = vmatprep.subr.bf16.mxu0 %v11669_v41  ;;  %9254 = vmatprep.subr.bf16.mxu1 %v11671_v50  ;;  %v11210_v41 = vcombine.low %v5784_v56, %v5788_v10  ;;  %v11217_v50 = vcombine.high %v5791_v40, %v5795_v13  ;;  %v11219_v0 = vcombine.high %v5792_v32, %v5796_v46  ;;  %v5843_v19 = vld [vmem:[%s13183_s11 + $0x230] sm:$0xff]  ;;  %v5840_v56 = vld [vmem:[%s13183_s11 + $0x218] sm:$0xff] }
 0x88b   : > { %v5844_v10 = vld [vmem:[%s13183_s11 + $0x238] sm:$0xff] }
 0x88d   : > { %9091 = vmatpush1.bf16.msra.mxu0 %v11668_v58  ;;  %9255 = vmatpush1.bf16.msra.mxu1 %v11670_v49  ;;  %v5804_v58 = vld [vmem:[%s13183_s11 + $0xf8] sm:$0xff]  ;;  %v11216_v49 = vcombine.low %v5791_v40, %v5795_v13  ;;  %v5847_v40 = vld [vmem:[%s13183_s11 + $0x250] sm:$0xff] }
 0x88e   : > { %9092 = vmatprep.subr.bf16.mxu0 %v11677_v39  ;;  %9256 = vmatprep.subr.bf16.mxu1 %v11679_v12  ;;  %v11218_v39 = vcombine.low %v5792_v32, %v5796_v46  ;;  %v11225_v12 = vcombine.high %v5799_v61, %v5803_v33  ;;  %v11227_v62 = vcombine.high %v5800_v47, %v5804_v58  ;;  %v5851_v13 = vld [vmem:[%s13183_s11 + $0x270] sm:$0xff]  ;;  %v5848_v32 = vld [vmem:[%s13183_s11 + $0x258] sm:$0xff] }
 0x88f   : > { %v5852_v46 = vld [vmem:[%s13183_s11 + $0x278] sm:$0xff] }
 0x891   : > { %9093 = vmatpush1.bf16.msra.mxu0 %v11676_v16  ;;  %9257 = vmatpush1.bf16.msra.mxu1 %v11678_v1  ;;  %v5812_v16 = vld [vmem:[%s13183_s11 + $0x138] sm:$0xff]  ;;  %v11224_v1 = vcombine.low %v5799_v61, %v5803_v33  ;;  %v5855_v61 = vld [vmem:[%s13183_s11 + $0x290] sm:$0xff] }
 0x892   : > { %9094 = vmatprep.subr.bf16.mxu0 %v11685_v5  ;;  %9258 = vmatprep.subr.bf16.mxu1 %v11687_v43  ;;  %v11233_v5 = vcombine.high %v5807_v36, %v5811_v57  ;;  %v11235_v43 = vcombine.high %v5808_v44, %v5812_v16  ;;  %v5859_v33 = vld [vmem:[%s13183_s11 + $0x2b0] sm:$0xff] }
 0x895   : > { %9095 = vmatpush1.bf16.msra.mxu0 %v11684_v45  ;;  %9259 = vmatpush1.bf16.msra.mxu1 %v11686_v9  ;;  %v11232_v45 = vcombine.low %v5807_v36, %v5811_v57  ;;  %v11234_v9 = vcombine.low %v5808_v44, %v5812_v16  ;;  %v5863_v36 = vld [vmem:[%s13183_s11 + $0x2d0] sm:$0xff]  ;;  %v5864_v44 = vld [vmem:[%s13183_s11 + $0x2d8] sm:$0xff] }
 0x896   : > { %9096 = vmatprep.subr.bf16.mxu0 %v11693_v48  ;;  %9260 = vmatprep.subr.bf16.mxu1 %v11695_v55  ;;  %v11241_v48 = vcombine.high %v5815_v59, %v5819_v53  ;;  %v11243_v55 = vcombine.high %v5816_v7, %v5820_v6  ;;  %v5867_v57 = vld [vmem:[%s13183_s11 + $0x2f0] sm:$0xff]  ;;  %v5868_v16 = vld [vmem:[%s13183_s11 + $0x2f8] sm:$0xff] }
 0x899   : > { %9097 = vmatpush1.bf16.msra.mxu0 %v11692_v24  ;;  %9261 = vmatpush1.bf16.msra.mxu1 %v11694_v42  ;;  %v11240_v24 = vcombine.low %v5815_v59, %v5819_v53  ;;  %v11242_v42 = vcombine.low %v5816_v7, %v5820_v6  ;;  %v5871_v59 = vld [vmem:[%s13183_s11 + $0x310] sm:$0xff]  ;;  %v5872_v7 = vld [vmem:[%s13183_s11 + $0x318] sm:$0xff] }
 0x89a   : > { %9098 = vmatprep.subr.bf16.mxu0 %v11701_v11  ;;  %9262 = vmatprep.subr.bf16.mxu1 %v11703_v15  ;;  %v11249_v11 = vcombine.high %v5823_v17, %v5827_v21  ;;  %v11251_v15 = vcombine.high %v5824_v23, %v5828_v51  ;;  %v5875_v53 = vld [vmem:[%s13183_s11 + $0x330] sm:$0xff]  ;;  %v5876_v6 = vld [vmem:[%s13183_s11 + $0x338] sm:$0xff] }
 0x89d   : > { %9099 = vmatpush1.bf16.msra.mxu0 %v11700_v28  ;;  %9263 = vmatpush1.bf16.msra.mxu1 %v11702_v4  ;;  %v11248_v28 = vcombine.low %v5823_v17, %v5827_v21  ;;  %v11250_v4 = vcombine.low %v5824_v23, %v5828_v51  ;;  %v5879_v17 = vld [vmem:[%s13183_s11 + $0x350] sm:$0xff]  ;;  %v5880_v23 = vld [vmem:[%s13183_s11 + $0x358] sm:$0xff] }
 0x89e   : > { %9273 = vmatprep.subr.bf16.mxu0 %v11201_v29  ;;  %9437 = vmatprep.subr.bf16.mxu1 %v11203_v18  ;;  %v11257_v29 = vcombine.high %v5831_v25, %v5835_v26  ;;  %v11259_v18 = vcombine.high %v5832_v14, %v5836_v60  ;;  %v5883_v21 = vld [vmem:[%s13183_s11 + $0x370] sm:$0xff]  ;;  %v5884_v51 = vld [vmem:[%s13183_s11 + $0x378] sm:$0xff] }
 0x8a0   : > { %9101 = vmatmul.mubr.bf16.vlgmr.msra.gmra.mrb[0].mxu0 %v14404_v35  ;;  %9265 = vmatmul.mubr.bf16.vlgmr.msra.gmra.mrb[0].mxu1 %v14404_v35 }
 0x8a1   : > { %9274 = vmatpush1.bf16.msra.mxu0 %v11200_v37  ;;  %9438 = vmatpush1.bf16.msra.mxu1 %v11202_v38  ;;  %v11256_v37 = vcombine.low %v5831_v25, %v5835_v26  ;;  %v11258_v38 = vcombine.low %v5832_v14, %v5836_v60  ;;  %v5887_v25 = vld [vmem:[%s13183_s11 + $0x390] sm:$0xff]  ;;  %v5888_v14 = vld [vmem:[%s13183_s11 + $0x398] sm:$0xff] }
 0x8a2   : > { %9275 = vmatprep.subr.bf16.mxu0 %v11209_v54  ;;  %9439 = vmatprep.subr.bf16.mxu1 %v11211_v30  ;;  %v11265_v54 = vcombine.high %v5839_v20, %v5843_v19  ;;  %v11267_v30 = vcombine.high %v5840_v56, %v5844_v10  ;;  %v5891_v26 = vld [vmem:[%s13183_s11 + $0x3b0] sm:$0xff]  ;;  %v5892_v60 = vld [vmem:[%s13183_s11 + $0x3b8] sm:$0xff] }
 0x8a3   : > { %9305 = vmatprep.mubr.bf16.mxu0 %v14133_v31  ;;  %9469 = vmatprep.mubr.bf16.mxu1 %v14133_v31  ;;  %v11226_v31 = vcombine.low %v5800_v47, %v5804_v58  ;;  %v5856_v47 = vld [vmem:[%s13183_s11 + $0x298] sm:$0xff] }
 0x8a4   : > { %v5860_v58 = vld [vmem:[%s13183_s11 + $0x2b8] sm:$0xff] }
 0x8a5   : > { %9276 = vmatpush1.bf16.msra.mxu0 %v11208_v34  ;;  %9440 = vmatpush1.bf16.msra.mxu1 %v11210_v41  ;;  %v11264_v34 = vcombine.low %v5839_v20, %v5843_v19  ;;  %v11266_v41 = vcombine.low %v5840_v56, %v5844_v10  ;;  %v5895_v20 = vld [vmem:[%s13183_s11 + $0x3d0] sm:$0xff]  ;;  %v5896_v56 = vld [vmem:[%s13183_s11 + $0x3d8] sm:$0xff] }
 0x8a6   : > { %9277 = vmatprep.subr.bf16.mxu0 %v11217_v50  ;;  %9441 = vmatprep.subr.bf16.mxu1 %v11219_v0  ;;  %v11273_v50 = vcombine.high %v5847_v40, %v5851_v13  ;;  %v11275_v0 = vcombine.high %v5848_v32, %v5852_v46  ;;  %v5899_v19 = vld [vmem:[%s13183_s11 + $0x3f0] sm:$0xff]  ;;  %v5900_v10 = vld [vmem:[%s13183_s11 + $0x3f8] sm:$0xff] }
 0x8a9   : > { %9278 = vmatpush1.bf16.msra.mxu0 %v11216_v49  ;;  %9442 = vmatpush1.bf16.msra.mxu1 %v11218_v39  ;;  %v11272_v49 = vcombine.low %v5847_v40, %v5851_v13  ;;  %v11274_v39 = vcombine.low %v5848_v32, %v5852_v46  ;;  %v5903_v40 = vld [vmem:[%s13183_s11 + $0x410] sm:$0xff]  ;;  %v5904_v32 = vld [vmem:[%s13183_s11 + $0x418] sm:$0xff] }
 0x8aa   : > { %9279 = vmatprep.subr.bf16.mxu0 %v11225_v12  ;;  %9443 = vmatprep.subr.bf16.mxu1 %v11227_v62  ;;  %v11281_v12 = vcombine.high %v5855_v61, %v5859_v33  ;;  %v11283_v62 = vcombine.high %v5856_v47, %v5860_v58  ;;  %v5907_v13 = vld [vmem:[%s13183_s11 + $0x430] sm:$0xff]  ;;  %v5908_v46 = vld [vmem:[%s13183_s11 + $0x438] sm:$0xff] }
 0x8ad   : > { %9280 = vmatpush1.bf16.msra.mxu0 %v11224_v1  ;;  %9444 = vmatpush1.bf16.msra.mxu1 %v11226_v31  ;;  %v11280_v1 = vcombine.low %v5855_v61, %v5859_v33  ;;  %v11282_v31 = vcombine.low %v5856_v47, %v5860_v58  ;;  %v5911_v61 = vld [vmem:[%s13183_s11 + $0x450] sm:$0xff]  ;;  %v5912_v47 = vld [vmem:[%s13183_s11 + $0x458] sm:$0xff] }
 0x8ae   : > { %9281 = vmatprep.subr.bf16.mxu0 %v11233_v5  ;;  %9445 = vmatprep.subr.bf16.mxu1 %v11235_v43  ;;  %v11289_v5 = vcombine.high %v5863_v36, %v5867_v57  ;;  %v11291_v43 = vcombine.high %v5864_v44, %v5868_v16  ;;  %v5915_v33 = vld [vmem:[%s13183_s11 + $0x470] sm:$0xff]  ;;  %v5916_v58 = vld [vmem:[%s13183_s11 + $0x478] sm:$0xff] }
 0x8b1   : > { %9282 = vmatpush1.bf16.msra.mxu0 %v11232_v45  ;;  %9446 = vmatpush1.bf16.msra.mxu1 %v11234_v9  ;;  %v11288_v45 = vcombine.low %v5863_v36, %v5867_v57  ;;  %v11290_v9 = vcombine.low %v5864_v44, %v5868_v16  ;;  %v5919_v36 = vld [vmem:[%s13183_s11 + $0x490] sm:$0xff]  ;;  %v5920_v44 = vld [vmem:[%s13183_s11 + $0x498] sm:$0xff] }
 0x8b2   : > { %9283 = vmatprep.subr.bf16.mxu0 %v11241_v48  ;;  %9447 = vmatprep.subr.bf16.mxu1 %v11243_v55  ;;  %v11297_v48 = vcombine.high %v5871_v59, %v5875_v53  ;;  %v11299_v55 = vcombine.high %v5872_v7, %v5876_v6  ;;  %v5923_v57 = vld [vmem:[%s13183_s11 + $0x4b0] sm:$0xff]  ;;  %v5924_v16 = vld [vmem:[%s13183_s11 + $0x4b8] sm:$0xff] }
 0x8b5   : > { %9284 = vmatpush1.bf16.msra.mxu0 %v11240_v24  ;;  %9448 = vmatpush1.bf16.msra.mxu1 %v11242_v42  ;;  %v11296_v24 = vcombine.low %v5871_v59, %v5875_v53  ;;  %v11298_v42 = vcombine.low %v5872_v7, %v5876_v6  ;;  %v5927_v59 = vld [vmem:[%s13183_s11 + $0x4d0] sm:$0xff]  ;;  %v5928_v7 = vld [vmem:[%s13183_s11 + $0x4d8] sm:$0xff] }
 0x8b6   : > { %9285 = vmatprep.subr.bf16.mxu0 %v11249_v11  ;;  %9449 = vmatprep.subr.bf16.mxu1 %v11251_v15  ;;  %v11305_v11 = vcombine.high %v5879_v17, %v5883_v21  ;;  %v11307_v15 = vcombine.high %v5880_v23, %v5884_v51  ;;  %v5931_v53 = vld [vmem:[%s13183_s11 + $0x4f0] sm:$0xff]  ;;  %v5932_v6 = vld [vmem:[%s13183_s11 + $0x4f8] sm:$0xff] }
 0x8b9   : > { %9286 = vmatpush1.bf16.msra.mxu0 %v11248_v28  ;;  %9450 = vmatpush1.bf16.msra.mxu1 %v11250_v4  ;;  %v11304_v28 = vcombine.low %v5879_v17, %v5883_v21  ;;  %v11306_v4 = vcombine.low %v5880_v23, %v5884_v51  ;;  %v5939_v17 = vld [vmem:[%s13183_s11 + $0x530] sm:$0xff]  ;;  %v5936_v21 = vld [vmem:[%s13183_s11 + $0x518] sm:$0xff]  ;;  %v11352_v51 = vcombine.low %v5927_v59, %v5931_v53 }
 0x8ba   : > { %9287 = vmatprep.subr.bf16.mxu0 %v11257_v29  ;;  %9451 = vmatprep.subr.bf16.mxu1 %v11259_v18  ;;  %v11313_v29 = vcombine.high %v5887_v25, %v5891_v26  ;;  %v11315_v18 = vcombine.high %v5888_v14, %v5892_v60  ;;  %v5940_v23 = vld [vmem:[%s13183_s11 + $0x538] sm:$0xff] }
 0x8bd   : > { %9288 = vmatpush1.bf16.msra.mxu0 %v11256_v37  ;;  %9452 = vmatpush1.bf16.msra.mxu1 %v11258_v38  ;;  %v11312_v37 = vcombine.low %v5887_v25, %v5891_v26  ;;  %v11314_v38 = vcombine.low %v5888_v14, %v5892_v60  ;;  %v5944_v25 = vld [vmem:[%s13183_s11 + $0x558] sm:$0xff]  ;;  %v11362_v60 = vcombine.low %v5936_v21, %v5940_v23 }
 0x8be   : > { %9289 = vmatprep.subr.bf16.mxu0 %v11265_v54  ;;  %9453 = vmatprep.subr.bf16.mxu1 %v11267_v30  ;;  %v11321_v54 = vcombine.high %v5895_v20, %v5899_v19  ;;  %v11323_v30 = vcombine.high %v5896_v56, %v5900_v10  ;;  %v5948_v26 = vld [vmem:[%s13183_s11 + $0x578] sm:$0xff] }
 0x8c1   : > { %9290 = vmatpush1.bf16.msra.mxu0 %v11264_v34  ;;  %9454 = vmatpush1.bf16.msra.mxu1 %v11266_v41  ;;  %v11320_v34 = vcombine.low %v5895_v20, %v5899_v19  ;;  %v11322_v41 = vcombine.low %v5896_v56, %v5900_v10  ;;  %v5952_v20 = vld [vmem:[%s13183_s11 + $0x598] sm:$0xff]  ;;  %v11370_v10 = vcombine.low %v5944_v25, %v5948_v26 }
 0x8c2   : > { %9291 = vmatprep.subr.bf16.mxu0 %v11273_v50  ;;  %9455 = vmatprep.subr.bf16.mxu1 %v11275_v0  ;;  %v11329_v50 = vcombine.high %v5903_v40, %v5907_v13  ;;  %v11331_v0 = vcombine.high %v5904_v32, %v5908_v46  ;;  %v5956_v19 = vld [vmem:[%s13183_s11 + $0x5b8] sm:$0xff] }
 0x8c5   : > { %9292 = vmatpush1.bf16.msra.mxu0 %v11272_v49  ;;  %9456 = vmatpush1.bf16.msra.mxu1 %v11274_v39  ;;  %v11328_v49 = vcombine.low %v5903_v40, %v5907_v13  ;;  %v11330_v39 = vcombine.low %v5904_v32, %v5908_v46  ;;  %v5960_v40 = vld [vmem:[%s13183_s11 + $0x5d8] sm:$0xff]  ;;  %v11378_v46 = vcombine.low %v5952_v20, %v5956_v19 }
 0x8c6   : > { %9293 = vmatprep.subr.bf16.mxu0 %v11281_v12  ;;  %9457 = vmatprep.subr.bf16.mxu1 %v11283_v62  ;;  %v11337_v12 = vcombine.high %v5911_v61, %v5915_v33  ;;  %v11339_v62 = vcombine.high %v5912_v47, %v5916_v58  ;;  %v5964_v13 = vld [vmem:[%s13183_s11 + $0x5f8] sm:$0xff] }
 0x8c9   : > { %9294 = vmatpush1.bf16.msra.mxu0 %v11280_v1  ;;  %9458 = vmatpush1.bf16.msra.mxu1 %v11282_v31  ;;  %v11336_v1 = vcombine.low %v5911_v61, %v5915_v33  ;;  %v11338_v31 = vcombine.low %v5912_v47, %v5916_v58  ;;  %v5968_v61 = vld [vmem:[%s13183_s11 + $0x618] sm:$0xff]  ;;  %v11386_v58 = vcombine.low %v5960_v40, %v5964_v13 }
 0x8ca   : > { %9295 = vmatprep.subr.bf16.mxu0 %v11289_v5  ;;  %9459 = vmatprep.subr.bf16.mxu1 %v11291_v43  ;;  %v11345_v5 = vcombine.high %v5919_v36, %v5923_v57  ;;  %v11347_v43 = vcombine.high %v5920_v44, %v5924_v16  ;;  %v5972_v33 = vld [vmem:[%s13183_s11 + $0x638] sm:$0xff] }
 0x8cd   : > { %9296 = vmatpush1.bf16.msra.mxu0 %v11288_v45  ;;  %9460 = vmatpush1.bf16.msra.mxu1 %v11290_v9  ;;  %v11346_v45 = vcombine.low %v5920_v44, %v5924_v16  ;;  %v11353_v9 = vcombine.high %v5927_v59, %v5931_v53  ;;  %v11394_v16 = vcombine.low %v5968_v61, %v5972_v33  ;;  %v5984_v59 = vld [vmem:[%s13183_s11 + $0x698] sm:$0xff] }
 0x8ce   : > { %9297 = vmatprep.subr.bf16.mxu0 %v11297_v48  ;;  %9461 = vmatprep.subr.bf16.mxu1 %v11299_v55  ;;  %v11355_v48 = vcombine.high %v5928_v7, %v5932_v6  ;;  %v5935_v55 = vld [vmem:[%s13183_s11 + $0x510] sm:$0xff]  ;;  %v5988_v53 = vld [vmem:[%s13183_s11 + $0x6b8] sm:$0xff] }
 0x8cf   : > { %v11360_v14 = vcombine.low %v5935_v55, %v5939_v17 }
 0x8d1   : > { %9298 = vmatpush1.bf16.msra.mxu0 %v11296_v24  ;;  %9462 = vmatpush1.bf16.msra.mxu1 %v11298_v42  ;;  %v11361_v24 = vcombine.high %v5935_v55, %v5939_v17  ;;  %v11363_v42 = vcombine.high %v5936_v21, %v5940_v23  ;;  %v5992_v55 = vld [vmem:[%s13183_s11 + $0x6d8] sm:$0xff]  ;;  %v11410_v23 = vcombine.low %v5984_v59, %v5988_v53 }
 0x8d2   : > { %9299 = vmatprep.subr.bf16.mxu0 %v11305_v11  ;;  %9463 = vmatprep.subr.bf16.mxu1 %v11307_v15  ;;  %v5943_v11 = vld [vmem:[%s13183_s11 + $0x550] sm:$0xff]  ;;  %v5996_v17 = vld [vmem:[%s13183_s11 + $0x6f8] sm:$0xff] }
 0x8d3   : > { %v5947_v15 = vld [vmem:[%s13183_s11 + $0x570] sm:$0xff] }
 0x8d4   : > { %v11368_v56 = vcombine.low %v5943_v11, %v5947_v15 }
 0x8d5   : > { %9300 = vmatpush1.bf16.msra.mxu0 %v11304_v28  ;;  %9464 = vmatpush1.bf16.msra.mxu1 %v11306_v4  ;;  %v11369_v28 = vcombine.high %v5943_v11, %v5947_v15  ;;  %v11371_v4 = vcombine.high %v5944_v25, %v5948_v26  ;;  %v6000_v11 = vld [vmem:[%s13183_s11 + $0x718] sm:$0xff]  ;;  %v11418_v26 = vcombine.low %v5992_v55, %v5996_v17 }
 0x8d6   : > { %9301 = vmatprep.subr.bf16.mxu0 %v11313_v29  ;;  %9465 = vmatprep.subr.bf16.mxu1 %v11315_v18  ;;  %v5951_v29 = vld [vmem:[%s13183_s11 + $0x590] sm:$0xff]  ;;  %v6004_v15 = vld [vmem:[%s13183_s11 + $0x738] sm:$0xff] }
 0x8d7   : > { %v5955_v18 = vld [vmem:[%s13183_s11 + $0x5b0] sm:$0xff] }
 0x8d8   : > { %v11376_v32 = vcombine.low %v5951_v29, %v5955_v18 }
 0x8d9   : > { %9302 = vmatpush1.bf16.msra.mxu0 %v11312_v37  ;;  %9466 = vmatpush1.bf16.msra.mxu1 %v11314_v38  ;;  %v11377_v37 = vcombine.high %v5951_v29, %v5955_v18  ;;  %v11379_v38 = vcombine.high %v5952_v20, %v5956_v19  ;;  %v6008_v29 = vld [vmem:[%s13183_s11 + $0x758] sm:$0xff]  ;;  %v11426_v19 = vcombine.low %v6000_v11, %v6004_v15 }
 0x8da   : > { %9303 = vmatprep.subr.bf16.mxu0 %v11321_v54  ;;  %9467 = vmatprep.subr.bf16.mxu1 %v11323_v30  ;;  %v5959_v54 = vld [vmem:[%s13183_s11 + $0x5d0] sm:$0xff]  ;;  %v6012_v18 = vld [vmem:[%s13183_s11 + $0x778] sm:$0xff] }
 0x8db   : > { %v5963_v30 = vld [vmem:[%s13183_s11 + $0x5f0] sm:$0xff] }
 0x8dc   : > { %v11384_v47 = vcombine.low %v5959_v54, %v5963_v30 }
 0x8dd   : > { %9304 = vmatpush1.bf16.msra.mxu0 %v11320_v34  ;;  %9468 = vmatpush1.bf16.msra.mxu1 %v11322_v41  ;;  %v11385_v34 = vcombine.high %v5959_v54, %v5963_v30  ;;  %v11387_v41 = vcombine.high %v5960_v40, %v5964_v13  ;;  %v6016_v54 = vld [vmem:[%s13183_s11 + $0x798] sm:$0xff]  ;;  %v11434_v13 = vcombine.low %v6008_v29, %v6012_v18 }
 0x8de   : > { %9314 = vmatprep.subr.bf16.mxu0 %v11329_v50  ;;  %9478 = vmatprep.subr.bf16.mxu1 %v11331_v0  ;;  %v5967_v50 = vld [vmem:[%s13183_s11 + $0x610] sm:$0xff]  ;;  %v6020_v30 = vld [vmem:[%s13183_s11 + $0x7b8] sm:$0xff] }
 0x8df   : > { %v5971_v0 = vld [vmem:[%s13183_s11 + $0x630] sm:$0xff] }
 0x8e0   : > { %9306 = vmatmul.mubr.bf16.vlgmr.msra.gmra.mrb[4].mxu0 %v14178_v22  ;;  %9470 = vmatmul.mubr.bf16.vlgmr.msra.gmra.mrb[4].mxu1 %v14178_v22  ;;  %v11344_v22 = vcombine.low %v5919_v36, %v5923_v57  ;;  %v5976_v36 = vld [vmem:[%s13183_s11 + $0x658] sm:$0xff]  ;;  %v11392_v44 = vcombine.low %v5967_v50, %v5971_v0 }
 0x8e1   : > { %9315 = vmatpush1.bf16.msra.mxu0 %v11328_v49  ;;  %9479 = vmatpush1.bf16.msra.mxu1 %v11330_v39  ;;  %v11393_v49 = vcombine.high %v5967_v50, %v5971_v0  ;;  %v11395_v39 = vcombine.high %v5968_v61, %v5972_v33  ;;  %v5980_v57 = vld [vmem:[%s13183_s11 + $0x678] sm:$0xff]  ;;  %v11442_v33 = vcombine.low %v6016_v54, %v6020_v30 }
 0x8e2   : > { %9316 = vmatprep.subr.bf16.mxu0 %v11337_v12  ;;  %9480 = vmatprep.subr.bf16.mxu1 %v11339_v62  ;;  %v5975_v12 = vld [vmem:[%s13183_s11 + $0x650] sm:$0xff]  ;;  %v6024_v50 = vld [vmem:[%s13183_s11 + $0x7d8] sm:$0xff] }
 0x8e3   : > { %9346 = vmatprep.mubr.bf16.mxu0 %v14188_v27  ;;  %9510 = vmatprep.mubr.bf16.mxu1 %v14188_v27  ;;  %v11354_v27 = vcombine.low %v5928_v7, %v5932_v6  ;;  %v5979_v62 = vld [vmem:[%s13183_s11 + $0x670] sm:$0xff]  ;;  %v11402_v6 = vcombine.low %v5976_v36, %v5980_v57  ;;  %v6028_v0 = vld [vmem:[%s13183_s11 + $0x7f8] sm:$0xff] }
 0x8e4   : > { %v11400_v7 = vcombine.low %v5975_v12, %v5979_v62 }
 0x8e5   : > { %9317 = vmatpush1.bf16.msra.mxu0 %v11336_v1  ;;  %9481 = vmatpush1.bf16.msra.mxu1 %v11338_v31  ;;  %v11401_v1 = vcombine.high %v5975_v12, %v5979_v62  ;;  %v11403_v31 = vcombine.high %v5976_v36, %v5980_v57  ;;  %v6032_v12 = vld [vmem:[%s13183_s11 + $0x818] sm:$0xff]  ;;  %v11450_v57 = vcombine.low %v6024_v50, %v6028_v0 }
 0x8e6   : > { %9318 = vmatprep.subr.bf16.mxu0 %v11345_v5  ;;  %9482 = vmatprep.subr.bf16.mxu1 %v11347_v43  ;;  %v5983_v5 = vld [vmem:[%s13183_s11 + $0x690] sm:$0xff]  ;;  %v6036_v62 = vld [vmem:[%s13183_s11 + $0x838] sm:$0xff] }
 0x8e7   : > { %v5987_v43 = vld [vmem:[%s13183_s11 + $0x6b0] sm:$0xff] }
 0x8e8   : > { %v11408_v21 = vcombine.low %v5983_v5, %v5987_v43 }
 0x8e9   : > { %9319 = vmatpush1.bf16.msra.mxu0 %v11344_v22  ;;  %9483 = vmatpush1.bf16.msra.mxu1 %v11346_v45  ;;  %v11409_v22 = vcombine.high %v5983_v5, %v5987_v43  ;;  %v11411_v45 = vcombine.high %v5984_v59, %v5988_v53  ;;  %v6040_v5 = vld [vmem:[%s13183_s11 + $0x858] sm:$0xff]  ;;  %v11458_v53 = vcombine.low %v6032_v12, %v6036_v62 }
 0x8ea   : > { %9320 = vmatprep.subr.bf16.mxu0 %v11353_v9  ;;  %9484 = vmatprep.subr.bf16.mxu1 %v11355_v48  ;;  %v5991_v9 = vld [vmem:[%s13183_s11 + $0x6d0] sm:$0xff]  ;;  %v6044_v43 = vld [vmem:[%s13183_s11 + $0x878] sm:$0xff] }
 0x8eb   : > { %v5995_v48 = vld [vmem:[%s13183_s11 + $0x6f0] sm:$0xff] }
 0x8ec   : > { %v11416_v25 = vcombine.low %v5991_v9, %v5995_v48 }
 0x8ed   : > { %9321 = vmatpush1.bf16.msra.mxu0 %v11352_v51  ;;  %9485 = vmatpush1.bf16.msra.mxu1 %v11354_v27  ;;  %v11417_v51 = vcombine.high %v5991_v9, %v5995_v48  ;;  %v11419_v27 = vcombine.high %v5992_v55, %v5996_v17  ;;  %v6048_v9 = vld [vmem:[%s13183_s11 + $0x898] sm:$0xff]  ;;  %v11466_v17 = vcombine.low %v6040_v5, %v6044_v43 }
 0x8ee   : > { %9322 = vmatprep.subr.bf16.mxu0 %v11361_v24  ;;  %9486 = vmatprep.subr.bf16.mxu1 %v11363_v42  ;;  %v5999_v24 = vld [vmem:[%s13183_s11 + $0x710] sm:$0xff]  ;;  %v6052_v48 = vld [vmem:[%s13183_s11 + $0x8b8] sm:$0xff] }
 0x8ef   : > { %v6003_v42 = vld [vmem:[%s13183_s11 + $0x730] sm:$0xff] }
 0x8f0   : > { %v11424_v20 = vcombine.low %v5999_v24, %v6003_v42 }
 0x8f1   : > { %9323 = vmatpush1.bf16.msra.mxu0 %v11360_v14  ;;  %9487 = vmatpush1.bf16.msra.mxu1 %v11362_v60  ;;  %v11425_v14 = vcombine.high %v5999_v24, %v6003_v42  ;;  %v11427_v60 = vcombine.high %v6000_v11, %v6004_v15  ;;  %v6056_v24 = vld [vmem:[%s13183_s11 + $0x8d8] sm:$0xff]  ;;  %v11474_v11 = vcombine.low %v6048_v9, %v6052_v48 }
 0x8f2   : > { %9324 = vmatprep.subr.bf16.mxu0 %v11369_v28  ;;  %9488 = vmatprep.subr.bf16.mxu1 %v11371_v4  ;;  %v6007_v28 = vld [vmem:[%s13183_s11 + $0x750] sm:$0xff]  ;;  %v6060_v42 = vld [vmem:[%s13183_s11 + $0x8f8] sm:$0xff] }
 0x8f3   : > { %v6011_v4 = vld [vmem:[%s13183_s11 + $0x770] sm:$0xff] }
 0x8f4   : > { %v11432_v40 = vcombine.low %v6007_v28, %v6011_v4 }
 0x8f5   : > { %9325 = vmatpush1.bf16.msra.mxu0 %v11368_v56  ;;  %9489 = vmatpush1.bf16.msra.mxu1 %v11370_v10  ;;  %v11433_v56 = vcombine.high %v6007_v28, %v6011_v4  ;;  %v11435_v10 = vcombine.high %v6008_v29, %v6012_v18  ;;  %v6068_v28 = vld [vmem:[%s13183_s11 + $0x938] sm:$0xff] }
 0x8f6   : > { %9326 = vmatprep.subr.bf16.mxu0 %v11377_v37  ;;  %9490 = vmatprep.subr.bf16.mxu1 %v11379_v38  ;;  %v6015_v37 = vld [vmem:[%s13183_s11 + $0x790] sm:$0xff] }
 0x8f7   : > { %v6019_v38 = vld [vmem:[%s13183_s11 + $0x7b0] sm:$0xff] }
 0x8f8   : > { %v11440_v61 = vcombine.low %v6015_v37, %v6019_v38 }
 0x8f9   : > { %9327 = vmatpush1.bf16.msra.mxu0 %v11376_v32  ;;  %9491 = vmatpush1.bf16.msra.mxu1 %v11378_v46  ;;  %v11441_v32 = vcombine.high %v6015_v37, %v6019_v38  ;;  %v11443_v46 = vcombine.high %v6016_v54, %v6020_v30 }
 0x8fa   : > { %9328 = vmatprep.subr.bf16.mxu0 %v11385_v34  ;;  %9492 = vmatprep.subr.bf16.mxu1 %v11387_v41  ;;  %v6023_v34 = vld [vmem:[%s13183_s11 + $0x7d0] sm:$0xff] }
 0x8fb   : > { %v6027_v41 = vld [vmem:[%s13183_s11 + $0x7f0] sm:$0xff] }
 0x8fc   : > { %v11448_v36 = vcombine.low %v6023_v34, %v6027_v41 }
 0x8fd   : > { %9329 = vmatpush1.bf16.msra.mxu0 %v11384_v47  ;;  %9493 = vmatpush1.bf16.msra.mxu1 %v11386_v58  ;;  %v11449_v47 = vcombine.high %v6023_v34, %v6027_v41  ;;  %v11451_v58 = vcombine.high %v6024_v50, %v6028_v0 }
 0x8fe   : > { %9330 = vmatprep.subr.bf16.mxu0 %v11393_v49  ;;  %9494 = vmatprep.subr.bf16.mxu1 %v11395_v39  ;;  %v6031_v49 = vld [vmem:[%s13183_s11 + $0x810] sm:$0xff] }
 0x8ff   : > { %v6035_v39 = vld [vmem:[%s13183_s11 + $0x830] sm:$0xff] }
 0x900   : > { %v11456_v59 = vcombine.low %v6031_v49, %v6035_v39 }
 0x901   : > { %9331 = vmatpush1.bf16.msra.mxu0 %v11392_v44  ;;  %9495 = vmatpush1.bf16.msra.mxu1 %v11394_v16  ;;  %v11457_v44 = vcombine.high %v6031_v49, %v6035_v39  ;;  %v11459_v16 = vcombine.high %v6032_v12, %v6036_v62 }
 0x902   : > { %9332 = vmatprep.subr.bf16.mxu0 %v11401_v1  ;;  %9496 = vmatprep.subr.bf16.mxu1 %v11403_v31  ;;  %v6039_v1 = vld [vmem:[%s13183_s11 + $0x850] sm:$0xff] }
 0x903   : > { %v6043_v31 = vld [vmem:[%s13183_s11 + $0x870] sm:$0xff] }
 0x904   : > { %v11464_v55 = vcombine.low %v6039_v1, %v6043_v31 }
 0x905   : > { %9333 = vmatpush1.bf16.msra.mxu0 %v11400_v7  ;;  %9497 = vmatpush1.bf16.msra.mxu1 %v11402_v6  ;;  %v11465_v7 = vcombine.high %v6039_v1, %v6043_v31  ;;  %v11467_v6 = vcombine.high %v6040_v5, %v6044_v43 }
 0x906   : > { %9334 = vmatprep.subr.bf16.mxu0 %v11409_v22  ;;  %9498 = vmatprep.subr.bf16.mxu1 %v11411_v45  ;;  %v6047_v22 = vld [vmem:[%s13183_s11 + $0x890] sm:$0xff] }
 0x907   : > { %v6051_v45 = vld [vmem:[%s13183_s11 + $0x8b0] sm:$0xff] }
 0x909   : > { %9335 = vmatpush1.bf16.msra.mxu0 %v11408_v21  ;;  %9499 = vmatpush1.bf16.msra.mxu1 %v11410_v23  ;;  %v11473_v21 = vcombine.high %v6047_v22, %v6051_v45  ;;  %v11475_v23 = vcombine.high %v6048_v9, %v6052_v48 }
 0x90a   : > { %9336 = vmatprep.subr.bf16.mxu0 %v11417_v51  ;;  %9500 = vmatprep.subr.bf16.mxu1 %v11419_v27  ;;  %v6055_v51 = vld [vmem:[%s13183_s11 + $0x8d0] sm:$0xff] }
 0x90b   : > { %v6059_v27 = vld [vmem:[%s13183_s11 + $0x8f0] sm:$0xff] }
 0x90c   : > { %v11481_v15 = vcombine.high %v6055_v51, %v6059_v27  ;;  %v11480_v4 = vcombine.low %v6055_v51, %v6059_v27 }
 0x90d   : > { %9337 = vmatpush1.bf16.msra.mxu0 %v11416_v25  ;;  %9501 = vmatpush1.bf16.msra.mxu1 %v11418_v26  ;;  %v11483_v25 = vcombine.high %v6056_v24, %v6060_v42  ;;  %v6063_v26 = vld [vmem:[%s13183_s11 + $0x910] sm:$0xff] }
 0x90e   : > { %9338 = vmatprep.subr.bf16.mxu0 %v11425_v14  ;;  %9502 = vmatprep.subr.bf16.mxu1 %v11427_v60  ;;  %v6067_v14 = vld [vmem:[%s13183_s11 + $0x930] sm:$0xff]  ;;  %v6064_v60 = vld [vmem:[%s13183_s11 + $0x918] sm:$0xff] }
 0x90f   : > { %v11489_v29 = vcombine.high %v6063_v26, %v6067_v14  ;;  %v11491_v18 = vcombine.high %v6064_v60, %v6068_v28  ;;  %v11488_v37 = vcombine.low %v6063_v26, %v6067_v14  ;;  %v11490_v38 = vcombine.low %v6064_v60, %v6068_v28 }
 0x911   : > { %9339 = vmatpush1.bf16.msra.mxu0 %v11424_v20  ;;  %9503 = vmatpush1.bf16.msra.mxu1 %v11426_v19  ;;  %v6071_v20 = vld [vmem:[%s13183_s11 + $0x950] sm:$0xff] }
 0x912   : > { %9340 = vmatprep.subr.bf16.mxu0 %v11433_v56  ;;  %9504 = vmatprep.subr.bf16.mxu1 %v11435_v10  ;;  %v6075_v19 = vld [vmem:[%s13183_s11 + $0x970] sm:$0xff]  ;;  %v6072_v56 = vld [vmem:[%s13183_s11 + $0x958] sm:$0xff] }
 0x913   : > { %v6076_v10 = vld [vmem:[%s13183_s11 + $0x978] sm:$0xff]  ;;  %v11497_v54 = vcombine.high %v6071_v20, %v6075_v19  ;;  %v11496_v34 = vcombine.low %v6071_v20, %v6075_v19 }
 0x914   : > { %v11499_v30 = vcombine.high %v6072_v56, %v6076_v10  ;;  %v11498_v41 = vcombine.low %v6072_v56, %v6076_v10 }
 0x915   : > { %9341 = vmatpush1.bf16.msra.mxu0 %v11432_v40  ;;  %9505 = vmatpush1.bf16.msra.mxu1 %v11434_v13  ;;  %v6079_v40 = vld [vmem:[%s13183_s11 + $0x990] sm:$0xff] }
 0x916   : > { %9342 = vmatprep.subr.bf16.mxu0 %v11441_v32  ;;  %9506 = vmatprep.subr.bf16.mxu1 %v11443_v46  ;;  %v6083_v13 = vld [vmem:[%s13183_s11 + $0x9b0] sm:$0xff]  ;;  %v6080_v32 = vld [vmem:[%s13183_s11 + $0x998] sm:$0xff] }
 0x917   : > { %v6084_v46 = vld [vmem:[%s13183_s11 + $0x9b8] sm:$0xff]  ;;  %v11505_v50 = vcombine.high %v6079_v40, %v6083_v13  ;;  %v11504_v49 = vcombine.low %v6079_v40, %v6083_v13 }
 0x918   : > { %v11507_v0 = vcombine.high %v6080_v32, %v6084_v46  ;;  %v11506_v39 = vcombine.low %v6080_v32, %v6084_v46 }
 0x919   : > { %9343 = vmatpush1.bf16.msra.mxu0 %v11440_v61  ;;  %9507 = vmatpush1.bf16.msra.mxu1 %v11442_v33  ;;  %v6087_v61 = vld [vmem:[%s13183_s11 + $0x9d0] sm:$0xff] }
 0x91a   : > { %9344 = vmatprep.subr.bf16.mxu0 %v11449_v47  ;;  %9508 = vmatprep.subr.bf16.mxu1 %v11451_v58  ;;  %v6091_v33 = vld [vmem:[%s13183_s11 + $0x9f0] sm:$0xff]  ;;  %v6088_v47 = vld [vmem:[%s13183_s11 + $0x9d8] sm:$0xff] }
 0x91b   : > { %v6092_v58 = vld [vmem:[%s13183_s11 + $0x9f8] sm:$0xff]  ;;  %v11513_v12 = vcombine.high %v6087_v61, %v6091_v33  ;;  %v11512_v1 = vcombine.low %v6087_v61, %v6091_v33 }
 0x91c   : > { %v11515_v62 = vcombine.high %v6088_v47, %v6092_v58  ;;  %v11514_v31 = vcombine.low %v6088_v47, %v6092_v58 }
 0x91d   : > { %9345 = vmatpush1.bf16.msra.mxu0 %v11448_v36  ;;  %9509 = vmatpush1.bf16.msra.mxu1 %v11450_v57  ;;  %v6095_v36 = vld [vmem:[%s13183_s11 + $0xa10] sm:$0xff] }
 0x91e   : > { %9355 = vmatprep.subr.bf16.mxu0 %v11457_v44  ;;  %9519 = vmatprep.subr.bf16.mxu1 %v11459_v16  ;;  %v6099_v57 = vld [vmem:[%s13183_s11 + $0xa30] sm:$0xff]  ;;  %v6096_v44 = vld [vmem:[%s13183_s11 + $0xa18] sm:$0xff] }
 0x91f   : > { %v6100_v16 = vld [vmem:[%s13183_s11 + $0xa38] sm:$0xff]  ;;  %v11521_v5 = vcombine.high %v6095_v36, %v6099_v57 }
 0x920   : > { %9347 = vmatmul.mubr.bf16.vlgmr.msra.gmra.mrb[4].mxu0 %v14262_v2  ;;  %9511 = vmatmul.mubr.bf16.vlgmr.msra.gmra.mrb[4].mxu1 %v14262_v2  ;;  %v11472_v2 = vcombine.low %v6047_v22, %v6051_v45  ;;  %v11523_v43 = vcombine.high %v6096_v44, %v6100_v16  ;;  %v11520_v22 = vcombine.low %v6095_v36, %v6099_v57 }
 0x921   : > { %9356 = vmatpush1.bf16.msra.mxu0 %v11456_v59  ;;  %9520 = vmatpush1.bf16.msra.mxu1 %v11458_v53  ;;  %v6103_v59 = vld [vmem:[%s13183_s11 + $0xa50] sm:$0xff]  ;;  %v11522_v45 = vcombine.low %v6096_v44, %v6100_v16 }
 0x922   : > { %9357 = vmatprep.subr.bf16.mxu0 %v11465_v7  ;;  %9521 = vmatprep.subr.bf16.mxu1 %v11467_v6  ;;  %v6107_v53 = vld [vmem:[%s13183_s11 + $0xa70] sm:$0xff]  ;;  %v6104_v7 = vld [vmem:[%s13183_s11 + $0xa58] sm:$0xff] }
 0x923   : > { %9387 = vmatprep.mubr.bf16.mxu0 %v14191_v63  ;;  %9551 = vmatprep.mubr.bf16.mxu1 %v14191_v63  ;;  %v11482_v63 = vcombine.low %v6056_v24, %v6060_v42  ;;  %v6108_v6 = vld [vmem:[%s13183_s11 + $0xa78] sm:$0xff]  ;;  %v11529_v9 = vcombine.high %v6103_v59, %v6107_v53  ;;  %v11528_v51 = vcombine.low %v6103_v59, %v6107_v53 }
 0x924   : > { %v11531_v48 = vcombine.high %v6104_v7, %v6108_v6  ;;  %v11530_v27 = vcombine.low %v6104_v7, %v6108_v6 }
 0x925   : > { %9358 = vmatpush1.bf16.msra.mxu0 %v11464_v55  ;;  %9522 = vmatpush1.bf16.msra.mxu1 %v11466_v17  ;;  %v6111_v55 = vld [vmem:[%s13183_s11 + $0xa90] sm:$0xff] }
 0x926   : > { %9359 = vmatprep.subr.bf16.mxu0 %v11473_v21  ;;  %9523 = vmatprep.subr.bf16.mxu1 %v11475_v23  ;;  %v6115_v17 = vld [vmem:[%s13183_s11 + $0xab0] sm:$0xff]  ;;  %v6112_v21 = vld [vmem:[%s13183_s11 + $0xa98] sm:$0xff] }
 0x927   : > { %v6116_v23 = vld [vmem:[%s13183_s11 + $0xab8] sm:$0xff]  ;;  %v11537_v24 = vcombine.high %v6111_v55, %v6115_v17  ;;  %v11536_v26 = vcombine.low %v6111_v55, %v6115_v17 }
 0x928   : > { %v11539_v42 = vcombine.high %v6112_v21, %v6116_v23  ;;  %v11538_v14 = vcombine.low %v6112_v21, %v6116_v23 }
 0x929   : > { %9360 = vmatpush1.bf16.msra.mxu0 %v11472_v2  ;;  %9524 = vmatpush1.bf16.msra.mxu1 %v11474_v11  ;;  %v6119_v2 = vld [vmem:[%s13183_s11 + $0xad0] sm:$0xff] }
 0x92a   : > { %9361 = vmatprep.subr.bf16.mxu0 %v11481_v15  ;;  %9525 = vmatprep.subr.bf16.mxu1 %v11483_v25  ;;  %v6123_v11 = vld [vmem:[%s13183_s11 + $0xaf0] sm:$0xff]  ;;  %v6120_v15 = vld [vmem:[%s13183_s11 + $0xad8] sm:$0xff] }
 0x92b   : > { %v6124_v25 = vld [vmem:[%s13183_s11 + $0xaf8] sm:$0xff]  ;;  %v11545_v60 = vcombine.high %v6119_v2, %v6123_v11  ;;  %v11544_v20 = vcombine.low %v6119_v2, %v6123_v11 }
 0x92c   : > { %v11547_v28 = vcombine.high %v6120_v15, %v6124_v25  ;;  %v11546_v19 = vcombine.low %v6120_v15, %v6124_v25 }
 0x92d   : > { %9362 = vmatpush1.bf16.msra.mxu0 %v11480_v4  ;;  %9526 = vmatpush1.bf16.msra.mxu1 %v11482_v63  ;;  %v6127_v4 = vld [vmem:[%s13183_s11 + $0xb10] sm:$0xff] }
 0x92e   : > { %9363 = vmatprep.subr.bf16.mxu0 %v11489_v29  ;;  %9527 = vmatprep.subr.bf16.mxu1 %v11491_v18  ;;  %v6131_v63 = vld [vmem:[%s13183_s11 + $0xb30] sm:$0xff]  ;;  %v6128_v29 = vld [vmem:[%s13183_s11 + $0xb18] sm:$0xff] }
 0x92f   : > { %v6132_v18 = vld [vmem:[%s13183_s11 + $0xb38] sm:$0xff]  ;;  %v11553_v56 = vcombine.high %v6127_v4, %v6131_v63  ;;  %v11552_v40 = vcombine.low %v6127_v4, %v6131_v63 }
 0x930   : > { %v11555_v10 = vcombine.high %v6128_v29, %v6132_v18  ;;  %v11554_v13 = vcombine.low %v6128_v29, %v6132_v18  ;;  %v6191_v18 = vld [vmem:[%s13183_s11 + $0xd10] sm:$0xff] }
 0x931   : > { %9364 = vmatpush1.bf16.msra.mxu0 %v11488_v37  ;;  %9528 = vmatpush1.bf16.msra.mxu1 %v11490_v38  ;;  %v6135_v37 = vld [vmem:[%s13183_s11 + $0xb50] sm:$0xff] }
 0x932   : > { %9365 = vmatprep.subr.bf16.mxu0 %v11497_v54  ;;  %9529 = vmatprep.subr.bf16.mxu1 %v11499_v30  ;;  %v6139_v38 = vld [vmem:[%s13183_s11 + $0xb70] sm:$0xff]  ;;  %v6136_v54 = vld [vmem:[%s13183_s11 + $0xb58] sm:$0xff] }
 0x933   : > { %v6140_v30 = vld [vmem:[%s13183_s11 + $0xb78] sm:$0xff]  ;;  %v11561_v32 = vcombine.high %v6135_v37, %v6139_v38  ;;  %v11560_v61 = vcombine.low %v6135_v37, %v6139_v38 }
 0x934   : > { %v11563_v46 = vcombine.high %v6136_v54, %v6140_v30  ;;  %v11562_v33 = vcombine.low %v6136_v54, %v6140_v30  ;;  %v6199_v54 = vld [vmem:[%s13183_s11 + $0xd50] sm:$0xff] }
 0x935   : > { %9366 = vmatpush1.bf16.msra.mxu0 %v11496_v34  ;;  %9530 = vmatpush1.bf16.msra.mxu1 %v11498_v41  ;;  %v6143_v34 = vld [vmem:[%s13183_s11 + $0xb90] sm:$0xff] }
 0x936   : > { %9367 = vmatprep.subr.bf16.mxu0 %v11505_v50  ;;  %9531 = vmatprep.subr.bf16.mxu1 %v11507_v0  ;;  %v6147_v41 = vld [vmem:[%s13183_s11 + $0xbb0] sm:$0xff]  ;;  %v6144_v50 = vld [vmem:[%s13183_s11 + $0xb98] sm:$0xff] }
 0x937   : > { %v6148_v0 = vld [vmem:[%s13183_s11 + $0xbb8] sm:$0xff]  ;;  %v11569_v47 = vcombine.high %v6143_v34, %v6147_v41  ;;  %v11568_v36 = vcombine.low %v6143_v34, %v6147_v41  ;;  %v6203_v30 = vld [vmem:[%s13183_s11 + $0xd70] sm:$0xff] }
 0x938   : > { %v11571_v58 = vcombine.high %v6144_v50, %v6148_v0  ;;  %v11570_v57 = vcombine.low %v6144_v50, %v6148_v0  ;;  %v11625_v34 = vcombine.high %v6199_v54, %v6203_v30  ;;  %v6207_v50 = vld [vmem:[%s13183_s11 + $0xd90] sm:$0xff] }
 0x939   : > { %9368 = vmatpush1.bf16.msra.mxu0 %v11504_v49  ;;  %9532 = vmatpush1.bf16.msra.mxu1 %v11506_v39  ;;  %v6151_v49 = vld [vmem:[%s13183_s11 + $0xbd0] sm:$0xff] }
 0x93a   : > { %9369 = vmatprep.subr.bf16.mxu0 %v11513_v12  ;;  %9533 = vmatprep.subr.bf16.mxu1 %v11515_v62  ;;  %v6155_v39 = vld [vmem:[%s13183_s11 + $0xbf0] sm:$0xff]  ;;  %v6152_v12 = vld [vmem:[%s13183_s11 + $0xbd8] sm:$0xff] }
 0x93b   : > { %v6156_v62 = vld [vmem:[%s13183_s11 + $0xbf8] sm:$0xff]  ;;  %v11577_v44 = vcombine.high %v6151_v49, %v6155_v39  ;;  %v11576_v59 = vcombine.low %v6151_v49, %v6155_v39  ;;  %v6211_v0 = vld [vmem:[%s13183_s11 + $0xdb0] sm:$0xff] }
 0x93c   : > { %v11579_v16 = vcombine.high %v6152_v12, %v6156_v62  ;;  %v11578_v53 = vcombine.low %v6152_v12, %v6156_v62  ;;  %v11633_v49 = vcombine.high %v6207_v50, %v6211_v0  ;;  %v6215_v62 = vld [vmem:[%s13183_s11 + $0xdd0] sm:$0xff] }
 0x93d   : > { %9370 = vmatpush1.bf16.msra.mxu0 %v11512_v1  ;;  %9534 = vmatpush1.bf16.msra.mxu1 %v11514_v31  ;;  %v6159_v1 = vld [vmem:[%s13183_s11 + $0xc10] sm:$0xff] }
 0x93e   : > { %9371 = vmatprep.subr.bf16.mxu0 %v11521_v5  ;;  %9535 = vmatprep.subr.bf16.mxu1 %v11523_v43  ;;  %v6163_v31 = vld [vmem:[%s13183_s11 + $0xc30] sm:$0xff]  ;;  %v6160_v5 = vld [vmem:[%s13183_s11 + $0xc18] sm:$0xff] }
 0x93f   : > { %v6164_v43 = vld [vmem:[%s13183_s11 + $0xc38] sm:$0xff]  ;;  %v11585_v7 = vcombine.high %v6159_v1, %v6163_v31  ;;  %v11584_v55 = vcombine.low %v6159_v1, %v6163_v31 }
 0x940   : > { %v11587_v6 = vcombine.high %v6160_v5, %v6164_v43  ;;  %v11586_v17 = vcombine.low %v6160_v5, %v6164_v43  ;;  %v6220_v1 = vld [vmem:[%s13183_s11 + $0xdf8] sm:$0xff]  ;;  %v11632_v43 = vcombine.low %v6207_v50, %v6211_v0 }
 0x941   : > { %9372 = vmatpush1.bf16.msra.mxu0 %v11520_v22  ;;  %9536 = vmatpush1.bf16.msra.mxu1 %v11522_v45  ;;  %v6167_v22 = vld [vmem:[%s13183_s11 + $0xc50] sm:$0xff] }
 0x942   : > { %9373 = vmatprep.subr.bf16.mxu0 %v11529_v9  ;;  %9537 = vmatprep.subr.bf16.mxu1 %v11531_v48  ;;  %v6171_v45 = vld [vmem:[%s13183_s11 + $0xc70] sm:$0xff]  ;;  %v6168_v9 = vld [vmem:[%s13183_s11 + $0xc58] sm:$0xff] }
 0x943   : > { %v6172_v48 = vld [vmem:[%s13183_s11 + $0xc78] sm:$0xff]  ;;  %v11593_v21 = vcombine.high %v6167_v22, %v6171_v45  ;;  %v11592_v2 = vcombine.low %v6167_v22, %v6171_v45 }
 0x944   : > { %v11595_v23 = vcombine.high %v6168_v9, %v6172_v48  ;;  %v11594_v11 = vcombine.low %v6168_v9, %v6172_v48  ;;  %v6223_v9 = vld [vmem:[%s13183_s11 + $0xe10] sm:$0xff] }
 0x945   : > { %9374 = vmatpush1.bf16.msra.mxu0 %v11528_v51  ;;  %9538 = vmatpush1.bf16.msra.mxu1 %v11530_v27  ;;  %v6175_v51 = vld [vmem:[%s13183_s11 + $0xc90] sm:$0xff] }
 0x946   : > { %9375 = vmatprep.subr.bf16.mxu0 %v11537_v24  ;;  %9539 = vmatprep.subr.bf16.mxu1 %v11539_v42  ;;  %v6179_v27 = vld [vmem:[%s13183_s11 + $0xcb0] sm:$0xff]  ;;  %v6176_v24 = vld [vmem:[%s13183_s11 + $0xc98] sm:$0xff] }
 0x947   : > { %v6180_v42 = vld [vmem:[%s13183_s11 + $0xcb8] sm:$0xff]  ;;  %v11601_v15 = vcombine.high %v6175_v51, %v6179_v27  ;;  %v6227_v48 = vld [vmem:[%s13183_s11 + $0xe30] sm:$0xff] }
 0x948   : > { %v11603_v25 = vcombine.high %v6176_v24, %v6180_v42  ;;  %v11602_v4 = vcombine.low %v6176_v24, %v6180_v42  ;;  %v6231_v24 = vld [vmem:[%s13183_s11 + $0xe50] sm:$0xff] }
 0x949   : > { %9376 = vmatpush1.bf16.msra.mxu0 %v11536_v26  ;;  %9540 = vmatpush1.bf16.msra.mxu1 %v11538_v14  ;;  %v6183_v26 = vld [vmem:[%s13183_s11 + $0xcd0] sm:$0xff] }
 0x94a   : > { %9377 = vmatprep.subr.bf16.mxu0 %v11545_v60  ;;  %9541 = vmatprep.subr.bf16.mxu1 %v11547_v28  ;;  %v6187_v14 = vld [vmem:[%s13183_s11 + $0xcf0] sm:$0xff]  ;;  %v6184_v60 = vld [vmem:[%s13183_s11 + $0xcd8] sm:$0xff] }
 0x94b   : > { %v6188_v28 = vld [vmem:[%s13183_s11 + $0xcf8] sm:$0xff]  ;;  %v11609_v63 = vcombine.high %v6183_v26, %v6187_v14  ;;  %v6235_v42 = vld [vmem:[%s13183_s11 + $0xe70] sm:$0xff] }
 0x94c   : > { %v11611_v29 = vcombine.high %v6184_v60, %v6188_v28 }
 0x94d   : > { %9378 = vmatpush1.bf16.msra.mxu0 %v11544_v20  ;;  %9542 = vmatpush1.bf16.msra.mxu1 %v11546_v19  ;;  %v6195_v20 = vld [vmem:[%s13183_s11 + $0xd30] sm:$0xff]  ;;  %v6192_v19 = vld [vmem:[%s13183_s11 + $0xd18] sm:$0xff] }
 0x94e   : > { %9379 = vmatprep.subr.bf16.mxu0 %v11553_v56  ;;  %9543 = vmatprep.subr.bf16.mxu1 %v11555_v10  ;;  %v6196_v56 = vld [vmem:[%s13183_s11 + $0xd38] sm:$0xff]  ;;  %v11608_v10 = vcombine.low %v6183_v26, %v6187_v14  ;;  %v11617_v37 = vcombine.high %v6191_v18, %v6195_v20  ;;  %v11657_v26 = vcombine.high %v6231_v24, %v6235_v42 }
 0x94f   : > { %v11619_v38 = vcombine.high %v6192_v19, %v6196_v56 }
 0x951   : > { %9380 = vmatpush1.bf16.msra.mxu0 %v11552_v40  ;;  %9544 = vmatpush1.bf16.msra.mxu1 %v11554_v13  ;;  %v6200_v40 = vld [vmem:[%s13183_s11 + $0xd58] sm:$0xff] }
 0x952   : > { %9381 = vmatprep.subr.bf16.mxu0 %v11561_v32  ;;  %9545 = vmatprep.subr.bf16.mxu1 %v11563_v46  ;;  %v6204_v13 = vld [vmem:[%s13183_s11 + $0xd78] sm:$0xff]  ;;  %v11616_v32 = vcombine.low %v6191_v18, %v6195_v20  ;;  %v11618_v46 = vcombine.low %v6192_v19, %v6196_v56  ;;  %v6247_v19 = vld [vmem:[%s13183_s11 + $0xed0] sm:$0xff] }
 0x953   : > { %v11627_v41 = vcombine.high %v6200_v40, %v6204_v13  ;;  %v6251_v56 = vld [vmem:[%s13183_s11 + $0xef0] sm:$0xff] }
 0x955   : > { %9382 = vmatpush1.bf16.msra.mxu0 %v11560_v61  ;;  %9546 = vmatpush1.bf16.msra.mxu1 %v11562_v33  ;;  %v6208_v61 = vld [vmem:[%s13183_s11 + $0xd98] sm:$0xff] }
 0x956   : > { %9383 = vmatprep.subr.bf16.mxu0 %v11569_v47  ;;  %9547 = vmatprep.subr.bf16.mxu1 %v11571_v58  ;;  %v6212_v33 = vld [vmem:[%s13183_s11 + $0xdb8] sm:$0xff]  ;;  %v11624_v47 = vcombine.low %v6199_v54, %v6203_v30  ;;  %v11626_v58 = vcombine.low %v6200_v40, %v6204_v13  ;;  %v11673_v54 = vcombine.high %v6247_v19, %v6251_v56  ;;  %v6255_v40 = vld [vmem:[%s13183_s11 + $0xf10] sm:$0xff] }
 0x957   : > { %v11635_v12 = vcombine.high %v6208_v61, %v6212_v33  ;;  %v6259_v13 = vld [vmem:[%s13183_s11 + $0xf30] sm:$0xff] }
 0x958   : > { %v11681_v50 = vcombine.high %v6255_v40, %v6259_v13 }
 0x959   : > { %9384 = vmatpush1.bf16.msra.mxu0 %v11568_v36  ;;  %9548 = vmatpush1.bf16.msra.mxu1 %v11570_v57  ;;  %v6219_v36 = vld [vmem:[%s13183_s11 + $0xdf0] sm:$0xff] }
 0x95a   : > { %9385 = vmatprep.subr.bf16.mxu0 %v11577_v44  ;;  %9549 = vmatprep.subr.bf16.mxu1 %v11579_v16  ;;  %v6216_v16 = vld [vmem:[%s13183_s11 + $0xdd8] sm:$0xff] }
 0x95b   : > { %v11643_v45 = vcombine.high %v6216_v16, %v6220_v1 }
 0x95d   : > { %9386 = vmatpush1.bf16.msra.mxu0 %v11576_v59  ;;  %9550 = vmatpush1.bf16.msra.mxu1 %v11578_v53 }
 0x95e   : > { %9396 = vmatprep.subr.bf16.mxu0 %v11585_v7  ;;  %9560 = vmatprep.subr.bf16.mxu1 %v11587_v6  ;;  %v11634_v7 = vcombine.low %v6208_v61, %v6212_v33  ;;  %v11641_v6 = vcombine.high %v6215_v62, %v6219_v36  ;;  %v6263_v61 = vld [vmem:[%s13183_s11 + $0xf50] sm:$0xff] }
 0x95f   : > { %v6267_v33 = vld [vmem:[%s13183_s11 + $0xf70] sm:$0xff] }
 0x960   : > { %9388 = vmatmul.mubr.bf16.vlgmr.msra.gmra.mrb[4].mxu0 %v14194_v52  ;;  %9552 = vmatmul.mubr.bf16.vlgmr.msra.gmra.mrb[4].mxu1 %v14194_v52  ;;  %v11600_v52 = vcombine.low %v6175_v51, %v6179_v27  ;;  %v11649_v51 = vcombine.high %v6223_v9, %v6227_v48 }
 0x961   : > { %9397 = vmatpush1.bf16.msra.mxu0 %v11584_v55  ;;  %9561 = vmatpush1.bf16.msra.mxu1 %v11586_v17  ;;  %v6224_v55 = vld [vmem:[%s13183_s11 + $0xe18] sm:$0xff] }
 0x962   : > { %9398 = vmatprep.subr.bf16.mxu0 %v11593_v21  ;;  %9562 = vmatprep.subr.bf16.mxu1 %v11595_v23  ;;  %v6228_v17 = vld [vmem:[%s13183_s11 + $0xe38] sm:$0xff]  ;;  %v11640_v21 = vcombine.low %v6215_v62, %v6219_v36  ;;  %v11642_v23 = vcombine.low %v6216_v16, %v6220_v1  ;;  %v11689_v62 = vcombine.high %v6263_v61, %v6267_v33  ;;  %v6271_v16 = vld [vmem:[%s13183_s11 + $0xf90] sm:$0xff] }
 0x963   : > { %9428 = vmatprep.mubr.bf16.mxu0 %v14336_v8  ;;  %9592 = vmatprep.mubr.bf16.mxu1 %v14336_v8  ;;  %v11610_v8 = vcombine.low %v6184_v60, %v6188_v28  ;;  %v11651_v27 = vcombine.high %v6224_v55, %v6228_v17  ;;  %v6239_v60 = vld [vmem:[%s13183_s11 + $0xe90] sm:$0xff] }
 0x964   : > { %v6243_v28 = vld [vmem:[%s13183_s11 + $0xeb0] sm:$0xff] }
 0x965   : > { %9399 = vmatpush1.bf16.msra.mxu0 %v11592_v2  ;;  %9563 = vmatpush1.bf16.msra.mxu1 %v11594_v11  ;;  %v6232_v2 = vld [vmem:[%s13183_s11 + $0xe58] sm:$0xff]  ;;  %v11665_v18 = vcombine.high %v6239_v60, %v6243_v28  ;;  %v6275_v1 = vld [vmem:[%s13183_s11 + $0xfb0] sm:$0xff] }
 0x966   : > { %9400 = vmatprep.subr.bf16.mxu0 %v11601_v15  ;;  %9564 = vmatprep.subr.bf16.mxu1 %v11603_v25  ;;  %v6236_v11 = vld [vmem:[%s13183_s11 + $0xe78] sm:$0xff]  ;;  %v11648_v15 = vcombine.low %v6223_v9, %v6227_v48  ;;  %v11650_v25 = vcombine.low %v6224_v55, %v6228_v17  ;;  %v11696_v55 = vcombine.low %v6271_v16, %v6275_v1 }
 0x967   : > { %v11659_v14 = vcombine.high %v6232_v2, %v6236_v11  ;;  %v6280_v9 = vld [vmem:[%s13183_s11 + $0xfd8] sm:$0xff] }
 0x968   : > { %v6284_v48 = vld [vmem:[%s13183_s11 + $0xff8] sm:$0xff] }
 0x969   : > { %9401 = vmatpush1.bf16.msra.mxu0 %v11600_v52  ;;  %9565 = vmatpush1.bf16.msra.mxu1 %v11602_v4  ;;  %v6240_v52 = vld [vmem:[%s13183_s11 + $0xe98] sm:$0xff] }
 0x96a   : > { %9402 = vmatprep.subr.bf16.mxu0 %v11609_v63  ;;  %9566 = vmatprep.subr.bf16.mxu1 %v11611_v29  ;;  %v6244_v4 = vld [vmem:[%s13183_s11 + $0xeb8] sm:$0xff]  ;;  %v11656_v63 = vcombine.low %v6231_v24, %v6235_v42  ;;  %v11658_v29 = vcombine.low %v6232_v2, %v6236_v11  ;;  %v14683_v24 = vsub.s32 0, %v14107_v3  ;;  %v14686_v42 = vsub.s32 1, %v14107_v3 }
 0x96b   : > { %v11667_v20 = vcombine.high %v6240_v52, %v6244_v4  ;;  %v6285_v2 = vld [vmem:[#allocation18] sm:$0xff] }
 0x96c   : > { %v6290_v11 = vrot.slane %v6285_v2, %v14683_v24 }
 0x96d   : > { %9403 = vmatpush1.bf16.msra.mxu0 %v11608_v10  ;;  %9567 = vmatpush1.bf16.msra.mxu1 %v11610_v8  ;;  %v6248_v10 = vld [vmem:[%s13183_s11 + $0xed8] sm:$0xff] }
 0x96e   : > { %9404 = vmatprep.subr.bf16.mxu0 %v11617_v37  ;;  %9568 = vmatprep.subr.bf16.mxu1 %v11619_v38  ;;  %v6252_v8 = vld [vmem:[%s13183_s11 + $0xef8] sm:$0xff]  ;;  %v11664_v37 = vcombine.low %v6239_v60, %v6243_v28  ;;  %v11666_v38 = vcombine.low %v6240_v52, %v6244_v4  ;;  %v14701_v60 = vsub.s32 3, %v14107_v3 }
 0x96f   : > { %v11675_v30 = vcombine.high %v6248_v10, %v6252_v8 }
 0x971   : > { %9405 = vmatpush1.bf16.msra.mxu0 %v11616_v32  ;;  %9569 = vmatpush1.bf16.msra.mxu1 %v11618_v46  ;;  %v6256_v32 = vld [vmem:[%s13183_s11 + $0xf18] sm:$0xff] }
 0x972   : > { %9406 = vmatprep.subr.bf16.mxu0 %v11625_v34  ;;  %9570 = vmatprep.subr.bf16.mxu1 %v11627_v41  ;;  %v6260_v46 = vld [vmem:[%s13183_s11 + $0xf38] sm:$0xff]  ;;  %v11672_v34 = vcombine.low %v6247_v19, %v6251_v56  ;;  %v11674_v41 = vcombine.low %v6248_v10, %v6252_v8 }
 0x973   : > { %v14636_v39 = vpop.f32.mrb[0].mxu0  ;;  %v14640_v57 = vpop.f32.mrb[0].mxu1  ;;  %v11683_v0 = vcombine.high %v6256_v32, %v6260_v46 }
 0x974   : > { %v14642_v44 = vpop.f32.mrb[1].mxu0  ;;  %v14646_v31 = vpop.f32.mrb[1].mxu1 }
 0x975   : > { %v9106_v5 = vpop.f32.mrb[2].mxu0  ;;  %9407 = vmatpush1.bf16.msra.mxu0 %v11624_v47  ;;  %v9270_v59 = vpop.f32.mrb[2].mxu1  ;;  %9571 = vmatpush1.bf16.msra.mxu1 %v11626_v58  ;;  %v6264_v47 = vld [vmem:[%s13183_s11 + $0xf58] sm:$0xff] }
 0x976   : > { %v9107_v53 = vpop.f32.mrb[3].mxu0  ;;  %9408 = vmatprep.subr.bf16.mxu0 %v11633_v49  ;;  %v9271_v22 = vpop.f32.mrb[3].mxu1  ;;  %9572 = vmatprep.subr.bf16.mxu1 %v11635_v12  ;;  %v6268_v58 = vld [vmem:[%s13183_s11 + $0xf78] sm:$0xff]  ;;  %v11680_v49 = vcombine.low %v6255_v40, %v6259_v13  ;;  %v11682_v12 = vcombine.low %v6256_v32, %v6260_v46  ;;  %v11688_v59 = vcombine.low %v6263_v61, %v6267_v33 }
 0x977   : > { %v11691_v36 = vcombine.high %v6264_v47, %v6268_v58  ;;  %v6272_v5 = vld [vmem:[%s13183_s11 + $0xf98] sm:$0xff]  ;;  %v11690_v53 = vcombine.low %v6264_v47, %v6268_v58  ;;  %v6279_v22 = vld [vmem:[%s13183_s11 + $0xfd0] sm:$0xff] }
 0x979   : > { %9409 = vmatpush1.bf16.msra.mxu0 %v11632_v43  ;;  %9573 = vmatpush1.bf16.msra.mxu1 %v11634_v7  ;;  %v6276_v43 = vld [vmem:[%s13183_s11 + $0xfb8] sm:$0xff]  ;;  %v11697_v7 = vcombine.high %v6271_v16, %v6275_v1 }
 0x97a   : > { %9410 = vmatprep.subr.bf16.mxu0 %v11641_v6  ;;  %9574 = vmatprep.subr.bf16.mxu1 %v11643_v45  ;;  %v11699_v6 = vcombine.high %v6272_v5, %v6276_v43  ;;  %v6283_v45 = vld [vmem:[%s13183_s11 + $0xff0] sm:$0xff]  ;;  %v11698_v17 = vcombine.low %v6272_v5, %v6276_v43  ;;  %v12242_v5 = vld [vmem:[%s15122_s16 + $0x40] sm:$0xff]  }
 0x97b   : > { %v12243_v43 = vld [vmem:[%s15122_s16 + $0xc0] sm:$0xff]  }
 0x97d   : > { %9411 = vmatpush1.bf16.msra.mxu0 %v11640_v21  ;;  %9575 = vmatpush1.bf16.msra.mxu1 %v11642_v23  ;;  %v11705_v21 = vcombine.high %v6279_v22, %v6283_v45  ;;  %v11707_v23 = vcombine.high %v6280_v9, %v6284_v48 }
 0x97e   : > { %9412 = vmatprep.subr.bf16.mxu0 %v11649_v51  ;;  %9576 = vmatprep.subr.bf16.mxu1 %v11651_v27  ;;  %v11704_v51 = vcombine.low %v6279_v22, %v6283_v45  ;;  %v11706_v27 = vcombine.low %v6280_v9, %v6284_v48  ;;  %v12248_v22 = vld [vmem:[%s15122_s16 + $0x8] sm:$0xff]   ;;  %v12250_v9 = vld [vmem:[%s15122_s16 + $0x50] sm:$0xff]  }
 0x97f   : > { %v12249_v45 = vld [vmem:[%s15122_s16 + $0x88] sm:$0xff]   ;;  %v12251_v48 = vld [vmem:[%s15122_s16 + $0xd0] sm:$0xff]  }
 0x981   : > { %9413 = vmatpush1.bf16.msra.mxu0 %v11648_v15  ;;  %9577 = vmatpush1.bf16.msra.mxu1 %v11650_v25  ;;  %v6294_v15 = vrot.slane %v6285_v2, %v14686_v42  ;;  %v14691_v25 = vsub.s32 2, %v14107_v3 }
 0x982   : > { %9414 = vmatprep.subr.bf16.mxu0 %v11657_v26  ;;  %9578 = vmatprep.subr.bf16.mxu1 %v11659_v14  ;;  %v14694_v26 = vadd.f32 %v14636_v39, %v6290_v11  ;;  %v6302_v39 = vrot.slane %v6285_v2, %v14701_v60 }
 0x983   : > { %v14697_v14 = vadd.f32 %v14642_v44, %v6294_v15 }
 0x984   : > { %v9602_v28 = vsel %vm9601_vm2, %v14694_v26, 0.0  ;;  %v11978_v19 = vadd.f32 %v14646_v31, %v6302_v39 }
 0x985   : > { %9415 = vmatpush1.bf16.msra.mxu0 %v11656_v63  ;;  %9579 = vmatpush1.bf16.msra.mxu1 %v11658_v29  ;;  %v9603_v52 = vsel %vm9601_vm2, %v14697_v14, 0.0  ;;  %v14710_v63 = vsub.s32 4, %v14107_v3  ;;  %v14713_v29 = vsub.s32 5, %v14107_v3 }
 0x986   : > { %9416 = vmatprep.subr.bf16.mxu0 %v11665_v18  ;;  %9580 = vmatprep.subr.bf16.mxu1 %v11667_v20  ;;  %v9604_v44 = vadd.f32 %v9603_v52, %v9602_v28  ;;  %v14716_v18 = vsub.s32 6, %v14107_v3 }
 0x987   : > { %v6306_v56 = vrot.slane %v6285_v2, %v14710_v63  ;;  %v6310_v8 = vrot.slane %v6285_v2, %v14713_v29 }
 0x989   : > { %9417 = vmatpush1.bf16.msra.mxu0 %v11664_v37  ;;  %9581 = vmatpush1.bf16.msra.mxu1 %v11666_v38  ;;  %v6314_v37 = vrot.slane %v6285_v2, %v14716_v18 }
 0x98a   : > { %9418 = vmatprep.subr.bf16.mxu0 %v11673_v54  ;;  %9582 = vmatprep.subr.bf16.mxu1 %v11675_v30  ;;  %v9607_v54 = vsel %vm9601_vm2, %v11978_v19, 0.0 }
 0x98d   : > { %9419 = vmatpush1.bf16.msra.mxu0 %v11672_v34  ;;  %9583 = vmatpush1.bf16.msra.mxu1 %v11674_v41 }
 0x98e   : > { %9420 = vmatprep.subr.bf16.mxu0 %v11681_v50  ;;  %9584 = vmatprep.subr.bf16.mxu1 %v11683_v0 }
 0x991   : > { %9421 = vmatpush1.bf16.msra.mxu0 %v11680_v49  ;;  %9585 = vmatpush1.bf16.msra.mxu1 %v11682_v12 }
 0x992   : > { %9422 = vmatprep.subr.bf16.mxu0 %v11689_v62  ;;  %9586 = vmatprep.subr.bf16.mxu1 %v11691_v36 }
 0x995   : > { %9423 = vmatpush1.bf16.msra.mxu0 %v11688_v59  ;;  %9587 = vmatpush1.bf16.msra.mxu1 %v11690_v53  ;;  %v12244_v59 = vld [vmem:[%s15122_s16] sm:$0xff]  }
 0x996   : > { %9424 = vmatprep.subr.bf16.mxu0 %v11697_v7  ;;  %9588 = vmatprep.subr.bf16.mxu1 %v11699_v6  ;;  %v12245_v53 = vld [vmem:[%s15122_s16 + $0x80] sm:$0xff]   ;;  %v12246_v7 = vld [vmem:[%s15122_s16 + $0x48] sm:$0xff]  }
 0x997   : > { %v12247_v6 = vld [vmem:[%s15122_s16 + $0xc8] sm:$0xff]  }
 0x999   : > { %9425 = vmatpush1.bf16.msra.mxu0 %v11696_v55  ;;  %9589 = vmatpush1.bf16.msra.mxu1 %v11698_v17 }
 0x99a   : > { %9426 = vmatprep.subr.bf16.mxu0 %v11705_v21  ;;  %9590 = vmatprep.subr.bf16.mxu1 %v11707_v23 }
 0x99d   : > { %9427 = vmatpush1.bf16.msra.mxu0 %v11704_v51  ;;  %9591 = vmatpush1.bf16.msra.mxu1 %v11706_v27 }
 0x99e   : > { %11791 = vmatprep.subr.bf16.mxu0 %v12242_v5  ;;  %11813 = vmatprep.subr.bf16.mxu1 %v12243_v43  ;;  %v12265_v5 = vld [vmem:[%s15122_s16 + $0xa8] sm:$0xff]   ;;  %v12266_v43 = vld [vmem:[%s15122_s16 + $0x70] sm:$0xff]  }
 0x9a0   : > { %9429 = vmatmul.mubr.bf16.vlgmr.msra.gmra.mrb[4].mxu0 %v14404_v35  ;;  %9593 = vmatmul.mubr.bf16.vlgmr.msra.gmra.mrb[4].mxu1 %v14404_v35  ;;  %v6298_v35 = vrot.slane %v6285_v2, %v14691_v25 }
 0x9a1   : > { %11792 = vmatpush3.bf16.msra.mxu0 %v12244_v59  ;;  %11814 = vmatpush3.bf16.msra.mxu1 %v12245_v53  ;;  %v12267_v59 = vld [vmem:[%s15122_s16 + $0xf0] sm:$0xff]  }
 0x9a2   : > { %v11977_v4 = vadd.f32 %v14640_v57, %v6298_v35  ;;  %v14722_v57 = vsub.s32 7, %v14107_v3  ;;  %11793 = vmatprep.subr.bf16.mxu0 %v12246_v7  ;;  %11815 = vmatprep.subr.bf16.mxu1 %v12247_v6  ;;  %v12268_v53 = vld [vmem:[%s15122_s16 + $0x30] sm:$0xff]   ;;  %v12270_v6 = vld [vmem:[%s15122_s16 + $0x78] sm:$0xff]  }
 0x9a3   : > { %v12269_v7 = vld [vmem:[%s15122_s16 + $0xb0] sm:$0xff]  }
 0x9a4   : > { %v9605_v20 = vsel %vm9601_vm2, %v11977_v4, 0.0  ;;  %v6318_v32 = vrot.slane %v6285_v2, %v14722_v57 }
 0x9a5   : > { %v9606_v10 = vadd.f32 %v9605_v20, %v9604_v44  ;;  %11794 = vmatpush3.bf16.msra.mxu0 %v12248_v22  ;;  %11816 = vmatpush3.bf16.msra.mxu1 %v12249_v45  ;;  %v12271_v22 = vld [vmem:[%s15122_s16 + $0xf8] sm:$0xff]  }
 0x9a6   : > { %11795 = vmatprep.subr.bf16.mxu0 %v12250_v9  ;;  %11817 = vmatprep.subr.bf16.mxu1 %v12251_v48  ;;  %v12272_v45 = vld [vmem:[%s15122_s16 + $0x38] sm:$0xff]   ;;  %v12274_v48 = vld [vmem:[%s15122_s16 + $0x140] sm:$0xff]  }
 0x9a7   : > { %v9608_v46 = vadd.f32 %v9607_v54, %v9606_v10  ;;  %v12273_v9 = vld [vmem:[%s15122_s16 + $0xb8] sm:$0xff]  }
 0xa73   : > { %v9430_v38 = vpop.f32.mrb[4].mxu0  ;;  %v9594_v40 = vpop.f32.mrb[4].mxu1 }
 0xa74   : > { %v11979_v30 = vadd.f32 %v9430_v38, %v6306_v56  ;;  %v9432_v13 = vpop.f32.mrb[5].mxu0  ;;  %v9596_v34 = vpop.f32.mrb[5].mxu1  ;;  %v11981_v50 = vadd.f32 %v9594_v40, %v6314_v37 }
 0xa75   : > { %v11980_v31 = vadd.f32 %v9432_v13, %v6310_v8  ;;  %v9434_v41 = vpop.f32.mrb[6].mxu0  ;;  %v9598_v0 = vpop.f32.mrb[6].mxu1  ;;  %v11982_v49 = vadd.f32 %v9596_v34, %v6318_v32 }
 0xa76   : > { %v9609_v3 = vsel %vm9601_vm2, %v11979_v30, 0.0  ;;  %v9435_v61 = vpop.f32.mrb[7].mxu0  ;;  %v9599_v58 = vpop.f32.mrb[7].mxu1  ;;  %v9613_v62 = vsel %vm9601_vm2, %v11981_v50, 0.0  ;;  %v12254_v0 = vld [vmem:[%s15122_s16 + $0x58] sm:$0xff]  }
 0xa77   : > { %v9610_v33 = vadd.f32 %v9609_v3, %v9608_v46  ;;  %v9611_v47 = vsel %vm9601_vm2, %v11980_v31, 0.0  ;;  %v9615_v16 = vsel %vm9601_vm2, %v11982_v49, 0.0  ;;  %v12252_v3 = vld [vmem:[%s15122_s16 + $0x10] sm:$0xff]   ;;  %v12255_v61 = vld [vmem:[%s15122_s16 + $0xd8] sm:$0xff]   ;;  %v12258_v58 = vld [vmem:[%s15122_s16 + $0x60] sm:$0xff]  }
 0xa78   : > { %11796 = vmatpush3.bf16.msra.mxu0 %v12252_v3 }
 0xa79   : > { %v9612_v12 = vadd.f32 %v9611_v47, %v9610_v33  ;;  %v12256_v33 = vld [vmem:[%s15122_s16 + $0x18] sm:$0xff]   ;;  %11797 = vmatprep.subr.bf16.mxu0 %v12254_v0 }
 0xa7a   : > { %v12257_v47 = vld [vmem:[%s15122_s16 + $0x98] sm:$0xff]  }
 0xa7b   : > { %v9614_v36 = vadd.f32 %v9613_v62, %v9612_v12  ;;  %v12260_v12 = vld [vmem:[%s15122_s16 + $0x20] sm:$0xff]  }
 0xa7c   : > { %11798 = vmatpush3.bf16.msra.mxu0 %v12256_v33  ;;  %v12261_v62 = vld [vmem:[%s15122_s16 + $0xa0] sm:$0xff]  }
 0xa7d   : > { %v9616_v1 = vadd.f32 %v9615_v16, %v9614_v36  ;;  %11799 = vmatprep.subr.bf16.mxu0 %v12258_v58  ;;  %v12262_v36 = vld [vmem:[%s15122_s16 + $0x68] sm:$0xff]  }
 0xa7e   : > { %v12263_v16 = vld [vmem:[%s15122_s16 + $0xe8] sm:$0xff]  }
 0xa7f   : > { %9617 = vadd.xlane.f32.xlu0 %v9616_v1  ;;  %v12264_v1 = vld [vmem:[%s15122_s16 + $0x28] sm:$0xff]  }
 0xa80   : > { %11800 = vmatpush3.bf16.msra.mxu0 %v12260_v12  ;;  %v12278_v58 = vld [vmem:[%s15122_s16 + $0x148] sm:$0xff]  }
 0xa81   : > { %11801 = vmatprep.subr.bf16.mxu0 %v12262_v36  ;;  %v12280_v36 = vld [vmem:[%s15122_s16 + $0x108] sm:$0xff]  }
 0xa84   : > { %11802 = vmatpush3.bf16.msra.mxu0 %v12264_v1  ;;  %v12282_v1 = vld [vmem:[%s15122_s16 + $0x150] sm:$0xff]  }
 0xa85   : > { %11803 = vmatprep.subr.bf16.mxu0 %v12266_v43  ;;  %v12284_v43 = vld [vmem:[%s15122_s16 + $0x110] sm:$0xff]  }
 0xa88   : > { %11804 = vmatpush3.bf16.msra.mxu0 %v12268_v53  ;;  %v12286_v53 = vld [vmem:[%s15122_s16 + $0x158] sm:$0xff]  }
 0xa89   : > { %11805 = vmatprep.subr.bf16.mxu0 %v12270_v6  ;;  %v12288_v6 = vld [vmem:[%s15122_s16 + $0x118] sm:$0xff]  }
 0xa8c   : > { %11806 = vmatpush3.bf16.msra.mxu0 %v12272_v45  ;;  %v12290_v45 = vld [vmem:[%s15122_s16 + $0x160] sm:$0xff]  }
 0xa8d   : > { %11835 = vmatprep.subr.bf16.mxu0 %v12274_v48  ;;  %v12292_v48 = vld [vmem:[%s15122_s16 + $0x120] sm:$0xff]  }
 0xb0c   : > { %v9618_v55 = vpop.xlane.xlu0 %9617 }
 0xb0d   : > { %v9620_v17 = vmul.f32 0.0009765625, %v9618_v55  ;;  %v12275_v55 = vld [vmem:[%s15122_s16 + $0x1c0] sm:$0xff]  }
 0xb0f   : > { %v14763_v21 = vsub.f32 %v14694_v26, %v9620_v17  ;;  %v14766_v23 = vsub.f32 %v14697_v14, %v9620_v17  ;;  %v14768_v51 = vsub.f32 %v11977_v4, %v9620_v17  ;;  %v14770_v27 = vsub.f32 %v11978_v19, %v9620_v17 }
 0xb10   : > { %v14772_v2 = vsub.f32 %v11979_v30, %v9620_v17  ;;  %v14780_v26 = vsub.f32 %v11980_v31, %v9620_v17  ;;  %v14786_v39 = vsub.f32 %v11981_v50, %v9620_v17  ;;  %v14791_v56 = vsub.f32 %v11982_v49, %v9620_v17  ;;  %v12253_v50 = vld [vmem:[%s15122_s16 + $0x90] sm:$0xff]   ;;  %v12259_v49 = vld [vmem:[%s15122_s16 + $0xe0] sm:$0xff]  }
 0xb11   : > { %v9629_v11 = vmul.f32 %v14763_v21, %v14763_v21  ;;  %v9630_v15 = vmul.f32 %v14766_v23, %v14766_v23  ;;  %v9631_v35 = vmul.f32 %v14768_v51, %v14768_v51  ;;  %v9632_v14 = vmul.f32 %v14770_v27, %v14770_v27  ;;  %11818 = vmatpush3.bf16.msra.mxu1 %v12253_v50 }
 0xb12   : > { %v9633_v44 = vmul.f32 %v14772_v2, %v14772_v2  ;;  %v9634_v10 = vmul.f32 %v14780_v26, %v14780_v26  ;;  %v9635_v38 = vmul.f32 %v14786_v39, %v14786_v39  ;;  %v9636_v40 = vmul.f32 %v14791_v56, %v14791_v56  ;;  %11819 = vmatprep.subr.bf16.mxu1 %v12255_v61 }
 0xb13   : > { %v9637_v28 = vsel %vm9601_vm2, %v9629_v11, 0.0  ;;  %v9638_v52 = vsel %vm9601_vm2, %v9630_v15, 0.0  ;;  %v9640_v20 = vsel %vm9601_vm2, %v9631_v35, 0.0  ;;  %v9642_v8 = vsel %vm9601_vm2, %v9632_v14, 0.0  ;;  %v14876_v35 = vld [vmem:[#allocation19] sm:$0xff]  ;;  %v14878_v14 = vld [vmem:[#allocation21] sm:$0xff] }
 0xb14   : > { %v9639_v4 = vadd.f32 %v9638_v52, %v9637_v28  ;;  %v9644_v54 = vsel %vm9601_vm2, %v9633_v44, 0.0  ;;  %v9646_v13 = vsel %vm9601_vm2, %v9634_v10, 0.0  ;;  %v9648_v46 = vsel %vm9601_vm2, %v9635_v38, 0.0 }
 0xb15   : > { %v9650_v34 = vsel %vm9601_vm2, %v9636_v40, 0.0  ;;  %11820 = vmatpush3.bf16.msra.mxu1 %v12257_v47  ;;  %v9670_v28 = vrot.slane %v14876_v35, %v14683_v24  ;;  %v9678_v52 = vrot.slane %v14876_v35, %v14691_v25  ;;  %v9682_v44 = vrot.slane %v14876_v35, %v14701_v60 }
 0xb16   : > { %v9641_v19 = vadd.f32 %v9640_v20, %v9639_v4  ;;  %11821 = vmatprep.subr.bf16.mxu1 %v12259_v49  ;;  %v9674_v4 = vrot.slane %v14876_v35, %v14686_v42  ;;  %v9690_v20 = vrot.slane %v14876_v35, %v14713_v29  ;;  %v9720_v38 = vrot.slane %v14878_v14, %v14683_v24  ;;  %v12279_v49 = vld [vmem:[%s15122_s16 + $0x1c8] sm:$0xff]  }
 0xb17   : > { %v9740_v24 = vrot.slane %v14878_v14, %v14713_v29 }
 0xb18   : > { %v9643_v37 = vadd.f32 %v9642_v8, %v9641_v19  ;;  %v9698_v19 = vrot.slane %v14876_v35, %v14722_v57  ;;  %v9724_v8 = vrot.slane %v14878_v14, %v14686_v42 }
 0xb19   : > { %11822 = vmatpush3.bf16.msra.mxu1 %v12261_v62 }
 0xb1a   : > { %v9645_v30 = vadd.f32 %v9644_v54, %v9643_v37  ;;  %11823 = vmatprep.subr.bf16.mxu1 %v12263_v16  ;;  %v9732_v37 = vrot.slane %v14878_v14, %v14701_v60  ;;  %v9728_v54 = vrot.slane %v14878_v14, %v14691_v25  ;;  %v12281_v16 = vld [vmem:[%s15122_s16 + $0x188] sm:$0xff]  }
 0xb1c   : > { %v9647_v32 = vadd.f32 %v9646_v13, %v9645_v30 }
 0xb1d   : > { %11824 = vmatpush3.bf16.msra.mxu1 %v12265_v5  ;;  %v12283_v5 = vld [vmem:[%s15122_s16 + $0x1d0] sm:$0xff]  }
 0xb1e   : > { %v9649_v31 = vadd.f32 %v9648_v46, %v9647_v32  ;;  %11825 = vmatprep.subr.bf16.mxu1 %v12267_v59  ;;  %v12285_v59 = vld [vmem:[%s15122_s16 + $0x190] sm:$0xff]  }
 0xb20   : > { %v9651_v41 = vadd.f32 %v9650_v34, %v9649_v31 }
 0xb21   : > { %11826 = vmatpush3.bf16.msra.mxu1 %v12269_v7  ;;  %v12287_v7 = vld [vmem:[%s15122_s16 + $0x1d8] sm:$0xff]  }
 0xb22   : > { %9652 = vadd.xlane.f32.xlu0 %v9651_v41  ;;  %11827 = vmatprep.subr.bf16.mxu1 %v12271_v22  ;;  %v12289_v22 = vld [vmem:[%s15122_s16 + $0x198] sm:$0xff]  }
 0xb25   : > { %11828 = vmatpush3.bf16.msra.mxu1 %v12273_v9  ;;  %v12291_v9 = vld [vmem:[%s15122_s16 + $0x1e0] sm:$0xff]  }
 0xb26   : > { %11857 = vmatprep.subr.bf16.mxu1 %v12275_v55  ;;  %v12293_v55 = vld [vmem:[%s15122_s16 + $0x1a0] sm:$0xff]  }
 0xbaf   : > { %v9653_v17 = vpop.xlane.xlu0 %9652 }
 0xbb0   : > { %v9654_v11 = vmul.f32 0.0009765625, %v9653_v17  ;;  %v12294_v17 = vld [vmem:[%s15122_s16 + $0x168] sm:$0xff]  }
 0xbb2   : > { %v9655_v15 = vadd.f32 1e-05, %v9654_v11  ;;  %v12295_v11 = vld [vmem:[%s15122_s16 + $0x1e8] sm:$0xff]  }
 0xbb4   : > { %12306 = vrsqrt.f32 %v9655_v15  ;;  %v9686_v15 = vrot.slane %v14876_v35, %v14710_v63 }
 0xbbe   : > { %v14892_v10 = vpop.eup %12306 }
 0xbbf   : > { %v9658_v30 = vmul.f32 %v14892_v10, %v14766_v23  ;;  %v9660_v40 = vmul.f32 %v14892_v10, %v14770_v27  ;;  %v9657_v13 = vmul.f32 %v14892_v10, %v14763_v21  ;;  %v9659_v42 = vmul.f32 %v14892_v10, %v14768_v51 }
 0xbc0   : > { %v9662_v60 = vmul.f32 %v14892_v10, %v14780_v26  ;;  %v9664_v25 = vmul.f32 %v14892_v10, %v14791_v56  ;;  %v9748_v23 = vrot.slane %v14878_v14, %v14722_v57  ;;  %v12276_v57 = vld [vmem:[%s15122_s16 + $0x100] sm:$0xff]  }
 0xbc1   : > { %v9708_v32 = vmul.f32 %v9674_v4, %v9658_v30  ;;  %v9710_v27 = vmul.f32 %v9682_v44, %v9660_v40  ;;  %v9707_v46 = vmul.f32 %v9670_v28, %v9657_v13  ;;  %v9709_v31 = vmul.f32 %v9678_v52, %v9659_v42  ;;  %v12277_v56 = vld [vmem:[%s15122_s16 + $0x180] sm:$0xff]   ;;  %v12296_v28 = vld [vmem:[%s15122_s16 + $0x128] sm:$0xff]   ;;  %v12298_v44 = vld [vmem:[%s15122_s16 + $0x170] sm:$0xff]  }
 0xbc2   : > { %v9712_v21 = vmul.f32 %v9690_v20, %v9662_v60  ;;  %v9714_v34 = vmul.f32 %v9698_v19, %v9664_v25  ;;  %v12297_v52 = vld [vmem:[%s15122_s16 + $0x1a8] sm:$0xff]   ;;  %v9694_v4 = vrot.slane %v14876_v35, %v14716_v18  ;;  %v12299_v20 = vld [vmem:[%s15122_s16 + $0x1f0] sm:$0xff]   ;;  %v9661_v19 = vmul.f32 %v14892_v10, %v14772_v2  ;;  %v12302_v2 = vld [vmem:[%s15122_s16 + $0x178] sm:$0xff]  }
 0xbc3   : > { %v9758_v41 = vadd.f32 %v9724_v8, %v9708_v32  ;;  %v9760_v51 = vadd.f32 %v9732_v37, %v9710_v27  ;;  %v9757_v3 = vadd.f32 %v9720_v38, %v9707_v46  ;;  %v9759_v50 = vadd.f32 %v9728_v54, %v9709_v31  ;;  %v12300_v35 = vld [vmem:[%s15122_s16 + $0x130] sm:$0xff]   ;;  %v12305_v40 = vld [vmem:[%s15122_s16 + $0x1b8] sm:$0xff]  }
 0xbc4   : > { %v9762_v26 = vadd.f32 %v9740_v24, %v9712_v21  ;;  %v9764_v0 = vadd.f32 %v9748_v23, %v9714_v34  ;;  %v9663_v8 = vmul.f32 %v14892_v10, %v14786_v39  ;;  %v12301_v37 = vld [vmem:[%s15122_s16 + $0x1b0] sm:$0xff]   ;;  %v9736_v38 = vrot.slane %v14878_v14, %v14710_v63  ;;  %v12303_v39 = vld [vmem:[%s15122_s16 + $0x1f8] sm:$0xff]  }
 0xbc5   : > { %v9766_v61 = vpack.c.bf16 %v9758_v41, %v9758_v41  ;;  %v9768_v29 = vpack.c.bf16 %v9760_v51, %v9760_v51  ;;  %v9765_v33 = vpack.c.bf16 %v9757_v3, %v9757_v3  ;;  %v9767_v47 = vpack.c.bf16 %v9759_v50, %v9759_v50  ;;  %v12304_v63 = vld [vmem:[%s15122_s16 + $0x138] sm:$0xff]  }
 0xbc6   : > { %v9770_v12 = vpack.c.bf16 %v9762_v26, %v9762_v26  ;;  %v9772_v62 = vpack.c.bf16 %v9764_v0, %v9764_v0  ;;  %v9711_v10 = vmul.f32 %v9686_v15, %v9661_v19  ;;  %v9713_v54 = vmul.f32 %v9694_v4, %v9663_v8  ;;  %v11708_v25 = vld [vmem:[#allocation22] ss:$0 sm:$0xff] }
 0xbc7   : > { %10324 = vmatprep.mubr.bf16.mxu0 %v9766_v61  ;;  %10364 = vmatprep.mubr.bf16.mxu1 %v9768_v29  ;;  %v9744_v30 = vrot.slane %v14878_v14, %v14716_v18 }
 0xbc8   : > { %10325 = vmatmul.mubr.bf16.vlgmr.msra.gmra.mrb[8].mxu0 %v9765_v33  ;;  %10365 = vmatmul.mubr.bf16.vlgmr.msra.gmra.mrb[8].mxu1 %v9767_v47  ;;  %v9761_v13 = vadd.f32 %v9736_v38, %v9711_v10 }
 0xbc9   : > { %11836 = vmatpush3.bf16.msra.mxu0 %v12276_v57  ;;  %11858 = vmatpush3.bf16.msra.mxu1 %v12277_v56  ;;  %v9763_v42 = vadd.f32 %v9744_v30, %v9713_v54 }
 0xbca   : > { %10404 = vmatprep.mubr.bf16.mxu0 %v9770_v12  ;;  %10444 = vmatprep.mubr.bf16.mxu1 %v9772_v62  ;;  %v9769_v60 = vpack.c.bf16 %v9761_v13, %v9761_v13 }
 0xbcb   : > { %11837 = vmatprep.subr.bf16.mxu0 %v12278_v58  ;;  %11859 = vmatprep.subr.bf16.mxu1 %v12279_v49  ;;  %v9771_v24 = vpack.c.bf16 %v9763_v42, %v9763_v42 }
 0xbcd   : > { %11838 = vmatpush3.bf16.msra.mxu0 %v12280_v36  ;;  %11860 = vmatpush3.bf16.msra.mxu1 %v12281_v16 }
 0xbce   : > { %11839 = vmatprep.subr.bf16.mxu0 %v12282_v1  ;;  %11861 = vmatprep.subr.bf16.mxu1 %v12283_v5 }
 0xbd1   : > { %11840 = vmatpush3.bf16.msra.mxu0 %v12284_v43  ;;  %11862 = vmatpush3.bf16.msra.mxu1 %v12285_v59 }
 0xbd2   : > { %11841 = vmatprep.subr.bf16.mxu0 %v12286_v53  ;;  %11863 = vmatprep.subr.bf16.mxu1 %v12287_v7 }
 0xbd5   : > { %11842 = vmatpush3.bf16.msra.mxu0 %v12288_v6  ;;  %11864 = vmatpush3.bf16.msra.mxu1 %v12289_v22 }
 0xbd6   : > { %11843 = vmatprep.subr.bf16.mxu0 %v12290_v45  ;;  %11865 = vmatprep.subr.bf16.mxu1 %v12291_v9 }
 0xbd9   : > { %11844 = vmatpush3.bf16.msra.mxu0 %v12292_v48  ;;  %11866 = vmatpush3.bf16.msra.mxu1 %v12293_v55 }
 0xbda   : > { %11845 = vmatprep.subr.bf16.mxu0 %v12294_v17  ;;  %11867 = vmatprep.subr.bf16.mxu1 %v12295_v11 }
 0xbdd   : > { %11846 = vmatpush3.bf16.msra.mxu0 %v12296_v28  ;;  %11868 = vmatpush3.bf16.msra.mxu1 %v12297_v52 }
 0xbde   : > { %11847 = vmatprep.subr.bf16.mxu0 %v12298_v44  ;;  %11869 = vmatprep.subr.bf16.mxu1 %v12299_v20 }
 0xbe1   : > { %11848 = vmatpush3.bf16.msra.mxu0 %v12300_v35  ;;  %11870 = vmatpush3.bf16.msra.mxu1 %v12301_v37 }
 0xbe2   : > { %11849 = vmatprep.subr.bf16.mxu0 %v12302_v2  ;;  %11871 = vmatprep.subr.bf16.mxu1 %v12303_v39 }
 0xbe5   : > { %11850 = vmatpush3.bf16.msra.mxu0 %v12304_v63  ;;  %11872 = vmatpush3.bf16.msra.mxu1 %v12305_v40 }
 0xbe8   : > { %10405 = vmatmul.mubr.bf16.vlgmr.msra.gmra.mrb[12].mxu0 %v9769_v60  ;;  %10445 = vmatmul.mubr.bf16.vlgmr.msra.gmra.mrb[12].mxu1 %v9771_v24 }
 0xc9b   : > { %v11807_v18 = vpop.f32.mrb[8].mxu0  ;;  %v11829_v14 = vpop.f32.mrb[8].mxu1 }
 0xc9c   : > { %v11808_v23 = vpop.f32.mrb[9].mxu0  ;;  %v11830_v32 = vpop.f32.mrb[9].mxu1 }
 0xc9d   : > { %v11809_v27 = vadd.f32 %v11808_v23, %v11807_v18  ;;  %v11831_v46 = vadd.f32 %v11830_v32, %v11829_v14  ;;  %v11810_v31 = vpop.f32.mrb[10].mxu0  ;;  %v11832_v21 = vpop.f32.mrb[10].mxu1 }
 0xc9e   : > { %v11811_v34 = vpop.f32.mrb[11].mxu0  ;;  %v11833_v41 = vpop.f32.mrb[11].mxu1 }
 0xc9f   : > { %v10327_v51 = vadd.f32 %v11809_v27, %v11708_v25 }
 0xca1   : > { %v10367_v3 = vadd.f32 %v11831_v46, %v10327_v51 }
 0xcbb   : > { %v11851_v50 = vpop.f32.mrb[12].mxu0  ;;  %v11873_v26 = vpop.f32.mrb[12].mxu1 }
 0xcbc   : > { %v11852_v0 = vpop.f32.mrb[13].mxu0  ;;  %v11874_v61 = vpop.f32.mrb[13].mxu1 }
 0xcbd   : > { %v11853_v29 = vadd.f32 %v11852_v0, %v11851_v50  ;;  %v11875_v33 = vadd.f32 %v11874_v61, %v11873_v26  ;;  %v11854_v47 = vpop.f32.mrb[14].mxu0  ;;  %v11876_v57 = vpop.f32.mrb[14].mxu1 }
 0xcbe   : > { %v11855_v56 = vpop.f32.mrb[15].mxu0  ;;  %v11877_v58 = vpop.f32.mrb[15].mxu1 }
 0xcbf   : > { %v10407_v49 = vadd.f32 %v11853_v29, %v10367_v3 }
 0xcc1   : > { %v10447_v12 = vadd.f32 %v11875_v33, %v10407_v49 }
 0xcc3   : > { %10453 = vst.msk [vmem:[#allocation24] sm:$0x3] %vm10452_vm3, %v10447_v12 }
 0xcc4 PF: > { %s15123_s11 = sld [smem:[#allocation35_spill]]  ;;  %s12767_s24 = smov [#allocation24]  }
 0xcc5   : > { %s10461_s21 = sshll.u32 %s12767_s24, 4  ;;  %s10462_s21 = int_to_ptr.vmem [resolvable:$true] %s10461_s21 }
 0xcc6   : > { %s12646_s19 = scalar_lea.vmem %s10462_s21, 32  ;;  %p12653_p8 = scmp.lt.s32.totalorder %s10462_s21, %s10462_s21 }
 0xcc7   : > { %p12647_p5 = scmp.ne.s32.totalorder %s10462_s21, %s12646_s19  ;;  %p12654_p1 = scmp.lt.s32.totalorder %s12646_s19, %s12646_s19 }
 0xcc9   : > { %p12655_p0 = por %p12654_p1, %p12653_p8 }
 0xcca   : > { %p12142_p2 = scmp.eq.s32.totalorder %s15123_s11, 3 }
 0xccc   : > { %p12648_p9 = pnand %p12647_p5, %p12142_p2 }
 0xcce   : > { %p12649_p10 = pneg %p12648_p9 }
 0xcd0   : > { %p12656_p7 = pnand %p12655_p0, %p12649_p10 }
 0xcd2   : > { %12659 = shalt.err (!%p12656_p7)
}
 0xcd3   : > { %s15124_s17 = sld [smem:[#allocation40_spill]] }
 0xcd9   : > { %s12660_s25 = scalar_lea.hbm %s15124_s17, 32 }
 0xcda   : > { %p12661_p3 = scmp.ne.s32.totalorder %s15124_s17, %s12660_s25  ;;  %p12666_p12 = scmp.lt.u32.totalorder %s12660_s25, %s15124_s17 }
 0xcdc   : > { %p12662_p4 = pnand %p12661_p3, %p12142_p2 }
 0xcde   : > { %p12663_p11 = pneg %p12662_p4 }
 0xce0   : > { %p12668_p13 = pnand %p12666_p12, %p12663_p11 }
 0xce2   : > { %12671 = shalt.err (!%p12668_p13)
}
 0xce3   : > { %12078 = dma.vmem_to_hbm [thread:$0]  (%p12142_p2), %s10462_s21, 32, %s15124_s17, [#allocation7]  }
 0xce4   : > { %12725 = dma.done.wait (%p12142_p2), [#allocation7], 32  }
 0xce5   : > { %12727 = vsyncadd (%p12142_p2), [#allocation7], 4294967264 }
 0xce6 PF: > { %p27_p6 = scmp.ge.s32.totalorder %s13105_s23, 6   ;;  %s15125_s25 = smov %s12734_s26 }
 0xce7   : > { %s15126_s26 = smov %s12738_s27  ;;  %s15127_s27 = smov %s13116_s29 }
 0xce8   : > { %s15128_s28 = smov %s13105_s23  ;;  %29 = sbr.rel (!%p27_p6) target bundleno = 13 (0xd), region = 171 }
 0xcef   :  { %10474 = vsyncpa [#allocation6], 1 }
 0xcf0   :  { %10476 = vsyncpa [#allocation6 + $0x1], 1 }
 0xcf1   :  { %10477 = vsyncpa [#allocation9], 1 }
 0xcf2   :  { %10478 = vsyncpa [#allocation12], 1 }
 0xcf3   :  { %10479 = vsyncpa [#allocation17], 1 }
 0xcf4   :  { %10480 = vsyncpa [#allocation20], 1 }
 0xcf5   :  { %10481 = vsyncpa [#allocation23], 1 }
 0xcf6   :  { %10482 = vsyncpa [#allocation7], 1 }
 0xcf7   :  { %10484 = vsyncpa [#allocation7 + $0x1], 1 }

</bundles_post_ra>
